<compile_context>
chip_gen: v6e
topology: v6e:2x2x1
jax: 0.10.0
libtpu: 0.0.40
codegen_flags: <defaults>
</compile_context>

<pallas_src>
import jax
import jax.numpy as jnp
from jax.experimental import pallas as pl
from jax.experimental.pallas import tpu as pltpu

_TAPS = tuple((dy, dx) for dy in range(3) for dx in range(3))


def build_forward(in_size, out_classes, filters, pool_every, hidden_dims):
    """Builds a jitted forward(params, x_nchw) backed by one fused Pallas kernel."""
    C0, H0, W0 = in_size
    n_blocks = len(filters) // pool_every

    # Static layer plan: (cin, cout, h, w) per conv layer (h,w = input spatial size).
    conv_plan = []
    cin, h, w = C0, H0, W0
    ci = 0
    for _ in range(n_blocks):
        for _ in range(pool_every):
            cout = filters[ci]
            conv_plan.append((cin, cout, h, w))
            cin, ci = cout, ci + 1
        h //= 2
        w //= 2
    Cf, Hf, Wf = cin, h, w
    fc_dims = [Cf * Hf * Wf] + list(hidden_dims) + [out_classes]
    n_conv, n_fc = len(conv_plan), len(fc_dims) - 1

    # ------------------------------- fused kernel -------------------------------
    def kernel(*refs):
        it = iter(refs)
        x_ref = next(it)
        conv_w, conv_b = [], []
        for _ in range(n_conv):
            conv_w.append(next(it)); conv_b.append(next(it))
        fc_w, fc_b = [], []
        for _ in range(n_fc):
            fc_w.append(next(it)); fc_b.append(next(it))
        o_ref = next(it)
        pad_refs, col_refs = [], []
        for _ in range(n_conv):
            pad_refs.append(next(it)); col_refs.append(next(it))
        pool_refs = [next(it) for _ in range(n_blocks)]
        flat_ref = next(it)

        cur = x_ref[0]                                        # (H0, W0, C0) NHWC tile
        li = 0
        for blk in range(n_blocks):
            a = None
            for _ in range(pool_every):
                cin_l, cout_l, hh, ww = conv_plan[li]
                pad_ref, col_ref = pad_refs[li], col_refs[li]
                # zero-pad halo entirely in VMEM, then write the interior.
                pad_ref[...] = jnp.zeros_like(pad_ref)
                pad_ref[1:hh + 1, 1:ww + 1, :] = cur
                xp = pad_ref[...]
                # im2col: one (hh*ww, 9*cin) patch matrix -> single GEMM on the MXU.
                for k, (dy, dx) in enumerate(_TAPS):
                    col_ref[:, k * cin_l:(k + 1) * cin_l] = (
                        xp[dy:dy + hh, dx:dx + ww, :].reshape(hh * ww, cin_l))
                a = jnp.dot(col_ref[...], conv_w[li][...],
                            preferred_element_type=jnp.float32)
                a = jnp.maximum(a + conv_b[li][...], 0.0)     # (hh*ww, cout)
                cur = a.reshape(hh, ww, cout_l)
                li += 1

            # 2x2 maxpool (stride 2), fully in VMEM.
            _, cout_l, hh, ww = conv_plan[li - 1]
            h2, w2 = hh // 2, ww // 2
            ps = pool_refs[blk]
            ps[...] = a                                       # rows p = y*ww + x
            half = (hh * ww) // 2
            xmax = jnp.maximum(ps[pl.ds(0, half, 2), :],      # pool along W:
                               ps[pl.ds(1, half, 2), :])      # adjacent flat rows
            xr = xmax.reshape(h2, 2, w2, cout_l)              # (y2, y_lo, x2, c)
            cur = jnp.maximum(xr[:, 0], xr[:, 1])             # (h2, w2, cout) pooled

        # Flatten into a lane-dense (Hf, Wf*Cf) scratch row-block. PyTorch's C,H,W
        # flatten order is absorbed by the wrapper-side FC1 weight permutation.
        for x2 in range(Wf):
            flat_ref[:, x2 * Cf:(x2 + 1) * Cf] = cur[:, x2, :]
        fv = flat_ref[...]                                    # (Hf, Wf*Cf)

        # Fused classifier: FC1 accumulated over the Hf rows, then remaining FCs.
        z = fc_b[0][...]                                      # (1, d1)
        for y in range(Hf):
            z = z + jnp.dot(fv[y:y + 1, :], fc_w[0][y],
                            preferred_element_type=jnp.float32)
        if n_fc > 1:
            z = jnp.maximum(z, 0.0)
        for i in range(1, n_fc):
            z = jnp.dot(z, fc_w[i][...],
                        preferred_element_type=jnp.float32) + fc_b[i][...]
            if i < n_fc - 1:
                z = jnp.maximum(z, 0.0)
        o_ref[0] = z.astype(o_ref.dtype)

    # --------------------------------- wrapper ----------------------------------
    def forward(params, x_nchw):
        B = x_nchw.shape[0]
        x = jnp.transpose(x_nchw, (0, 2, 3, 1))               # NCHW -> NHWC (input only)

        operands = [x]
        in_specs = [pl.BlockSpec((1, H0, W0, C0), lambda b: (b, 0, 0, 0))]
        for li, (wk, bk) in enumerate(params["convs"]):
            cin_l, cout_l, _, _ = conv_plan[li]
            # OIHW -> (9*Cin, Cout), row index = (dy*3 + dx)*Cin + c  (matches im2col)
            w2d = jnp.transpose(wk, (2, 3, 1, 0)).reshape(9 * cin_l, cout_l)
            operands += [w2d, bk.reshape(1, cout_l)]
            in_specs += [pl.BlockSpec((9 * cin_l, cout_l), lambda b: (0, 0)),
                         pl.BlockSpec((1, cout_l), lambda b: (0, 0))]

        w1, b1 = params["linears"][0]
        d1 = fc_dims[1]
        # (Cf*Hf*Wf, d1) with PyTorch (c, y, x) row order -> (Hf, Wf*Cf, d1) with
        # row layout (y)(x-major, c-minor) matching the in-kernel flat scratch.
        w1p = (w1.reshape(Cf, Hf, Wf, d1).transpose(1, 2, 0, 3)
                 .reshape(Hf, Wf * Cf, d1))
        operands += [w1p, b1.reshape(1, d1)]
        in_specs += [pl.BlockSpec((Hf, Wf * Cf, d1), lambda b: (0, 0, 0)),
                     pl.BlockSpec((1, d1), lambda b: (0, 0))]
        for i in range(1, n_fc):
            wi, bi = params["linears"][i]
            din, dout = fc_dims[i], fc_dims[i + 1]
            operands += [wi, bi.reshape(1, dout)]
            in_specs += [pl.BlockSpec((din, dout), lambda b: (0, 0)),
                         pl.BlockSpec((1, dout), lambda b: (0, 0))]

        scratch = []
        for (cin_l, cout_l, hh, ww) in conv_plan:
            scratch.append(pltpu.VMEM((hh + 2, ww + 2, cin_l), jnp.float32))  # pad halo
            scratch.append(pltpu.VMEM((hh * ww, 9 * cin_l), jnp.float32))     # im2col
        for blk in range(n_blocks):
            _, cout_l, hh, ww = conv_plan[(blk + 1) * pool_every - 1]
            scratch.append(pltpu.VMEM((hh * ww, cout_l), jnp.float32))        # pool buf
        scratch.append(pltpu.VMEM((Hf, Wf * Cf), jnp.float32))                # flatten

        out = pl.pallas_call(
            kernel,
            out_shape=jax.ShapeDtypeStruct((B, 1, out_classes), jnp.float32),
            grid=(B,),
            in_specs=in_specs,
            out_specs=pl.BlockSpec((1, 1, out_classes), lambda b: (b, 0, 0)),
            scratch_shapes=scratch,
            compiler_params=pltpu.CompilerParams(
                dimension_semantics=("parallel",)),
        )(*operands)
        return out.reshape(B, out_classes)

    return jax.jit(forward)


# ------------------------------ params & reference ------------------------------
def init_params(key, in_size, out_classes, filters, pool_every, hidden_dims):
    """Deterministic synthetic params with the same shapes/semantics as nn.Module."""
    C, H, W = in_size
    params = {"convs": [], "linears": []}
    in_ch, h, w = C, H, W
    ci = 0
    for _ in range(len(filters) // pool_every):
        for _ in range(pool_every):
            cout = filters[ci]
            key, k1, k2 = jax.random.split(key, 3)
            scale = (in_ch * 9) ** -0.5
            wk = jax.random.uniform(k1, (cout, in_ch, 3, 3), jnp.float32, -scale, scale)
            bk = jax.random.uniform(k2, (cout,), jnp.float32, -scale, scale)
            params["convs"].append((wk, bk))
            in_ch = cout
            ci += 1
        h //= 2
        w //= 2
    in_features = in_ch * h * w
    for d in list(hidden_dims) + [out_classes]:
        key, k1, k2 = jax.random.split(key, 3)
        scale = in_features ** -0.5
        wl = jax.random.uniform(k1, (in_features, d), jnp.float32, -scale, scale)
        bl = jax.random.uniform(k2, (d,), jnp.float32, -scale, scale)
        params["linears"].append((wl, bl))
        in_features = d
    return params


def reference_forward(params, x_nchw, pool_every):
    """Pure-JAX reference mirroring the PyTorch module exactly (NCHW)."""
    h = x_nchw
    n_blocks = len(params["convs"]) // pool_every
    li = 0
    for _ in range(n_blocks):
        for _ in range(pool_every):
            wk, bk = params["convs"][li]
            h = jax.lax.conv_general_dilated(
                h, wk, window_strides=(1, 1), padding=((1, 1), (1, 1)),
                dimension_numbers=("NCHW", "OIHW", "NCHW"))
            h = jnp.maximum(h + bk[None, :, None, None], 0.0)
            li += 1
        h = jax.lax.reduce_window(h, -jnp.inf, jax.lax.max,
                                  (1, 1, 2, 2), (1, 1, 2, 2), "VALID")
    h = h.reshape(h.shape[0], -1)
    n_lin = len(params["linears"])
    for i, (wl, bl) in enumerate(params["linears"]):
        h = h @ wl + bl
        if i < n_lin - 1:
            h = jnp.maximum(h, 0.0)
    return h


if __name__ == "__main__":
    in_size = (4, 16, 16)
    out_classes = 10
    filters = [8, 16]
    pool_every = 2
    hidden_dims = [32]
    B = 2

    key = jax.random.PRNGKey(0)
    kx, kp = jax.random.split(key)
    x = jax.random.normal(kx, (B,) + in_size, jnp.float32)
    params = init_params(kp, in_size, out_classes, filters, pool_every, hidden_dims)

    fwd = build_forward(in_size, out_classes, filters, pool_every, hidden_dims)
    out = jax.block_until_ready(fwd(params, x))

    ref = reference_forward(params, x, pool_every)
    assert out.shape == (B, out_classes)
    max_err = float(jnp.max(jnp.abs(out - ref)))
    assert jnp.allclose(out, ref, atol=1e-4, rtol=1e-4), max_err

    print("KERNEL_OK")
</pallas_src>

<mosaic_0001>
module attributes {stable_mosaic.version = 11 : i64} {
  func.func @kernel(%arg0: i32, %arg1: memref<1x16x16x4xf32, #tpu.memory_space<vmem>>, %arg2: memref<36x8xf32, #tpu.memory_space<vmem>>, %arg3: memref<1x8xf32, #tpu.memory_space<vmem>>, %arg4: memref<72x16xf32, #tpu.memory_space<vmem>>, %arg5: memref<1x16xf32, #tpu.memory_space<vmem>>, %arg6: memref<8x128x32xf32, #tpu.memory_space<vmem>>, %arg7: memref<1x32xf32, #tpu.memory_space<vmem>>, %arg8: memref<32x10xf32, #tpu.memory_space<vmem>>, %arg9: memref<1x10xf32, #tpu.memory_space<vmem>>, %arg10: memref<1x1x10xf32, #tpu.memory_space<vmem>>, %arg11: memref<18x18x4xf32, #tpu.memory_space<vmem>>, %arg12: memref<256x36xf32, #tpu.memory_space<vmem>>, %arg13: memref<18x18x8xf32, #tpu.memory_space<vmem>>, %arg14: memref<256x72xf32, #tpu.memory_space<vmem>>, %arg15: memref<256x16xf32, #tpu.memory_space<vmem>>, %arg16: memref<8x128xf32, #tpu.memory_space<vmem>>) attributes {dimension_semantics = [#tpu.dimension_semantics<parallel>], iteration_bounds = array<i64: 2>, scalar_prefetch = 0 : i64, scratch_operands = 6 : i64, tpu.core_type = #tpu.core_type<tc>, window_params = [{transform_indices = @transform_0, window_bounds = array<i64: 1, 16, 16, 4>}, {pipeline_mode = #tpu.pipeline_mode<synchronous>, transform_indices = @transform_1, window_bounds = array<i64: 36, 8>}, {pipeline_mode = #tpu.pipeline_mode<synchronous>, transform_indices = @transform_2, window_bounds = array<i64: 1, 8>}, {pipeline_mode = #tpu.pipeline_mode<synchronous>, transform_indices = @transform_3, window_bounds = array<i64: 72, 16>}, {pipeline_mode = #tpu.pipeline_mode<synchronous>, transform_indices = @transform_4, window_bounds = array<i64: 1, 16>}, {pipeline_mode = #tpu.pipeline_mode<synchronous>, transform_indices = @transform_5, window_bounds = array<i64: 8, 128, 32>}, {pipeline_mode = #tpu.pipeline_mode<synchronous>, transform_indices = @transform_6, window_bounds = array<i64: 1, 32>}, {pipeline_mode = #tpu.pipeline_mode<synchronous>, transform_indices = @transform_7, window_bounds = array<i64: 32, 10>}, {pipeline_mode = #tpu.pipeline_mode<synchronous>, transform_indices = @transform_8, window_bounds = array<i64: 1, 10>}, {transform_indices = @transform_9, window_bounds = array<i64: 1, 1, 10>}]} {
    %c0 = arith.constant 0 : index
    %c0_0 = arith.constant 0 : index
    %c0_1 = arith.constant 0 : index
    %c0_2 = arith.constant 0 : index
    %0 = vector.load %arg1[%c0, %c0_0, %c0_1, %c0_2] : memref<1x16x16x4xf32, #tpu.memory_space<vmem>>, vector<1x16x16x4xf32>
    %1 = vector.shape_cast %0 : vector<1x16x16x4xf32> to vector<16x16x4xf32>
    %cst = arith.constant 0.000000e+00 : f32
    %2 = vector.broadcast %cst : f32 to vector<18x18x4xf32>
    %c0_3 = arith.constant 0 : index
    %c0_4 = arith.constant 0 : index
    %c0_5 = arith.constant 0 : index
    %3 = vector.load %arg11[%c0_3, %c0_4, %c0_5] : memref<18x18x4xf32, #tpu.memory_space<vmem>>, vector<18x18x4xf32>
    tpu.vector_store %arg11[%c0_3, %c0_4, %c0_5], %2 {strides = array<i32>} : memref<18x18x4xf32, #tpu.memory_space<vmem>>, vector<18x18x4xf32>,
    %c1 = arith.constant 1 : index
    %c1_6 = arith.constant 1 : index
    %c0_7 = arith.constant 0 : index
    %4 = vector.load %arg11[%c1, %c1_6, %c0_7] : memref<18x18x4xf32, #tpu.memory_space<vmem>>, vector<16x16x4xf32>
    tpu.vector_store %arg11[%c1, %c1_6, %c0_7], %1 {strides = array<i32>} : memref<18x18x4xf32, #tpu.memory_space<vmem>>, vector<16x16x4xf32>,
    %c0_8 = arith.constant 0 : index
    %c0_9 = arith.constant 0 : index
    %c0_10 = arith.constant 0 : index
    %5 = vector.load %arg11[%c0_8, %c0_9, %c0_10] : memref<18x18x4xf32, #tpu.memory_space<vmem>>, vector<18x18x4xf32>
    %6 = vector.extract_strided_slice %5 {offsets = [0, 0, 0], sizes = [16, 16, 4], strides = [1, 1, 1]} : vector<18x18x4xf32> to vector<16x16x4xf32>
    %7 = vector.shape_cast %6 : vector<16x16x4xf32> to vector<256x4xf32>
    %c0_11 = arith.constant 0 : index
    %c0_12 = arith.constant 0 : index
    %8 = vector.load %arg12[%c0_11, %c0_12] : memref<256x36xf32, #tpu.memory_space<vmem>>, vector<256x4xf32>
    tpu.vector_store %arg12[%c0_11, %c0_12], %7 {strides = array<i32>} : memref<256x36xf32, #tpu.memory_space<vmem>>, vector<256x4xf32>,
    %9 = vector.extract_strided_slice %5 {offsets = [0, 1, 0], sizes = [16, 16, 4], strides = [1, 1, 1]} : vector<18x18x4xf32> to vector<16x16x4xf32>
    %10 = vector.shape_cast %9 : vector<16x16x4xf32> to vector<256x4xf32>
    %c0_13 = arith.constant 0 : index
    %c4 = arith.constant 4 : index
    %11 = vector.load %arg12[%c0_13, %c4] : memref<256x36xf32, #tpu.memory_space<vmem>>, vector<256x4xf32>
    tpu.vector_store %arg12[%c0_13, %c4], %10 {strides = array<i32>} : memref<256x36xf32, #tpu.memory_space<vmem>>, vector<256x4xf32>,
    %12 = vector.extract_strided_slice %5 {offsets = [0, 2, 0], sizes = [16, 16, 4], strides = [1, 1, 1]} : vector<18x18x4xf32> to vector<16x16x4xf32>
    %13 = vector.shape_cast %12 : vector<16x16x4xf32> to vector<256x4xf32>
    %c0_14 = arith.constant 0 : index
    %c8 = arith.constant 8 : index
    %14 = vector.load %arg12[%c0_14, %c8] : memref<256x36xf32, #tpu.memory_space<vmem>>, vector<256x4xf32>
    tpu.vector_store %arg12[%c0_14, %c8], %13 {strides = array<i32>} : memref<256x36xf32, #tpu.memory_space<vmem>>, vector<256x4xf32>,
    %15 = vector.extract_strided_slice %5 {offsets = [1, 0, 0], sizes = [16, 16, 4], strides = [1, 1, 1]} : vector<18x18x4xf32> to vector<16x16x4xf32>
    %16 = vector.shape_cast %15 : vector<16x16x4xf32> to vector<256x4xf32>
    %c0_15 = arith.constant 0 : index
    %c12 = arith.constant 12 : index
    %17 = vector.load %arg12[%c0_15, %c12] : memref<256x36xf32, #tpu.memory_space<vmem>>, vector<256x4xf32>
    tpu.vector_store %arg12[%c0_15, %c12], %16 {strides = array<i32>} : memref<256x36xf32, #tpu.memory_space<vmem>>, vector<256x4xf32>,
    %18 = vector.extract_strided_slice %5 {offsets = [1, 1, 0], sizes = [16, 16, 4], strides = [1, 1, 1]} : vector<18x18x4xf32> to vector<16x16x4xf32>
    %19 = vector.shape_cast %18 : vector<16x16x4xf32> to vector<256x4xf32>
    %c0_16 = arith.constant 0 : index
    %c16 = arith.constant 16 : index
    %20 = vector.load %arg12[%c0_16, %c16] : memref<256x36xf32, #tpu.memory_space<vmem>>, vector<256x4xf32>
    tpu.vector_store %arg12[%c0_16, %c16], %19 {strides = array<i32>} : memref<256x36xf32, #tpu.memory_space<vmem>>, vector<256x4xf32>,
    %21 = vector.extract_strided_slice %5 {offsets = [1, 2, 0], sizes = [16, 16, 4], strides = [1, 1, 1]} : vector<18x18x4xf32> to vector<16x16x4xf32>
    %22 = vector.shape_cast %21 : vector<16x16x4xf32> to vector<256x4xf32>
    %c0_17 = arith.constant 0 : index
    %c20 = arith.constant 20 : index
    %23 = vector.load %arg12[%c0_17, %c20] : memref<256x36xf32, #tpu.memory_space<vmem>>, vector<256x4xf32>
    tpu.vector_store %arg12[%c0_17, %c20], %22 {strides = array<i32>} : memref<256x36xf32, #tpu.memory_space<vmem>>, vector<256x4xf32>,
    %24 = vector.extract_strided_slice %5 {offsets = [2, 0, 0], sizes = [16, 16, 4], strides = [1, 1, 1]} : vector<18x18x4xf32> to vector<16x16x4xf32>
    %25 = vector.shape_cast %24 : vector<16x16x4xf32> to vector<256x4xf32>
    %c0_18 = arith.constant 0 : index
    %c24 = arith.constant 24 : index
    %26 = vector.load %arg12[%c0_18, %c24] : memref<256x36xf32, #tpu.memory_space<vmem>>, vector<256x4xf32>
    tpu.vector_store %arg12[%c0_18, %c24], %25 {strides = array<i32>} : memref<256x36xf32, #tpu.memory_space<vmem>>, vector<256x4xf32>,
    %27 = vector.extract_strided_slice %5 {offsets = [2, 1, 0], sizes = [16, 16, 4], strides = [1, 1, 1]} : vector<18x18x4xf32> to vector<16x16x4xf32>
    %28 = vector.shape_cast %27 : vector<16x16x4xf32> to vector<256x4xf32>
    %c0_19 = arith.constant 0 : index
    %c28 = arith.constant 28 : index
    %29 = vector.load %arg12[%c0_19, %c28] : memref<256x36xf32, #tpu.memory_space<vmem>>, vector<256x4xf32>
    tpu.vector_store %arg12[%c0_19, %c28], %28 {strides = array<i32>} : memref<256x36xf32, #tpu.memory_space<vmem>>, vector<256x4xf32>,
    %30 = vector.extract_strided_slice %5 {offsets = [2, 2, 0], sizes = [16, 16, 4], strides = [1, 1, 1]} : vector<18x18x4xf32> to vector<16x16x4xf32>
    %31 = vector.shape_cast %30 : vector<16x16x4xf32> to vector<256x4xf32>
    %c0_20 = arith.constant 0 : index
    %c32 = arith.constant 32 : index
    %32 = vector.load %arg12[%c0_20, %c32] : memref<256x36xf32, #tpu.memory_space<vmem>>, vector<256x4xf32>
    tpu.vector_store %arg12[%c0_20, %c32], %31 {strides = array<i32>} : memref<256x36xf32, #tpu.memory_space<vmem>>, vector<256x4xf32>,
    %c0_21 = arith.constant 0 : index
    %c0_22 = arith.constant 0 : index
    %33 = vector.load %arg12[%c0_21, %c0_22] : memref<256x36xf32, #tpu.memory_space<vmem>>, vector<256x36xf32>
    %c0_23 = arith.constant 0 : index
    %c0_24 = arith.constant 0 : index
    %34 = vector.load %arg2[%c0_23, %c0_24] : memref<36x8xf32, #tpu.memory_space<vmem>>, vector<36x8xf32>
    %cst_25 = arith.constant dense<0.000000e+00> : vector<256x8xf32>
    %35 = tpu.matmul %33, %34, %cst_25 {dimension_numbers = #tpu.dot_dimension_numbers<[1], [0], [0], [1], [0, 0, 1, 1], [], []>} : vector<256x36xf32>, vector<36x8xf32>, vector<256x8xf32> -> vector<256x8xf32>
    %c0_26 = arith.constant 0 : index
    %c0_27 = arith.constant 0 : index
    %36 = vector.load %arg3[%c0_26, %c0_27] : memref<1x8xf32, #tpu.memory_space<vmem>>, vector<1x8xf32>
    %37 = vector.broadcast %36 : vector<1x8xf32> to vector<256x8xf32>
    %38 = arith.addf %35, %37 : vector<256x8xf32>
    %cst_28 = arith.constant 0.000000e+00 : f32
    %39 = vector.broadcast %cst_28 : f32 to vector<256x8xf32>
    %40 = arith.maximumf %38, %39 : vector<256x8xf32>
    %41 = vector.shape_cast %40 : vector<256x8xf32> to vector<16x16x8xf32>
    %cst_29 = arith.constant 0.000000e+00 : f32
    %42 = vector.broadcast %cst_29 : f32 to vector<18x18x8xf32>
    %c0_30 = arith.constant 0 : index
    %c0_31 = arith.constant 0 : index
    %c0_32 = arith.constant 0 : index
    %43 = vector.load %arg13[%c0_30, %c0_31, %c0_32] : memref<18x18x8xf32, #tpu.memory_space<vmem>>, vector<18x18x8xf32>
    tpu.vector_store %arg13[%c0_30, %c0_31, %c0_32], %42 {strides = array<i32>} : memref<18x18x8xf32, #tpu.memory_space<vmem>>, vector<18x18x8xf32>,
    %c1_33 = arith.constant 1 : index
    %c1_34 = arith.constant 1 : index
    %c0_35 = arith.constant 0 : index
    %44 = vector.load %arg13[%c1_33, %c1_34, %c0_35] : memref<18x18x8xf32, #tpu.memory_space<vmem>>, vector<16x16x8xf32>
    tpu.vector_store %arg13[%c1_33, %c1_34, %c0_35], %41 {strides = array<i32>} : memref<18x18x8xf32, #tpu.memory_space<vmem>>, vector<16x16x8xf32>,
    %c0_36 = arith.constant 0 : index
    %c0_37 = arith.constant 0 : index
    %c0_38 = arith.constant 0 : index
    %45 = vector.load %arg13[%c0_36, %c0_37, %c0_38] : memref<18x18x8xf32, #tpu.memory_space<vmem>>, vector<18x18x8xf32>
    %46 = vector.extract_strided_slice %45 {offsets = [0, 0, 0], sizes = [16, 16, 8], strides = [1, 1, 1]} : vector<18x18x8xf32> to vector<16x16x8xf32>
    %47 = vector.shape_cast %46 : vector<16x16x8xf32> to vector<256x8xf32>
    %c0_39 = arith.constant 0 : index
    %c0_40 = arith.constant 0 : index
    %48 = vector.load %arg14[%c0_39, %c0_40] : memref<256x72xf32, #tpu.memory_space<vmem>>, vector<256x8xf32>
    tpu.vector_store %arg14[%c0_39, %c0_40], %47 {strides = array<i32>} : memref<256x72xf32, #tpu.memory_space<vmem>>, vector<256x8xf32>,
    %49 = vector.extract_strided_slice %45 {offsets = [0, 1, 0], sizes = [16, 16, 8], strides = [1, 1, 1]} : vector<18x18x8xf32> to vector<16x16x8xf32>
    %50 = vector.shape_cast %49 : vector<16x16x8xf32> to vector<256x8xf32>
    %c0_41 = arith.constant 0 : index
    %c8_42 = arith.constant 8 : index
    %51 = vector.load %arg14[%c0_41, %c8_42] : memref<256x72xf32, #tpu.memory_space<vmem>>, vector<256x8xf32>
    tpu.vector_store %arg14[%c0_41, %c8_42], %50 {strides = array<i32>} : memref<256x72xf32, #tpu.memory_space<vmem>>, vector<256x8xf32>,
    %52 = vector.extract_strided_slice %45 {offsets = [0, 2, 0], sizes = [16, 16, 8], strides = [1, 1, 1]} : vector<18x18x8xf32> to vector<16x16x8xf32>
    %53 = vector.shape_cast %52 : vector<16x16x8xf32> to vector<256x8xf32>
    %c0_43 = arith.constant 0 : index
    %c16_44 = arith.constant 16 : index
    %54 = vector.load %arg14[%c0_43, %c16_44] : memref<256x72xf32, #tpu.memory_space<vmem>>, vector<256x8xf32>
    tpu.vector_store %arg14[%c0_43, %c16_44], %53 {strides = array<i32>} : memref<256x72xf32, #tpu.memory_space<vmem>>, vector<256x8xf32>,
    %55 = vector.extract_strided_slice %45 {offsets = [1, 0, 0], sizes = [16, 16, 8], strides = [1, 1, 1]} : vector<18x18x8xf32> to vector<16x16x8xf32>
    %56 = vector.shape_cast %55 : vector<16x16x8xf32> to vector<256x8xf32>
    %c0_45 = arith.constant 0 : index
    %c24_46 = arith.constant 24 : index
    %57 = vector.load %arg14[%c0_45, %c24_46] : memref<256x72xf32, #tpu.memory_space<vmem>>, vector<256x8xf32>
    tpu.vector_store %arg14[%c0_45, %c24_46], %56 {strides = array<i32>} : memref<256x72xf32, #tpu.memory_space<vmem>>, vector<256x8xf32>,
    %58 = vector.extract_strided_slice %45 {offsets = [1, 1, 0], sizes = [16, 16, 8], strides = [1, 1, 1]} : vector<18x18x8xf32> to vector<16x16x8xf32>
    %59 = vector.shape_cast %58 : vector<16x16x8xf32> to vector<256x8xf32>
    %c0_47 = arith.constant 0 : index
    %c32_48 = arith.constant 32 : index
    %60 = vector.load %arg14[%c0_47, %c32_48] : memref<256x72xf32, #tpu.memory_space<vmem>>, vector<256x8xf32>
    tpu.vector_store %arg14[%c0_47, %c32_48], %59 {strides = array<i32>} : memref<256x72xf32, #tpu.memory_space<vmem>>, vector<256x8xf32>,
    %61 = vector.extract_strided_slice %45 {offsets = [1, 2, 0], sizes = [16, 16, 8], strides = [1, 1, 1]} : vector<18x18x8xf32> to vector<16x16x8xf32>
    %62 = vector.shape_cast %61 : vector<16x16x8xf32> to vector<256x8xf32>
    %c0_49 = arith.constant 0 : index
    %c40 = arith.constant 40 : index
    %63 = vector.load %arg14[%c0_49, %c40] : memref<256x72xf32, #tpu.memory_space<vmem>>, vector<256x8xf32>
    tpu.vector_store %arg14[%c0_49, %c40], %62 {strides = array<i32>} : memref<256x72xf32, #tpu.memory_space<vmem>>, vector<256x8xf32>,
    %64 = vector.extract_strided_slice %45 {offsets = [2, 0, 0], sizes = [16, 16, 8], strides = [1, 1, 1]} : vector<18x18x8xf32> to vector<16x16x8xf32>
    %65 = vector.shape_cast %64 : vector<16x16x8xf32> to vector<256x8xf32>
    %c0_50 = arith.constant 0 : index
    %c48 = arith.constant 48 : index
    %66 = vector.load %arg14[%c0_50, %c48] : memref<256x72xf32, #tpu.memory_space<vmem>>, vector<256x8xf32>
    tpu.vector_store %arg14[%c0_50, %c48], %65 {strides = array<i32>} : memref<256x72xf32, #tpu.memory_space<vmem>>, vector<256x8xf32>,
    %67 = vector.extract_strided_slice %45 {offsets = [2, 1, 0], sizes = [16, 16, 8], strides = [1, 1, 1]} : vector<18x18x8xf32> to vector<16x16x8xf32>
    %68 = vector.shape_cast %67 : vector<16x16x8xf32> to vector<256x8xf32>
    %c0_51 = arith.constant 0 : index
    %c56 = arith.constant 56 : index
    %69 = vector.load %arg14[%c0_51, %c56] : memref<256x72xf32, #tpu.memory_space<vmem>>, vector<256x8xf32>
    tpu.vector_store %arg14[%c0_51, %c56], %68 {strides = array<i32>} : memref<256x72xf32, #tpu.memory_space<vmem>>, vector<256x8xf32>,
    %70 = vector.extract_strided_slice %45 {offsets = [2, 2, 0], sizes = [16, 16, 8], strides = [1, 1, 1]} : vector<18x18x8xf32> to vector<16x16x8xf32>
    %71 = vector.shape_cast %70 : vector<16x16x8xf32> to vector<256x8xf32>
    %c0_52 = arith.constant 0 : index
    %c64 = arith.constant 64 : index
    %72 = vector.load %arg14[%c0_52, %c64] : memref<256x72xf32, #tpu.memory_space<vmem>>, vector<256x8xf32>
    tpu.vector_store %arg14[%c0_52, %c64], %71 {strides = array<i32>} : memref<256x72xf32, #tpu.memory_space<vmem>>, vector<256x8xf32>,
    %c0_53 = arith.constant 0 : index
    %c0_54 = arith.constant 0 : index
    %73 = vector.load %arg14[%c0_53, %c0_54] : memref<256x72xf32, #tpu.memory_space<vmem>>, vector<256x72xf32>
    %c0_55 = arith.constant 0 : index
    %c0_56 = arith.constant 0 : index
    %74 = vector.load %arg4[%c0_55, %c0_56] : memref<72x16xf32, #tpu.memory_space<vmem>>, vector<72x16xf32>
    %cst_57 = arith.constant dense<0.000000e+00> : vector<256x16xf32>
    %75 = tpu.matmul %73, %74, %cst_57 {dimension_numbers = #tpu.dot_dimension_numbers<[1], [0], [0], [1], [0, 0, 1, 1], [], []>} : vector<256x72xf32>, vector<72x16xf32>, vector<256x16xf32> -> vector<256x16xf32>
    %c0_58 = arith.constant 0 : index
    %c0_59 = arith.constant 0 : index
    %76 = vector.load %arg5[%c0_58, %c0_59] : memref<1x16xf32, #tpu.memory_space<vmem>>, vector<1x16xf32>
    %77 = vector.broadcast %76 : vector<1x16xf32> to vector<256x16xf32>
    %78 = arith.addf %75, %77 : vector<256x16xf32>
    %cst_60 = arith.constant 0.000000e+00 : f32
    %79 = vector.broadcast %cst_60 : f32 to vector<256x16xf32>
    %80 = arith.maximumf %78, %79 : vector<256x16xf32>
    %c0_61 = arith.constant 0 : index
    %c0_62 = arith.constant 0 : index
    %81 = vector.load %arg15[%c0_61, %c0_62] : memref<256x16xf32, #tpu.memory_space<vmem>>, vector<256x16xf32>
    tpu.vector_store %arg15[%c0_61, %c0_62], %80 {strides = array<i32>} : memref<256x16xf32, #tpu.memory_space<vmem>>, vector<256x16xf32>,
    %c0_63 = arith.constant 0 : index
    %c0_64 = arith.constant 0 : index
    %82 = tpu.strided_load %arg15[%c0_63, %c0_64] {strides = array<i32: 2, 1>} : memref<256x16xf32, #tpu.memory_space<vmem>>, vector<128x16xf32>
    %c1_65 = arith.constant 1 : index
    %c0_66 = arith.constant 0 : index
    %83 = tpu.strided_load %arg15[%c1_65, %c0_66] {strides = array<i32: 2, 1>} : memref<256x16xf32, #tpu.memory_space<vmem>>, vector<128x16xf32>
    %84 = arith.maximumf %82, %83 : vector<128x16xf32>
    %85 = vector.shape_cast %84 : vector<128x16xf32> to vector<8x2x8x16xf32>
    %86 = vector.extract_strided_slice %85 {offsets = [0, 0, 0, 0], sizes = [8, 1, 8, 16], strides = [1, 1, 1, 1]} : vector<8x2x8x16xf32> to vector<8x1x8x16xf32>
    %87 = vector.shape_cast %86 : vector<8x1x8x16xf32> to vector<8x8x16xf32>
    %88 = vector.extract_strided_slice %85 {offsets = [0, 1, 0, 0], sizes = [8, 1, 8, 16], strides = [1, 1, 1, 1]} : vector<8x2x8x16xf32> to vector<8x1x8x16xf32>
    %89 = vector.shape_cast %88 : vector<8x1x8x16xf32> to vector<8x8x16xf32>
    %90 = arith.maximumf %87, %89 : vector<8x8x16xf32>
    %91 = vector.extract_strided_slice %90 {offsets = [0, 0, 0], sizes = [8, 1, 16], strides = [1, 1, 1]} : vector<8x8x16xf32> to vector<8x1x16xf32>
    %92 = vector.shape_cast %91 : vector<8x1x16xf32> to vector<8x16xf32>
    %c0_67 = arith.constant 0 : index
    %c0_68 = arith.constant 0 : index
    %93 = vector.load %arg16[%c0_67, %c0_68] : memref<8x128xf32, #tpu.memory_space<vmem>>, vector<8x16xf32>
    tpu.vector_store %arg16[%c0_67, %c0_68], %92 {strides = array<i32>} : memref<8x128xf32, #tpu.memory_space<vmem>>, vector<8x16xf32>,
    %94 = vector.extract_strided_slice %90 {offsets = [0, 1, 0], sizes = [8, 1, 16], strides = [1, 1, 1]} : vector<8x8x16xf32> to vector<8x1x16xf32>
    %95 = vector.shape_cast %94 : vector<8x1x16xf32> to vector<8x16xf32>
    %c0_69 = arith.constant 0 : index
    %c16_70 = arith.constant 16 : index
    %96 = vector.load %arg16[%c0_69, %c16_70] : memref<8x128xf32, #tpu.memory_space<vmem>>, vector<8x16xf32>
    tpu.vector_store %arg16[%c0_69, %c16_70], %95 {strides = array<i32>} : memref<8x128xf32, #tpu.memory_space<vmem>>, vector<8x16xf32>,
    %97 = vector.extract_strided_slice %90 {offsets = [0, 2, 0], sizes = [8, 1, 16], strides = [1, 1, 1]} : vector<8x8x16xf32> to vector<8x1x16xf32>
    %98 = vector.shape_cast %97 : vector<8x1x16xf32> to vector<8x16xf32>
    %c0_71 = arith.constant 0 : index
    %c32_72 = arith.constant 32 : index
    %99 = vector.load %arg16[%c0_71, %c32_72] : memref<8x128xf32, #tpu.memory_space<vmem>>, vector<8x16xf32>
    tpu.vector_store %arg16[%c0_71, %c32_72], %98 {strides = array<i32>} : memref<8x128xf32, #tpu.memory_space<vmem>>, vector<8x16xf32>,
    %100 = vector.extract_strided_slice %90 {offsets = [0, 3, 0], sizes = [8, 1, 16], strides = [1, 1, 1]} : vector<8x8x16xf32> to vector<8x1x16xf32>
    %101 = vector.shape_cast %100 : vector<8x1x16xf32> to vector<8x16xf32>
    %c0_73 = arith.constant 0 : index
    %c48_74 = arith.constant 48 : index
    %102 = vector.load %arg16[%c0_73, %c48_74] : memref<8x128xf32, #tpu.memory_space<vmem>>, vector<8x16xf32>
    tpu.vector_store %arg16[%c0_73, %c48_74], %101 {strides = array<i32>} : memref<8x128xf32, #tpu.memory_space<vmem>>, vector<8x16xf32>,
    %103 = vector.extract_strided_slice %90 {offsets = [0, 4, 0], sizes = [8, 1, 16], strides = [1, 1, 1]} : vector<8x8x16xf32> to vector<8x1x16xf32>
    %104 = vector.shape_cast %103 : vector<8x1x16xf32> to vector<8x16xf32>
    %c0_75 = arith.constant 0 : index
    %c64_76 = arith.constant 64 : index
    %105 = vector.load %arg16[%c0_75, %c64_76] : memref<8x128xf32, #tpu.memory_space<vmem>>, vector<8x16xf32>
    tpu.vector_store %arg16[%c0_75, %c64_76], %104 {strides = array<i32>} : memref<8x128xf32, #tpu.memory_space<vmem>>, vector<8x16xf32>,
    %106 = vector.extract_strided_slice %90 {offsets = [0, 5, 0], sizes = [8, 1, 16], strides = [1, 1, 1]} : vector<8x8x16xf32> to vector<8x1x16xf32>
    %107 = vector.shape_cast %106 : vector<8x1x16xf32> to vector<8x16xf32>
    %c0_77 = arith.constant 0 : index
    %c80 = arith.constant 80 : index
    %108 = vector.load %arg16[%c0_77, %c80] : memref<8x128xf32, #tpu.memory_space<vmem>>, vector<8x16xf32>
    tpu.vector_store %arg16[%c0_77, %c80], %107 {strides = array<i32>} : memref<8x128xf32, #tpu.memory_space<vmem>>, vector<8x16xf32>,
    %109 = vector.extract_strided_slice %90 {offsets = [0, 6, 0], sizes = [8, 1, 16], strides = [1, 1, 1]} : vector<8x8x16xf32> to vector<8x1x16xf32>
    %110 = vector.shape_cast %109 : vector<8x1x16xf32> to vector<8x16xf32>
    %c0_78 = arith.constant 0 : index
    %c96 = arith.constant 96 : index
    %111 = vector.load %arg16[%c0_78, %c96] : memref<8x128xf32, #tpu.memory_space<vmem>>, vector<8x16xf32>
    tpu.vector_store %arg16[%c0_78, %c96], %110 {strides = array<i32>} : memref<8x128xf32, #tpu.memory_space<vmem>>, vector<8x16xf32>,
    %112 = vector.extract_strided_slice %90 {offsets = [0, 7, 0], sizes = [8, 1, 16], strides = [1, 1, 1]} : vector<8x8x16xf32> to vector<8x1x16xf32>
    %113 = vector.shape_cast %112 : vector<8x1x16xf32> to vector<8x16xf32>
    %c0_79 = arith.constant 0 : index
    %c112 = arith.constant 112 : index
    %114 = vector.load %arg16[%c0_79, %c112] : memref<8x128xf32, #tpu.memory_space<vmem>>, vector<8x16xf32>
    tpu.vector_store %arg16[%c0_79, %c112], %113 {strides = array<i32>} : memref<8x128xf32, #tpu.memory_space<vmem>>, vector<8x16xf32>,
    %c0_80 = arith.constant 0 : index
    %c0_81 = arith.constant 0 : index
    %115 = vector.load %arg16[%c0_80, %c0_81] : memref<8x128xf32, #tpu.memory_space<vmem>>, vector<8x128xf32>
    %c0_82 = arith.constant 0 : index
    %c0_83 = arith.constant 0 : index
    %116 = vector.load %arg7[%c0_82, %c0_83] : memref<1x32xf32, #tpu.memory_space<vmem>>, vector<1x32xf32>
    %117 = vector.extract_strided_slice %115 {offsets = [0, 0], sizes = [1, 128], strides = [1, 1]} : vector<8x128xf32> to vector<1x128xf32>
    %c0_84 = arith.constant 0 : index
    %c0_85 = arith.constant 0 : index
    %c0_86 = arith.constant 0 : index
    %118 = vector.load %arg6[%c0_84, %c0_85, %c0_86] : memref<8x128x32xf32, #tpu.memory_space<vmem>>, vector<1x128x32xf32>
    %119 = vector.shape_cast %118 : vector<1x128x32xf32> to vector<128x32xf32>
    %cst_87 = arith.constant dense<0.000000e+00> : vector<1x32xf32>
    %120 = tpu.matmul %117, %119, %cst_87 {dimension_numbers = #tpu.dot_dimension_numbers<[1], [0], [0], [1], [0, 0, 1, 1], [], []>} : vector<1x128xf32>, vector<128x32xf32>, vector<1x32xf32> -> vector<1x32xf32>
    %121 = arith.addf %116, %120 : vector<1x32xf32>
    %122 = vector.extract_strided_slice %115 {offsets = [1, 0], sizes = [1, 128], strides = [1, 1]} : vector<8x128xf32> to vector<1x128xf32>
    %c1_88 = arith.constant 1 : index
    %c0_89 = arith.constant 0 : index
    %c0_90 = arith.constant 0 : index
    %123 = vector.load %arg6[%c1_88, %c0_89, %c0_90] : memref<8x128x32xf32, #tpu.memory_space<vmem>>, vector<1x128x32xf32>
    %124 = vector.shape_cast %123 : vector<1x128x32xf32> to vector<128x32xf32>
    %cst_91 = arith.constant dense<0.000000e+00> : vector<1x32xf32>
    %125 = tpu.matmul %122, %124, %cst_91 {dimension_numbers = #tpu.dot_dimension_numbers<[1], [0], [0], [1], [0, 0, 1, 1], [], []>} : vector<1x128xf32>, vector<128x32xf32>, vector<1x32xf32> -> vector<1x32xf32>
    %126 = arith.addf %121, %125 : vector<1x32xf32>
    %127 = vector.extract_strided_slice %115 {offsets = [2, 0], sizes = [1, 128], strides = [1, 1]} : vector<8x128xf32> to vector<1x128xf32>
    %c2 = arith.constant 2 : index
    %c0_92 = arith.constant 0 : index
    %c0_93 = arith.constant 0 : index
    %128 = vector.load %arg6[%c2, %c0_92, %c0_93] : memref<8x128x32xf32, #tpu.memory_space<vmem>>, vector<1x128x32xf32>
    %129 = vector.shape_cast %128 : vector<1x128x32xf32> to vector<128x32xf32>
    %cst_94 = arith.constant dense<0.000000e+00> : vector<1x32xf32>
    %130 = tpu.matmul %127, %129, %cst_94 {dimension_numbers = #tpu.dot_dimension_numbers<[1], [0], [0], [1], [0, 0, 1, 1], [], []>} : vector<1x128xf32>, vector<128x32xf32>, vector<1x32xf32> -> vector<1x32xf32>
    %131 = arith.addf %126, %130 : vector<1x32xf32>
    %132 = vector.extract_strided_slice %115 {offsets = [3, 0], sizes = [1, 128], strides = [1, 1]} : vector<8x128xf32> to vector<1x128xf32>
    %c3 = arith.constant 3 : index
    %c0_95 = arith.constant 0 : index
    %c0_96 = arith.constant 0 : index
    %133 = vector.load %arg6[%c3, %c0_95, %c0_96] : memref<8x128x32xf32, #tpu.memory_space<vmem>>, vector<1x128x32xf32>
    %134 = vector.shape_cast %133 : vector<1x128x32xf32> to vector<128x32xf32>
    %cst_97 = arith.constant dense<0.000000e+00> : vector<1x32xf32>
    %135 = tpu.matmul %132, %134, %cst_97 {dimension_numbers = #tpu.dot_dimension_numbers<[1], [0], [0], [1], [0, 0, 1, 1], [], []>} : vector<1x128xf32>, vector<128x32xf32>, vector<1x32xf32> -> vector<1x32xf32>
    %136 = arith.addf %131, %135 : vector<1x32xf32>
    %137 = vector.extract_strided_slice %115 {offsets = [4, 0], sizes = [1, 128], strides = [1, 1]} : vector<8x128xf32> to vector<1x128xf32>
    %c4_98 = arith.constant 4 : index
    %c0_99 = arith.constant 0 : index
    %c0_100 = arith.constant 0 : index
    %138 = vector.load %arg6[%c4_98, %c0_99, %c0_100] : memref<8x128x32xf32, #tpu.memory_space<vmem>>, vector<1x128x32xf32>
    %139 = vector.shape_cast %138 : vector<1x128x32xf32> to vector<128x32xf32>
    %cst_101 = arith.constant dense<0.000000e+00> : vector<1x32xf32>
    %140 = tpu.matmul %137, %139, %cst_101 {dimension_numbers = #tpu.dot_dimension_numbers<[1], [0], [0], [1], [0, 0, 1, 1], [], []>} : vector<1x128xf32>, vector<128x32xf32>, vector<1x32xf32> -> vector<1x32xf32>
    %141 = arith.addf %136, %140 : vector<1x32xf32>
    %142 = vector.extract_strided_slice %115 {offsets = [5, 0], sizes = [1, 128], strides = [1, 1]} : vector<8x128xf32> to vector<1x128xf32>
    %c5 = arith.constant 5 : index
    %c0_102 = arith.constant 0 : index
    %c0_103 = arith.constant 0 : index
    %143 = vector.load %arg6[%c5, %c0_102, %c0_103] : memref<8x128x32xf32, #tpu.memory_space<vmem>>, vector<1x128x32xf32>
    %144 = vector.shape_cast %143 : vector<1x128x32xf32> to vector<128x32xf32>
    %cst_104 = arith.constant dense<0.000000e+00> : vector<1x32xf32>
    %145 = tpu.matmul %142, %144, %cst_104 {dimension_numbers = #tpu.dot_dimension_numbers<[1], [0], [0], [1], [0, 0, 1, 1], [], []>} : vector<1x128xf32>, vector<128x32xf32>, vector<1x32xf32> -> vector<1x32xf32>
    %146 = arith.addf %141, %145 : vector<1x32xf32>
    %147 = vector.extract_strided_slice %115 {offsets = [6, 0], sizes = [1, 128], strides = [1, 1]} : vector<8x128xf32> to vector<1x128xf32>
    %c6 = arith.constant 6 : index
    %c0_105 = arith.constant 0 : index
    %c0_106 = arith.constant 0 : index
    %148 = vector.load %arg6[%c6, %c0_105, %c0_106] : memref<8x128x32xf32, #tpu.memory_space<vmem>>, vector<1x128x32xf32>
    %149 = vector.shape_cast %148 : vector<1x128x32xf32> to vector<128x32xf32>
    %cst_107 = arith.constant dense<0.000000e+00> : vector<1x32xf32>
    %150 = tpu.matmul %147, %149, %cst_107 {dimension_numbers = #tpu.dot_dimension_numbers<[1], [0], [0], [1], [0, 0, 1, 1], [], []>} : vector<1x128xf32>, vector<128x32xf32>, vector<1x32xf32> -> vector<1x32xf32>
    %151 = arith.addf %146, %150 : vector<1x32xf32>
    %152 = vector.extract_strided_slice %115 {offsets = [7, 0], sizes = [1, 128], strides = [1, 1]} : vector<8x128xf32> to vector<1x128xf32>
    %c7 = arith.constant 7 : index
    %c0_108 = arith.constant 0 : index
    %c0_109 = arith.constant 0 : index
    %153 = vector.load %arg6[%c7, %c0_108, %c0_109] : memref<8x128x32xf32, #tpu.memory_space<vmem>>, vector<1x128x32xf32>
    %154 = vector.shape_cast %153 : vector<1x128x32xf32> to vector<128x32xf32>
    %cst_110 = arith.constant dense<0.000000e+00> : vector<1x32xf32>
    %155 = tpu.matmul %152, %154, %cst_110 {dimension_numbers = #tpu.dot_dimension_numbers<[1], [0], [0], [1], [0, 0, 1, 1], [], []>} : vector<1x128xf32>, vector<128x32xf32>, vector<1x32xf32> -> vector<1x32xf32>
    %156 = arith.addf %151, %155 : vector<1x32xf32>
    %cst_111 = arith.constant 0.000000e+00 : f32
    %157 = vector.broadcast %cst_111 : f32 to vector<1x32xf32>
    %158 = arith.maximumf %156, %157 : vector<1x32xf32>
    %c0_112 = arith.constant 0 : index
    %c0_113 = arith.constant 0 : index
    %159 = vector.load %arg8[%c0_112, %c0_113] : memref<32x10xf32, #tpu.memory_space<vmem>>, vector<32x10xf32>
    %cst_114 = arith.constant dense<0.000000e+00> : vector<1x10xf32>
    %160 = tpu.matmul %158, %159, %cst_114 {dimension_numbers = #tpu.dot_dimension_numbers<[1], [0], [0], [1], [0, 0, 1, 1], [], []>} : vector<1x32xf32>, vector<32x10xf32>, vector<1x10xf32> -> vector<1x10xf32>
    %c0_115 = arith.constant 0 : index
    %c0_116 = arith.constant 0 : index
    %161 = vector.load %arg9[%c0_115, %c0_116] : memref<1x10xf32, #tpu.memory_space<vmem>>, vector<1x10xf32>
    %162 = arith.addf %160, %161 : vector<1x10xf32>
    %c0_117 = arith.constant 0 : index
    %c0_118 = arith.constant 0 : index
    %c0_119 = arith.constant 0 : index
    %163 = vector.load %arg10[%c0_117, %c0_118, %c0_119] : memref<1x1x10xf32, #tpu.memory_space<vmem>>, vector<1x1x10xf32>
    %164 = vector.shape_cast %163 : vector<1x1x10xf32> to vector<1x10xf32>
    %165 = vector.shape_cast %162 : vector<1x10xf32> to vector<1x1x10xf32>
    tpu.vector_store %arg10[%c0_117, %c0_118, %c0_119], %165 {strides = array<i32>} : memref<1x1x10xf32, #tpu.memory_space<vmem>>, vector<1x1x10xf32>,
    return
  }
  func.func @transform_0(%arg0: i32) -> (i32, i32, i32, i32) {
    %c0_i32 = arith.constant 0 : i32
    %c0_i32_0 = arith.constant 0 : i32
    %c0_i32_1 = arith.constant 0 : i32
    %c0_i32_2 = arith.constant 0 : i32
    return %arg0, %c0_i32, %c0_i32_0, %c0_i32_1 : i32, i32, i32, i32
  }
  func.func @transform_1(%arg0: i32) -> (i32, i32) {
    %c0_i32 = arith.constant 0 : i32
    %c0_i32_0 = arith.constant 0 : i32
    %c0_i32_1 = arith.constant 0 : i32
    return %c0_i32, %c0_i32_0 : i32, i32
  }
  func.func @transform_2(%arg0: i32) -> (i32, i32) {
    %c0_i32 = arith.constant 0 : i32
    %c0_i32_0 = arith.constant 0 : i32
    %c0_i32_1 = arith.constant 0 : i32
    return %c0_i32, %c0_i32_0 : i32, i32
  }
  func.func @transform_3(%arg0: i32) -> (i32, i32) {
    %c0_i32 = arith.constant 0 : i32
    %c0_i32_0 = arith.constant 0 : i32
    %c0_i32_1 = arith.constant 0 : i32
    return %c0_i32, %c0_i32_0 : i32, i32
  }
  func.func @transform_4(%arg0: i32) -> (i32, i32) {
    %c0_i32 = arith.constant 0 : i32
    %c0_i32_0 = arith.constant 0 : i32
    %c0_i32_1 = arith.constant 0 : i32
    return %c0_i32, %c0_i32_0 : i32, i32
  }
  func.func @transform_5(%arg0: i32) -> (i32, i32, i32) {
    %c0_i32 = arith.constant 0 : i32
    %c0_i32_0 = arith.constant 0 : i32
    %c0_i32_1 = arith.constant 0 : i32
    %c0_i32_2 = arith.constant 0 : i32
    return %c0_i32, %c0_i32_0, %c0_i32_1 : i32, i32, i32
  }
  func.func @transform_6(%arg0: i32) -> (i32, i32) {
    %c0_i32 = arith.constant 0 : i32
    %c0_i32_0 = arith.constant 0 : i32
    %c0_i32_1 = arith.constant 0 : i32
    return %c0_i32, %c0_i32_0 : i32, i32
  }
  func.func @transform_7(%arg0: i32) -> (i32, i32) {
    %c0_i32 = arith.constant 0 : i32
    %c0_i32_0 = arith.constant 0 : i32
    %c0_i32_1 = arith.constant 0 : i32
    return %c0_i32, %c0_i32_0 : i32, i32
  }
  func.func @transform_8(%arg0: i32) -> (i32, i32) {
    %c0_i32 = arith.constant 0 : i32
    %c0_i32_0 = arith.constant 0 : i32
    %c0_i32_1 = arith.constant 0 : i32
    return %c0_i32, %c0_i32_0 : i32, i32
  }
  func.func @transform_9(%arg0: i32) -> (i32, i32, i32) {
    %c0_i32 = arith.constant 0 : i32
    %c0_i32_0 = arith.constant 0 : i32
    %c0_i32_1 = arith.constant 0 : i32
    return %arg0, %c0_i32, %c0_i32_0 : i32, i32, i32
  }
}

</mosaic_0001>

<bundles_post_ra>
// kernel: forward.1
= control target key start
LH: loop header
LB: loop body
LE: loop exit
PB: predicated region body
PF: predicated region fallthrough
CT: control target
= control target key end

     0   :  { %14 = vsyncpa [#allocation9], 0  ;;  %s9201_s0 = inlined_call_operand.vmem [shape: f32[2,16,16,4], index: 0, kind: input, shape index: {}]   ;;  %s9202_s1 = inlined_call_operand.vmem [shape: f32[36,8], index: 1, kind: input, shape index: {}]   ;;  %s9203_s2 = inlined_call_operand.vmem [shape: f32[1,8], index: 2, kind: input, shape index: {}]   ;;  %s9204_s3 = inlined_call_operand.vmem [shape: f32[72,16], index: 3, kind: input, shape index: {}]   ;;  %s9205_s4 = inlined_call_operand.vmem [shape: f32[1,16], index: 4, kind: input, shape index: {}]   ;;  %s9206_s5 = inlined_call_operand.vmem [shape: f32[8,128,32], index: 5, kind: input, shape index: {}]   ;;  %s9207_s6 = inlined_call_operand.vmem [shape: f32[1,32], index: 6, kind: input, shape index: {}]   ;;  %s9208_s7 = inlined_call_operand.vmem [shape: f32[32,10], index: 7, kind: input, shape index: {}]   ;;  %s9209_s8 = inlined_call_operand.vmem [shape: f32[1,10], index: 8, kind: input, shape index: {}]   ;;  %s9210_s9 = inlined_call_operand.hbm [shape: f32[2,1,10], index: 9, kind: output, shape index: {}]  }
   0x1   :  { %16 = vsyncpa [#allocation9 + $0x1], 0  ;;  %s6196_s30 = smov 0   ;;  %s6198_s10 = smov 0  }
   0x2   :  { %s6200_s11 = smov 0   ;;  %s6202_s12 = smov 0  }
   0x3 LB: > { %s6217_s13 = sadd.s32 4294967295, %s6126_s12   ;;  %s5183_s14 = sadd.s32 4294967294, %s6126_s12   ;;  %s6126_s12 = sphi %s6202_s12, %s9228_s12   ;;  %s6122_s11 = sphi %s6200_s11, %s9227_s11   ;;  %s6118_s10 = sphi %s6198_s10, %s9226_s10   ;;  %s6114_s30 = sphi %s6196_s30, %s9225_s30  }
   0x4   : > { %s6221_s15 = sadd.s32 1, %s6126_s12   ;;  %s223_s16 = sadd.s32 1, %s6122_s11 }
   0x5   : > { %s220_s17 = ssub.s32 %s6126_s12, %s6221_s15  ;;  %p233_p0 = scmp.ne.s32.totalorder %s6122_s11, %s6118_s10 }
   0x6   : > { %p221_p1 = scmp.eq.s32.totalorder %s220_s17, 0  ;;  %p234_p2 = scmp.eq.s32.totalorder %s6217_s13, 1 }
   0x7   : > { %p239_p3 = scmp.ne.s32.totalorder %s6118_s10, %s6114_s30  ;;  %p240_p4 = scmp.eq.s32.totalorder %s5183_s14, 1 }
   0x8   : > { %s6232_s18 = scalar_select %p221_p1, %s6122_s11, %s223_s16  }
   0x9   : > { %p6234_p5 = por %p234_p2, %p233_p0  ;;  %p6238_p6 = por %p240_p4, %p239_p3 }
   0xa   : > { %p5186_p7 = scmp.ge.s32.totalorder %s6126_s12, 1  ;;  %p290_p8 = scmp.lt.s32.totalorder %s6126_s12, 3 }
   0xc   : > { %p291_p9 = pnand %p5186_p7, %p290_p8 }
   0xd   : > { %p325_p10 = scmp.lt.s32.totalorder (!%p291_p9), %s6217_s13, 1  ;;  %s9213_s26 = smov (!%p291_p9), 8  }
   0xe   : > { %294 = sbr.rel (%p291_p9) target bundleno = 2058 (0x80a), region = 56  ;;  %s6130_s27 = smov (!%p291_p9), 4  }
   0xf   : > { %s6131_s28 = smov (!%p291_p9), 12   ;;  %s6132_s29 = smov (!%p291_p9), 16  }
  0x10   : > { %s6133_s14 = smov (!%p291_p9), 20   ;;  %s9211_s16 = smov (!%p291_p9), 24  }
  0x11   : > { %s6135_s17 = smov (!%p291_p9), 28   ;;  %s6136_s23 = smov (!%p291_p9), 32  }
  0x12   : > { %s6139_s24 = smov (!%p291_p9), 56  }
  0x13   : > { %vm362_vm0 = vcmask 31744   ;;  %v6128_v0 = vmov 0.0   ;;  %vm365_vm1 = vcmask 25600   ;;  %s326_s21 = scalar_select %p325_p10, %s6217_s13, 1  ;;  %vm795_vm2 = vcmask 1045504   ;;  %v1840_v57 = vld [vmem:[%s9202_s1 + $0x18] sm:$0xff] }
  0x14   : > { %363 = vst.msk [vmem:[#allocation2] sm:$0xff] %vm362_vm0, %v6128_v0  ;;  %364 = vst.msk [vmem:[#allocation2 + $0x8] sm:$0xff] %vm362_vm0, %v6128_v0  ;;  %vm585_vm3 = vcmask 1046528   ;;  %v1841_v53 = vld [vmem:[%s9202_s1 + $0x20] sm:$0xf]  ;;  %vm1946_vm4 = vcmask 1043456  }
  0x15   : > { %367 = vst.msk [vmem:[#allocation2 + $0x18] sm:$0xff] %vm362_vm0, %v6128_v0  ;;  %368 = vst.msk [vmem:[#allocation2 + $0x20] sm:$0xff] %vm362_vm0, %v6128_v0  ;;  %s5372_s22 = sshll.u32 %s326_s21, 8  ;;  %5592 = vmatprep.subr.msk.mxu0 %vm1946_vm4, %v1841_v53  ;;  %v1839_v58 = vld [vmem:[%s9202_s1 + $0x10] sm:$0xff]  ;;  %v1838_v61 = vld [vmem:[%s9202_s1 + $0x8] sm:$0xff]  ;;  %vm762_vm5 = vcmask 64544  }
  0x16   : > { %370 = vst.msk [vmem:[#allocation2 + $0x30] sm:$0xff] %vm362_vm0, %v6128_v0  ;;  %371 = vst.msk [vmem:[#allocation2 + $0x38] sm:$0xff] %vm362_vm0, %v6128_v0  ;;  %s6359_s25 = scalar_lea.vmem %s9201_s0, %s5372_s22  ;;  %5593 = vmatpush3.msk.msra.mxu0 %vm1946_vm4, %v1841_v53  ;;  %v1837_v62 = vld [vmem:[%s9202_s1] sm:$0xff]  ;;  %vm972_vm6 = vcmask 97344   ;;  %vm1103_vm7 = vcmask 130144   ;;  %vm1238_vm8 = vcmask 162944  }
  0x17   : > { %373 = vst.msk [vmem:[#allocation2 + $0x48] sm:$0xff] %vm362_vm0, %v6128_v0  ;;  %374 = vst.msk [vmem:[#allocation2 + $0x50] sm:$0xff] %vm362_vm0, %v6128_v0  ;;  %v330_v1 = vld [vmem:[%s6359_s25] sm:$0xff]  ;;  %v331_v2 = vld [vmem:[%s6359_s25 + $0x8] sm:$0xff]  ;;  %5594 = vmatprep.subr.mxu0 %v1840_v57  ;;  %vm1372_vm9 = vcmask 195744   ;;  %vm1503_vm10 = vcmask 228544  }
  0x18   : > { %376 = vst.msk [vmem:[#allocation2 + $0x60] sm:$0xff] %vm362_vm0, %v6128_v0  ;;  %377 = vst.msk [vmem:[#allocation2 + $0x68] sm:$0xff] %vm362_vm0, %v6128_v0  ;;  %v332_v3 = vld [vmem:[%s6359_s25 + $0x10] sm:$0xff]  ;;  %v333_v6 = vld [vmem:[%s6359_s25 + $0x18] sm:$0xff]  ;;  %5595 = vmatpush3.msra.mxu0 %v1840_v57  ;;  %vm1638_vm11 = vcmask 261344   ;;  %vm1772_vm12 = vcmask 294144  }
  0x19   : > { %379 = vst.msk [vmem:[#allocation2 + $0x78] sm:$0xff] %vm362_vm0, %v6128_v0  ;;  %380 = vst.msk [vmem:[#allocation2 + $0x80] sm:$0xff] %vm362_vm0, %v6128_v0  ;;  %v334_v14 = vld [vmem:[%s6359_s25 + $0x20] sm:$0xff]  ;;  %v335_v15 = vld [vmem:[%s6359_s25 + $0x28] sm:$0xff]  ;;  %5596 = vmatprep.subr.mxu0 %v1839_v58  ;;  %vm1849_vm13 = vcmask 293888   ;;  %vm2207_vm14 = vcmask 64512  }
  0x1a   : > { %382 = vst.msk [vmem:[#allocation2 + $0x90] sm:$0xff] %vm362_vm0, %v6128_v0  ;;  %383 = vst.msk [vmem:[#allocation2 + $0x98] sm:$0xff] %vm362_vm0, %v6128_v0  ;;  %v336_v16 = vld [vmem:[%s6359_s25 + $0x30] sm:$0xff]  ;;  %v337_v19 = vld [vmem:[%s6359_s25 + $0x38] sm:$0xff]  ;;  %5597 = vmatpush3.msra.mxu0 %v1839_v58  ;;  %vm2210_vm15 = vcmask 58368   ;;  %vm2946_vm4 = vcmask 261312  }
  0x1b   : > { %385 = vst.msk [vmem:[#allocation2 + $0xa8] sm:$0xff] %vm362_vm0, %v6128_v0  ;;  %386 = vst.msk [vmem:[#allocation2 + $0xb0] sm:$0xff] %vm362_vm0, %v6128_v0  ;;  %v451_v4 = vld [vmem:[#allocation2] sm:$0xff]  ;;  %v452_v5 = vld [vmem:[#allocation2 + $0x8] sm:$0xff]  ;;  %5598 = vmatprep.subr.mxu0 %v1838_v61  ;;  %s9215_s21 = smov 112  }
  0x1c   : > { %388 = vst.msk [vmem:[#allocation2 + $0xc0] sm:$0xff] %vm362_vm0, %v6128_v0  ;;  %389 = vst.msk [vmem:[#allocation2 + $0xc8] sm:$0xff] %vm362_vm0, %v6128_v0  ;;  %v796_v7 = vrot.slane %v451_v4, 2  ;;  %v797_v8 = vrot.slane %v452_v5, 2  ;;  %v586_v9 = vrot.slane %v451_v4, 1  ;;  %v587_v10 = vrot.slane %v452_v5, 1  ;;  %5599 = vmatpush3.msra.mxu0 %v1838_v61 }
  0x1d   : > { %391 = vst.msk [vmem:[#allocation2 + $0xd8] sm:$0xff] %vm362_vm0, %v6128_v0  ;;  %392 = vst.msk [vmem:[#allocation2 + $0xe0] sm:$0xff] %vm362_vm0, %v6128_v0  ;;  %v338_v20 = vld [vmem:[%s6359_s25 + $0x40] sm:$0xff]  ;;  %v339_v21 = vld [vmem:[%s6359_s25 + $0x48] sm:$0xff]  ;;  %5600 = vmatprep.subr.mxu0 %v1837_v62 }
  0x1e   : > { %394 = vst.msk [vmem:[#allocation2 + $0xf0] sm:$0xff] %vm362_vm0, %v6128_v0  ;;  %395 = vst.msk [vmem:[#allocation2 + $0xf8] sm:$0xff] %vm362_vm0, %v6128_v0  ;;  %v798_v17 = vsel %vm795_vm2, %v796_v7, %v797_v8  ;;  %v588_v18 = vsel %vm585_vm3, %v586_v9, %v587_v10  ;;  %v340_v43 = vld [vmem:[%s6359_s25 + $0x50] sm:$0xff]  ;;  %v341_v45 = vld [vmem:[%s6359_s25 + $0x58] sm:$0xff]  ;;  %5601 = vmatpush3.msra.mxu0 %v1837_v62 }
  0x1f   : > { %397 = vst.msk [vmem:[#allocation2 + $0x108] sm:$0xff] %vm362_vm0, %v6128_v0  ;;  %398 = vst.msk [vmem:[#allocation2 + $0x110] sm:$0xff] %vm362_vm0, %v6128_v0  ;;  %876 = vrot.lane.b32.xlu1 %v798_v17, %s9213_s26  ;;  %666 = vrot.lane.b32.xlu0 %v588_v18, %s6130_s27  ;;  %v344_v17 = vld [vmem:[%s6359_s25 + $0x70] sm:$0xff]  ;;  %v345_v18 = vld [vmem:[%s6359_s25 + $0x78] sm:$0xff] }
  0x20   : > { %400 = vst.msk [vmem:[#allocation2 + $0x120] sm:$0xff] %vm362_vm0, %v6128_v0  ;;  %401 = vst.msk [vmem:[#allocation2 + $0x128] sm:$0xff] %vm362_vm0, %v6128_v0  ;;  %5716 = vmatprep.subr.mxu0 %v6128_v0 }
  0x21   : > { %403 = vst.msk [vmem:[#allocation2 + $0x138] sm:$0xff] %vm362_vm0, %v6128_v0  ;;  %404 = vst.msk [vmem:[#allocation2 + $0x140] sm:$0xff] %vm362_vm0, %v6128_v0 }
  0x22   : > { %406 = vst.msk [vmem:[#allocation2 + $0x150] sm:$0xff] %vm362_vm0, %v6128_v0  ;;  %407 = vst.msk [vmem:[#allocation2 + $0x158] sm:$0xff] %vm362_vm0, %v6128_v0 }
  0x23   : > { %409 = vst.msk [vmem:[#allocation2 + $0x168] sm:$0xff] %vm362_vm0, %v6128_v0  ;;  %410 = vst.msk [vmem:[#allocation2 + $0x170] sm:$0xff] %vm362_vm0, %v6128_v0 }
  0x24   : > { %412 = vst.msk [vmem:[#allocation2 + $0x180] sm:$0xff] %vm362_vm0, %v6128_v0  ;;  %413 = vst.msk [vmem:[#allocation2 + $0x188] sm:$0xff] %vm362_vm0, %v6128_v0 }
  0x25   : > { %415 = vst.msk [vmem:[#allocation2 + $0x198] sm:$0xff] %vm362_vm0, %v6128_v0  ;;  %416 = vst.msk [vmem:[#allocation2 + $0x1a0] sm:$0xff] %vm362_vm0, %v6128_v0 }
  0x26   : > { %366 = vst.msk [vmem:[#allocation2 + $0x10] sm:$0x3] %vm365_vm1, %v6128_v0  ;;  %369 = vst.msk [vmem:[#allocation2 + $0x28] sm:$0x3] %vm365_vm1, %v6128_v0 }
  0x27   : > { %372 = vst.msk [vmem:[#allocation2 + $0x40] sm:$0x3] %vm365_vm1, %v6128_v0  ;;  %375 = vst.msk [vmem:[#allocation2 + $0x58] sm:$0x3] %vm365_vm1, %v6128_v0 }
  0x28   : > { %378 = vst.msk [vmem:[#allocation2 + $0x70] sm:$0x3] %vm365_vm1, %v6128_v0  ;;  %381 = vst.msk [vmem:[#allocation2 + $0x88] sm:$0x3] %vm365_vm1, %v6128_v0 }
  0x29   : > { %384 = vst.msk [vmem:[#allocation2 + $0xa0] sm:$0x3] %vm365_vm1, %v6128_v0  ;;  %387 = vst.msk [vmem:[#allocation2 + $0xb8] sm:$0x3] %vm365_vm1, %v6128_v0 }
  0x2a   : > { %390 = vst.msk [vmem:[#allocation2 + $0xd0] sm:$0x3] %vm365_vm1, %v6128_v0  ;;  %393 = vst.msk [vmem:[#allocation2 + $0xe8] sm:$0x3] %vm365_vm1, %v6128_v0 }
  0x2b   : > { %396 = vst.msk [vmem:[#allocation2 + $0x100] sm:$0x3] %vm365_vm1, %v6128_v0  ;;  %399 = vst.msk [vmem:[#allocation2 + $0x118] sm:$0x3] %vm365_vm1, %v6128_v0 }
  0x2c   : > { %402 = vst.msk [vmem:[#allocation2 + $0x130] sm:$0x3] %vm365_vm1, %v6128_v0  ;;  %405 = vst.msk [vmem:[#allocation2 + $0x148] sm:$0x3] %vm365_vm1, %v6128_v0 }
  0x2d   : > { %408 = vst.msk [vmem:[#allocation2 + $0x160] sm:$0x3] %vm365_vm1, %v6128_v0  ;;  %411 = vst.msk [vmem:[#allocation2 + $0x178] sm:$0x3] %vm365_vm1, %v6128_v0  ;;  %v453_v11 = vld [vmem:[#allocation2 + $0x10] sm:$0x3] }
  0x2e   : > { %414 = vst.msk [vmem:[#allocation2 + $0x190] sm:$0x3] %vm365_vm1, %v6128_v0  ;;  %417 = vst.msk [vmem:[#allocation2 + $0x1a8] sm:$0x3] %vm365_vm1, %v6128_v0  ;;  %v799_v12 = vrot.slane %v453_v11, 2  ;;  %v589_v13 = vrot.slane %v453_v11, 1 }
  0x2f   : > { %419 = vst.msk [vmem:[#allocation2 + $0x19] sm:$0xff] %vm362_vm0, %v330_v1  ;;  %420 = vst.msk [vmem:[#allocation2 + $0x21] sm:$0xff] %vm362_vm0, %v331_v2  ;;  %v342_v2 = vld [vmem:[%s6359_s25 + $0x60] sm:$0xff]  ;;  %vm2815_vm1 = vcmask 195712  }
  0x30   : > { %421 = vst.msk [vmem:[#allocation2 + $0x31] sm:$0xff] %vm362_vm0, %v332_v3  ;;  %505 = vst.msk [vmem:[#allocation3] sm:$0xff] %vm362_vm0, %v451_v4  ;;  %v800_v22 = vsel %vm795_vm2, %v797_v8, %v799_v12  ;;  %v590_v23 = vsel %vm585_vm3, %v587_v10, %v589_v13  ;;  %v343_v3 = vld [vmem:[%s6359_s25 + $0x68] sm:$0xff] }
  0x31   : > { %506 = vst.msk [vmem:[#allocation3 + $0x8] sm:$0xff] %vm362_vm0, %v452_v5  ;;  %422 = vst.msk [vmem:[#allocation2 + $0x39] sm:$0xff] %vm362_vm0, %v333_v6  ;;  %878 = vrot.lane.b32.xlu1 %v800_v22, %s9213_s26  ;;  %668 = vrot.lane.b32.xlu0 %v590_v23, %s6130_s27 }
  0x32   : > { %423 = vst.msk [vmem:[#allocation2 + $0x49] sm:$0xff] %vm362_vm0, %v334_v14  ;;  %424 = vst.msk [vmem:[#allocation2 + $0x51] sm:$0xff] %vm362_vm0, %v335_v15 }
  0x33   : > { %425 = vst.msk [vmem:[#allocation2 + $0x61] sm:$0xff] %vm362_vm0, %v336_v16  ;;  %426 = vst.msk [vmem:[#allocation2 + $0x69] sm:$0xff] %vm362_vm0, %v337_v19 }
  0x34   : > { %427 = vst.msk [vmem:[#allocation2 + $0x79] sm:$0xff] %vm362_vm0, %v338_v20  ;;  %428 = vst.msk [vmem:[#allocation2 + $0x81] sm:$0xff] %vm362_vm0, %v339_v21 }
  0x35   : > { %429 = vst.msk [vmem:[#allocation2 + $0x91] sm:$0xff] %vm362_vm0, %v340_v43  ;;  %430 = vst.msk [vmem:[#allocation2 + $0x99] sm:$0xff] %vm362_vm0, %v341_v45 }
  0x36   : > { %v455_v24 = vld [vmem:[#allocation2 + $0x20] sm:$0xff]  ;;  %v454_v25 = vld [vmem:[#allocation2 + $0x18] sm:$0xff]  ;;  %v456_v30 = vld [vmem:[#allocation2 + $0x28] sm:$0x3]  ;;  %431 = vst.msk [vmem:[#allocation2 + $0xa9] sm:$0xff] %vm362_vm0, %v342_v2 }
  0x37   : > { %508 = vst.msk [vmem:[#allocation3 + $0x18] sm:$0xff] %vm362_vm0, %v455_v24  ;;  %507 = vst.msk [vmem:[#allocation3 + $0x10] sm:$0xff] %vm362_vm0, %v454_v25  ;;  %v6393_v26 = vld [vmem:[#allocation2 + $0x30] sm:$0xff]  ;;  %v591_v28 = vrot.slane %v454_v25, 1  ;;  %v592_v29 = vrot.slane %v455_v24, 1  ;;  %1009 = vrot.lane.b32.xlu1 %v455_v24, %s6131_s28  ;;  %1007 = vrot.lane.b32.xlu0 %v454_v25, %s6131_s28  ;;  %v801_v38 = vrot.slane %v454_v25, 2 }
  0x38   : > { %v6395_v27 = vld [vmem:[#allocation2 + $0x38] sm:$0xff]  ;;  %509 = vst.msk [vmem:[#allocation3 + $0x20] sm:$0xff] %vm362_vm0, %v6393_v26  ;;  %v802_v39 = vrot.slane %v455_v24, 2  ;;  %v594_v40 = vrot.slane %v456_v30, 1  ;;  %v804_v44 = vrot.slane %v456_v30, 2  ;;  %v596_v48 = vrot.slane %v6393_v26, 1 }
  0x39   : > { %510 = vst.msk [vmem:[#allocation3 + $0x28] sm:$0xff] %vm362_vm0, %v6395_v27  ;;  %v6401_v31 = vld [vmem:[#allocation2 + $0x48] sm:$0xff]  ;;  %v6403_v32 = vld [vmem:[#allocation2 + $0x50] sm:$0xff]  ;;  %v593_v37 = vsel %vm585_vm3, %v591_v28, %v592_v29  ;;  %v597_v49 = vrot.slane %v6395_v27, 1  ;;  %v459_v52 = vld [vmem:[#allocation2 + $0x40] sm:$0x3] }
  0x3a   : > { %511 = vst.msk [vmem:[#allocation3 + $0x30] sm:$0xff] %vm362_vm0, %v6401_v31  ;;  %512 = vst.msk [vmem:[#allocation3 + $0x38] sm:$0xff] %vm362_vm0, %v6403_v32  ;;  %v6409_v33 = vld [vmem:[#allocation2 + $0x60] sm:$0xff]  ;;  %v6411_v34 = vld [vmem:[#allocation2 + $0x68] sm:$0xff]  ;;  %v803_v41 = vsel %vm795_vm2, %v801_v38, %v802_v39  ;;  %v595_v42 = vsel %vm585_vm3, %v592_v29, %v594_v40  ;;  %v805_v46 = vsel %vm795_vm2, %v802_v39, %v804_v44  ;;  %v806_v54 = vrot.slane %v6393_v26, 2 }
  0x3b   : > { %513 = vst.msk [vmem:[#allocation3 + $0x40] sm:$0xff] %vm362_vm0, %v6409_v33  ;;  %514 = vst.msk [vmem:[#allocation3 + $0x48] sm:$0xff] %vm362_vm0, %v6411_v34  ;;  %v6419_v35 = vld [vmem:[#allocation2 + $0x78] sm:$0xff]  ;;  %v6421_v36 = vld [vmem:[#allocation2 + $0x80] sm:$0xff]  ;;  %670 = vrot.lane.b32.xlu1 %v593_v37, %s6130_s27  ;;  %1142 = vrot.lane.b32.xlu0 %v593_v37, %s6132_s29  ;;  %v598_v51 = vsel %vm585_vm3, %v596_v48, %v597_v49  ;;  %v807_v55 = vrot.slane %v6395_v27, 2  ;;  %v599_v56 = vrot.slane %v459_v52, 1 }
  0x3c   : > { %515 = vst.msk [vmem:[#allocation3 + $0x50] sm:$0xff] %vm362_vm0, %v6419_v35  ;;  %516 = vst.msk [vmem:[#allocation3 + $0x58] sm:$0xff] %vm362_vm0, %v6421_v36  ;;  %v6441_v47 = vld [vmem:[#allocation2 + $0x90] sm:$0xff]  ;;  %v6453_v50 = vld [vmem:[#allocation2 + $0x98] sm:$0xff]  ;;  %v809_v63 = vrot.slane %v459_v52, 2  ;;  %v601_v5 = vrot.slane %v6401_v31, 1 }
  0x3d   : > { %517 = vst.msk [vmem:[#allocation3 + $0x60] sm:$0xff] %vm362_vm0, %v6441_v47  ;;  %518 = vst.msk [vmem:[#allocation3 + $0x68] sm:$0xff] %vm362_vm0, %v6453_v50  ;;  %v808_v59 = vsel %vm795_vm2, %v806_v54, %v807_v55  ;;  %v600_v60 = vsel %vm585_vm3, %v597_v49, %v599_v56  ;;  %v6497_v4 = vld [vmem:[#allocation2 + $0xa8] sm:$0xff]  ;;  %v602_v6 = vrot.slane %v6403_v32, 1  ;;  %v462_v9 = vld [vmem:[#allocation2 + $0x58] sm:$0x3] }
  0x3e   : > { %v810_v1 = vsel %vm795_vm2, %v807_v55, %v809_v63  ;;  %432 = vst.msk [vmem:[#allocation2 + $0xb1] sm:$0xff] %vm362_vm0, %v343_v3  ;;  %519 = vst.msk [vmem:[#allocation3 + $0x70] sm:$0xff] %vm362_vm0, %v6497_v4  ;;  %v811_v10 = vrot.slane %v6401_v31, 2  ;;  %v812_v11 = vrot.slane %v6403_v32, 2  ;;  %v604_v12 = vrot.slane %v462_v9, 1  ;;  %v347_v37 = vld [vmem:[%s6359_s25 + $0x88] sm:$0xff] }
  0x3f   : > { %1276 = vrot.lane.b32.xlu1 %v803_v41, %s6133_s14  ;;  %1144 = vrot.lane.b32.xlu0 %v595_v42, %s6132_s29  ;;  %v603_v8 = vsel %vm585_vm3, %v601_v5, %v602_v6  ;;  %v814_v15 = vrot.slane %v462_v9, 2  ;;  %433 = vst.msk [vmem:[#allocation2 + $0xc1] sm:$0xff] %vm362_vm0, %v344_v17  ;;  %434 = vst.msk [vmem:[#allocation2 + $0xc9] sm:$0xff] %vm362_vm0, %v345_v18  ;;  %v606_v20 = vrot.slane %v6409_v33, 1  ;;  %v607_v21 = vrot.slane %v6411_v34, 1  ;;  %v348_v2 = vld [vmem:[%s6359_s25 + $0x90] sm:$0xff] }
  0x40   : > { %v813_v13 = vsel %vm795_vm2, %v811_v10, %v812_v11  ;;  %v605_v14 = vsel %vm585_vm3, %v602_v6, %v604_v12  ;;  %v465_v24 = vld [vmem:[#allocation2 + $0x70] sm:$0x3]  ;;  %v816_v25 = vrot.slane %v6409_v33, 2  ;;  %436 = vst.msk [vmem:[#allocation2 + $0xe1] sm:$0xff] %vm362_vm0, %v347_v37  ;;  %v821_v52 = vrot.slane %v6419_v35, 2  ;;  %437 = vst.msk [vmem:[#allocation2 + $0xf1] sm:$0xff] %vm362_vm0, %v348_v2 }
  0x41   : > { %v815_v16 = vsel %vm795_vm2, %v812_v11, %v814_v15  ;;  %v608_v23 = vsel %vm585_vm3, %v606_v20, %v607_v21  ;;  %v819_v30 = vrot.slane %v465_v24, 2  ;;  %v822_v53 = vrot.slane %v6421_v36, 2  ;;  %v349_v6 = vld [vmem:[%s6359_s25 + $0x98] sm:$0xff]  ;;  %v471_v20 = vld [vmem:[#allocation2 + $0xa0] sm:$0x3]  ;;  %2213 = vst.msk [vmem:[#allocation4 + $0x20] sm:$0xff] %vm2207_vm14, %v6128_v0 }
  0x42   : > { %438 = vst.msk [vmem:[#allocation2 + $0xf9] sm:$0xff] %vm362_vm0, %v349_v6  ;;  %v616_v11 = vrot.slane %v6441_v47, 1  ;;  %v617_v12 = vrot.slane %v6453_v50, 1 }
  0x43   : > { %880 = vrot.lane.b32.xlu1 %v803_v41, %s9213_s26  ;;  %672 = vrot.lane.b32.xlu0 %v595_v42, %s6130_s27  ;;  %v611_v41 = vrot.slane %v6419_v35, 1  ;;  %v612_v42 = vrot.slane %v6421_v36, 1  ;;  %v823_v57 = vsel %vm795_vm2, %v821_v52, %v822_v53  ;;  %2214 = vst.msk [vmem:[#allocation4 + $0x28] sm:$0x3] %vm2210_vm15, %v6128_v0  ;;  %2211 = vst.msk [vmem:[#allocation4 + $0x10] sm:$0x3] %vm2210_vm15, %v6128_v0 }
  0x44   : > { %2208 = vst.msk [vmem:[#allocation4] sm:$0xff] %vm2207_vm14, %v6128_v0  ;;  %2209 = vst.msk [vmem:[#allocation4 + $0x8] sm:$0xff] %vm2207_vm14, %v6128_v0 }
  0x45   : > { %v6509_v7 = vld [vmem:[#allocation2 + $0xb0] sm:$0xff]  ;;  %2212 = vst.msk [vmem:[#allocation4 + $0x18] sm:$0xff] %vm2207_vm14, %v6128_v0  ;;  %2215 = vst.msk [vmem:[#allocation4 + $0x30] sm:$0xff] %vm2207_vm14, %v6128_v0 }
  0x46   : > { %520 = vst.msk [vmem:[#allocation3 + $0x78] sm:$0xff] %vm362_vm0, %v6509_v7  ;;  %v6537_v19 = vld [vmem:[#allocation2 + $0xc0] sm:$0xff]  ;;  %v6549_v22 = vld [vmem:[#allocation2 + $0xc8] sm:$0xff] }
  0x47   : > { %1407 = vrot.lane.b32.xlu1 %v6393_v26, %s9211_s16  ;;  %1278 = vrot.lane.b32.xlu0 %v805_v46, %s6133_s14  ;;  %521 = vst.msk [vmem:[#allocation3 + $0x80] sm:$0xff] %vm362_vm0, %v6537_v19  ;;  %522 = vst.msk [vmem:[#allocation3 + $0x88] sm:$0xff] %vm362_vm0, %v6549_v22  ;;  %v6637_v10 = vld [vmem:[#allocation2 + $0xf0] sm:$0xff] }
  0x48   : > { %525 = vst.msk [vmem:[#allocation3 + $0xa0] sm:$0xff] %vm362_vm0, %v6637_v10 }
  0x49   : > { %v6651_v15 = vld [vmem:[#allocation2 + $0xf8] sm:$0xff]  ;;  %2216 = vst.msk [vmem:[#allocation4 + $0x38] sm:$0xff] %vm2207_vm14, %v6128_v0  ;;  %2218 = vst.msk [vmem:[#allocation4 + $0x48] sm:$0xff] %vm2207_vm14, %v6128_v0 }
  0x4a   : > { %526 = vst.msk [vmem:[#allocation3 + $0xa8] sm:$0xff] %vm362_vm0, %v6651_v15 }
  0x4b   : > { %1011 = vrot.lane.b32.xlu1 %v6393_v26, %s6131_s28  ;;  %882 = vrot.lane.b32.xlu0 %v805_v46, %s9213_s26  ;;  %s9220_s26 = smov 8   ;;  %v817_v26 = vrot.slane %v6411_v34, 2  ;;  %v613_v46 = vsel %vm585_vm3, %v611_v41, %v612_v42  ;;  %2217 = vst.msk [vmem:[#allocation4 + $0x40] sm:$0x3] %vm2210_vm15, %v6128_v0  ;;  %2220 = vst.msk [vmem:[#allocation4 + $0x58] sm:$0x3] %vm2210_vm15, %v6128_v0 }
  0x4c   : > { %2219 = vst.msk [vmem:[#allocation4 + $0x50] sm:$0xff] %vm2207_vm14, %v6128_v0  ;;  %2221 = vst.msk [vmem:[#allocation4 + $0x60] sm:$0xff] %vm2207_vm14, %v6128_v0 }
  0x4d   : > { %v818_v28 = vsel %vm795_vm2, %v816_v25, %v817_v26  ;;  %2222 = vst.msk [vmem:[#allocation4 + $0x68] sm:$0xff] %vm2207_vm14, %v6128_v0  ;;  %2224 = vst.msk [vmem:[#allocation4 + $0x78] sm:$0xff] %vm2207_vm14, %v6128_v0 }
  0x4e   : > { %2223 = vst.msk [vmem:[#allocation4 + $0x70] sm:$0x3] %vm2210_vm15, %v6128_v0  ;;  %2226 = vst.msk [vmem:[#allocation4 + $0x88] sm:$0x3] %vm2210_vm15, %v6128_v0 }
  0x4f   : > { %1542 = vrot.lane.b32.xlu1 %v598_v51, %s6135_s17  ;;  %1409 = vrot.lane.b32.xlu0 %v6395_v27, %s9211_s16  ;;  %s9221_s16 = smov 24   ;;  %2225 = vst.msk [vmem:[#allocation4 + $0x80] sm:$0xff] %vm2207_vm14, %v6128_v0  ;;  %2227 = vst.msk [vmem:[#allocation4 + $0x90] sm:$0xff] %vm2207_vm14, %v6128_v0 }
  0x50   : > { %2228 = vst.msk [vmem:[#allocation4 + $0x98] sm:$0xff] %vm2207_vm14, %v6128_v0  ;;  %2230 = vst.msk [vmem:[#allocation4 + $0xa8] sm:$0xff] %vm2207_vm14, %v6128_v0 }
  0x51   : > { %2229 = vst.msk [vmem:[#allocation4 + $0xa0] sm:$0x3] %vm2210_vm15, %v6128_v0  ;;  %2232 = vst.msk [vmem:[#allocation4 + $0xb8] sm:$0x3] %vm2210_vm15, %v6128_v0 }
  0x52   : > { %2231 = vst.msk [vmem:[#allocation4 + $0xb0] sm:$0xff] %vm2207_vm14, %v6128_v0  ;;  %2233 = vst.msk [vmem:[#allocation4 + $0xc0] sm:$0xff] %vm2207_vm14, %v6128_v0 }
  0x53   : > { %1146 = vrot.lane.b32.xlu1 %v598_v51, %s6132_s29  ;;  %1013 = vrot.lane.b32.xlu0 %v6395_v27, %s6131_s28  ;;  %v609_v27 = vrot.slane %v465_v24, 1  ;;  %v619_v24 = vrot.slane %v471_v20, 1  ;;  %2234 = vst.msk [vmem:[#allocation4 + $0xc8] sm:$0xff] %vm2207_vm14, %v6128_v0  ;;  %2236 = vst.msk [vmem:[#allocation4 + $0xd8] sm:$0xff] %vm2207_vm14, %v6128_v0 }
  0x54   : > { %2235 = vst.msk [vmem:[#allocation4 + $0xd0] sm:$0x3] %vm2210_vm15, %v6128_v0  ;;  %2238 = vst.msk [vmem:[#allocation4 + $0xe8] sm:$0x3] %vm2210_vm15, %v6128_v0 }
  0x55   : > { %v610_v29 = vsel %vm585_vm3, %v607_v21, %v609_v27  ;;  %v826_v21 = vrot.slane %v6441_v47, 2  ;;  %2237 = vst.msk [vmem:[#allocation4 + $0xe0] sm:$0xff] %vm2207_vm14, %v6128_v0  ;;  %2239 = vst.msk [vmem:[#allocation4 + $0xf0] sm:$0xff] %vm2207_vm14, %v6128_v0 }
  0x56   : > { %2240 = vst.msk [vmem:[#allocation4 + $0xf8] sm:$0xff] %vm2207_vm14, %v6128_v0  ;;  %2242 = vst.msk [vmem:[#allocation4 + $0x108] sm:$0xff] %vm2207_vm14, %v6128_v0 }
  0x57   : > { %1676 = vrot.lane.b32.xlu1 %v808_v59, %s6136_s23  ;;  %1544 = vrot.lane.b32.xlu0 %v600_v60, %s6135_s17  ;;  %2241 = vst.msk [vmem:[#allocation4 + $0x100] sm:$0x3] %vm2210_vm15, %v6128_v0  ;;  %2244 = vst.msk [vmem:[#allocation4 + $0x118] sm:$0x3] %vm2210_vm15, %v6128_v0 }
  0x58   : > { %2243 = vst.msk [vmem:[#allocation4 + $0x110] sm:$0xff] %vm2207_vm14, %v6128_v0  ;;  %2245 = vst.msk [vmem:[#allocation4 + $0x120] sm:$0xff] %vm2207_vm14, %v6128_v0 }
  0x59   : > { %2246 = vst.msk [vmem:[#allocation4 + $0x128] sm:$0xff] %vm2207_vm14, %v6128_v0  ;;  %2248 = vst.msk [vmem:[#allocation4 + $0x138] sm:$0xff] %vm2207_vm14, %v6128_v0 }
  0x5a   : > { %2247 = vst.msk [vmem:[#allocation4 + $0x130] sm:$0x3] %vm2210_vm15, %v6128_v0  ;;  %2250 = vst.msk [vmem:[#allocation4 + $0x148] sm:$0x3] %vm2210_vm15, %v6128_v0 }
  0x5b   : > { %1148 = vrot.lane.b32.xlu1 %v600_v60, %s6132_s29  ;;  %674 = vrot.lane.b32.xlu0 %v598_v51, %s6130_s27  ;;  %v468_v51 = vld [vmem:[#allocation2 + $0x88] sm:$0x3]  ;;  %2249 = vst.msk [vmem:[#allocation4 + $0x140] sm:$0xff] %vm2207_vm14, %v6128_v0  ;;  %2251 = vst.msk [vmem:[#allocation4 + $0x150] sm:$0xff] %vm2207_vm14, %v6128_v0 }
  0x5c   : > { %v614_v54 = vrot.slane %v468_v51, 1  ;;  %2252 = vst.msk [vmem:[#allocation4 + $0x158] sm:$0xff] %vm2207_vm14, %v6128_v0  ;;  %2254 = vst.msk [vmem:[#allocation4 + $0x168] sm:$0xff] %vm2207_vm14, %v6128_v0 }
  0x5d   : > { %2253 = vst.msk [vmem:[#allocation4 + $0x160] sm:$0x3] %vm2210_vm15, %v6128_v0  ;;  %2256 = vst.msk [vmem:[#allocation4 + $0x178] sm:$0x3] %vm2210_vm15, %v6128_v0 }
  0x5e   : > { %v615_v58 = vsel %vm585_vm3, %v612_v42, %v614_v54  ;;  %2255 = vst.msk [vmem:[#allocation4 + $0x170] sm:$0xff] %vm2207_vm14, %v6128_v0  ;;  %2257 = vst.msk [vmem:[#allocation4 + $0x180] sm:$0xff] %vm2207_vm14, %v6128_v0 }
  0x5f   : > { %1678 = vrot.lane.b32.xlu1 %v810_v1, %s6136_s23  ;;  %1280 = vrot.lane.b32.xlu0 %v808_v59, %s6133_s14  ;;  %2258 = vst.msk [vmem:[#allocation4 + $0x188] sm:$0xff] %vm2207_vm14, %v6128_v0  ;;  %2260 = vst.msk [vmem:[#allocation4 + $0x198] sm:$0xff] %vm2207_vm14, %v6128_v0 }
  0x60   : > { %2259 = vst.msk [vmem:[#allocation4 + $0x190] sm:$0x3] %vm2210_vm15, %v6128_v0  ;;  %2262 = vst.msk [vmem:[#allocation4 + $0x1a8] sm:$0x3] %vm2210_vm15, %v6128_v0  ;;  %vm4194_vm15 = vcmask 1046534  }
  0x61   : > { %2261 = vst.msk [vmem:[#allocation4 + $0x1a0] sm:$0xff] %vm2207_vm14, %v6128_v0 }
  0x63   : > { %884 = vrot.lane.b32.xlu1 %v808_v59, %s9220_s26  ;;  %676 = vrot.lane.b32.xlu0 %v600_v60, %s6130_s27  ;;  %v824_v60 = vrot.slane %v468_v51, 2  ;;  %v622_v51 = vrot.slane %v6509_v7, 1 }
  0x67   : > { %1411 = vrot.lane.b32.xlu1 %v6401_v31, %s9221_s16  ;;  %1282 = vrot.lane.b32.xlu0 %v810_v1, %s6133_s14 }
  0x6b   : > { %1015 = vrot.lane.b32.xlu1 %v6401_v31, %s6131_s28  ;;  %886 = vrot.lane.b32.xlu0 %v810_v1, %s9220_s26  ;;  %v820_v31 = vsel %vm795_vm2, %v817_v26, %v819_v30 }
  0x6f   : > { %1546 = vrot.lane.b32.xlu1 %v603_v8, %s6135_s17  ;;  %1413 = vrot.lane.b32.xlu0 %v6403_v32, %s9221_s16 }
  0x73   : > { %1150 = vrot.lane.b32.xlu1 %v603_v8, %s6132_s29  ;;  %1017 = vrot.lane.b32.xlu0 %v6403_v32, %s6131_s28  ;;  %v346_v32 = vld [vmem:[%s6359_s25 + $0x80] sm:$0xff] }
  0x74   : > { %435 = vst.msk [vmem:[#allocation2 + $0xd9] sm:$0xff] %vm362_vm0, %v346_v32 }
  0x77   : > { %1680 = vrot.lane.b32.xlu1 %v813_v13, %s6136_s23  ;;  %1548 = vrot.lane.b32.xlu0 %v605_v14, %s6135_s17 }
  0x7b   : > { %1152 = vrot.lane.b32.xlu1 %v605_v14, %s6132_s29  ;;  %678 = vrot.lane.b32.xlu0 %v603_v8, %s6130_s27  ;;  %v6580_v40 = vld [vmem:[#allocation2 + $0xd8] sm:$0xff]  ;;  %v6595_v45 = vld [vmem:[#allocation2 + $0xe0] sm:$0xff] }
  0x7c   : > { %523 = vst.msk [vmem:[#allocation3 + $0x90] sm:$0xff] %vm362_vm0, %v6580_v40  ;;  %524 = vst.msk [vmem:[#allocation3 + $0x98] sm:$0xff] %vm362_vm0, %v6595_v45 }
  0x7f   : > { %1682 = vrot.lane.b32.xlu1 %v815_v16, %s6136_s23  ;;  %1284 = vrot.lane.b32.xlu0 %v813_v13, %s6133_s14 }
  0x83   : > { %888 = vrot.lane.b32.xlu1 %v813_v13, %s9220_s26  ;;  %680 = vrot.lane.b32.xlu0 %v605_v14, %s6130_s27 }
  0x87   : > { %1415 = vrot.lane.b32.xlu1 %v6409_v33, %s9221_s16  ;;  %1286 = vrot.lane.b32.xlu0 %v815_v16, %s6133_s14 }
  0x8b   : > { %1019 = vrot.lane.b32.xlu1 %v6409_v33, %s6131_s28  ;;  %890 = vrot.lane.b32.xlu0 %v815_v16, %s9220_s26  ;;  %v618_v16 = vsel %vm585_vm3, %v616_v11, %v617_v12 }
  0x8f   : > { %1550 = vrot.lane.b32.xlu1 %v608_v23, %s6135_s17  ;;  %1417 = vrot.lane.b32.xlu0 %v6411_v34, %s9221_s16 }
  0x91   : > { %v877_v33 = vpop.permute.xlu1 %876 }
  0x93   : > { %1154 = vrot.lane.b32.xlu1 %v608_v23, %s6132_s29  ;;  %1021 = vrot.lane.b32.xlu0 %v6411_v34, %s6131_s28  ;;  %v667_v34 = vpop.permute.xlu0 %666 }
  0x94   : > { %763 = vst.msk [vmem:[#allocation3] sm:$0xff] %vm762_vm5, %v667_v34 }
  0x95   : > { %973 = vst.msk [vmem:[#allocation3] sm:$0xff] %vm972_vm6, %v877_v33 }
  0x97   : > { %1684 = vrot.lane.b32.xlu1 %v818_v28, %s6136_s23  ;;  %1552 = vrot.lane.b32.xlu0 %v610_v29, %s6135_s17 }
  0x9b   : > { %1156 = vrot.lane.b32.xlu1 %v610_v29, %s6132_s29  ;;  %682 = vrot.lane.b32.xlu0 %v608_v23, %s6130_s27  ;;  %v827_v23 = vrot.slane %v6453_v50, 2 }
  0x9f   : > { %1686 = vrot.lane.b32.xlu1 %v820_v31, %s6136_s23  ;;  %1288 = vrot.lane.b32.xlu0 %v818_v28, %s6133_s14 }
  0xa3   : > { %892 = vrot.lane.b32.xlu1 %v818_v28, %s9220_s26  ;;  %684 = vrot.lane.b32.xlu0 %v610_v29, %s6130_s27  ;;  %v879_v38 = vpop.permute.xlu1 %878  ;;  %v669_v39 = vpop.permute.xlu0 %668  ;;  %v828_v28 = vsel %vm795_vm2, %v826_v21, %v827_v23  ;;  %v626_v21 = vrot.slane %v6537_v19, 1 }
  0xa4   : > { %764 = vst.msk [vmem:[#allocation3 + $0x8] sm:$0xff] %vm762_vm5, %v669_v39  ;;  %v350_v39 = vld [vmem:[%s6359_s25 + $0xa0] sm:$0xff] }
  0xa5   : > { %974 = vst.msk [vmem:[#allocation3 + $0x8] sm:$0xff] %vm972_vm6, %v879_v38 }
  0xa6   : > { %439 = vst.msk [vmem:[#allocation2 + $0x109] sm:$0xff] %vm362_vm0, %v350_v39 }
  0xa7   : > { %1419 = vrot.lane.b32.xlu1 %v6419_v35, %s9221_s16  ;;  %1290 = vrot.lane.b32.xlu0 %v820_v31, %s6133_s14 }
  0xa9   : > { %v1010_v43 = vpop.permute.xlu1 %1009  ;;  %v1008_v44 = vpop.permute.xlu0 %1007 }
  0xaa   : > { %1105 = vst.msk [vmem:[#allocation3 + $0x8] sm:$0xff] %vm1103_vm7, %v1010_v43  ;;  %1104 = vst.msk [vmem:[#allocation3] sm:$0xff] %vm1103_vm7, %v1008_v44  ;;  %v351_v43 = vld [vmem:[%s6359_s25 + $0xa8] sm:$0xff] }
  0xab   : > { %1023 = vrot.lane.b32.xlu1 %v6419_v35, %s6131_s28  ;;  %894 = vrot.lane.b32.xlu0 %v820_v31, %s9220_s26  ;;  %v829_v31 = vrot.slane %v471_v20, 2  ;;  %440 = vst.msk [vmem:[#allocation2 + $0x111] sm:$0xff] %vm362_vm0, %v351_v43 }
  0xad   : > { %v671_v48 = vpop.permute.xlu1 %670  ;;  %v1143_v49 = vpop.permute.xlu0 %1142 }
  0xae   : > { %765 = vst.msk [vmem:[#allocation3 + $0x10] sm:$0xff] %vm762_vm5, %v671_v48  ;;  %v6695_v48 = vld [vmem:[#allocation2 + $0x108] sm:$0xff] }
  0xaf   : > { %1239 = vst.msk [vmem:[#allocation3] sm:$0xff] %vm1238_vm8, %v1143_v49  ;;  %1554 = vrot.lane.b32.xlu1 %v613_v46, %s6135_s17  ;;  %1421 = vrot.lane.b32.xlu0 %v6421_v36, %s9221_s16  ;;  %v621_v49 = vrot.slane %v6497_v4, 1 }
  0xb0   : > { %527 = vst.msk [vmem:[#allocation3 + $0xb0] sm:$0xff] %vm362_vm0, %v6695_v48 }
  0xb1   : > { %v1277_v55 = vpop.permute.xlu1 %1276  ;;  %v1145_v56 = vpop.permute.xlu0 %1144 }
  0xb2   : > { %1373 = vst.msk [vmem:[#allocation3] sm:$0xff] %vm1372_vm9, %v1277_v55  ;;  %v6709_v54 = vld [vmem:[#allocation2 + $0x110] sm:$0xff]  ;;  %v623_v55 = vsel %vm585_vm3, %v621_v49, %v622_v51 }
  0xb3   : > { %1240 = vst.msk [vmem:[#allocation3 + $0x8] sm:$0xff] %vm1238_vm8, %v1145_v56  ;;  %1158 = vrot.lane.b32.xlu1 %v613_v46, %s6132_s29  ;;  %1025 = vrot.lane.b32.xlu0 %v6421_v36, %s6131_s28  ;;  %v825_v36 = vsel %vm795_vm2, %v822_v53, %v824_v60 }
  0xb4   : > { %528 = vst.msk [vmem:[#allocation3 + $0xb8] sm:$0xff] %vm362_vm0, %v6709_v54 }
  0xb5   : > { %v881_v59 = vpop.permute.xlu1 %880  ;;  %v673_v35 = vpop.permute.xlu0 %672 }
  0xb6   : > { %975 = vst.msk [vmem:[#allocation3 + $0x10] sm:$0xff] %vm972_vm6, %v881_v59  ;;  %v831_v59 = vrot.slane %v6497_v4, 2 }
  0xb7   : > { %766 = vst.msk [vmem:[#allocation3 + $0x18] sm:$0xff] %vm762_vm5, %v673_v35  ;;  %1688 = vrot.lane.b32.xlu1 %v823_v57, %s6136_s23  ;;  %1556 = vrot.lane.b32.xlu0 %v615_v58, %s6135_s17  ;;  %v832_v35 = vrot.slane %v6509_v7, 2 }
  0xb9   : > { %v1408_v61 = vpop.permute.xlu1 %1407  ;;  %v1279_v62 = vpop.permute.xlu0 %1278 }
  0xba   : > { %1504 = vst.msk [vmem:[#allocation3] sm:$0xff] %vm1503_vm10, %v1408_v61 }
  0xbb   : > { %1374 = vst.msk [vmem:[#allocation3 + $0x8] sm:$0xff] %vm1372_vm9, %v1279_v62  ;;  %1160 = vrot.lane.b32.xlu1 %v615_v58, %s6132_s29  ;;  %686 = vrot.lane.b32.xlu0 %v613_v46, %s6130_s27 }
  0xbd   : > { %v1012_v63 = vpop.permute.xlu1 %1011  ;;  %v883_v1 = vpop.permute.xlu0 %882 }
  0xbe   : > { %1106 = vst.msk [vmem:[#allocation3 + $0x10] sm:$0xff] %vm1103_vm7, %v1012_v63  ;;  %v833_v63 = vsel %vm795_vm2, %v831_v59, %v832_v35  ;;  %v631_v59 = vrot.slane %v6580_v40, 1 }
  0xbf   : > { %976 = vst.msk [vmem:[#allocation3 + $0x18] sm:$0xff] %vm972_vm6, %v883_v1  ;;  %1690 = vrot.lane.b32.xlu1 %v825_v36, %s6136_s23  ;;  %1292 = vrot.lane.b32.xlu0 %v823_v57, %s6133_s14 }
  0xc1   : > { %v1543_v3 = vpop.permute.xlu1 %1542  ;;  %v1410_v5 = vpop.permute.xlu0 %1409 }
  0xc2   : > { %1639 = vst.msk [vmem:[#allocation3] sm:$0xff] %vm1638_vm11, %v1543_v3 }
  0xc3   : > { %1505 = vst.msk [vmem:[#allocation3 + $0x8] sm:$0xff] %vm1503_vm10, %v1410_v5  ;;  %896 = vrot.lane.b32.xlu1 %v823_v57, %s9220_s26  ;;  %688 = vrot.lane.b32.xlu0 %v615_v58, %s6130_s27  ;;  %v474_v58 = vld [vmem:[#allocation2 + $0xb8] sm:$0x3] }
  0xc4   : > { %v624_v60 = vrot.slane %v474_v58, 1  ;;  %v834_v3 = vrot.slane %v474_v58, 2 }
  0xc5   : > { %v1147_v8 = vpop.permute.xlu1 %1146  ;;  %v1014_v9 = vpop.permute.xlu0 %1013 }
  0xc6   : > { %1241 = vst.msk [vmem:[#allocation3 + $0x10] sm:$0xff] %vm1238_vm8, %v1147_v8 }
  0xc7   : > { %1107 = vst.msk [vmem:[#allocation3 + $0x18] sm:$0xff] %vm1103_vm7, %v1014_v9  ;;  %1423 = vrot.lane.b32.xlu1 %v6441_v47, %s9221_s16  ;;  %1294 = vrot.lane.b32.xlu0 %v825_v36, %s6133_s14 }
  0xc9   : > { %v1677_v13 = vpop.permute.xlu1 %1676  ;;  %v1545_v14 = vpop.permute.xlu0 %1544 }
  0xca   : > { %1773 = vst.msk [vmem:[#allocation3] sm:$0xff] %vm1772_vm12, %v1677_v13 }
  0xcb   : > { %1640 = vst.msk [vmem:[#allocation3 + $0x8] sm:$0xff] %vm1638_vm11, %v1545_v14  ;;  %1027 = vrot.lane.b32.xlu1 %v6441_v47, %s6131_s28  ;;  %898 = vrot.lane.b32.xlu0 %v825_v36, %s9220_s26  ;;  %v620_v47 = vsel %vm585_vm3, %v617_v12, %v619_v24  ;;  %v352_v12 = vld [vmem:[%s6359_s25 + $0xb0] sm:$0xff] }
  0xcc   : > { %441 = vst.msk [vmem:[#allocation2 + $0x121] sm:$0xff] %vm362_vm0, %v352_v12 }
  0xcd   : > { %v1149_v17 = vpop.permute.xlu1 %1148  ;;  %v675_v18 = vpop.permute.xlu0 %674 }
  0xce   : > { %1242 = vst.msk [vmem:[#allocation3 + $0x18] sm:$0xff] %vm1238_vm8, %v1149_v17 }
  0xcf   : > { %767 = vst.msk [vmem:[#allocation3 + $0x20] sm:$0xff] %vm762_vm5, %v675_v18  ;;  %1558 = vrot.lane.b32.xlu1 %v618_v16, %s6135_s17  ;;  %1425 = vrot.lane.b32.xlu0 %v6453_v50, %s9221_s16 }
  0xd1   : > { %v1679_v25 = vpop.permute.xlu1 %1678  ;;  %v1281_v26 = vpop.permute.xlu0 %1280  ;;  %v1805_v27 = vld [vmem:[#allocation3] sm:$0xff] }
  0xd2   : > { %1774 = vst.msk [vmem:[#allocation3 + $0x8] sm:$0xff] %vm1772_vm12, %v1679_v25  ;;  %5602 = vmatprep.mubr.msk.f32.mxu0 %vm1849_vm13, %v1805_v27 }
  0xd3   : > { %1375 = vst.msk [vmem:[#allocation3 + $0x10] sm:$0xff] %vm1372_vm9, %v1281_v26  ;;  %1162 = vrot.lane.b32.xlu1 %v618_v16, %s6132_s29  ;;  %1029 = vrot.lane.b32.xlu0 %v6453_v50, %s6131_s28  ;;  %v830_v50 = vsel %vm795_vm2, %v827_v23, %v829_v31  ;;  %v6753_v20 = vld [vmem:[#allocation2 + $0x120] sm:$0xff]  ;;  %v627_v23 = vrot.slane %v6549_v22, 1  ;;  %v837_v31 = vrot.slane %v6549_v22, 2 }
  0xd4   : > { %529 = vst.msk [vmem:[#allocation3 + $0xc0] sm:$0xff] %vm362_vm0, %v6753_v20 }
  0xd5   : > { %v885_v29 = vpop.permute.xlu1 %884  ;;  %v677_v30 = vpop.permute.xlu0 %676  ;;  %v628_v27 = vsel %vm585_vm3, %v626_v21, %v627_v23 }
  0xd6   : > { %977 = vst.msk [vmem:[#allocation3 + $0x20] sm:$0xff] %vm972_vm6, %v885_v29  ;;  %v477_v29 = vld [vmem:[#allocation2 + $0xd0] sm:$0x3] }
  0xd7   : > { %768 = vst.msk [vmem:[#allocation3 + $0x28] sm:$0xff] %vm762_vm5, %v677_v30  ;;  %1692 = vrot.lane.b32.xlu1 %v828_v28, %s6136_s23  ;;  %1560 = vrot.lane.b32.xlu0 %v620_v47, %s6135_s17  ;;  %v836_v30 = vrot.slane %v6537_v19, 2 }
  0xd9   : > { %v1412_v32 = vpop.permute.xlu1 %1411  ;;  %v1283_v33 = vpop.permute.xlu0 %1282  ;;  %v1806_v34 = vld [vmem:[#allocation3 + $0x8] sm:$0xff] }
  0xda   : > { %1506 = vst.msk [vmem:[#allocation3 + $0x10] sm:$0xff] %vm1503_vm10, %v1412_v32  ;;  %5603 = vmatmul.mubr.msk.f32.vlgmr.msra.gmra.mxu0 %vm1849_vm13, %v1806_v34  ;;  %v629_v32 = vrot.slane %v477_v29, 1 }
  0xdb   : > { %1376 = vst.msk [vmem:[#allocation3 + $0x18] sm:$0xff] %vm1372_vm9, %v1283_v33  ;;  %1164 = vrot.lane.b32.xlu1 %v620_v47, %s6132_s29  ;;  %690 = vrot.lane.b32.xlu0 %v618_v16, %s6130_s27  ;;  %v353_v16 = vld [vmem:[%s6359_s25 + $0xb8] sm:$0xff] }
  0xdc   : > { %442 = vst.msk [vmem:[#allocation2 + $0x129] sm:$0xff] %vm362_vm0, %v353_v16 }
  0xdd   : > { %v1016_v37 = vpop.permute.xlu1 %1015  ;;  %v887_v38 = vpop.permute.xlu0 %886 }
  0xde   : > { %1108 = vst.msk [vmem:[#allocation3 + $0x20] sm:$0xff] %vm1103_vm7, %v1016_v37  ;;  %v6786_v37 = vsel %vm795_vm2, %v836_v30, %v837_v31  ;;  %v636_v30 = vrot.slane %v6637_v10, 1 }
  0xdf   : > { %978 = vst.msk [vmem:[#allocation3 + $0x28] sm:$0xff] %vm972_vm6, %v887_v38  ;;  %1694 = vrot.lane.b32.xlu1 %v830_v50, %s6136_s23  ;;  %1296 = vrot.lane.b32.xlu0 %v828_v28, %s6133_s14 }
  0xe1   : > { %v1547_v41 = vpop.permute.xlu1 %1546  ;;  %v1414_v42 = vpop.permute.xlu0 %1413 }
  0xe2   : > { %1641 = vst.msk [vmem:[#allocation3 + $0x10] sm:$0xff] %vm1638_vm11, %v1547_v41  ;;  %v839_v41 = vrot.slane %v477_v29, 2 }
  0xe3   : > { %1507 = vst.msk [vmem:[#allocation3 + $0x18] sm:$0xff] %vm1503_vm10, %v1414_v42  ;;  %900 = vrot.lane.b32.xlu1 %v828_v28, %s9220_s26  ;;  %692 = vrot.lane.b32.xlu0 %v620_v47, %s6130_s27  ;;  %v6767_v26 = vld [vmem:[#allocation2 + $0x128] sm:$0xff] }
  0xe4   : > { %530 = vst.msk [vmem:[#allocation3 + $0xc8] sm:$0xff] %vm362_vm0, %v6767_v26 }
  0xe5   : > { %v1151_v44 = vpop.permute.xlu1 %1150  ;;  %v1018_v46 = vpop.permute.xlu0 %1017 }
  0xe6   : > { %1243 = vst.msk [vmem:[#allocation3 + $0x20] sm:$0xff] %vm1238_vm8, %v1151_v44  ;;  %v6804_v44 = vsel %vm795_vm2, %v837_v31, %v839_v41  ;;  %v637_v31 = vrot.slane %v6651_v15, 1  ;;  %v847_v41 = vrot.slane %v6651_v15, 2 }
  0xe7   : > { %1109 = vst.msk [vmem:[#allocation3 + $0x28] sm:$0xff] %vm1103_vm7, %v1018_v46  ;;  %1427 = vrot.lane.b32.xlu1 %v6497_v4, %s9221_s16  ;;  %1298 = vrot.lane.b32.xlu0 %v830_v50, %s6133_s14 }
  0xe9   : > { %v1681_v52 = vpop.permute.xlu1 %1680  ;;  %v1549_v53 = vpop.permute.xlu0 %1548 }
  0xea   : > { %1775 = vst.msk [vmem:[#allocation3 + $0x10] sm:$0xff] %vm1772_vm12, %v1681_v52 }
  0xeb   : > { %1642 = vst.msk [vmem:[#allocation3 + $0x18] sm:$0xff] %vm1638_vm11, %v1549_v53  ;;  %1031 = vrot.lane.b32.xlu1 %v6497_v4, %s6131_s28  ;;  %902 = vrot.lane.b32.xlu0 %v830_v50, %s9220_s26  ;;  %v625_v4 = vsel %vm585_vm3, %v622_v51, %v624_v60  ;;  %v354_v51 = vld [vmem:[%s6359_s25 + $0xc0] sm:$0xff] }
  0xec   : > { %443 = vst.msk [vmem:[#allocation2 + $0x139] sm:$0xff] %vm362_vm0, %v354_v51 }
  0xed   : > { %v1153_v56 = vpop.permute.xlu1 %1152  ;;  %v679_v57 = vpop.permute.xlu0 %678 }
  0xee   : > { %1244 = vst.msk [vmem:[#allocation3 + $0x28] sm:$0xff] %vm1238_vm8, %v1153_v56 }
  0xef   : > { %769 = vst.msk [vmem:[#allocation3 + $0x30] sm:$0xff] %vm762_vm5, %v679_v57  ;;  %1562 = vrot.lane.b32.xlu1 %v623_v55, %s6135_s17  ;;  %1429 = vrot.lane.b32.xlu0 %v6509_v7, %s9221_s16 }
  0xf1   : > { %v1683_v61 = vpop.permute.xlu1 %1682  ;;  %v1285_v62 = vpop.permute.xlu0 %1284  ;;  %v1807_v36 = vld [vmem:[#allocation3 + $0x10] sm:$0xff] }
  0xf2   : > { %1776 = vst.msk [vmem:[#allocation3 + $0x18] sm:$0xff] %vm1772_vm12, %v1683_v61  ;;  %5605 = vmatprep.mubr.msk.f32.mxu0 %vm1849_vm13, %v1807_v36 }
  0xf3   : > { %1377 = vst.msk [vmem:[#allocation3 + $0x20] sm:$0xff] %vm1372_vm9, %v1285_v62  ;;  %1166 = vrot.lane.b32.xlu1 %v623_v55, %s6132_s29  ;;  %1033 = vrot.lane.b32.xlu0 %v6509_v7, %s6131_s28  ;;  %v835_v7 = vsel %vm795_vm2, %v832_v35, %v834_v3  ;;  %v6932_v58 = vld [vmem:[#allocation2 + $0x138] sm:$0xff]  ;;  %v632_v35 = vrot.slane %v6595_v45, 1  ;;  %v842_v3 = vrot.slane %v6595_v45, 2 }
  0xf4   : > { %531 = vst.msk [vmem:[#allocation3 + $0xd0] sm:$0xff] %vm362_vm0, %v6932_v58 }
  0xf5   : > { %v889_v1 = vpop.permute.xlu1 %888  ;;  %v681_v2 = vpop.permute.xlu0 %680  ;;  %v633_v36 = vsel %vm585_vm3, %v631_v59, %v632_v35 }
  0xf6   : > { %979 = vst.msk [vmem:[#allocation3 + $0x30] sm:$0xff] %vm972_vm6, %v889_v1  ;;  %v480_v1 = vld [vmem:[#allocation2 + $0xe8] sm:$0x3] }
  0xf7   : > { %770 = vst.msk [vmem:[#allocation3 + $0x38] sm:$0xff] %vm762_vm5, %v681_v2  ;;  %1696 = vrot.lane.b32.xlu1 %v833_v63, %s6136_s23  ;;  %1564 = vrot.lane.b32.xlu0 %v625_v4, %s6135_s17  ;;  %v841_v2 = vrot.slane %v6580_v40, 2 }
  0xf9   : > { %v1416_v5 = vpop.permute.xlu1 %1415  ;;  %v1287_v6 = vpop.permute.xlu0 %1286  ;;  %v1808_v8 = vld [vmem:[#allocation3 + $0x18] sm:$0xff] }
  0xfa   : > { %1508 = vst.msk [vmem:[#allocation3 + $0x20] sm:$0xff] %vm1503_vm10, %v1416_v5  ;;  %5606 = vmatmul.mubr.msk.f32.gmra.mxu0 %vm1849_vm13, %v1808_v8  ;;  %v634_v5 = vrot.slane %v480_v1, 1 }
  0xfb   : > { %1378 = vst.msk [vmem:[#allocation3 + $0x28] sm:$0xff] %vm1372_vm9, %v1287_v6  ;;  %1168 = vrot.lane.b32.xlu1 %v625_v4, %s6132_s29  ;;  %694 = vrot.lane.b32.xlu0 %v623_v55, %s6130_s27  ;;  %v355_v55 = vld [vmem:[%s6359_s25 + $0xc8] sm:$0xff] }
  0xfc   : > { %444 = vst.msk [vmem:[#allocation2 + $0x141] sm:$0xff] %vm362_vm0, %v355_v55 }
  0xfd   : > { %v1020_v9 = vpop.permute.xlu1 %1019  ;;  %v891_v11 = vpop.permute.xlu0 %890 }
  0xfe   : > { %1110 = vst.msk [vmem:[#allocation3 + $0x30] sm:$0xff] %vm1103_vm7, %v1020_v9  ;;  %v843_v9 = vsel %vm795_vm2, %v841_v2, %v842_v3  ;;  %v641_v2 = vrot.slane %v6695_v48, 1 }
  0xff   : > { %980 = vst.msk [vmem:[#allocation3 + $0x38] sm:$0xff] %vm972_vm6, %v891_v11  ;;  %1698 = vrot.lane.b32.xlu1 %v835_v7, %s6136_s23  ;;  %1300 = vrot.lane.b32.xlu0 %v833_v63, %s6133_s14 }
 0x101   : > { %v1551_v13 = vpop.permute.xlu1 %1550  ;;  %v1418_v14 = vpop.permute.xlu0 %1417 }
 0x102   : > { %1643 = vst.msk [vmem:[#allocation3 + $0x20] sm:$0xff] %vm1638_vm11, %v1551_v13  ;;  %v844_v13 = vrot.slane %v480_v1, 2 }
 0x103   : > { %1509 = vst.msk [vmem:[#allocation3 + $0x28] sm:$0xff] %vm1503_vm10, %v1418_v14  ;;  %904 = vrot.lane.b32.xlu1 %v833_v63, %s9220_s26  ;;  %696 = vrot.lane.b32.xlu0 %v625_v4, %s6130_s27  ;;  %v6948_v62 = vld [vmem:[#allocation2 + $0x140] sm:$0xff] }
 0x104   : > { %532 = vst.msk [vmem:[#allocation3 + $0xd8] sm:$0xff] %vm362_vm0, %v6948_v62 }
 0x105   : > { %v1155_v17 = vpop.permute.xlu1 %1154  ;;  %v1022_v18 = vpop.permute.xlu0 %1021 }
 0x106   : > { %1245 = vst.msk [vmem:[#allocation3 + $0x30] sm:$0xff] %vm1238_vm8, %v1155_v17 }
 0x107   : > { %1111 = vst.msk [vmem:[#allocation3 + $0x38] sm:$0xff] %vm1103_vm7, %v1022_v18  ;;  %1431 = vrot.lane.b32.xlu1 %v6537_v19, %s9221_s16  ;;  %1302 = vrot.lane.b32.xlu0 %v835_v7, %s6133_s14 }
 0x109   : > { %v1685_v24 = vpop.permute.xlu1 %1684  ;;  %v1553_v25 = vpop.permute.xlu0 %1552 }
 0x10a   : > { %1777 = vst.msk [vmem:[#allocation3 + $0x20] sm:$0xff] %vm1772_vm12, %v1685_v24 }
 0x10b   : > { %1644 = vst.msk [vmem:[#allocation3 + $0x28] sm:$0xff] %vm1638_vm11, %v1553_v25  ;;  %1035 = vrot.lane.b32.xlu1 %v6537_v19, %s6131_s28  ;;  %906 = vrot.lane.b32.xlu0 %v835_v7, %s9220_s26  ;;  %v6789_v19 = vsel %vm585_vm3, %v627_v23, %v629_v32  ;;  %v356_v23 = vld [vmem:[%s6359_s25 + $0xd0] sm:$0xff] }
 0x10c   : > { %445 = vst.msk [vmem:[#allocation2 + $0x151] sm:$0xff] %vm362_vm0, %v356_v23 }
 0x10d   : > { %v1157_v28 = vpop.permute.xlu1 %1156  ;;  %v683_v47 = vpop.permute.xlu0 %682 }
 0x10e   : > { %1246 = vst.msk [vmem:[#allocation3 + $0x38] sm:$0xff] %vm1238_vm8, %v1157_v28 }
 0x10f   : > { %771 = vst.msk [vmem:[#allocation3 + $0x40] sm:$0xff] %vm762_vm5, %v683_v47  ;;  %1566 = vrot.lane.b32.xlu1 %v628_v27, %s6135_s17  ;;  %1433 = vrot.lane.b32.xlu0 %v6549_v22, %s9221_s16 }
 0x111   : > { %v1687_v33 = vpop.permute.xlu1 %1686  ;;  %v1289_v34 = vpop.permute.xlu0 %1288  ;;  %v1809_v50 = vld [vmem:[#allocation3 + $0x20] sm:$0xff] }
 0x112   : > { %1778 = vst.msk [vmem:[#allocation3 + $0x28] sm:$0xff] %vm1772_vm12, %v1687_v33  ;;  %5608 = vmatprep.mubr.msk.f32.mxu0 %vm1849_vm13, %v1809_v50  ;;  %v638_v50 = vsel %vm585_vm3, %v636_v30, %v637_v31 }
 0x113   : > { %1379 = vst.msk [vmem:[#allocation3 + $0x30] sm:$0xff] %vm1372_vm9, %v1289_v34  ;;  %1170 = vrot.lane.b32.xlu1 %v628_v27, %s6132_s29  ;;  %1037 = vrot.lane.b32.xlu0 %v6549_v22, %s6131_s28  ;;  %v6992_v29 = vld [vmem:[#allocation2 + $0x150] sm:$0xff] }
 0x114   : > { %533 = vst.msk [vmem:[#allocation3 + $0xe0] sm:$0xff] %vm362_vm0, %v6992_v29 }
 0x115   : > { %v893_v38 = vpop.permute.xlu1 %892  ;;  %v685_v39 = vpop.permute.xlu0 %684 }
 0x116   : > { %981 = vst.msk [vmem:[#allocation3 + $0x40] sm:$0xff] %vm972_vm6, %v893_v38  ;;  %v483_v38 = vld [vmem:[#allocation2 + $0x100] sm:$0x3] }
 0x117   : > { %772 = vst.msk [vmem:[#allocation3 + $0x48] sm:$0xff] %vm762_vm5, %v685_v39  ;;  %1700 = vrot.lane.b32.xlu1 %v6786_v37, %s6136_s23  ;;  %1568 = vrot.lane.b32.xlu0 %v6789_v19, %s6135_s17  ;;  %v846_v39 = vrot.slane %v6637_v10, 2 }
 0x119   : > { %v1420_v22 = vpop.permute.xlu1 %1419  ;;  %v1291_v42 = vpop.permute.xlu0 %1290  ;;  %v1810_v43 = vld [vmem:[#allocation3 + $0x28] sm:$0xff] }
 0x11a   : > { %1510 = vst.msk [vmem:[#allocation3 + $0x30] sm:$0xff] %vm1503_vm10, %v1420_v22  ;;  %5609 = vmatmul.mubr.msk.f32.gmra.mxu0 %vm1849_vm13, %v1810_v43  ;;  %v639_v22 = vrot.slane %v483_v38, 1 }
 0x11b   : > { %1380 = vst.msk [vmem:[#allocation3 + $0x38] sm:$0xff] %vm1372_vm9, %v1291_v42  ;;  %1172 = vrot.lane.b32.xlu1 %v6789_v19, %s6132_s29  ;;  %698 = vrot.lane.b32.xlu0 %v628_v27, %s6130_s27  ;;  %v357_v27 = vld [vmem:[%s6359_s25 + $0xd8] sm:$0xff] }
 0x11c   : > { %446 = vst.msk [vmem:[#allocation2 + $0x159] sm:$0xff] %vm362_vm0, %v357_v27 }
 0x11d   : > { %v1024_v46 = vpop.permute.xlu1 %1023  ;;  %v895_v49 = vpop.permute.xlu0 %894 }
 0x11e   : > { %1112 = vst.msk [vmem:[#allocation3 + $0x40] sm:$0xff] %vm1103_vm7, %v1024_v46  ;;  %v848_v46 = vsel %vm795_vm2, %v846_v39, %v847_v41  ;;  %v647_v39 = vrot.slane %v6767_v26, 1 }
 0x11f   : > { %982 = vst.msk [vmem:[#allocation3 + $0x48] sm:$0xff] %vm972_vm6, %v895_v49  ;;  %1702 = vrot.lane.b32.xlu1 %v6804_v44, %s6136_s23  ;;  %1304 = vrot.lane.b32.xlu0 %v6786_v37, %s6133_s14 }
 0x121   : > { %v1555_v52 = vpop.permute.xlu1 %1554  ;;  %v1422_v53 = vpop.permute.xlu0 %1421 }
 0x122   : > { %1645 = vst.msk [vmem:[#allocation3 + $0x30] sm:$0xff] %vm1638_vm11, %v1555_v52  ;;  %v849_v52 = vrot.slane %v483_v38, 2  ;;  %v646_v38 = vrot.slane %v6753_v20, 1 }
 0x123   : > { %1511 = vst.msk [vmem:[#allocation3 + $0x38] sm:$0xff] %vm1503_vm10, %v1422_v53  ;;  %908 = vrot.lane.b32.xlu1 %v6786_v37, %s9220_s26  ;;  %700 = vrot.lane.b32.xlu0 %v6789_v19, %s6130_s27  ;;  %v7006_v34 = vld [vmem:[#allocation2 + $0x158] sm:$0xff] }
 0x124   : > { %534 = vst.msk [vmem:[#allocation3 + $0xe8] sm:$0xff] %vm362_vm0, %v7006_v34 }
 0x125   : > { %v1159_v56 = vpop.permute.xlu1 %1158  ;;  %v1026_v57 = vpop.permute.xlu0 %1025 }
 0x126   : > { %1247 = vst.msk [vmem:[#allocation3 + $0x40] sm:$0xff] %vm1238_vm8, %v1159_v56 }
 0x127   : > { %1113 = vst.msk [vmem:[#allocation3 + $0x48] sm:$0xff] %vm1103_vm7, %v1026_v57  ;;  %1435 = vrot.lane.b32.xlu1 %v6580_v40, %s9221_s16  ;;  %1306 = vrot.lane.b32.xlu0 %v6804_v44, %s6133_s14 }
 0x129   : > { %v1689_v60 = vpop.permute.xlu1 %1688  ;;  %v1557_v61 = vpop.permute.xlu0 %1556 }
 0x12a   : > { %1779 = vst.msk [vmem:[#allocation3 + $0x30] sm:$0xff] %vm1772_vm12, %v1689_v60 }
 0x12b   : > { %1646 = vst.msk [vmem:[#allocation3 + $0x38] sm:$0xff] %vm1638_vm11, %v1557_v61  ;;  %1039 = vrot.lane.b32.xlu1 %v6580_v40, %s6131_s28  ;;  %910 = vrot.lane.b32.xlu0 %v6804_v44, %s9220_s26  ;;  %v635_v40 = vsel %vm585_vm3, %v632_v35, %v634_v5  ;;  %v358_v35 = vld [vmem:[%s6359_s25 + $0xe0] sm:$0xff] }
 0x12c   : > { %447 = vst.msk [vmem:[#allocation2 + $0x169] sm:$0xff] %vm362_vm0, %v358_v35 }
 0x12d   : > { %v1161_v63 = vpop.permute.xlu1 %1160  ;;  %v687_v4 = vpop.permute.xlu0 %686 }
 0x12e   : > { %1248 = vst.msk [vmem:[#allocation3 + $0x48] sm:$0xff] %vm1238_vm8, %v1161_v63 }
 0x12f   : > { %773 = vst.msk [vmem:[#allocation3 + $0x50] sm:$0xff] %vm762_vm5, %v687_v4  ;;  %1570 = vrot.lane.b32.xlu1 %v633_v36, %s6135_s17  ;;  %1437 = vrot.lane.b32.xlu0 %v6595_v45, %s9221_s16 }
 0x131   : > { %v1691_v6 = vpop.permute.xlu1 %1690  ;;  %v1293_v8 = vpop.permute.xlu0 %1292  ;;  %v1811_v7 = vld [vmem:[#allocation3 + $0x30] sm:$0xff] }
 0x132   : > { %1780 = vst.msk [vmem:[#allocation3 + $0x38] sm:$0xff] %vm1772_vm12, %v1691_v6  ;;  %5611 = vmatprep.mubr.msk.f32.mxu0 %vm1849_vm13, %v1811_v7 }
 0x133   : > { %1381 = vst.msk [vmem:[#allocation3 + $0x40] sm:$0xff] %vm1372_vm9, %v1293_v8  ;;  %1174 = vrot.lane.b32.xlu1 %v633_v36, %s6132_s29  ;;  %1041 = vrot.lane.b32.xlu0 %v6595_v45, %s6131_s28  ;;  %v845_v45 = vsel %vm795_vm2, %v842_v3, %v844_v13  ;;  %v7050_v1 = vld [vmem:[#allocation2 + $0x168] sm:$0xff]  ;;  %v642_v3 = vrot.slane %v6709_v54, 1  ;;  %v852_v13 = vrot.slane %v6709_v54, 2 }
 0x134   : > { %535 = vst.msk [vmem:[#allocation3 + $0xf0] sm:$0xff] %vm362_vm0, %v7050_v1 }
 0x135   : > { %v897_v11 = vpop.permute.xlu1 %896  ;;  %v689_v12 = vpop.permute.xlu0 %688  ;;  %v643_v7 = vsel %vm585_vm3, %v641_v2, %v642_v3 }
 0x136   : > { %983 = vst.msk [vmem:[#allocation3 + $0x50] sm:$0xff] %vm972_vm6, %v897_v11  ;;  %v486_v11 = vld [vmem:[#allocation2 + $0x118] sm:$0x3] }
 0x137   : > { %774 = vst.msk [vmem:[#allocation3 + $0x58] sm:$0xff] %vm762_vm5, %v689_v12  ;;  %1704 = vrot.lane.b32.xlu1 %v843_v9, %s6136_s23  ;;  %1572 = vrot.lane.b32.xlu0 %v635_v40, %s6135_s17  ;;  %v851_v12 = vrot.slane %v6695_v48, 2 }
 0x139   : > { %v1424_v14 = vpop.permute.xlu1 %1423  ;;  %v1295_v16 = vpop.permute.xlu0 %1294  ;;  %v1812_v17 = vld [vmem:[#allocation3 + $0x38] sm:$0xff] }
 0x13a   : > { %1512 = vst.msk [vmem:[#allocation3 + $0x40] sm:$0xff] %vm1503_vm10, %v1424_v14  ;;  %5612 = vmatmul.mubr.msk.f32.gmra.mxu0 %vm1849_vm13, %v1812_v17  ;;  %v644_v14 = vrot.slane %v486_v11, 1 }
 0x13b   : > { %1382 = vst.msk [vmem:[#allocation3 + $0x48] sm:$0xff] %vm1372_vm9, %v1295_v16  ;;  %1176 = vrot.lane.b32.xlu1 %v635_v40, %s6132_s29  ;;  %702 = vrot.lane.b32.xlu0 %v633_v36, %s6130_s27  ;;  %v359_v36 = vld [vmem:[%s6359_s25 + $0xe8] sm:$0xff] }
 0x13c   : > { %448 = vst.msk [vmem:[#allocation2 + $0x171] sm:$0xff] %vm362_vm0, %v359_v36 }
 0x13d   : > { %v1028_v18 = vpop.permute.xlu1 %1027  ;;  %v899_v21 = vpop.permute.xlu0 %898 }
 0x13e   : > { %1114 = vst.msk [vmem:[#allocation3 + $0x50] sm:$0xff] %vm1103_vm7, %v1028_v18  ;;  %v853_v18 = vsel %vm795_vm2, %v851_v12, %v852_v13 }
 0x13f   : > { %984 = vst.msk [vmem:[#allocation3 + $0x58] sm:$0xff] %vm972_vm6, %v899_v21  ;;  %1706 = vrot.lane.b32.xlu1 %v845_v45, %s6136_s23  ;;  %1308 = vrot.lane.b32.xlu0 %v843_v9, %s6133_s14 }
 0x141   : > { %v1559_v24 = vpop.permute.xlu1 %1558  ;;  %v1426_v25 = vpop.permute.xlu0 %1425 }
 0x142   : > { %1647 = vst.msk [vmem:[#allocation3 + $0x40] sm:$0xff] %vm1638_vm11, %v1559_v24  ;;  %v854_v24 = vrot.slane %v486_v11, 2 }
 0x143   : > { %1513 = vst.msk [vmem:[#allocation3 + $0x48] sm:$0xff] %vm1503_vm10, %v1426_v25  ;;  %912 = vrot.lane.b32.xlu1 %v843_v9, %s9220_s26  ;;  %704 = vrot.lane.b32.xlu0 %v635_v40, %s6130_s27  ;;  %v7064_v8 = vld [vmem:[#allocation2 + $0x170] sm:$0xff] }
 0x144   : > { %536 = vst.msk [vmem:[#allocation3 + $0xf8] sm:$0xff] %vm362_vm0, %v7064_v8 }
 0x145   : > { %v1163_v28 = vpop.permute.xlu1 %1162  ;;  %v1030_v47 = vpop.permute.xlu0 %1029 }
 0x146   : > { %1249 = vst.msk [vmem:[#allocation3 + $0x50] sm:$0xff] %vm1238_vm8, %v1163_v28 }
 0x147   : > { %1115 = vst.msk [vmem:[#allocation3 + $0x58] sm:$0xff] %vm1103_vm7, %v1030_v47  ;;  %1439 = vrot.lane.b32.xlu1 %v6637_v10, %s9221_s16  ;;  %1310 = vrot.lane.b32.xlu0 %v845_v45, %s6133_s14 }
 0x149   : > { %v1693_v32 = vpop.permute.xlu1 %1692  ;;  %v1561_v33 = vpop.permute.xlu0 %1560 }
 0x14a   : > { %1781 = vst.msk [vmem:[#allocation3 + $0x40] sm:$0xff] %vm1772_vm12, %v1693_v32 }
 0x14b   : > { %1648 = vst.msk [vmem:[#allocation3 + $0x48] sm:$0xff] %vm1638_vm11, %v1561_v33  ;;  %1043 = vrot.lane.b32.xlu1 %v6637_v10, %s6131_s28  ;;  %914 = vrot.lane.b32.xlu0 %v845_v45, %s9220_s26  ;;  %v640_v10 = vsel %vm585_vm3, %v637_v31, %v639_v22  ;;  %v360_v31 = vld [vmem:[%s6359_s25 + $0xf0] sm:$0xff] }
 0x14c   : > { %449 = vst.msk [vmem:[#allocation2 + $0x181] sm:$0xff] %vm362_vm0, %v360_v31  ;;  %v861_v31 = vrot.slane %v6932_v58, 2 }
 0x14d   : > { %v1165_v37 = vpop.permute.xlu1 %1164  ;;  %v691_v19 = vpop.permute.xlu0 %690 }
 0x14e   : > { %1250 = vst.msk [vmem:[#allocation3 + $0x58] sm:$0xff] %vm1238_vm8, %v1165_v37 }
 0x14f   : > { %775 = vst.msk [vmem:[#allocation3 + $0x60] sm:$0xff] %vm762_vm5, %v691_v19  ;;  %1574 = vrot.lane.b32.xlu1 %v638_v50, %s6135_s17  ;;  %1441 = vrot.lane.b32.xlu0 %v6651_v15, %s9221_s16 }
 0x151   : > { %v1695_v42 = vpop.permute.xlu1 %1694  ;;  %v1297_v43 = vpop.permute.xlu0 %1296  ;;  %v1813_v44 = vld [vmem:[#allocation3 + $0x40] sm:$0xff] }
 0x152   : > { %1782 = vst.msk [vmem:[#allocation3 + $0x48] sm:$0xff] %vm1772_vm12, %v1695_v42  ;;  %5614 = vmatprep.mubr.msk.f32.mxu0 %vm1849_vm13, %v1813_v44  ;;  %v648_v42 = vsel %vm585_vm3, %v646_v38, %v647_v39 }
 0x153   : > { %1383 = vst.msk [vmem:[#allocation3 + $0x50] sm:$0xff] %vm1372_vm9, %v1297_v43  ;;  %1178 = vrot.lane.b32.xlu1 %v638_v50, %s6132_s29  ;;  %1045 = vrot.lane.b32.xlu0 %v6651_v15, %s6131_s28  ;;  %v850_v15 = vsel %vm795_vm2, %v847_v41, %v849_v52 }
 0x155   : > { %v901_v49 = vpop.permute.xlu1 %900  ;;  %v693_v51 = vpop.permute.xlu0 %692 }
 0x156   : > { %985 = vst.msk [vmem:[#allocation3 + $0x60] sm:$0xff] %vm972_vm6, %v901_v49  ;;  %v857_v49 = vrot.slane %v6767_v26, 2 }
 0x157   : > { %776 = vst.msk [vmem:[#allocation3 + $0x68] sm:$0xff] %vm762_vm5, %v693_v51  ;;  %1708 = vrot.lane.b32.xlu1 %v848_v46, %s6136_s23  ;;  %1576 = vrot.lane.b32.xlu0 %v640_v10, %s6135_s17 }
 0x159   : > { %v1428_v53 = vpop.permute.xlu1 %1427  ;;  %v1299_v55 = vpop.permute.xlu0 %1298  ;;  %v1814_v56 = vld [vmem:[#allocation3 + $0x48] sm:$0xff] }
 0x15a   : > { %1514 = vst.msk [vmem:[#allocation3 + $0x50] sm:$0xff] %vm1503_vm10, %v1428_v53  ;;  %5615 = vmatmul.mubr.msk.f32.gmra.mxu0 %vm1849_vm13, %v1814_v56 }
 0x15b   : > { %1384 = vst.msk [vmem:[#allocation3 + $0x58] sm:$0xff] %vm1372_vm9, %v1299_v55  ;;  %1180 = vrot.lane.b32.xlu1 %v640_v10, %s6132_s29  ;;  %706 = vrot.lane.b32.xlu0 %v638_v50, %s6130_s27  ;;  %v361_v50 = vld [vmem:[%s6359_s25 + $0xf8] sm:$0xff]  ;;  %s6140_s25 = smov 64  }
 0x15c   : > { %450 = vst.msk [vmem:[#allocation2 + $0x189] sm:$0xff] %vm362_vm0, %v361_v50  ;;  %vm2606_vm0 = vcmask 130112  }
 0x15d   : > { %v1032_v57 = vpop.permute.xlu1 %1031  ;;  %v903_v59 = vpop.permute.xlu0 %902 }
 0x15e   : > { %1116 = vst.msk [vmem:[#allocation3 + $0x60] sm:$0xff] %vm1103_vm7, %v1032_v57 }
 0x15f   : > { %986 = vst.msk [vmem:[#allocation3 + $0x68] sm:$0xff] %vm972_vm6, %v903_v59  ;;  %1710 = vrot.lane.b32.xlu1 %v850_v15, %s6136_s23  ;;  %1312 = vrot.lane.b32.xlu0 %v848_v46, %s6133_s14  ;;  %v7141_v59 = vld [vmem:[%s9203_s2] ss:$0 sm:$0xff] }
 0x161   : > { %v1563_v60 = vpop.permute.xlu1 %1562  ;;  %v1430_v61 = vpop.permute.xlu0 %1429 }
 0x162   : > { %1649 = vst.msk [vmem:[#allocation3 + $0x50] sm:$0xff] %vm1638_vm11, %v1563_v60 }
 0x163   : > { %1515 = vst.msk [vmem:[#allocation3 + $0x58] sm:$0xff] %vm1503_vm10, %v1430_v61  ;;  %916 = vrot.lane.b32.xlu1 %v848_v46, %s9220_s26  ;;  %708 = vrot.lane.b32.xlu0 %v640_v10, %s6130_s27  ;;  %v489_v46 = vld [vmem:[#allocation2 + $0x130] sm:$0x3]  ;;  %v856_v10 = vrot.slane %v6753_v20, 2 }
 0x164   : > { %v649_v51 = vrot.slane %v489_v46, 1 }
 0x165   : > { %v1167_v63 = vpop.permute.xlu1 %1166  ;;  %v1034_v4 = vpop.permute.xlu0 %1033  ;;  %v858_v56 = vsel %vm795_vm2, %v856_v10, %v857_v49 }
 0x166   : > { %1251 = vst.msk [vmem:[#allocation3 + $0x60] sm:$0xff] %vm1238_vm8, %v1167_v63 }
 0x167   : > { %1117 = vst.msk [vmem:[#allocation3 + $0x68] sm:$0xff] %vm1103_vm7, %v1034_v4  ;;  %1443 = vrot.lane.b32.xlu1 %v6695_v48, %s9221_s16  ;;  %1314 = vrot.lane.b32.xlu0 %v850_v15, %s6133_s14 }
 0x169   : > { %v1697_v5 = vpop.permute.xlu1 %1696  ;;  %v1565_v6 = vpop.permute.xlu0 %1564 }
 0x16a   : > { %1783 = vst.msk [vmem:[#allocation3 + $0x50] sm:$0xff] %vm1772_vm12, %v1697_v5 }
 0x16b   : > { %1650 = vst.msk [vmem:[#allocation3 + $0x58] sm:$0xff] %vm1638_vm11, %v1565_v6  ;;  %1047 = vrot.lane.b32.xlu1 %v6695_v48, %s6131_s28  ;;  %918 = vrot.lane.b32.xlu0 %v850_v15, %s9220_s26  ;;  %v645_v48 = vsel %vm585_vm3, %v642_v3, %v644_v14  ;;  %v651_v14 = vrot.slane %v6932_v58, 1 }
 0x16d   : > { %v1169_v9 = vpop.permute.xlu1 %1168  ;;  %v695_v40 = vpop.permute.xlu0 %694 }
 0x16e   : > { %1252 = vst.msk [vmem:[#allocation3 + $0x68] sm:$0xff] %vm1238_vm8, %v1169_v9 }
 0x16f   : > { %777 = vst.msk [vmem:[#allocation3 + $0x70] sm:$0xff] %vm762_vm5, %v695_v40  ;;  %1578 = vrot.lane.b32.xlu1 %v643_v7, %s6135_s17  ;;  %1445 = vrot.lane.b32.xlu0 %v6709_v54, %s9221_s16 }
 0x171   : > { %v1699_v16 = vpop.permute.xlu1 %1698  ;;  %v1301_v17 = vpop.permute.xlu0 %1300  ;;  %v1815_v45 = vld [vmem:[#allocation3 + $0x50] sm:$0xff] }
 0x172   : > { %1784 = vst.msk [vmem:[#allocation3 + $0x58] sm:$0xff] %vm1772_vm12, %v1699_v16  ;;  %5617 = vmatprep.mubr.msk.f32.mxu0 %vm1849_vm13, %v1815_v45  ;;  %v652_v16 = vrot.slane %v6948_v62, 1 }
 0x173   : > { %1385 = vst.msk [vmem:[#allocation3 + $0x60] sm:$0xff] %vm1372_vm9, %v1301_v17  ;;  %1182 = vrot.lane.b32.xlu1 %v643_v7, %s6132_s29  ;;  %1049 = vrot.lane.b32.xlu0 %v6709_v54, %s6131_s28  ;;  %v855_v54 = vsel %vm795_vm2, %v852_v13, %v854_v24 }
 0x174   : > { %v653_v24 = vsel %vm585_vm3, %v651_v14, %v652_v16 }
 0x175   : > { %v905_v21 = vpop.permute.xlu1 %904  ;;  %v697_v23 = vpop.permute.xlu0 %696 }
 0x176   : > { %987 = vst.msk [vmem:[#allocation3 + $0x70] sm:$0xff] %vm972_vm6, %v905_v21  ;;  %v7181_v21 = vld [vmem:[#allocation4 + $0x8] sm:$0xff] }
 0x177   : > { %778 = vst.msk [vmem:[#allocation3 + $0x78] sm:$0xff] %vm762_vm5, %v697_v23  ;;  %1712 = vrot.lane.b32.xlu1 %v853_v18, %s6136_s23  ;;  %1580 = vrot.lane.b32.xlu0 %v645_v48, %s6135_s17  ;;  %v2296_v23 = vld [vmem:[#allocation4] sm:$0xff]  ;;  %v2640_v50 = vrot.slane %v7181_v21, 2 }
 0x178   : > { %2351 = vst.msk [vmem:[#allocation5 + $0x8] sm:$0xff] %vm2207_vm14, %v7181_v21  ;;  %2350 = vst.msk [vmem:[#allocation5] sm:$0xff] %vm2207_vm14, %v2296_v23 }
 0x179   : > { %v1432_v25 = vpop.permute.xlu1 %1431  ;;  %v1303_v27 = vpop.permute.xlu0 %1302  ;;  %v1816_v28 = vld [vmem:[#allocation3 + $0x58] sm:$0xff] }
 0x17a   : > { %1516 = vst.msk [vmem:[#allocation3 + $0x60] sm:$0xff] %vm1503_vm10, %v1432_v25  ;;  %5618 = vmatmul.mubr.msk.f32.gmra.mxu0 %vm1849_vm13, %v1816_v28  ;;  %v2431_v25 = vrot.slane %v7181_v21, 1 }
 0x17b   : > { %1386 = vst.msk [vmem:[#allocation3 + $0x68] sm:$0xff] %vm1372_vm9, %v1303_v27  ;;  %1184 = vrot.lane.b32.xlu1 %v645_v48, %s6132_s29  ;;  %710 = vrot.lane.b32.xlu0 %v643_v7, %s6130_s27  ;;  %v2430_v27 = vrot.slane %v2296_v23, 1 }
 0x17d   : > { %v1036_v47 = vpop.permute.xlu1 %1035  ;;  %v907_v30 = vpop.permute.xlu0 %906 }
 0x17e   : > { %1118 = vst.msk [vmem:[#allocation3 + $0x70] sm:$0xff] %vm1103_vm7, %v1036_v47  ;;  %v492_v47 = vld [vmem:[#allocation2 + $0x148] sm:$0x3] }
 0x17f   : > { %988 = vst.msk [vmem:[#allocation3 + $0x78] sm:$0xff] %vm972_vm6, %v907_v30  ;;  %1714 = vrot.lane.b32.xlu1 %v855_v54, %s6136_s23  ;;  %1316 = vrot.lane.b32.xlu0 %v853_v18, %s6133_s14  ;;  %v7193_v30 = vsel %vm585_vm3, %v2430_v27, %v2431_v25 }
 0x181   : > { %v1567_v32 = vpop.permute.xlu1 %1566  ;;  %v1434_v33 = vpop.permute.xlu0 %1433 }
 0x182   : > { %1651 = vst.msk [vmem:[#allocation3 + $0x60] sm:$0xff] %vm1638_vm11, %v1567_v32  ;;  %v862_v32 = vrot.slane %v6948_v62, 2 }
 0x183   : > { %1517 = vst.msk [vmem:[#allocation3 + $0x68] sm:$0xff] %vm1503_vm10, %v1434_v33  ;;  %920 = vrot.lane.b32.xlu1 %v853_v18, %s9220_s26  ;;  %712 = vrot.lane.b32.xlu0 %v645_v48, %s6130_s27  ;;  %v654_v33 = vrot.slane %v492_v47, 1 }
 0x185   : > { %v1171_v37 = vpop.permute.xlu1 %1170  ;;  %v1038_v19 = vpop.permute.xlu0 %1037 }
 0x186   : > { %1253 = vst.msk [vmem:[#allocation3 + $0x70] sm:$0xff] %vm1238_vm8, %v1171_v37  ;;  %v2639_v37 = vrot.slane %v2296_v23, 2 }
 0x187   : > { %1119 = vst.msk [vmem:[#allocation3 + $0x78] sm:$0xff] %vm1103_vm7, %v1038_v19  ;;  %1447 = vrot.lane.b32.xlu1 %v6753_v20, %s9221_s16  ;;  %1318 = vrot.lane.b32.xlu0 %v855_v54, %s6133_s14 }
 0x189   : > { %v1701_v41 = vpop.permute.xlu1 %1700  ;;  %v1569_v22 = vpop.permute.xlu0 %1568 }
 0x18a   : > { %1785 = vst.msk [vmem:[#allocation3 + $0x60] sm:$0xff] %vm1772_vm12, %v1701_v41  ;;  %v7207_v41 = vsel %vm795_vm2, %v2639_v37, %v2640_v50 }
 0x18b   : > { %1652 = vst.msk [vmem:[#allocation3 + $0x68] sm:$0xff] %vm1638_vm11, %v1569_v22  ;;  %1051 = vrot.lane.b32.xlu1 %v6753_v20, %s6131_s28  ;;  %922 = vrot.lane.b32.xlu0 %v855_v54, %s9220_s26  ;;  %v650_v20 = vsel %vm585_vm3, %v647_v39, %v649_v51  ;;  %v655_v22 = vsel %vm585_vm3, %v652_v16, %v654_v33 }
 0x18d   : > { %v1173_v43 = vpop.permute.xlu1 %1172  ;;  %v699_v44 = vpop.permute.xlu0 %698 }
 0x18e   : > { %1254 = vst.msk [vmem:[#allocation3 + $0x78] sm:$0xff] %vm1238_vm8, %v1173_v43 }
 0x18f   : > { %779 = vst.msk [vmem:[#allocation3 + $0x80] sm:$0xff] %vm762_vm5, %v699_v44  ;;  %1582 = vrot.lane.b32.xlu1 %v648_v42, %s6135_s17  ;;  %1449 = vrot.lane.b32.xlu0 %v6767_v26, %s9221_s16  ;;  %v864_v44 = vrot.slane %v492_v47, 2 }
 0x191   : > { %v1703_v52 = vpop.permute.xlu1 %1702  ;;  %v1305_v53 = vpop.permute.xlu0 %1304  ;;  %v1817_v55 = vld [vmem:[#allocation3 + $0x60] sm:$0xff] }
 0x192   : > { %1786 = vst.msk [vmem:[#allocation3 + $0x68] sm:$0xff] %vm1772_vm12, %v1703_v52  ;;  %5620 = vmatprep.mubr.msk.f32.mxu0 %vm1849_vm13, %v1817_v55 }
 0x193   : > { %1387 = vst.msk [vmem:[#allocation3 + $0x70] sm:$0xff] %vm1372_vm9, %v1305_v53  ;;  %1186 = vrot.lane.b32.xlu1 %v648_v42, %s6132_s29  ;;  %1053 = vrot.lane.b32.xlu0 %v6767_v26, %s6131_s28  ;;  %v859_v26 = vrot.slane %v489_v46, 2  ;;  %v865_v53 = vsel %vm795_vm2, %v862_v32, %v864_v44 }
 0x195   : > { %v909_v15 = vpop.permute.xlu1 %908  ;;  %v701_v57 = vpop.permute.xlu0 %700  ;;  %v860_v2 = vsel %vm795_vm2, %v857_v49, %v859_v26 }
 0x196   : > { %989 = vst.msk [vmem:[#allocation3 + $0x80] sm:$0xff] %vm972_vm6, %v909_v15 }
 0x197   : > { %780 = vst.msk [vmem:[#allocation3 + $0x88] sm:$0xff] %vm762_vm5, %v701_v57  ;;  %1716 = vrot.lane.b32.xlu1 %v858_v56, %s6136_s23  ;;  %1584 = vrot.lane.b32.xlu0 %v650_v20, %s6135_s17 }
 0x199   : > { %v1436_v35 = vpop.permute.xlu1 %1435  ;;  %v1307_v60 = vpop.permute.xlu0 %1306  ;;  %v1818_v61 = vld [vmem:[#allocation3 + $0x68] sm:$0xff] }
 0x19a   : > { %1518 = vst.msk [vmem:[#allocation3 + $0x70] sm:$0xff] %vm1503_vm10, %v1436_v35  ;;  %v5604_v36 = vpop.f32.mrf.mxu0  ;;  %5621 = vmatmul.mubr.msk.f32.gmra.mxu0 %vm1849_vm13, %v1818_v61 }
 0x19b   : > { %1388 = vst.msk [vmem:[#allocation3 + $0x78] sm:$0xff] %vm1372_vm9, %v1307_v60  ;;  %v2022_v63 = vadd.f32 %v5604_v36, %v7141_v59  ;;  %1188 = vrot.lane.b32.xlu1 %v650_v20, %s6132_s29  ;;  %714 = vrot.lane.b32.xlu0 %v648_v42, %s6130_s27  ;;  %v656_v36 = vrot.slane %v6992_v29, 1 }
 0x19c   : > { %v2016_v4 = vpop.f32.mrf.mxu0 }
 0x19d   : > { %v2176_v3 = vmax.f32 %v2022_v63, 0.0  ;;  %v2017_v5 = vadd.f32 %v7141_v59, %v2016_v4  ;;  %v1040_v6 = vpop.permute.xlu1 %1039  ;;  %v911_v7 = vpop.permute.xlu0 %910  ;;  %v657_v63 = vrot.slane %v7006_v34, 1 }
 0x19e   : > { %1120 = vst.msk [vmem:[#allocation3 + $0x80] sm:$0xff] %vm1103_vm7, %v1040_v6 }
 0x19f   : > { %990 = vst.msk [vmem:[#allocation3 + $0x88] sm:$0xff] %vm972_vm6, %v911_v7  ;;  %v2175_v9 = vmax.f32 %v2017_v5, 0.0  ;;  %1718 = vrot.lane.b32.xlu1 %v860_v2, %s6136_s23  ;;  %1320 = vrot.lane.b32.xlu0 %v858_v56, %s6133_s14  ;;  %v658_v6 = vsel %vm585_vm3, %v656_v36, %v657_v63 }
 0x1a0   : > { %2265 = vst.msk [vmem:[#allocation4 + $0x21] sm:$0xff] %vm2207_vm14, %v2176_v3 }
 0x1a1   : > { %2264 = vst.msk [vmem:[#allocation4 + $0x19] sm:$0xff] %vm2207_vm14, %v2175_v9  ;;  %v1571_v40 = vpop.permute.xlu1 %1570  ;;  %v1438_v11 = vpop.permute.xlu0 %1437 }
 0x1a2   : > { %1653 = vst.msk [vmem:[#allocation3 + $0x70] sm:$0xff] %vm1638_vm11, %v1571_v40  ;;  %v495_v40 = vld [vmem:[#allocation2 + $0x160] sm:$0x3] }
 0x1a3   : > { %1519 = vst.msk [vmem:[#allocation3 + $0x78] sm:$0xff] %vm1503_vm10, %v1438_v11  ;;  %924 = vrot.lane.b32.xlu1 %v858_v56, %s9220_s26  ;;  %716 = vrot.lane.b32.xlu0 %v650_v20, %s6130_s27  ;;  %v866_v11 = vrot.slane %v6992_v29, 2  ;;  %v869_v27 = vrot.slane %v495_v40, 2 }
 0x1a5   : > { %v1175_v12 = vpop.permute.xlu1 %1174  ;;  %v1042_v13 = vpop.permute.xlu0 %1041 }
 0x1a6   : > { %1255 = vst.msk [vmem:[#allocation3 + $0x80] sm:$0xff] %vm1238_vm8, %v1175_v12  ;;  %v867_v12 = vrot.slane %v7006_v34, 2 }
 0x1a7   : > { %1121 = vst.msk [vmem:[#allocation3 + $0x88] sm:$0xff] %vm1103_vm7, %v1042_v13  ;;  %1451 = vrot.lane.b32.xlu1 %v6932_v58, %s9221_s16  ;;  %1322 = vrot.lane.b32.xlu0 %v860_v2, %s6133_s14  ;;  %v659_v13 = vrot.slane %v495_v40, 1 }
 0x1a8   : > { %v7168_v17 = vld [vmem:[#allocation4 + $0x20] sm:$0xff]  ;;  %v7170_v45 = vld [vmem:[#allocation4 + $0x18] sm:$0xff]  ;;  %v870_v33 = vsel %vm795_vm2, %v867_v12, %v869_v27 }
 0x1a9   : > { %v1705_v18 = vpop.permute.xlu1 %1704  ;;  %v1573_v48 = vpop.permute.xlu0 %1572  ;;  %2353 = vst.msk [vmem:[#allocation5 + $0x18] sm:$0xff] %vm2207_vm14, %v7168_v17  ;;  %2352 = vst.msk [vmem:[#allocation5 + $0x10] sm:$0xff] %vm2207_vm14, %v7170_v45  ;;  %v2436_v21 = vrot.slane %v7168_v17, 1 }
 0x1aa   : > { %1787 = vst.msk [vmem:[#allocation3 + $0x70] sm:$0xff] %vm1772_vm12, %v1705_v18 }
 0x1ab   : > { %1654 = vst.msk [vmem:[#allocation3 + $0x78] sm:$0xff] %vm1638_vm11, %v1573_v48  ;;  %1055 = vrot.lane.b32.xlu1 %v6932_v58, %s6131_s28  ;;  %926 = vrot.lane.b32.xlu0 %v860_v2, %s9220_s26  ;;  %v863_v58 = vsel %vm795_vm2, %v861_v31, %v862_v32  ;;  %v868_v48 = vsel %vm795_vm2, %v866_v11, %v867_v12 }
 0x1ad   : > { %v1177_v28 = vpop.permute.xlu1 %1176  ;;  %v703_v54 = vpop.permute.xlu0 %702 }
 0x1ae   : > { %1256 = vst.msk [vmem:[#allocation3 + $0x88] sm:$0xff] %vm1238_vm8, %v1177_v28 }
 0x1af   : > { %781 = vst.msk [vmem:[#allocation3 + $0x90] sm:$0xff] %vm762_vm5, %v703_v54  ;;  %1586 = vrot.lane.b32.xlu1 %v653_v24, %s6135_s17  ;;  %1453 = vrot.lane.b32.xlu0 %v6948_v62, %s9221_s16 }
 0x1b1   : > { %v1707_v19 = vpop.permute.xlu1 %1706  ;;  %v1309_v38 = vpop.permute.xlu0 %1308  ;;  %v1819_v39 = vld [vmem:[#allocation3 + $0x70] sm:$0xff] }
 0x1b2   : > { %1788 = vst.msk [vmem:[#allocation3 + $0x78] sm:$0xff] %vm1772_vm12, %v1707_v19  ;;  %5623 = vmatprep.mubr.msk.f32.mxu0 %vm1849_vm13, %v1819_v39 }
 0x1b3   : > { %1389 = vst.msk [vmem:[#allocation3 + $0x80] sm:$0xff] %vm1372_vm9, %v1309_v38  ;;  %1190 = vrot.lane.b32.xlu1 %v653_v24, %s6132_s29  ;;  %1057 = vrot.lane.b32.xlu0 %v6948_v62, %s6131_s28 }
 0x1b5   : > { %v913_v42 = vpop.permute.xlu1 %912  ;;  %v705_v43 = vpop.permute.xlu0 %704 }
 0x1b6   : > { %991 = vst.msk [vmem:[#allocation3 + $0x90] sm:$0xff] %vm972_vm6, %v913_v42 }
 0x1b7   : > { %782 = vst.msk [vmem:[#allocation3 + $0x98] sm:$0xff] %vm762_vm5, %v705_v43  ;;  %1720 = vrot.lane.b32.xlu1 %v863_v58, %s6136_s23  ;;  %1588 = vrot.lane.b32.xlu0 %v655_v22, %s6135_s17 }
 0x1b9   : > { %v1440_v46 = vpop.permute.xlu1 %1439  ;;  %v1311_v10 = vpop.permute.xlu0 %1310  ;;  %v1820_v49 = vld [vmem:[#allocation3 + $0x78] sm:$0xff] }
 0x1ba   : > { %1520 = vst.msk [vmem:[#allocation3 + $0x80] sm:$0xff] %vm1503_vm10, %v1440_v46  ;;  %v5607_v62 = vpop.f32.mrf.mxu0  ;;  %5624 = vmatmul.mubr.msk.f32.gmra.mxu0 %vm1849_vm13, %v1820_v49  ;;  %v661_v46 = vrot.slane %v7050_v1, 1 }
 0x1bb   : > { %1390 = vst.msk [vmem:[#allocation3 + $0x88] sm:$0xff] %vm1372_vm9, %v1311_v10  ;;  %v2032_v51 = vadd.f32 %v5607_v62, %v7141_v59  ;;  %1192 = vrot.lane.b32.xlu1 %v655_v22, %s6132_s29  ;;  %718 = vrot.lane.b32.xlu0 %v653_v24, %s6130_s27  ;;  %v662_v10 = vrot.slane %v7064_v8, 1 }
 0x1bc   : > { %v2026_v52 = vpop.f32.mrf.mxu0 }
 0x1bd   : > { %v2178_v55 = vmax.f32 %v2032_v51, 0.0  ;;  %v2027_v56 = vadd.f32 %v7141_v59, %v2026_v52  ;;  %v1044_v20 = vpop.permute.xlu1 %1043  ;;  %v915_v15 = vpop.permute.xlu0 %914 }
 0x1be   : > { %1122 = vst.msk [vmem:[#allocation3 + $0x90] sm:$0xff] %vm1103_vm7, %v1044_v20  ;;  %v498_v20 = vld [vmem:[#allocation2 + $0x178] sm:$0x3] }
 0x1bf   : > { %992 = vst.msk [vmem:[#allocation3 + $0x98] sm:$0xff] %vm972_vm6, %v915_v15  ;;  %v2177_v57 = vmax.f32 %v2027_v56, 0.0  ;;  %1722 = vrot.lane.b32.xlu1 %v865_v53, %s6136_s23  ;;  %1324 = vrot.lane.b32.xlu0 %v863_v58, %s6133_s14  ;;  %v871_v15 = vrot.slane %v7050_v1, 2 }
 0x1c0   : > { %2267 = vst.msk [vmem:[#allocation4 + $0x39] sm:$0xff] %vm2207_vm14, %v2178_v55 }
 0x1c1   : > { %2266 = vst.msk [vmem:[#allocation4 + $0x31] sm:$0xff] %vm2207_vm14, %v2177_v57  ;;  %v1575_v26 = vpop.permute.xlu1 %1574  ;;  %v1442_v35 = vpop.permute.xlu0 %1441  ;;  %v872_v57 = vrot.slane %v7064_v8, 2 }
 0x1c2   : > { %1655 = vst.msk [vmem:[#allocation3 + $0x80] sm:$0xff] %vm1638_vm11, %v1575_v26  ;;  %v664_v26 = vrot.slane %v498_v20, 1 }
 0x1c3   : > { %1521 = vst.msk [vmem:[#allocation3 + $0x88] sm:$0xff] %vm1503_vm10, %v1442_v35  ;;  %928 = vrot.lane.b32.xlu1 %v863_v58, %s9220_s26  ;;  %720 = vrot.lane.b32.xlu0 %v655_v22, %s6130_s27  ;;  %v873_v36 = vsel %vm795_vm2, %v871_v15, %v872_v57 }
 0x1c5   : > { %v1179_v60 = vpop.permute.xlu1 %1178  ;;  %v1046_v61 = vpop.permute.xlu0 %1045 }
 0x1c6   : > { %1257 = vst.msk [vmem:[#allocation3 + $0x90] sm:$0xff] %vm1238_vm8, %v1179_v60 }
 0x1c7   : > { %1123 = vst.msk [vmem:[#allocation3 + $0x98] sm:$0xff] %vm1103_vm7, %v1046_v61  ;;  %1455 = vrot.lane.b32.xlu1 %v6992_v29, %s9221_s16  ;;  %1326 = vrot.lane.b32.xlu0 %v865_v53, %s6133_s14 }
 0x1c8   : > { %v7243_v4 = vld [vmem:[#allocation4 + $0x30] sm:$0xff]  ;;  %v7245_v2 = vld [vmem:[#allocation4 + $0x38] sm:$0xff] }
 0x1c9   : > { %v1709_v3 = vpop.permute.xlu1 %1708  ;;  %v1577_v5 = vpop.permute.xlu0 %1576  ;;  %2354 = vst.msk [vmem:[#allocation5 + $0x20] sm:$0xff] %vm2207_vm14, %v7243_v4  ;;  %2355 = vst.msk [vmem:[#allocation5 + $0x28] sm:$0xff] %vm2207_vm14, %v7245_v2 }
 0x1ca   : > { %1789 = vst.msk [vmem:[#allocation3 + $0x80] sm:$0xff] %vm1772_vm12, %v1709_v3 }
 0x1cb   : > { %1656 = vst.msk [vmem:[#allocation3 + $0x88] sm:$0xff] %vm1638_vm11, %v1577_v5  ;;  %1059 = vrot.lane.b32.xlu1 %v6992_v29, %s6131_s28  ;;  %930 = vrot.lane.b32.xlu0 %v865_v53, %s9220_s26  ;;  %v660_v29 = vsel %vm585_vm3, %v657_v63, %v659_v13  ;;  %v663_v53 = vsel %vm585_vm3, %v661_v46, %v662_v10  ;;  %v874_v5 = vrot.slane %v498_v20, 2 }
 0x1cd   : > { %v1181_v7 = vpop.permute.xlu1 %1180  ;;  %v707_v9 = vpop.permute.xlu0 %706  ;;  %v875_v12 = vsel %vm795_vm2, %v872_v57, %v874_v5  ;;  %v503_v5 = vld [vmem:[#allocation2 + $0x1a0] sm:$0xff] }
 0x1ce   : > { %1258 = vst.msk [vmem:[#allocation3 + $0x98] sm:$0xff] %vm1238_vm8, %v1181_v7 }
 0x1cf   : > { %783 = vst.msk [vmem:[#allocation3 + $0xa0] sm:$0xff] %vm762_vm5, %v707_v9  ;;  %1590 = vrot.lane.b32.xlu1 %v658_v6, %s6135_s17  ;;  %1457 = vrot.lane.b32.xlu0 %v7006_v34, %s9221_s16 }
 0x1d1   : > { %v1711_v14 = vpop.permute.xlu1 %1710  ;;  %v1313_v16 = vpop.permute.xlu0 %1312  ;;  %v1821_v18 = vld [vmem:[#allocation3 + $0x80] sm:$0xff] }
 0x1d2   : > { %1790 = vst.msk [vmem:[#allocation3 + $0x88] sm:$0xff] %vm1772_vm12, %v1711_v14  ;;  %5626 = vmatprep.mubr.msk.f32.mxu0 %vm1849_vm13, %v1821_v18 }
 0x1d3   : > { %1391 = vst.msk [vmem:[#allocation3 + $0x90] sm:$0xff] %vm1372_vm9, %v1313_v16  ;;  %1194 = vrot.lane.b32.xlu1 %v658_v6, %s6132_s29  ;;  %1061 = vrot.lane.b32.xlu0 %v7006_v34, %s6131_s28 }
 0x1d5   : > { %v917_v23 = vpop.permute.xlu1 %916  ;;  %v709_v24 = vpop.permute.xlu0 %708 }
 0x1d6   : > { %993 = vst.msk [vmem:[#allocation3 + $0xa0] sm:$0xff] %vm972_vm6, %v917_v23 }
 0x1d7   : > { %784 = vst.msk [vmem:[#allocation3 + $0xa8] sm:$0xff] %vm762_vm5, %v709_v24  ;;  %1724 = vrot.lane.b32.xlu1 %v868_v48, %s6136_s23  ;;  %1592 = vrot.lane.b32.xlu0 %v660_v29, %s6135_s17  ;;  %v499_v24 = vld [vmem:[#allocation2 + $0x180] sm:$0xff] }
 0x1d9   : > { %v1444_v28 = vpop.permute.xlu1 %1443  ;;  %v1315_v54 = vpop.permute.xlu0 %1314  ;;  %v1822_v47 = vld [vmem:[#allocation3 + $0x88] sm:$0xff] }
 0x1da   : > { %1522 = vst.msk [vmem:[#allocation3 + $0x90] sm:$0xff] %vm1503_vm10, %v1444_v28  ;;  %v5610_v34 = vpop.f32.mrf.mxu0  ;;  %5627 = vmatmul.mubr.msk.f32.gmra.mxu0 %vm1849_vm13, %v1822_v47  ;;  %v1137_v47 = vrot.slane %v499_v24, 1 }
 0x1db   : > { %1392 = vst.msk [vmem:[#allocation3 + $0x98] sm:$0xff] %vm1372_vm9, %v1315_v54  ;;  %v2042_v31 = vadd.f32 %v5610_v34, %v7141_v59  ;;  %1196 = vrot.lane.b32.xlu1 %v660_v29, %s6132_s29  ;;  %722 = vrot.lane.b32.xlu0 %v658_v6, %s6130_s27  ;;  %v500_v54 = vld [vmem:[#allocation2 + $0x188] sm:$0xff] }
 0x1dc   : > { %v2036_v32 = vpop.f32.mrf.mxu0  ;;  %v1138_v34 = vrot.slane %v500_v54, 1 }
 0x1dd   : > { %v2180_v37 = vmax.f32 %v2042_v31, 0.0  ;;  %v2037_v19 = vadd.f32 %v7141_v59, %v2036_v32  ;;  %v1048_v38 = vpop.permute.xlu1 %1047  ;;  %v919_v39 = vpop.permute.xlu0 %918 }
 0x1de   : > { %1124 = vst.msk [vmem:[#allocation3 + $0xa0] sm:$0xff] %vm1103_vm7, %v1048_v38 }
 0x1df   : > { %994 = vst.msk [vmem:[#allocation3 + $0xa8] sm:$0xff] %vm972_vm6, %v919_v39  ;;  %v2179_v58 = vmax.f32 %v2037_v19, 0.0  ;;  %1726 = vrot.lane.b32.xlu1 %v870_v33, %s6136_s23  ;;  %1328 = vrot.lane.b32.xlu0 %v868_v48, %s6133_s14  ;;  %v1139_v19 = vsel %vm585_vm3, %v1137_v47, %v1138_v34 }
 0x1e0   : > { %2269 = vst.msk [vmem:[#allocation4 + $0x51] sm:$0xff] %vm2207_vm14, %v2180_v37 }
 0x1e1   : > { %2268 = vst.msk [vmem:[#allocation4 + $0x49] sm:$0xff] %vm2207_vm14, %v2179_v58  ;;  %v1579_v22 = vpop.permute.xlu1 %1578  ;;  %v1446_v42 = vpop.permute.xlu0 %1445  ;;  %v501_v58 = vld [vmem:[#allocation2 + $0x190] sm:$0x3] }
 0x1e2   : > { %1657 = vst.msk [vmem:[#allocation3 + $0x90] sm:$0xff] %vm1638_vm11, %v1579_v22  ;;  %v1271_v22 = vrot.slane %v499_v24, 2 }
 0x1e3   : > { %1523 = vst.msk [vmem:[#allocation3 + $0x98] sm:$0xff] %vm1503_vm10, %v1446_v42  ;;  %932 = vrot.lane.b32.xlu1 %v868_v48, %s9220_s26  ;;  %724 = vrot.lane.b32.xlu0 %v660_v29, %s6130_s27  ;;  %v1272_v42 = vrot.slane %v500_v54, 2 }
 0x1e5   : > { %v1183_v43 = vpop.permute.xlu1 %1182  ;;  %v1050_v44 = vpop.permute.xlu0 %1049 }
 0x1e6   : > { %1259 = vst.msk [vmem:[#allocation3 + $0xa0] sm:$0xff] %vm1238_vm8, %v1183_v43  ;;  %v1140_v43 = vrot.slane %v501_v58, 1 }
 0x1e7   : > { %1125 = vst.msk [vmem:[#allocation3 + $0xa8] sm:$0xff] %vm1103_vm7, %v1050_v44  ;;  %1459 = vrot.lane.b32.xlu1 %v7050_v1, %s9221_s16  ;;  %1330 = vrot.lane.b32.xlu0 %v870_v33, %s6133_s14 }
 0x1e8   : > { %v7301_v49 = vld [vmem:[#allocation4 + $0x48] sm:$0xff]  ;;  %v7303_v62 = vld [vmem:[#allocation4 + $0x50] sm:$0xff] }
 0x1e9   : > { %v1713_v51 = vpop.permute.xlu1 %1712  ;;  %v1581_v52 = vpop.permute.xlu0 %1580  ;;  %2356 = vst.msk [vmem:[#allocation5 + $0x30] sm:$0xff] %vm2207_vm14, %v7301_v49  ;;  %2357 = vst.msk [vmem:[#allocation5 + $0x38] sm:$0xff] %vm2207_vm14, %v7303_v62 }
 0x1ea   : > { %1791 = vst.msk [vmem:[#allocation3 + $0x90] sm:$0xff] %vm1772_vm12, %v1713_v51  ;;  %v1273_v51 = vsel %vm795_vm2, %v1271_v22, %v1272_v42 }
 0x1eb   : > { %1658 = vst.msk [vmem:[#allocation3 + $0x98] sm:$0xff] %vm1638_vm11, %v1581_v52  ;;  %1063 = vrot.lane.b32.xlu1 %v7050_v1, %s6131_s28  ;;  %934 = vrot.lane.b32.xlu0 %v870_v33, %s9220_s26  ;;  %v665_v1 = vsel %vm585_vm3, %v662_v10, %v664_v26  ;;  %v1141_v52 = vsel %vm585_vm3, %v1138_v34, %v1140_v43 }
 0x1ed   : > { %v1185_v55 = vpop.permute.xlu1 %1184  ;;  %v711_v56 = vpop.permute.xlu0 %710 }
 0x1ee   : > { %1260 = vst.msk [vmem:[#allocation3 + $0xa8] sm:$0xff] %vm1238_vm8, %v1185_v55 }
 0x1ef   : > { %785 = vst.msk [vmem:[#allocation3 + $0xb0] sm:$0xff] %vm762_vm5, %v711_v56  ;;  %1594 = vrot.lane.b32.xlu1 %v663_v53, %s6135_s17  ;;  %1461 = vrot.lane.b32.xlu0 %v7064_v8, %s9221_s16  ;;  %v1274_v56 = vrot.slane %v501_v58, 2 }
 0x1f1   : > { %v1715_v35 = vpop.permute.xlu1 %1714  ;;  %v1317_v60 = vpop.permute.xlu0 %1316  ;;  %v1823_v61 = vld [vmem:[#allocation3 + $0x90] sm:$0xff] }
 0x1f2   : > { %1792 = vst.msk [vmem:[#allocation3 + $0x98] sm:$0xff] %vm1772_vm12, %v1715_v35  ;;  %5629 = vmatprep.mubr.msk.f32.mxu0 %vm1849_vm13, %v1823_v61  ;;  %v1275_v61 = vsel %vm795_vm2, %v1272_v42, %v1274_v56 }
 0x1f3   : > { %1393 = vst.msk [vmem:[#allocation3 + $0xa0] sm:$0xff] %vm1372_vm9, %v1317_v60  ;;  %1198 = vrot.lane.b32.xlu1 %v663_v53, %s6132_s29  ;;  %1065 = vrot.lane.b32.xlu0 %v7064_v8, %s6131_s28 }
 0x1f5   : > { %v921_v63 = vpop.permute.xlu1 %920  ;;  %v713_v3 = vpop.permute.xlu0 %712 }
 0x1f6   : > { %995 = vst.msk [vmem:[#allocation3 + $0xb0] sm:$0xff] %vm972_vm6, %v921_v63 }
 0x1f7   : > { %786 = vst.msk [vmem:[#allocation3 + $0xb8] sm:$0xff] %vm762_vm5, %v713_v3  ;;  %1728 = vrot.lane.b32.xlu1 %v873_v36, %s6136_s23  ;;  %1596 = vrot.lane.b32.xlu0 %v665_v1, %s6135_s17 }
 0x1f9   : > { %v1448_v6 = vpop.permute.xlu1 %1447  ;;  %v1319_v7 = vpop.permute.xlu0 %1318  ;;  %v1824_v9 = vld [vmem:[#allocation3 + $0x98] sm:$0xff] }
 0x1fa   : > { %1524 = vst.msk [vmem:[#allocation3 + $0xa0] sm:$0xff] %vm1503_vm10, %v1448_v6  ;;  %v5613_v8 = vpop.f32.mrf.mxu0  ;;  %5630 = vmatmul.mubr.msk.f32.gmra.mxu0 %vm1849_vm13, %v1824_v9  ;;  %v502_v6 = vld [vmem:[#allocation2 + $0x198] sm:$0xff] }
 0x1fb   : > { %1394 = vst.msk [vmem:[#allocation3 + $0xa8] sm:$0xff] %vm1372_vm9, %v1319_v7  ;;  %v2052_v40 = vadd.f32 %v5613_v8, %v7141_v59  ;;  %1200 = vrot.lane.b32.xlu1 %v665_v1, %s6132_s29  ;;  %726 = vrot.lane.b32.xlu0 %v663_v53, %s6130_s27  ;;  %v504_v7 = vld [vmem:[#allocation2 + $0x1a8] sm:$0x3]  ;;  %v1538_v8 = vrot.slane %v503_v5, 1 }
 0x1fc   : > { %v2046_v11 = vpop.f32.mrf.mxu0 }
 0x1fd   : > { %v2182_v13 = vmax.f32 %v2052_v40, 0.0  ;;  %v2047_v14 = vadd.f32 %v7141_v59, %v2046_v11  ;;  %v1052_v16 = vpop.permute.xlu1 %1051  ;;  %v923_v18 = vpop.permute.xlu0 %922  ;;  %v1537_v40 = vrot.slane %v502_v6, 1  ;;  %v1540_v11 = vrot.slane %v504_v7, 1 }
 0x1fe   : > { %1126 = vst.msk [vmem:[#allocation3 + $0xb0] sm:$0xff] %vm1103_vm7, %v1052_v16  ;;  %v1671_v16 = vrot.slane %v502_v6, 2 }
 0x1ff   : > { %996 = vst.msk [vmem:[#allocation3 + $0xb8] sm:$0xff] %vm972_vm6, %v923_v18  ;;  %v2181_v48 = vmax.f32 %v2047_v14, 0.0  ;;  %1730 = vrot.lane.b32.xlu1 %v875_v12, %s6136_s23  ;;  %1332 = vrot.lane.b32.xlu0 %v873_v36, %s6133_s14  ;;  %v1672_v14 = vrot.slane %v503_v5, 2  ;;  %v1541_v18 = vsel %vm585_vm3, %v1538_v8, %v1540_v11 }
 0x200   : > { %2271 = vst.msk [vmem:[#allocation4 + $0x69] sm:$0xff] %vm2207_vm14, %v2182_v13 }
 0x201   : > { %2270 = vst.msk [vmem:[#allocation4 + $0x61] sm:$0xff] %vm2207_vm14, %v2181_v48  ;;  %v1583_v29 = vpop.permute.xlu1 %1582  ;;  %v1450_v23 = vpop.permute.xlu0 %1449  ;;  %v1539_v48 = vsel %vm585_vm3, %v1537_v40, %v1538_v8  ;;  %v3688_v8 = vld [vmem:[%s9204_s3 + $0x40] sm:$0xff] }
 0x202   : > { %1659 = vst.msk [vmem:[#allocation3 + $0xa0] sm:$0xff] %vm1638_vm11, %v1583_v29  ;;  %v1674_v29 = vrot.slane %v504_v7, 2  ;;  %5650 = vmatprep.subr.mxu1 %v3688_v8 }
 0x203   : > { %1525 = vst.msk [vmem:[#allocation3 + $0xa8] sm:$0xff] %vm1503_vm10, %v1450_v23  ;;  %936 = vrot.lane.b32.xlu1 %v873_v36, %s9220_s26  ;;  %728 = vrot.lane.b32.xlu0 %v665_v1, %s6130_s27  ;;  %s6137_s27 = smov 40  }
 0x204   : > { %5651 = vmatpush3.msra.mxu1 %v3688_v8 }
 0x205   : > { %v1187_v27 = vpop.permute.xlu1 %1186  ;;  %v1054_v28 = vpop.permute.xlu0 %1053 }
 0x206   : > { %1261 = vst.msk [vmem:[#allocation3 + $0xb0] sm:$0xff] %vm1238_vm8, %v1187_v27  ;;  %v2298_v27 = vld [vmem:[#allocation4 + $0x10] sm:$0x3] }
 0x207   : > { %1127 = vst.msk [vmem:[#allocation3 + $0xb8] sm:$0xff] %vm1103_vm7, %v1054_v28  ;;  %1463 = vrot.lane.b32.xlu1 %v499_v24, %s9221_s16  ;;  %1334 = vrot.lane.b32.xlu0 %v875_v12, %s6133_s14  ;;  %v1675_v28 = vsel %vm795_vm2, %v1672_v14, %v1674_v29  ;;  %v2433_v47 = vrot.slane %v2298_v27, 1 }
 0x208   : > { %v7356_v31 = vld [vmem:[#allocation4 + $0x60] sm:$0xff]  ;;  %v7358_v32 = vld [vmem:[#allocation4 + $0x68] sm:$0xff] }
 0x209   : > { %v1717_v33 = vpop.permute.xlu1 %1716  ;;  %v1585_v37 = vpop.permute.xlu0 %1584  ;;  %2358 = vst.msk [vmem:[#allocation5 + $0x40] sm:$0xff] %vm2207_vm14, %v7356_v31  ;;  %2359 = vst.msk [vmem:[#allocation5 + $0x48] sm:$0xff] %vm2207_vm14, %v7358_v32 }
 0x20a   : > { %1793 = vst.msk [vmem:[#allocation3 + $0xa0] sm:$0xff] %vm1772_vm12, %v1717_v33 }
 0x20b   : > { %1660 = vst.msk [vmem:[#allocation3 + $0xa8] sm:$0xff] %vm1638_vm11, %v1585_v37  ;;  %1067 = vrot.lane.b32.xlu1 %v499_v24, %s6131_s28  ;;  %938 = vrot.lane.b32.xlu0 %v875_v12, %s9220_s26 }
 0x20d   : > { %v1189_v38 = vpop.permute.xlu1 %1188  ;;  %v715_v39 = vpop.permute.xlu0 %714 }
 0x20e   : > { %1262 = vst.msk [vmem:[#allocation3 + $0xb8] sm:$0xff] %vm1238_vm8, %v1189_v38  ;;  %v2434_v38 = vsel %vm585_vm3, %v2431_v25, %v2433_v47 }
 0x20f   : > { %787 = vst.msk [vmem:[#allocation3 + $0xc0] sm:$0xff] %vm762_vm5, %v715_v39  ;;  %1598 = vrot.lane.b32.xlu1 %v1139_v19, %s6135_s17  ;;  %1465 = vrot.lane.b32.xlu0 %v500_v54, %s9221_s16  ;;  %v2642_v39 = vrot.slane %v2298_v27, 2  ;;  %v2304_v27 = vld [vmem:[#allocation4 + $0x40] sm:$0x3] }
 0x211   : > { %v1719_v44 = vpop.permute.xlu1 %1718  ;;  %v1321_v46 = vpop.permute.xlu0 %1320  ;;  %v1825_v10 = vld [vmem:[#allocation3 + $0xa0] sm:$0xff]  ;;  %v2643_v42 = vsel %vm795_vm2, %v2640_v50, %v2642_v39  ;;  %v2435_v50 = vrot.slane %v7170_v45, 1  ;;  %v2650_v39 = vrot.slane %v7245_v2, 2 }
 0x212   : > { %1794 = vst.msk [vmem:[#allocation3 + $0xa8] sm:$0xff] %vm1772_vm12, %v1719_v44  ;;  %5632 = vmatprep.mubr.msk.f32.mxu0 %vm1849_vm13, %v1825_v10  ;;  %v2301_v10 = vld [vmem:[#allocation4 + $0x28] sm:$0x3] }
 0x213   : > { %1395 = vst.msk [vmem:[#allocation3 + $0xb0] sm:$0xff] %vm1372_vm9, %v1321_v46  ;;  %1202 = vrot.lane.b32.xlu1 %v1139_v19, %s6132_s29  ;;  %1069 = vrot.lane.b32.xlu0 %v500_v54, %s6131_s28  ;;  %v1673_v54 = vsel %vm795_vm2, %v1671_v16, %v1672_v14  ;;  %s6138_s28 = smov 48   ;;  %v2441_v14 = vrot.slane %v7245_v2, 1  ;;  %v3687_v16 = vld [vmem:[%s9204_s3 + $0x38] sm:$0xff] }
 0x214   : > { %5652 = vmatprep.subr.mxu1 %v3687_v16 }
 0x215   : > { %v925_v53 = vpop.permute.xlu1 %924  ;;  %v717_v55 = vpop.permute.xlu0 %716  ;;  %5653 = vmatpush3.msra.mxu1 %v3687_v16  ;;  %v2655_v16 = vrot.slane %v7303_v62, 2 }
 0x216   : > { %997 = vst.msk [vmem:[#allocation3 + $0xc0] sm:$0xff] %vm972_vm6, %v925_v53  ;;  %v2645_v53 = vrot.slane %v7168_v17, 2 }
 0x217   : > { %788 = vst.msk [vmem:[#allocation3 + $0xc8] sm:$0xff] %vm762_vm5, %v717_v55  ;;  %1732 = vrot.lane.b32.xlu1 %v1273_v51, %s6136_s23  ;;  %1600 = vrot.lane.b32.xlu0 %v1141_v52, %s6135_s17  ;;  %v2644_v55 = vrot.slane %v7170_v45, 2 }
 0x219   : > { %v1452_v20 = vpop.permute.xlu1 %1451  ;;  %v1323_v15 = vpop.permute.xlu0 %1322  ;;  %v1826_v57 = vld [vmem:[#allocation3 + $0xa8] sm:$0xff] }
 0x21a   : > { %1526 = vst.msk [vmem:[#allocation3 + $0xb0] sm:$0xff] %vm1503_vm10, %v1452_v20  ;;  %v5616_v26 = vpop.f32.mrf.mxu0  ;;  %5633 = vmatmul.mubr.msk.f32.gmra.mxu0 %vm1849_vm13, %v1826_v57  ;;  %v2437_v20 = vsel %vm585_vm3, %v2435_v50, %v2436_v21  ;;  %v2652_v50 = vrot.slane %v2304_v27, 2 }
 0x21b   : > { %1396 = vst.msk [vmem:[#allocation3 + $0xb8] sm:$0xff] %vm1372_vm9, %v1323_v15  ;;  %v2062_v35 = vadd.f32 %v5616_v26, %v7141_v59  ;;  %1336 = vrot.lane.b32.xlu1 %v1273_v51, %s6133_s14  ;;  %1204 = vrot.lane.b32.xlu0 %v1141_v52, %s6132_s29  ;;  %v2438_v15 = vrot.slane %v2301_v10, 1 }
 0x21c   : > { %v2056_v60 = vpop.f32.mrf.mxu0 }
 0x21d   : > { %v2184_v36 = vmax.f32 %v2062_v35, 0.0  ;;  %v2057_v1 = vadd.f32 %v7141_v59, %v2056_v60  ;;  %v1056_v63 = vpop.permute.xlu1 %1055  ;;  %v927_v3 = vpop.permute.xlu0 %926 }
 0x21e   : > { %1128 = vst.msk [vmem:[#allocation3 + $0xc0] sm:$0xff] %vm1103_vm7, %v1056_v63 }
 0x21f   : > { %998 = vst.msk [vmem:[#allocation3 + $0xc8] sm:$0xff] %vm972_vm6, %v927_v3  ;;  %v2183_v9 = vmax.f32 %v2057_v1, 0.0  ;;  %1338 = vrot.lane.b32.xlu1 %v1275_v61, %s6133_s14  ;;  %1734 = vrot.lane.b32.xlu0 %v1275_v61, %s6136_s23  ;;  %v2646_v61 = vsel %vm795_vm2, %v2644_v55, %v2645_v53  ;;  %v2647_v3 = vrot.slane %v2301_v10, 2  ;;  %v7540_v10 = vld [vmem:[%s9203_s2] ss:$0 sm:$0xff]  ;;  %s9223_s14 = smov 96  }
 0x220   : > { %2273 = vst.msk [vmem:[#allocation4 + $0x81] sm:$0xff] %vm2207_vm14, %v2184_v36  ;;  %v2439_v36 = vsel %vm585_vm3, %v2436_v21, %v2438_v15  ;;  %v2653_v15 = vsel %vm795_vm2, %v2650_v39, %v2652_v50  ;;  %v2451_v50 = vrot.slane %v7358_v32, 1 }
 0x221   : > { %2272 = vst.msk [vmem:[#allocation4 + $0x79] sm:$0xff] %vm2207_vm14, %v2183_v9  ;;  %v1587_v12 = vpop.permute.xlu1 %1586  ;;  %v1454_v13 = vpop.permute.xlu0 %1453  ;;  %v2648_v7 = vsel %vm795_vm2, %v2645_v53, %v2647_v3 }
 0x222   : > { %1661 = vst.msk [vmem:[#allocation3 + $0xb0] sm:$0xff] %vm1638_vm11, %v1587_v12 }
 0x223   : > { %1527 = vst.msk [vmem:[#allocation3 + $0xb8] sm:$0xff] %vm1503_vm10, %v1454_v13  ;;  %1469 = vrot.lane.b32.xlu1 %v503_v5, %s9221_s16  ;;  %1467 = vrot.lane.b32.xlu0 %v502_v6, %s9221_s16  ;;  %v2440_v13 = vrot.slane %v7243_v4, 1 }
 0x225   : > { %v1191_v23 = vpop.permute.xlu1 %1190  ;;  %v1058_v24 = vpop.permute.xlu0 %1057 }
 0x226   : > { %1263 = vst.msk [vmem:[#allocation3 + $0xc0] sm:$0xff] %vm1238_vm8, %v1191_v23  ;;  %v2442_v23 = vsel %vm585_vm3, %v2440_v13, %v2441_v14 }
 0x227   : > { %1129 = vst.msk [vmem:[#allocation3 + $0xc8] sm:$0xff] %vm1103_vm7, %v1058_v24  ;;  %1604 = vrot.lane.b32.xlu1 %v1541_v18, %s6135_s17  ;;  %1602 = vrot.lane.b32.xlu0 %v1539_v48, %s6135_s17  ;;  %v3686_v18 = vld [vmem:[%s9204_s3 + $0x30] sm:$0xff]  ;;  %v3685_v24 = vld [vmem:[%s9204_s3 + $0x28] sm:$0xff]  ;;  %s9217_s17 = smov 80  }
 0x228   : > { %v7410_v34 = vld [vmem:[#allocation4 + $0x78] sm:$0xff]  ;;  %v7412_v33 = vld [vmem:[#allocation4 + $0x80] sm:$0xff]  ;;  %5654 = vmatprep.subr.mxu1 %v3686_v18 }
 0x229   : > { %v1721_v37 = vpop.permute.xlu1 %1720  ;;  %v1589_v19 = vpop.permute.xlu0 %1588  ;;  %2360 = vst.msk [vmem:[#allocation5 + $0x50] sm:$0xff] %vm2207_vm14, %v7410_v34  ;;  %2361 = vst.msk [vmem:[#allocation5 + $0x58] sm:$0xff] %vm2207_vm14, %v7412_v33  ;;  %5655 = vmatpush3.msra.mxu1 %v3686_v18 }
 0x22a   : > { %1795 = vst.msk [vmem:[#allocation3 + $0xb0] sm:$0xff] %vm1772_vm12, %v1721_v37  ;;  %5656 = vmatprep.subr.mxu1 %v3685_v24  ;;  %v3684_v37 = vld [vmem:[%s9204_s3 + $0x20] sm:$0xff] }
 0x22b   : > { %1662 = vst.msk [vmem:[#allocation3 + $0xb8] sm:$0xff] %vm1638_vm11, %v1589_v19  ;;  %1738 = vrot.lane.b32.xlu1 %v1675_v28, %s6136_s23  ;;  %1736 = vrot.lane.b32.xlu0 %v1673_v54, %s6136_s23  ;;  %v2443_v19 = vrot.slane %v2304_v27, 1 }
 0x22c   : > { %5657 = vmatpush3.msra.mxu1 %v3685_v24 }
 0x22d   : > { %v1193_v58 = vpop.permute.xlu1 %1192  ;;  %v719_v22 = vpop.permute.xlu0 %718  ;;  %5658 = vmatprep.subr.mxu1 %v3684_v37 }
 0x22e   : > { %1264 = vst.msk [vmem:[#allocation3 + $0xc8] sm:$0xff] %vm1238_vm8, %v1193_v58  ;;  %v3683_v58 = vld [vmem:[%s9204_s3 + $0x18] sm:$0xff]  ;;  %5659 = vmatpush3.msra.mxu1 %v3684_v37 }
 0x22f   : > { %789 = vst.msk [vmem:[#allocation3 + $0xd0] sm:$0xff] %vm762_vm5, %v719_v22  ;;  %2512 = vrot.lane.b32.xlu1 %v2434_v38, %s9220_s26  ;;  %2510 = vrot.lane.b32.xlu0 %v7193_v30, %s9220_s26  ;;  %v2649_v38 = vrot.slane %v7243_v4, 2 }
 0x230   : > { %5660 = vmatprep.subr.mxu1 %v3683_v58 }
 0x231   : > { %v1723_v43 = vpop.permute.xlu1 %1722  ;;  %v1325_v44 = vpop.permute.xlu0 %1324  ;;  %v1827_v46 = vld [vmem:[#allocation3 + $0xb0] sm:$0xff]  ;;  %5661 = vmatpush3.msra.mxu1 %v3683_v58 }
 0x232   : > { %1796 = vst.msk [vmem:[#allocation3 + $0xb8] sm:$0xff] %vm1772_vm12, %v1723_v43  ;;  %5635 = vmatprep.mubr.msk.f32.mxu0 %vm1849_vm13, %v1827_v46  ;;  %v2651_v43 = vsel %vm795_vm2, %v2649_v38, %v2650_v39 }
 0x233   : > { %1397 = vst.msk [vmem:[#allocation3 + $0xc0] sm:$0xff] %vm1372_vm9, %v1325_v44  ;;  %2721 = vrot.lane.b32.xlu1 %v2643_v42, %s6132_s29  ;;  %2719 = vrot.lane.b32.xlu0 %v7207_v41, %s6132_s29 }
 0x235   : > { %v929_v25 = vpop.permute.xlu1 %928  ;;  %v721_v30 = vpop.permute.xlu0 %720 }
 0x236   : > { %999 = vst.msk [vmem:[#allocation3 + $0xd0] sm:$0xff] %vm972_vm6, %v929_v25 }
 0x237   : > { %790 = vst.msk [vmem:[#allocation3 + $0xd8] sm:$0xff] %vm762_vm5, %v721_v30  ;;  %2852 = vrot.lane.b32.xlu1 %v7168_v17, %s9221_s16  ;;  %2850 = vrot.lane.b32.xlu0 %v7170_v45, %s9221_s16  ;;  %v3681_v30 = vld [vmem:[%s9204_s3 + $0x8] sm:$0xff] }
 0x239   : > { %v1456_v51 = vpop.permute.xlu1 %1455  ;;  %v1327_v52 = vpop.permute.xlu0 %1326  ;;  %v1828_v41 = vld [vmem:[#allocation3 + $0xb8] sm:$0xff] }
 0x23a   : > { %1528 = vst.msk [vmem:[#allocation3 + $0xc0] sm:$0xff] %vm1503_vm10, %v1456_v51  ;;  %v5619_v56 = vpop.f32.mrf.mxu0  ;;  %5636 = vmatmul.mubr.msk.f32.gmra.mxu0 %vm1849_vm13, %v1828_v41 }
 0x23b   : > { %1398 = vst.msk [vmem:[#allocation3 + $0xc8] sm:$0xff] %vm1372_vm9, %v1327_v52  ;;  %v2072_v57 = vadd.f32 %v5619_v56, %v7141_v59  ;;  %2514 = vrot.lane.b32.xlu1 %v2437_v20, %s9220_s26  ;;  %2985 = vrot.lane.b32.xlu0 %v2437_v20, %s6136_s23  ;;  %v3680_v52 = vld [vmem:[%s9204_s3] sm:$0xff] }
 0x23c   : > { %v2066_v26 = vpop.f32.mrf.mxu0 }
 0x23d   : > { %v2186_v17 = vmax.f32 %v2072_v57, 0.0  ;;  %v2067_v45 = vadd.f32 %v7141_v59, %v2066_v26  ;;  %v1060_v35 = vpop.permute.xlu1 %1059  ;;  %v931_v60 = vpop.permute.xlu0 %930 }
 0x23e   : > { %1130 = vst.msk [vmem:[#allocation3 + $0xd0] sm:$0xff] %vm1103_vm7, %v1060_v35 }
 0x23f   : > { %1000 = vst.msk [vmem:[#allocation3 + $0xd8] sm:$0xff] %vm972_vm6, %v931_v60  ;;  %v2185_v1 = vmax.f32 %v2067_v45, 0.0  ;;  %3119 = vrot.lane.b32.xlu1 %v2646_v61, %s6137_s27  ;;  %2987 = vrot.lane.b32.xlu0 %v2439_v36, %s6136_s23 }
 0x240   : > { %2275 = vst.msk [vmem:[#allocation4 + $0x99] sm:$0xff] %vm2207_vm14, %v2186_v17 }
 0x241   : > { %2274 = vst.msk [vmem:[#allocation4 + $0x91] sm:$0xff] %vm2207_vm14, %v2185_v1  ;;  %v1591_v59 = vpop.permute.xlu1 %1590  ;;  %v1458_v63 = vpop.permute.xlu0 %1457 }
 0x242   : > { %1663 = vst.msk [vmem:[#allocation3 + $0xc0] sm:$0xff] %vm1638_vm11, %v1591_v59  ;;  %v2445_v59 = vrot.slane %v7301_v49, 1 }
 0x243   : > { %1529 = vst.msk [vmem:[#allocation3 + $0xc8] sm:$0xff] %vm1503_vm10, %v1458_v63  ;;  %2723 = vrot.lane.b32.xlu1 %v2646_v61, %s6132_s29  ;;  %2516 = vrot.lane.b32.xlu0 %v2439_v36, %s9220_s26  ;;  %v2446_v63 = vrot.slane %v7303_v62, 1 }
 0x245   : > { %v1195_v5 = vpop.permute.xlu1 %1194  ;;  %v1062_v6 = vpop.permute.xlu0 %1061 }
 0x246   : > { %1265 = vst.msk [vmem:[#allocation3 + $0xd0] sm:$0xff] %vm1238_vm8, %v1195_v5 }
 0x247   : > { %1131 = vst.msk [vmem:[#allocation3 + $0xd8] sm:$0xff] %vm1103_vm7, %v1062_v6  ;;  %3121 = vrot.lane.b32.xlu0 %v2648_v7, %s6137_s27  ;;  %3250 = vrot.lane.b32.xlu1 %v7243_v4, %s6138_s28  ;;  %v2447_v6 = vsel %vm585_vm3, %v2445_v59, %v2446_v63 }
 0x248   : > { %v7475_v9 = vld [vmem:[#allocation4 + $0x90] sm:$0xff]  ;;  %v7480_v40 = vld [vmem:[#allocation4 + $0x98] sm:$0xff] }
 0x249   : > { %v1725_v11 = vpop.permute.xlu1 %1724  ;;  %v1593_v12 = vpop.permute.xlu0 %1592  ;;  %2362 = vst.msk [vmem:[#allocation5 + $0x60] sm:$0xff] %vm2207_vm14, %v7475_v9  ;;  %2363 = vst.msk [vmem:[#allocation5 + $0x68] sm:$0xff] %vm2207_vm14, %v7480_v40 }
 0x24a   : > { %1797 = vst.msk [vmem:[#allocation3 + $0xc0] sm:$0xff] %vm1772_vm12, %v1725_v11 }
 0x24b   : > { %1664 = vst.msk [vmem:[#allocation3 + $0xc8] sm:$0xff] %vm1638_vm11, %v1593_v12  ;;  %2725 = vrot.lane.b32.xlu0 %v2648_v7, %s6132_s29  ;;  %2854 = vrot.lane.b32.xlu1 %v7243_v4, %s9221_s16  ;;  %v2444_v4 = vsel %vm585_vm3, %v2441_v14, %v2443_v19  ;;  %v2307_v7 = vld [vmem:[#allocation4 + $0x58] sm:$0x3]  ;;  %v2654_v14 = vrot.slane %v7301_v49, 2 }
 0x24c   : > { %v2448_v13 = vrot.slane %v2307_v7, 1 }
 0x24d   : > { %v1197_v48 = vpop.permute.xlu1 %1196  ;;  %v723_v29 = vpop.permute.xlu0 %722 }
 0x24e   : > { %1266 = vst.msk [vmem:[#allocation3 + $0xd8] sm:$0xff] %vm1238_vm8, %v1197_v48 }
 0x24f   : > { %791 = vst.msk [vmem:[#allocation3 + $0xe0] sm:$0xff] %vm762_vm5, %v723_v29  ;;  %3252 = vrot.lane.b32.xlu0 %v7245_v2, %s6138_s28  ;;  %3385 = vrot.lane.b32.xlu1 %v2442_v23, %s6139_s24  ;;  %v2449_v29 = vsel %vm585_vm3, %v2446_v63, %v2448_v13 }
 0x251   : > { %v1727_v28 = vpop.permute.xlu1 %1726  ;;  %v1329_v54 = vpop.permute.xlu0 %1328  ;;  %v1829_v47 = vld [vmem:[#allocation3 + $0xc0] sm:$0xff] }
 0x252   : > { %1798 = vst.msk [vmem:[#allocation3 + $0xc8] sm:$0xff] %vm1772_vm12, %v1727_v28  ;;  %5638 = vmatprep.mubr.msk.f32.mxu0 %vm1849_vm13, %v1829_v47  ;;  %v2657_v28 = vrot.slane %v2307_v7, 2 }
 0x253   : > { %1399 = vst.msk [vmem:[#allocation3 + $0xd0] sm:$0xff] %vm1372_vm9, %v1329_v54  ;;  %2856 = vrot.lane.b32.xlu0 %v7245_v2, %s9221_s16  ;;  %2989 = vrot.lane.b32.xlu1 %v2442_v23, %s6136_s23  ;;  %v3682_v2 = vld [vmem:[%s9204_s3 + $0x10] sm:$0xff] }
 0x254   : > { %5662 = vmatprep.subr.mxu1 %v3682_v2  ;;  %v2658_v58 = vsel %vm795_vm2, %v2655_v16, %v2657_v28  ;;  %v2455_v28 = vrot.slane %v7410_v34, 1 }
 0x255   : > { %v933_v22 = vpop.permute.xlu1 %932  ;;  %v725_v42 = vpop.permute.xlu0 %724  ;;  %5663 = vmatpush3.msra.mxu1 %v3682_v2 }
 0x256   : > { %1001 = vst.msk [vmem:[#allocation3 + $0xe0] sm:$0xff] %vm972_vm6, %v933_v22  ;;  %5664 = vmatprep.subr.mxu1 %v3681_v30 }
 0x257   : > { %792 = vst.msk [vmem:[#allocation3 + $0xe8] sm:$0xff] %vm762_vm5, %v725_v42  ;;  %3387 = vrot.lane.b32.xlu0 %v2444_v4, %s6139_s24  ;;  %3519 = vrot.lane.b32.xlu1 %v2651_v43, %s6140_s25 }
 0x258   : > { %5665 = vmatpush3.msra.mxu1 %v3681_v30 }
 0x259   : > { %v1460_v44 = vpop.permute.xlu1 %1459  ;;  %v1331_v46 = vpop.permute.xlu0 %1330  ;;  %v1830_v25 = vld [vmem:[#allocation3 + $0xc8] sm:$0xff]  ;;  %5666 = vmatprep.subr.mxu1 %v3680_v52 }
 0x25a   : > { %1530 = vst.msk [vmem:[#allocation3 + $0xd0] sm:$0xff] %vm1503_vm10, %v1460_v44  ;;  %v5622_v21 = vpop.f32.mrf.mxu0  ;;  %5639 = vmatmul.mubr.msk.f32.gmra.mxu0 %vm1849_vm13, %v1830_v25  ;;  %5667 = vmatpush3.msra.mxu1 %v3680_v52 }
 0x25b   : > { %1400 = vst.msk [vmem:[#allocation3 + $0xd8] sm:$0xff] %vm1372_vm9, %v1331_v46  ;;  %v2082_v51 = vadd.f32 %v7540_v10, %v5622_v21  ;;  %2518 = vrot.lane.b32.xlu0 %v2442_v23, %s9220_s26  ;;  %2991 = vrot.lane.b32.xlu1 %v2444_v4, %s6136_s23  ;;  %v2656_v23 = vsel %vm795_vm2, %v2654_v14, %v2655_v16  ;;  %v2450_v21 = vrot.slane %v7356_v31, 1 }
 0x25c   : > { %v2076_v41 = vpop.f32.mrf.mxu0  ;;  %5751 = vmatprep.subr.mxu1 %v6128_v0 }
 0x25d   : > { %v2188_v53 = vmax.f32 %v2082_v51, 0.0  ;;  %v2077_v55 = vadd.f32 %v7540_v10, %v2076_v41  ;;  %v1064_v56 = vpop.permute.xlu1 %1063  ;;  %v935_v20 = vpop.permute.xlu0 %934  ;;  %v2452_v41 = vsel %vm585_vm3, %v2450_v21, %v2451_v50 }
 0x25e   : > { %1132 = vst.msk [vmem:[#allocation3 + $0xe0] sm:$0xff] %vm1103_vm7, %v1064_v56 }
 0x25f   : > { %1002 = vst.msk [vmem:[#allocation3 + $0xe8] sm:$0xff] %vm972_vm6, %v935_v20  ;;  %v2187_v57 = vmax.f32 %v2077_v55, 0.0  ;;  %3123 = vrot.lane.b32.xlu0 %v2651_v43, %s6137_s27  ;;  %3521 = vrot.lane.b32.xlu1 %v2653_v15, %s6140_s25 }
 0x260   : > { %2277 = vst.msk [vmem:[#allocation4 + $0xb1] sm:$0xff] %vm2207_vm14, %v2188_v53  ;;  %v2310_v53 = vld [vmem:[#allocation4 + $0x70] sm:$0x3] }
 0x261   : > { %2276 = vst.msk [vmem:[#allocation4 + $0xa9] sm:$0xff] %vm2207_vm14, %v2187_v57  ;;  %v1595_v26 = vpop.permute.xlu1 %1594  ;;  %v1462_v17 = vpop.permute.xlu0 %1461  ;;  %v2659_v57 = vrot.slane %v7356_v31, 2  ;;  %v2662_v63 = vrot.slane %v2310_v53, 2 }
 0x262   : > { %1665 = vst.msk [vmem:[#allocation3 + $0xd0] sm:$0xff] %vm1638_vm11, %v1595_v26  ;;  %v2660_v26 = vrot.slane %v7358_v32, 2 }
 0x263   : > { %1531 = vst.msk [vmem:[#allocation3 + $0xd8] sm:$0xff] %vm1503_vm10, %v1462_v17  ;;  %2520 = vrot.lane.b32.xlu0 %v2444_v4, %s9220_s26  ;;  %2727 = vrot.lane.b32.xlu1 %v2651_v43, %s6132_s29 }
 0x265   : > { %v1199_v45 = vpop.permute.xlu1 %1198  ;;  %v1066_v35 = vpop.permute.xlu0 %1065 }
 0x266   : > { %1267 = vst.msk [vmem:[#allocation3 + $0xe0] sm:$0xff] %vm1238_vm8, %v1199_v45 }
 0x267   : > { %1133 = vst.msk [vmem:[#allocation3 + $0xe8] sm:$0xff] %vm1103_vm7, %v1066_v35  ;;  %3125 = vrot.lane.b32.xlu0 %v2653_v15, %s6137_s27  ;;  %3254 = vrot.lane.b32.xlu1 %v7301_v49, %s6138_s28 }
 0x268   : > { %v7566_v60 = vld [vmem:[#allocation4 + $0xa8] sm:$0xff]  ;;  %v7568_v61 = vld [vmem:[#allocation4 + $0xb0] sm:$0xff] }
 0x269   : > { %v1729_v36 = vpop.permute.xlu1 %1728  ;;  %v1597_v1 = vpop.permute.xlu0 %1596  ;;  %2364 = vst.msk [vmem:[#allocation5 + $0x70] sm:$0xff] %vm2207_vm14, %v7566_v60  ;;  %2365 = vst.msk [vmem:[#allocation5 + $0x78] sm:$0xff] %vm2207_vm14, %v7568_v61 }
 0x26a   : > { %1799 = vst.msk [vmem:[#allocation3 + $0xd0] sm:$0xff] %vm1772_vm12, %v1729_v36  ;;  %v2661_v36 = vsel %vm795_vm2, %v2659_v57, %v2660_v26 }
 0x26b   : > { %1666 = vst.msk [vmem:[#allocation3 + $0xd8] sm:$0xff] %vm1638_vm11, %v1597_v1  ;;  %2729 = vrot.lane.b32.xlu0 %v2653_v15, %s6132_s29  ;;  %2858 = vrot.lane.b32.xlu1 %v7301_v49, %s9221_s16  ;;  %v2453_v15 = vrot.slane %v2310_v53, 1 }
 0x26d   : > { %v1201_v3 = vpop.permute.xlu1 %1200  ;;  %v727_v5 = vpop.permute.xlu0 %726  ;;  %v2454_v35 = vsel %vm585_vm3, %v2451_v50, %v2453_v15 }
 0x26e   : > { %1268 = vst.msk [vmem:[#allocation3 + $0xe8] sm:$0xff] %vm1238_vm8, %v1201_v3 }
 0x26f   : > { %793 = vst.msk [vmem:[#allocation3 + $0xf0] sm:$0xff] %vm762_vm5, %v727_v5  ;;  %3256 = vrot.lane.b32.xlu0 %v7303_v62, %s6138_s28  ;;  %3389 = vrot.lane.b32.xlu1 %v2447_v6, %s6139_s24 }
 0x271   : > { %v1731_v8 = vpop.permute.xlu1 %1730  ;;  %v1333_v11 = vpop.permute.xlu0 %1332  ;;  %v1831_v12 = vld [vmem:[#allocation3 + $0xd0] sm:$0xff] }
 0x272   : > { %1800 = vst.msk [vmem:[#allocation3 + $0xd8] sm:$0xff] %vm1772_vm12, %v1731_v8  ;;  %5641 = vmatprep.mubr.msk.f32.mxu0 %vm1849_vm13, %v1831_v12  ;;  %v2663_v12 = vsel %vm795_vm2, %v2660_v26, %v2662_v63 }
 0x273   : > { %1401 = vst.msk [vmem:[#allocation3 + $0xe0] sm:$0xff] %vm1372_vm9, %v1333_v11  ;;  %2860 = vrot.lane.b32.xlu0 %v7303_v62, %s9221_s16  ;;  %2993 = vrot.lane.b32.xlu1 %v2447_v6, %s6136_s23 }
 0x275   : > { %v937_v18 = vpop.permute.xlu1 %936  ;;  %v729_v48 = vpop.permute.xlu0 %728 }
 0x276   : > { %1003 = vst.msk [vmem:[#allocation3 + $0xf0] sm:$0xff] %vm972_vm6, %v937_v18 }
 0x277   : > { %794 = vst.msk [vmem:[#allocation3 + $0xf8] sm:$0xff] %vm762_vm5, %v729_v48  ;;  %3391 = vrot.lane.b32.xlu0 %v2449_v29, %s6139_s24  ;;  %3523 = vrot.lane.b32.xlu1 %v2656_v23, %s6140_s25  ;;  %vm3081_vm5 = vcmask 326912  }
 0x279   : > { %v1464_v49 = vpop.permute.xlu1 %1463  ;;  %v1335_v24 = vpop.permute.xlu0 %1334  ;;  %v1832_v27 = vld [vmem:[#allocation3 + $0xd8] sm:$0xff] }
 0x27a   : > { %1532 = vst.msk [vmem:[#allocation3 + $0xe0] sm:$0xff] %vm1503_vm10, %v1464_v49  ;;  %v5625_v62 = vpop.f32.mrf.mxu0  ;;  %5642 = vmatmul.mubr.msk.f32.gmra.mxu0 %vm1849_vm13, %v1832_v27 }
 0x27b   : > { %1402 = vst.msk [vmem:[#allocation3 + $0xe8] sm:$0xff] %vm1372_vm9, %v1335_v24  ;;  %v2092_v54 = vadd.f32 %v7540_v10, %v5625_v62  ;;  %2522 = vrot.lane.b32.xlu0 %v2447_v6, %s9220_s26  ;;  %2995 = vrot.lane.b32.xlu1 %v2449_v29, %s6136_s23 }
 0x27c   : > { %v2086_v47 = vpop.f32.mrf.mxu0 }
 0x27d   : > { %v2190_v37 = vmax.f32 %v2092_v54, 0.0  ;;  %v2087_v19 = vadd.f32 %v7540_v10, %v2086_v47  ;;  %v1068_v38 = vpop.permute.xlu1 %1067  ;;  %v939_v39 = vpop.permute.xlu0 %938  ;;  %v2456_v54 = vrot.slane %v7412_v33, 1 }
 0x27e   : > { %1134 = vst.msk [vmem:[#allocation3 + $0xf0] sm:$0xff] %vm1103_vm7, %v1068_v38  ;;  %v2313_v38 = vld [vmem:[#allocation4 + $0x88] sm:$0x3] }
 0x27f   : > { %1004 = vst.msk [vmem:[#allocation3 + $0xf8] sm:$0xff] %vm972_vm6, %v939_v39  ;;  %v2189_v22 = vmax.f32 %v2087_v19, 0.0  ;;  %3127 = vrot.lane.b32.xlu0 %v2656_v23, %s6137_s27  ;;  %3525 = vrot.lane.b32.xlu1 %v2658_v58, %s6140_s25  ;;  %v2457_v19 = vsel %vm585_vm3, %v2455_v28, %v2456_v54  ;;  %vm3215_vm6 = vcmask 392512  }
 0x280   : > { %2279 = vst.msk [vmem:[#allocation4 + $0xc9] sm:$0xff] %vm2207_vm14, %v2190_v37 }
 0x281   : > { %2278 = vst.msk [vmem:[#allocation4 + $0xc1] sm:$0xff] %vm2207_vm14, %v2189_v22  ;;  %v1599_v42 = vpop.permute.xlu1 %1598  ;;  %v1466_v4 = vpop.permute.xlu0 %1465  ;;  %v2458_v22 = vrot.slane %v2313_v38, 1 }
 0x282   : > { %1667 = vst.msk [vmem:[#allocation3 + $0xe0] sm:$0xff] %vm1638_vm11, %v1599_v42  ;;  %v2664_v42 = vrot.slane %v7410_v34, 2 }
 0x283   : > { %1533 = vst.msk [vmem:[#allocation3 + $0xe8] sm:$0xff] %vm1503_vm10, %v1466_v4  ;;  %2524 = vrot.lane.b32.xlu0 %v2449_v29, %s9220_s26  ;;  %2731 = vrot.lane.b32.xlu1 %v2656_v23, %s6132_s29  ;;  %v2665_v4 = vrot.slane %v7412_v33, 2 }
 0x285   : > { %v1203_v43 = vpop.permute.xlu1 %1202  ;;  %v1070_v2 = vpop.permute.xlu0 %1069 }
 0x286   : > { %1269 = vst.msk [vmem:[#allocation3 + $0xf0] sm:$0xff] %vm1238_vm8, %v1203_v43 }
 0x287   : > { %1135 = vst.msk [vmem:[#allocation3 + $0xf8] sm:$0xff] %vm1103_vm7, %v1070_v2  ;;  %3129 = vrot.lane.b32.xlu0 %v2658_v58, %s6137_s27  ;;  %3258 = vrot.lane.b32.xlu1 %v7356_v31, %s6138_s28  ;;  %vm3346_vm7 = vcmask 458112  }
 0x288   : > { %v7624_v44 = vld [vmem:[#allocation4 + $0xc0] sm:$0xff]  ;;  %v7626_v46 = vld [vmem:[#allocation4 + $0xc8] sm:$0xff] }
 0x289   : > { %v1733_v25 = vpop.permute.xlu1 %1732  ;;  %v1601_v30 = vpop.permute.xlu0 %1600  ;;  %2366 = vst.msk [vmem:[#allocation5 + $0x80] sm:$0xff] %vm2207_vm14, %v7624_v44  ;;  %2367 = vst.msk [vmem:[#allocation5 + $0x88] sm:$0xff] %vm2207_vm14, %v7626_v46 }
 0x28a   : > { %1801 = vst.msk [vmem:[#allocation3 + $0xe0] sm:$0xff] %vm1772_vm12, %v1733_v25  ;;  %v2459_v25 = vsel %vm585_vm3, %v2456_v54, %v2458_v22 }
 0x28b   : > { %1668 = vst.msk [vmem:[#allocation3 + $0xe8] sm:$0xff] %vm1638_vm11, %v1601_v30  ;;  %2733 = vrot.lane.b32.xlu0 %v2658_v58, %s6132_s29  ;;  %2862 = vrot.lane.b32.xlu1 %v7356_v31, %s9221_s16  ;;  %v2666_v30 = vsel %vm795_vm2, %v2664_v42, %v2665_v4 }
 0x28d   : > { %v1337_v51 = vpop.permute.xlu1 %1336  ;;  %v1205_v52 = vpop.permute.xlu0 %1204 }
 0x28e   : > { %1403 = vst.msk [vmem:[#allocation3 + $0xf0] sm:$0xff] %vm1372_vm9, %v1337_v51  ;;  %v2667_v51 = vrot.slane %v2313_v38, 2 }
 0x28f   : > { %1270 = vst.msk [vmem:[#allocation3 + $0xf8] sm:$0xff] %vm1238_vm8, %v1205_v52  ;;  %3260 = vrot.lane.b32.xlu0 %v7358_v32, %s6138_s28  ;;  %3393 = vrot.lane.b32.xlu1 %v2452_v41, %s6139_s24  ;;  %vm3481_vm8 = vcmask 523712  }
 0x290   : > { %v2668_v15 = vsel %vm795_vm2, %v2665_v4, %v2667_v51 }
 0x291   : > { %v1339_v55 = vpop.permute.xlu1 %1338  ;;  %v1735_v56 = vpop.permute.xlu0 %1734  ;;  %v1833_v20 = vld [vmem:[#allocation3 + $0xe0] sm:$0xff] }
 0x292   : > { %1404 = vst.msk [vmem:[#allocation3 + $0xf8] sm:$0xff] %vm1372_vm9, %v1339_v55  ;;  %5644 = vmatprep.mubr.msk.f32.mxu0 %vm1849_vm13, %v1833_v20  ;;  %vm3615_vm9 = vcmask 589312  }
 0x293   : > { %1802 = vst.msk [vmem:[#allocation3 + $0xe8] sm:$0xff] %vm1772_vm12, %v1735_v56  ;;  %2864 = vrot.lane.b32.xlu0 %v7358_v32, %s9221_s16  ;;  %2997 = vrot.lane.b32.xlu1 %v2452_v41, %s6136_s23 }
 0x295   : > { %v1470_v17 = vpop.permute.xlu1 %1469  ;;  %v1468_v45 = vpop.permute.xlu0 %1467 }
 0x296   : > { %1535 = vst.msk [vmem:[#allocation3 + $0xf8] sm:$0xff] %vm1503_vm10, %v1470_v17  ;;  %1534 = vst.msk [vmem:[#allocation3 + $0xf0] sm:$0xff] %vm1503_vm10, %v1468_v45  ;;  %vm3696_vm10 = vcmask 588800  }
 0x297   : > { %3395 = vrot.lane.b32.xlu0 %v2454_v35, %s6139_s24  ;;  %3527 = vrot.lane.b32.xlu1 %v2661_v36, %s6140_s25 }
 0x299   : > { %v1605_v31 = vpop.permute.xlu1 %1604  ;;  %v1603_v1 = vpop.permute.xlu0 %1602 }
 0x29a   : > { %v1834_v59 = vld [vmem:[#allocation3 + $0xe8] sm:$0xff]  ;;  %1670 = vst.msk [vmem:[#allocation3 + $0xf8] sm:$0xff] %vm1638_vm11, %v1605_v31  ;;  %1669 = vst.msk [vmem:[#allocation3 + $0xf0] sm:$0xff] %vm1638_vm11, %v1603_v1  ;;  %v5628_v32 = vpop.f32.mrf.mxu0  ;;  %vm4050_vm11 = vcmask 130048  }
 0x29b   : > { %5645 = vmatmul.mubr.msk.f32.gmra.mxu0 %vm1849_vm13, %v1834_v59  ;;  %v2102_v3 = vadd.f32 %v7540_v10, %v5628_v32  ;;  %2526 = vrot.lane.b32.xlu0 %v2452_v41, %s9220_s26  ;;  %v2460_v59 = vrot.slane %v7475_v9, 1  ;;  %v2461_v32 = vrot.slane %v7480_v40, 1 }
 0x29c   : > { %2999 = vrot.lane.b32.xlu1 %v2454_v35, %s6136_s23  ;;  %v2096_v5 = vpop.f32.mrf.mxu0 }
 0x29d   : > { %v2192_v6 = vmax.f32 %v2102_v3, 0.0  ;;  %v2097_v7 = vadd.f32 %v7540_v10, %v2096_v5  ;;  %v1739_v8 = vpop.permute.xlu1 %1738  ;;  %v1737_v11 = vpop.permute.xlu0 %1736  ;;  %v2462_v5 = vsel %vm585_vm3, %v2460_v59, %v2461_v32 }
 0x29e   : > { %1804 = vst.msk [vmem:[#allocation3 + $0xf8] sm:$0xff] %vm1772_vm12, %v1739_v8  ;;  %1803 = vst.msk [vmem:[#allocation3 + $0xf0] sm:$0xff] %vm1772_vm12, %v1737_v11  ;;  %vm4185_vm12 = vcmask 1043459  }
 0x29f   : > { %2281 = vst.msk [vmem:[#allocation4 + $0xe1] sm:$0xff] %vm2207_vm14, %v2192_v6  ;;  %v2191_v13 = vmax.f32 %v2097_v7, 0.0  ;;  %3131 = vrot.lane.b32.xlu0 %v2661_v36, %s6137_s27  ;;  %v2316_v6 = vld [vmem:[#allocation4 + $0xa0] sm:$0x3] }
 0x2a0   : > { %3529 = vrot.lane.b32.xlu1 %v2663_v12, %s6140_s25  ;;  %v2672_v28 = vrot.slane %v2316_v6, 2 }
 0x2a1   : > { %2280 = vst.msk [vmem:[#allocation4 + $0xd9] sm:$0xff] %vm2207_vm14, %v2191_v13  ;;  %v2513_v14 = vpop.permute.xlu1 %2512  ;;  %v2511_v16 = vpop.permute.xlu0 %2510  ;;  %v2669_v13 = vrot.slane %v7475_v9, 2 }
 0x2a2   : > { %2608 = vst.msk [vmem:[#allocation5 + $0x8] sm:$0xff] %vm2606_vm0, %v2513_v14  ;;  %2607 = vst.msk [vmem:[#allocation5] sm:$0xff] %vm2606_vm0, %v2511_v16  ;;  %v2670_v14 = vrot.slane %v7480_v40, 2 }
 0x2a3   : > { %2528 = vrot.lane.b32.xlu0 %v2454_v35, %s9220_s26 }
 0x2a4   : > { %2735 = vrot.lane.b32.xlu1 %v2661_v36, %s6132_s29 }
 0x2a5   : > { %v2722_v18 = vpop.permute.xlu1 %2721  ;;  %v2720_v48 = vpop.permute.xlu0 %2719  ;;  %v1835_v29 = vld [vmem:[#allocation3 + $0xf0] sm:$0xff]  ;;  %v1836_v23 = vld [vmem:[#allocation3 + $0xf8] sm:$0xff] }
 0x2a6   : > { %2817 = vst.msk [vmem:[#allocation5 + $0x8] sm:$0xff] %vm2815_vm1, %v2722_v18  ;;  %2816 = vst.msk [vmem:[#allocation5] sm:$0xff] %vm2815_vm1, %v2720_v48  ;;  %5647 = vmatprep.mubr.msk.f32.mxu0 %vm1849_vm13, %v1835_v29  ;;  %v2671_v29 = vsel %vm795_vm2, %v2669_v13, %v2670_v14 }
 0x2a7   : > { %5648 = vmatmul.mubr.msk.f32.gmra.mxu0 %vm1849_vm13, %v1836_v23  ;;  %3133 = vrot.lane.b32.xlu0 %v2663_v12, %s6137_s27  ;;  %vm4188_vm13 = vcmask 1044484  }
 0x2a8   : > { %3262 = vrot.lane.b32.xlu1 %v7410_v34, %s6138_s28  ;;  %v7684_v49 = vld [vmem:[#allocation4 + $0xd8] sm:$0xff]  ;;  %v7686_v24 = vld [vmem:[#allocation4 + $0xe0] sm:$0xff] }
 0x2a9   : > { %v2853_v27 = vpop.permute.xlu1 %2852  ;;  %v2851_v62 = vpop.permute.xlu0 %2850  ;;  %2368 = vst.msk [vmem:[#allocation5 + $0x90] sm:$0xff] %vm2207_vm14, %v7684_v49  ;;  %2369 = vst.msk [vmem:[#allocation5 + $0x98] sm:$0xff] %vm2207_vm14, %v7686_v24 }
 0x2aa   : > { %2948 = vst.msk [vmem:[#allocation5 + $0x8] sm:$0xff] %vm2946_vm4, %v2853_v27  ;;  %2947 = vst.msk [vmem:[#allocation5] sm:$0xff] %vm2946_vm4, %v2851_v62 }
 0x2ab   : > { %2737 = vrot.lane.b32.xlu0 %v2663_v12, %s6132_s29  ;;  %v2463_v12 = vrot.slane %v2316_v6, 1 }
 0x2ac   : > { %2866 = vrot.lane.b32.xlu1 %v7410_v34, %s9221_s16 }
 0x2ad   : > { %v2515_v47 = vpop.permute.xlu1 %2514  ;;  %v2986_v37 = vpop.permute.xlu0 %2985  ;;  %v2464_v48 = vsel %vm585_vm3, %v2461_v32, %v2463_v12 }
 0x2ae   : > { %2609 = vst.msk [vmem:[#allocation5 + $0x10] sm:$0xff] %vm2606_vm0, %v2515_v47 }
 0x2af   : > { %3082 = vst.msk [vmem:[#allocation5] sm:$0xff] %vm3081_vm5, %v2986_v37  ;;  %3264 = vrot.lane.b32.xlu0 %v7412_v33, %s6138_s28 }
 0x2b0   : > { %3397 = vrot.lane.b32.xlu1 %v2457_v19, %s6139_s24 }
 0x2b1   : > { %v3120_v39 = vpop.permute.xlu1 %3119  ;;  %v2988_v58 = vpop.permute.xlu0 %2987 }
 0x2b2   : > { %3216 = vst.msk [vmem:[#allocation5] sm:$0xff] %vm3215_vm6, %v3120_v39 }
 0x2b3   : > { %3083 = vst.msk [vmem:[#allocation5 + $0x8] sm:$0xff] %vm3081_vm5, %v2988_v58  ;;  %2868 = vrot.lane.b32.xlu0 %v7412_v33, %s9221_s16  ;;  %v2673_v58 = vsel %vm795_vm2, %v2670_v14, %v2672_v28 }
 0x2b4   : > { %3001 = vrot.lane.b32.xlu1 %v2457_v19, %s6136_s23 }
 0x2b5   : > { %v2724_v43 = vpop.permute.xlu1 %2723  ;;  %v2517_v2 = vpop.permute.xlu0 %2516 }
 0x2b6   : > { %2818 = vst.msk [vmem:[#allocation5 + $0x10] sm:$0xff] %vm2815_vm1, %v2724_v43 }
 0x2b7   : > { %2610 = vst.msk [vmem:[#allocation5 + $0x18] sm:$0xff] %vm2606_vm0, %v2517_v2  ;;  %3399 = vrot.lane.b32.xlu0 %v2459_v25, %s6139_s24 }
 0x2b8   : > { %3531 = vrot.lane.b32.xlu1 %v2666_v30, %s6140_s25 }
 0x2b9   : > { %v3122_v34 = vpop.permute.xlu0 %3121  ;;  %v3251_v21 = vpop.permute.xlu1 %3250 }
 0x2ba   : > { %3217 = vst.msk [vmem:[#allocation5 + $0x8] sm:$0xff] %vm3215_vm6, %v3122_v34  ;;  %v5631_v33 = vpop.f32.mrf.mxu0 }
 0x2bb   : > { %3347 = vst.msk [vmem:[#allocation5] sm:$0xff] %vm3346_vm7, %v3251_v21  ;;  %v2112_v50 = vadd.f32 %v7540_v10, %v5631_v33  ;;  %2530 = vrot.lane.b32.xlu0 %v2457_v19, %s9220_s26  ;;  %v2465_v21 = vrot.slane %v7566_v60, 1  ;;  %v2466_v33 = vrot.slane %v7568_v61, 1 }
 0x2bc   : > { %3003 = vrot.lane.b32.xlu1 %v2459_v25, %s6136_s23  ;;  %v2106_v52 = vpop.f32.mrf.mxu0 }
 0x2bd   : > { %v2194_v41 = vmax.f32 %v2112_v50, 0.0  ;;  %v2107_v53 = vadd.f32 %v7540_v10, %v2106_v52  ;;  %v2726_v55 = vpop.permute.xlu0 %2725  ;;  %v2855_v56 = vpop.permute.xlu1 %2854  ;;  %v2467_v52 = vsel %vm585_vm3, %v2465_v21, %v2466_v33 }
 0x2be   : > { %2819 = vst.msk [vmem:[#allocation5 + $0x18] sm:$0xff] %vm2815_vm1, %v2726_v55 }
 0x2bf   : > { %2949 = vst.msk [vmem:[#allocation5 + $0x10] sm:$0xff] %vm2946_vm4, %v2855_v56  ;;  %v2193_v20 = vmax.f32 %v2107_v53, 0.0  ;;  %3135 = vrot.lane.b32.xlu0 %v2666_v30, %s6137_s27 }
 0x2c0   : > { %2283 = vst.msk [vmem:[#allocation4 + $0xf9] sm:$0xff] %vm2207_vm14, %v2194_v41  ;;  %3533 = vrot.lane.b32.xlu1 %v2668_v15, %s6140_s25  ;;  %v2319_v41 = vld [vmem:[#allocation4 + $0xb8] sm:$0x3] }
 0x2c1   : > { %2282 = vst.msk [vmem:[#allocation4 + $0xf1] sm:$0xff] %vm2207_vm14, %v2193_v20  ;;  %v3253_v57 = vpop.permute.xlu0 %3252  ;;  %v3386_v26 = vpop.permute.xlu1 %3385  ;;  %v2468_v20 = vrot.slane %v2319_v41, 1 }
 0x2c2   : > { %3348 = vst.msk [vmem:[#allocation5 + $0x8] sm:$0xff] %vm3346_vm7, %v3253_v57  ;;  %v2675_v57 = vrot.slane %v7568_v61, 2 }
 0x2c3   : > { %3482 = vst.msk [vmem:[#allocation5] sm:$0xff] %vm3481_vm8, %v3386_v26  ;;  %2532 = vrot.lane.b32.xlu0 %v2459_v25, %s9220_s26 }
 0x2c4   : > { %2739 = vrot.lane.b32.xlu1 %v2666_v30, %s6132_s29 }
 0x2c5   : > { %v2857_v17 = vpop.permute.xlu0 %2856  ;;  %v2990_v45 = vpop.permute.xlu1 %2989 }
 0x2c6   : > { %2950 = vst.msk [vmem:[#allocation5 + $0x18] sm:$0xff] %vm2946_vm4, %v2857_v17 }
 0x2c7   : > { %3084 = vst.msk [vmem:[#allocation5 + $0x10] sm:$0xff] %vm3081_vm5, %v2990_v45  ;;  %3137 = vrot.lane.b32.xlu0 %v2668_v15, %s6137_s27  ;;  %v2469_v45 = vsel %vm585_vm3, %v2466_v33, %v2468_v20 }
 0x2c8   : > { %3266 = vrot.lane.b32.xlu1 %v7475_v9, %s6138_s28  ;;  %v7740_v35 = vld [vmem:[#allocation4 + $0xf0] sm:$0xff]  ;;  %v7742_v36 = vld [vmem:[#allocation4 + $0xf8] sm:$0xff] }
 0x2c9   : > { %v3388_v31 = vpop.permute.xlu0 %3387  ;;  %v3520_v1 = vpop.permute.xlu1 %3519  ;;  %2370 = vst.msk [vmem:[#allocation5 + $0xa0] sm:$0xff] %vm2207_vm14, %v7740_v35  ;;  %2371 = vst.msk [vmem:[#allocation5 + $0xa8] sm:$0xff] %vm2207_vm14, %v7742_v36 }
 0x2ca   : > { %3483 = vst.msk [vmem:[#allocation5 + $0x8] sm:$0xff] %vm3481_vm8, %v3388_v31 }
 0x2cb   : > { %3616 = vst.msk [vmem:[#allocation5] sm:$0xff] %vm3615_vm9, %v3520_v1  ;;  %2741 = vrot.lane.b32.xlu0 %v2668_v15, %s6132_s29  ;;  %v2674_v15 = vrot.slane %v7566_v60, 2 }
 0x2cc   : > { %2870 = vrot.lane.b32.xlu1 %v7475_v9, %s9221_s16 }
 0x2cd   : > { %v2519_v63 = vpop.permute.xlu0 %2518  ;;  %v2992_v3 = vpop.permute.xlu1 %2991  ;;  %v2676_v31 = vsel %vm795_vm2, %v2674_v15, %v2675_v57 }
 0x2ce   : > { %2611 = vst.msk [vmem:[#allocation5 + $0x20] sm:$0xff] %vm2606_vm0, %v2519_v63  ;;  %v2677_v63 = vrot.slane %v2319_v41, 2 }
 0x2cf   : > { %3085 = vst.msk [vmem:[#allocation5 + $0x18] sm:$0xff] %vm3081_vm5, %v2992_v3  ;;  %3268 = vrot.lane.b32.xlu0 %v7480_v40, %s6138_s28 }
 0x2d0   : > { %3401 = vrot.lane.b32.xlu1 %v2462_v5, %s6139_s24  ;;  %v2678_v12 = vsel %vm795_vm2, %v2675_v57, %v2677_v63 }
 0x2d1   : > { %v3124_v7 = vpop.permute.xlu0 %3123  ;;  %v3522_v8 = vpop.permute.xlu1 %3521 }
 0x2d2   : > { %v3648_v11 = vld [vmem:[#allocation5] sm:$0xff]  ;;  %3218 = vst.msk [vmem:[#allocation5 + $0x10] sm:$0xff] %vm3215_vm6, %v3124_v7 }
 0x2d3   : > { %3617 = vst.msk [vmem:[#allocation5 + $0x8] sm:$0xff] %vm3615_vm9, %v3522_v8  ;;  %5668 = vmatprep.mubr.msk.f32.mxu1 %vm3696_vm10, %v3648_v11  ;;  %2872 = vrot.lane.b32.xlu0 %v7480_v40, %s9221_s16 }
 0x2d4   : > { %3005 = vrot.lane.b32.xlu1 %v2462_v5, %s6136_s23 }
 0x2d5   : > { %v2521_v16 = vpop.permute.xlu0 %2520  ;;  %v2728_v18 = vpop.permute.xlu1 %2727 }
 0x2d6   : > { %2612 = vst.msk [vmem:[#allocation5 + $0x28] sm:$0xff] %vm2606_vm0, %v2521_v16 }
 0x2d7   : > { %2820 = vst.msk [vmem:[#allocation5 + $0x20] sm:$0xff] %vm2815_vm1, %v2728_v18  ;;  %3403 = vrot.lane.b32.xlu0 %v2464_v48, %s6139_s24 }
 0x2d8   : > { %3535 = vrot.lane.b32.xlu1 %v2671_v29, %s6140_s25 }
 0x2d9   : > { %v3126_v23 = vpop.permute.xlu0 %3125  ;;  %v3255_v9 = vpop.permute.xlu1 %3254 }
 0x2da   : > { %v3649_v27 = vld [vmem:[#allocation5 + $0x8] sm:$0xff]  ;;  %3219 = vst.msk [vmem:[#allocation5 + $0x18] sm:$0xff] %vm3215_vm6, %v3126_v23  ;;  %v5634_v40 = vpop.f32.mrf.mxu0 }
 0x2db   : > { %3349 = vst.msk [vmem:[#allocation5 + $0x10] sm:$0xff] %vm3346_vm7, %v3255_v9  ;;  %5669 = vmatmul.mubr.msk.f32.vlgmr.msra.gmra.mxu1 %vm3696_vm10, %v3649_v27  ;;  %v2122_v62 = vadd.f32 %v7540_v10, %v5634_v40  ;;  %2534 = vrot.lane.b32.xlu0 %v2462_v5, %s9220_s26  ;;  %v2470_v27 = vrot.slane %v7624_v44, 1  ;;  %v2471_v40 = vrot.slane %v7626_v46, 1 }
 0x2dc   : > { %3007 = vrot.lane.b32.xlu1 %v2464_v48, %s6136_s23  ;;  %v2116_v54 = vpop.f32.mrf.mxu0 }
 0x2dd   : > { %v2196_v47 = vmax.f32 %v2122_v62, 0.0  ;;  %v2117_v37 = vadd.f32 %v7540_v10, %v2116_v54  ;;  %v2730_v19 = vpop.permute.xlu0 %2729  ;;  %v2859_v38 = vpop.permute.xlu1 %2858  ;;  %v2472_v54 = vsel %vm585_vm3, %v2470_v27, %v2471_v40  ;;  %v7954_v27 = vld [vmem:[%s9203_s2] ss:$0 sm:$0xff] }
 0x2de   : > { %2821 = vst.msk [vmem:[#allocation5 + $0x28] sm:$0xff] %vm2815_vm1, %v2730_v19 }
 0x2df   : > { %2951 = vst.msk [vmem:[#allocation5 + $0x20] sm:$0xff] %vm2946_vm4, %v2859_v38  ;;  %v2195_v39 = vmax.f32 %v2117_v37, 0.0  ;;  %3139 = vrot.lane.b32.xlu0 %v2671_v29, %s6137_s27 }
 0x2e0   : > { %2285 = vst.msk [vmem:[#allocation4 + $0x111] sm:$0xff] %vm2207_vm14, %v2196_v47  ;;  %3537 = vrot.lane.b32.xlu1 %v2673_v58, %s6140_s25  ;;  %v2322_v47 = vld [vmem:[#allocation4 + $0xd0] sm:$0x3] }
 0x2e1   : > { %2284 = vst.msk [vmem:[#allocation4 + $0x109] sm:$0xff] %vm2207_vm14, %v2195_v39  ;;  %v3257_v22 = vpop.permute.xlu0 %3256  ;;  %v3390_v42 = vpop.permute.xlu1 %3389  ;;  %v2473_v39 = vrot.slane %v2322_v47, 1 }
 0x2e2   : > { %3350 = vst.msk [vmem:[#allocation5 + $0x18] sm:$0xff] %vm3346_vm7, %v3257_v22  ;;  %v2680_v22 = vrot.slane %v7626_v46, 2 }
 0x2e3   : > { %3484 = vst.msk [vmem:[#allocation5 + $0x10] sm:$0xff] %vm3481_vm8, %v3390_v42  ;;  %2536 = vrot.lane.b32.xlu0 %v2464_v48, %s9220_s26 }
 0x2e4   : > { %2743 = vrot.lane.b32.xlu1 %v2671_v29, %s6132_s29 }
 0x2e5   : > { %v2861_v4 = vpop.permute.xlu0 %2860  ;;  %v2994_v43 = vpop.permute.xlu1 %2993 }
 0x2e6   : > { %2952 = vst.msk [vmem:[#allocation5 + $0x28] sm:$0xff] %vm2946_vm4, %v2861_v4 }
 0x2e7   : > { %3086 = vst.msk [vmem:[#allocation5 + $0x20] sm:$0xff] %vm3081_vm5, %v2994_v43  ;;  %3141 = vrot.lane.b32.xlu0 %v2673_v58, %s6137_s27  ;;  %v2474_v43 = vsel %vm585_vm3, %v2471_v40, %v2473_v39 }
 0x2e8   : > { %3270 = vrot.lane.b32.xlu1 %v7566_v60, %s6138_s28  ;;  %v7798_v2 = vld [vmem:[#allocation4 + $0x108] sm:$0xff]  ;;  %v7800_v25 = vld [vmem:[#allocation4 + $0x110] sm:$0xff] }
 0x2e9   : > { %v3392_v30 = vpop.permute.xlu0 %3391  ;;  %v3524_v34 = vpop.permute.xlu1 %3523  ;;  %2372 = vst.msk [vmem:[#allocation5 + $0xb0] sm:$0xff] %vm2207_vm14, %v7798_v2  ;;  %2373 = vst.msk [vmem:[#allocation5 + $0xb8] sm:$0xff] %vm2207_vm14, %v7800_v25 }
 0x2ea   : > { %3485 = vst.msk [vmem:[#allocation5 + $0x18] sm:$0xff] %vm3481_vm8, %v3392_v30 }
 0x2eb   : > { %3618 = vst.msk [vmem:[#allocation5 + $0x10] sm:$0xff] %vm3615_vm9, %v3524_v34  ;;  %2745 = vrot.lane.b32.xlu0 %v2673_v58, %s6132_s29  ;;  %v2679_v58 = vrot.slane %v7624_v44, 2 }
 0x2ec   : > { %2874 = vrot.lane.b32.xlu1 %v7566_v60, %s9221_s16 }
 0x2ed   : > { %v2523_v50 = vpop.permute.xlu0 %2522  ;;  %v2996_v51 = vpop.permute.xlu1 %2995  ;;  %v2681_v30 = vsel %vm795_vm2, %v2679_v58, %v2680_v22 }
 0x2ee   : > { %2613 = vst.msk [vmem:[#allocation5 + $0x30] sm:$0xff] %vm2606_vm0, %v2523_v50  ;;  %v2682_v50 = vrot.slane %v2322_v47, 2 }
 0x2ef   : > { %3087 = vst.msk [vmem:[#allocation5 + $0x28] sm:$0xff] %vm3081_vm5, %v2996_v51  ;;  %3272 = vrot.lane.b32.xlu0 %v7568_v61, %s6138_s28 }
 0x2f0   : > { %3405 = vrot.lane.b32.xlu1 %v2467_v52, %s6139_s24  ;;  %v2683_v20 = vsel %vm795_vm2, %v2680_v22, %v2682_v50 }
 0x2f1   : > { %v3128_v53 = vpop.permute.xlu0 %3127  ;;  %v3526_v55 = vpop.permute.xlu1 %3525 }
 0x2f2   : > { %v3650_v56 = vld [vmem:[#allocation5 + $0x10] sm:$0xff]  ;;  %3220 = vst.msk [vmem:[#allocation5 + $0x20] sm:$0xff] %vm3215_vm6, %v3128_v53 }
 0x2f3   : > { %3619 = vst.msk [vmem:[#allocation5 + $0x18] sm:$0xff] %vm3615_vm9, %v3526_v55  ;;  %5671 = vmatprep.mubr.msk.f32.mxu1 %vm3696_vm10, %v3650_v56  ;;  %2876 = vrot.lane.b32.xlu0 %v7568_v61, %s9221_s16 }
 0x2f4   : > { %3009 = vrot.lane.b32.xlu1 %v2467_v52, %s6136_s23 }
 0x2f5   : > { %v2525_v26 = vpop.permute.xlu0 %2524  ;;  %v2732_v17 = vpop.permute.xlu1 %2731 }
 0x2f6   : > { %2614 = vst.msk [vmem:[#allocation5 + $0x38] sm:$0xff] %vm2606_vm0, %v2525_v26 }
 0x2f7   : > { %2822 = vst.msk [vmem:[#allocation5 + $0x30] sm:$0xff] %vm2815_vm1, %v2732_v17  ;;  %3407 = vrot.lane.b32.xlu0 %v2469_v45, %s6139_s24 }
 0x2f8   : > { %3539 = vrot.lane.b32.xlu1 %v2676_v31, %s6140_s25 }
 0x2f9   : > { %v3130_v1 = vpop.permute.xlu0 %3129  ;;  %v3259_v60 = vpop.permute.xlu1 %3258 }
 0x2fa   : > { %v3651_v59 = vld [vmem:[#allocation5 + $0x18] sm:$0xff]  ;;  %3221 = vst.msk [vmem:[#allocation5 + $0x28] sm:$0xff] %vm3215_vm6, %v3130_v1  ;;  %v5637_v61 = vpop.f32.mrf.mxu0 }
 0x2fb   : > { %3351 = vst.msk [vmem:[#allocation5 + $0x20] sm:$0xff] %vm3346_vm7, %v3259_v60  ;;  %5672 = vmatmul.mubr.msk.f32.gmra.mxu1 %vm3696_vm10, %v3651_v59  ;;  %v2132_v32 = vadd.f32 %v7540_v10, %v5637_v61  ;;  %2538 = vrot.lane.b32.xlu0 %v2467_v52, %s9220_s26  ;;  %v2475_v60 = vrot.slane %v7684_v49, 1  ;;  %v2476_v59 = vrot.slane %v7686_v24, 1 }
 0x2fc   : > { %3011 = vrot.lane.b32.xlu1 %v2469_v45, %s6136_s23  ;;  %v2126_v3 = vpop.f32.mrf.mxu0 }
 0x2fd   : > { %v2198_v5 = vmax.f32 %v2132_v32, 0.0  ;;  %v2127_v6 = vadd.f32 %v7540_v10, %v2126_v3  ;;  %v2734_v7 = vpop.permute.xlu0 %2733  ;;  %v2863_v8 = vpop.permute.xlu1 %2862  ;;  %v2477_v63 = vsel %vm585_vm3, %v2475_v60, %v2476_v59  ;;  %v2325_v3 = vld [vmem:[#allocation4 + $0xe8] sm:$0x3] }
 0x2fe   : > { %2823 = vst.msk [vmem:[#allocation5 + $0x38] sm:$0xff] %vm2815_vm1, %v2734_v7 }
 0x2ff   : > { %2953 = vst.msk [vmem:[#allocation5 + $0x30] sm:$0xff] %vm2946_vm4, %v2863_v8  ;;  %v2197_v11 = vmax.f32 %v2127_v6, 0.0  ;;  %3143 = vrot.lane.b32.xlu0 %v2676_v31, %s6137_s27  ;;  %v2478_v8 = vrot.slane %v2325_v3, 1 }
 0x300   : > { %2287 = vst.msk [vmem:[#allocation4 + $0x129] sm:$0xff] %vm2207_vm14, %v2198_v5  ;;  %3541 = vrot.lane.b32.xlu1 %v2678_v12, %s6140_s25 }
 0x301   : > { %2286 = vst.msk [vmem:[#allocation4 + $0x121] sm:$0xff] %vm2207_vm14, %v2197_v11  ;;  %v3261_v13 = vpop.permute.xlu0 %3260  ;;  %v3394_v14 = vpop.permute.xlu1 %3393  ;;  %v2684_v11 = vrot.slane %v7684_v49, 2 }
 0x302   : > { %3352 = vst.msk [vmem:[#allocation5 + $0x28] sm:$0xff] %vm3346_vm7, %v3261_v13 }
 0x303   : > { %3486 = vst.msk [vmem:[#allocation5 + $0x20] sm:$0xff] %vm3481_vm8, %v3394_v14  ;;  %2540 = vrot.lane.b32.xlu0 %v2469_v45, %s9220_s26 }
 0x304   : > { %2747 = vrot.lane.b32.xlu1 %v2676_v31, %s6132_s29 }
 0x305   : > { %v2865_v16 = vpop.permute.xlu0 %2864  ;;  %v2998_v18 = vpop.permute.xlu1 %2997 }
 0x306   : > { %2954 = vst.msk [vmem:[#allocation5 + $0x38] sm:$0xff] %vm2946_vm4, %v2865_v16  ;;  %v2479_v16 = vsel %vm585_vm3, %v2476_v59, %v2478_v8 }
 0x307   : > { %3088 = vst.msk [vmem:[#allocation5 + $0x30] sm:$0xff] %vm3081_vm5, %v2998_v18  ;;  %3145 = vrot.lane.b32.xlu0 %v2678_v12, %s6137_s27 }
 0x308   : > { %3274 = vrot.lane.b32.xlu1 %v7624_v44, %s6138_s28  ;;  %v7856_v48 = vld [vmem:[#allocation4 + $0x120] sm:$0xff]  ;;  %v7858_v29 = vld [vmem:[#allocation4 + $0x128] sm:$0xff] }
 0x309   : > { %v3396_v23 = vpop.permute.xlu0 %3395  ;;  %v3528_v9 = vpop.permute.xlu1 %3527  ;;  %2374 = vst.msk [vmem:[#allocation5 + $0xc0] sm:$0xff] %vm2207_vm14, %v7856_v48  ;;  %2375 = vst.msk [vmem:[#allocation5 + $0xc8] sm:$0xff] %vm2207_vm14, %v7858_v29 }
 0x30a   : > { %3487 = vst.msk [vmem:[#allocation5 + $0x28] sm:$0xff] %vm3481_vm8, %v3396_v23 }
 0x30b   : > { %3620 = vst.msk [vmem:[#allocation5 + $0x20] sm:$0xff] %vm3615_vm9, %v3528_v9  ;;  %2749 = vrot.lane.b32.xlu0 %v2678_v12, %s6132_s29  ;;  %v2685_v12 = vrot.slane %v7686_v24, 2 }
 0x30c   : > { %2878 = vrot.lane.b32.xlu1 %v7624_v44, %s9221_s16 }
 0x30d   : > { %v2527_v62 = vpop.permute.xlu0 %2526  ;;  %v2686_v18 = vsel %vm795_vm2, %v2684_v11, %v2685_v12 }
 0x30e   : > { %v3000_v28 = vpop.permute.xlu1 %2999  ;;  %2615 = vst.msk [vmem:[#allocation5 + $0x40] sm:$0xff] %vm2606_vm0, %v2527_v62  ;;  %v2687_v62 = vrot.slane %v2325_v3, 2 }
 0x30f   : > { %3089 = vst.msk [vmem:[#allocation5 + $0x38] sm:$0xff] %vm3081_vm5, %v3000_v28  ;;  %3276 = vrot.lane.b32.xlu0 %v7626_v46, %s6138_s28 }
 0x310   : > { %3409 = vrot.lane.b32.xlu1 %v2472_v54, %s6139_s24  ;;  %v2688_v39 = vsel %vm795_vm2, %v2685_v12, %v2687_v62 }
 0x311   : > { %v3132_v37 = vpop.permute.xlu0 %3131 }
 0x312   : > { %v3530_v19 = vpop.permute.xlu1 %3529  ;;  %v3652_v38 = vld [vmem:[#allocation5 + $0x20] sm:$0xff]  ;;  %3222 = vst.msk [vmem:[#allocation5 + $0x30] sm:$0xff] %vm3215_vm6, %v3132_v37 }
 0x313   : > { %3621 = vst.msk [vmem:[#allocation5 + $0x28] sm:$0xff] %vm3615_vm9, %v3530_v19  ;;  %5674 = vmatprep.mubr.msk.f32.mxu1 %vm3696_vm10, %v3652_v38  ;;  %2880 = vrot.lane.b32.xlu0 %v7626_v46, %s9221_s16 }
 0x314   : > { %3013 = vrot.lane.b32.xlu1 %v2472_v54, %s6136_s23 }
 0x315   : > { %v2529_v42 = vpop.permute.xlu0 %2528 }
 0x316   : > { %v2736_v4 = vpop.permute.xlu1 %2735  ;;  %2616 = vst.msk [vmem:[#allocation5 + $0x48] sm:$0xff] %vm2606_vm0, %v2529_v42 }
 0x317   : > { %2824 = vst.msk [vmem:[#allocation5 + $0x40] sm:$0xff] %vm2815_vm1, %v2736_v4  ;;  %3411 = vrot.lane.b32.xlu0 %v2474_v43, %s6139_s24 }
 0x318   : > { %3543 = vrot.lane.b32.xlu1 %v2681_v30, %s6140_s25 }
 0x319   : > { %v3134_v34 = vpop.permute.xlu0 %3133 }
 0x31a   : > { %v3653_v44 = vld [vmem:[#allocation5 + $0x28] sm:$0xff]  ;;  %3223 = vst.msk [vmem:[#allocation5 + $0x38] sm:$0xff] %vm3215_vm6, %v3134_v34  ;;  %v3263_v46 = vpop.permute.xlu1 %3262  ;;  %v5640_v21 = vpop.f32.mrf.mxu0 }
 0x31b   : > { %5675 = vmatmul.mubr.msk.f32.gmra.mxu1 %vm3696_vm10, %v3653_v44  ;;  %3353 = vst.msk [vmem:[#allocation5 + $0x30] sm:$0xff] %vm3346_vm7, %v3263_v46  ;;  %v2142_v33 = vadd.f32 %v7540_v10, %v5640_v21  ;;  %2542 = vrot.lane.b32.xlu0 %v2472_v54, %s9220_s26  ;;  %v2480_v46 = vrot.slane %v7740_v35, 1  ;;  %v2481_v21 = vrot.slane %v7742_v36, 1 }
 0x31c   : > { %3015 = vrot.lane.b32.xlu1 %v2474_v43, %s6136_s23  ;;  %v2136_v51 = vpop.f32.mrf.mxu0 }
 0x31d   : > { %v2200_v52 = vmax.f32 %v2142_v33, 0.0  ;;  %v2137_v41 = vadd.f32 %v7540_v10, %v2136_v51  ;;  %v2738_v53 = vpop.permute.xlu0 %2737  ;;  %v2482_v51 = vsel %vm585_vm3, %v2480_v46, %v2481_v21 }
 0x31e   : > { %2825 = vst.msk [vmem:[#allocation5 + $0x48] sm:$0xff] %vm2815_vm1, %v2738_v53  ;;  %v2867_v55 = vpop.permute.xlu1 %2866 }
 0x31f   : > { %2289 = vst.msk [vmem:[#allocation4 + $0x141] sm:$0xff] %vm2207_vm14, %v2200_v52  ;;  %v2199_v56 = vmax.f32 %v2137_v41, 0.0  ;;  %3147 = vrot.lane.b32.xlu0 %v2681_v30, %s6137_s27  ;;  %v2328_v52 = vld [vmem:[#allocation4 + $0x100] sm:$0x3] }
 0x320   : > { %2955 = vst.msk [vmem:[#allocation5 + $0x40] sm:$0xff] %vm2946_vm4, %v2867_v55  ;;  %3545 = vrot.lane.b32.xlu1 %v2683_v20, %s6140_s25 }
 0x321   : > { %2288 = vst.msk [vmem:[#allocation4 + $0x139] sm:$0xff] %vm2207_vm14, %v2199_v56  ;;  %v3265_v15 = vpop.permute.xlu0 %3264  ;;  %v2483_v56 = vrot.slane %v2328_v52, 1 }
 0x322   : > { %3354 = vst.msk [vmem:[#allocation5 + $0x38] sm:$0xff] %vm3346_vm7, %v3265_v15  ;;  %v3398_v10 = vpop.permute.xlu1 %3397  ;;  %v2690_v15 = vrot.slane %v7742_v36, 2 }
 0x323   : > { %3488 = vst.msk [vmem:[#allocation5 + $0x30] sm:$0xff] %vm3481_vm8, %v3398_v10  ;;  %2544 = vrot.lane.b32.xlu0 %v2474_v43, %s9220_s26 }
 0x324   : > { %2751 = vrot.lane.b32.xlu1 %v2681_v30, %s6132_s29 }
 0x325   : > { %v2869_v57 = vpop.permute.xlu0 %2868 }
 0x326   : > { %2956 = vst.msk [vmem:[#allocation5 + $0x48] sm:$0xff] %vm2946_vm4, %v2869_v57  ;;  %v3002_v26 = vpop.permute.xlu1 %3001 }
 0x327   : > { %3090 = vst.msk [vmem:[#allocation5 + $0x40] sm:$0xff] %vm3081_vm5, %v3002_v26  ;;  %3149 = vrot.lane.b32.xlu0 %v2683_v20, %s6137_s27  ;;  %v2484_v26 = vsel %vm585_vm3, %v2481_v21, %v2483_v56 }
 0x328   : > { %3278 = vrot.lane.b32.xlu1 %v7684_v49, %s6138_s28  ;;  %v7914_v17 = vld [vmem:[#allocation4 + $0x138] sm:$0xff]  ;;  %v7916_v45 = vld [vmem:[#allocation4 + $0x140] sm:$0xff] }
 0x329   : > { %v3400_v31 = vpop.permute.xlu0 %3399  ;;  %2376 = vst.msk [vmem:[#allocation5 + $0xd0] sm:$0xff] %vm2207_vm14, %v7914_v17  ;;  %2377 = vst.msk [vmem:[#allocation5 + $0xd8] sm:$0xff] %vm2207_vm14, %v7916_v45 }
 0x32a   : > { %3489 = vst.msk [vmem:[#allocation5 + $0x38] sm:$0xff] %vm3481_vm8, %v3400_v31  ;;  %v3532_v1 = vpop.permute.xlu1 %3531 }
 0x32b   : > { %3622 = vst.msk [vmem:[#allocation5 + $0x30] sm:$0xff] %vm3615_vm9, %v3532_v1  ;;  %2753 = vrot.lane.b32.xlu0 %v2683_v20, %s6132_s29  ;;  %v2689_v20 = vrot.slane %v7740_v35, 2 }
 0x32c   : > { %2882 = vrot.lane.b32.xlu1 %v7684_v49, %s9221_s16 }
 0x32d   : > { %v2531_v61 = vpop.permute.xlu0 %2530  ;;  %v2691_v31 = vsel %vm795_vm2, %v2689_v20, %v2690_v15 }
 0x32e   : > { %2617 = vst.msk [vmem:[#allocation5 + $0x50] sm:$0xff] %vm2606_vm0, %v2531_v61  ;;  %v3004_v32 = vpop.permute.xlu1 %3003  ;;  %v2692_v61 = vrot.slane %v2328_v52, 2 }
 0x32f   : > { %3091 = vst.msk [vmem:[#allocation5 + $0x48] sm:$0xff] %vm3081_vm5, %v3004_v32  ;;  %3280 = vrot.lane.b32.xlu0 %v7686_v24, %s6138_s28 }
 0x330   : > { %3413 = vrot.lane.b32.xlu1 %v2477_v63, %s6139_s24  ;;  %v2693_v8 = vsel %vm795_vm2, %v2690_v15, %v2692_v61 }
 0x331   : > { %v3136_v5 = vpop.permute.xlu0 %3135 }
 0x332   : > { %3224 = vst.msk [vmem:[#allocation5 + $0x40] sm:$0xff] %vm3215_vm6, %v3136_v5  ;;  %v3534_v6 = vpop.permute.xlu1 %3533  ;;  %v3654_v7 = vld [vmem:[#allocation5 + $0x30] sm:$0xff] }
 0x333   : > { %3623 = vst.msk [vmem:[#allocation5 + $0x38] sm:$0xff] %vm3615_vm9, %v3534_v6  ;;  %5677 = vmatprep.mubr.msk.f32.mxu1 %vm3696_vm10, %v3654_v7  ;;  %2884 = vrot.lane.b32.xlu0 %v7686_v24, %s9221_s16 }
 0x334   : > { %3017 = vrot.lane.b32.xlu1 %v2477_v63, %s6136_s23 }
 0x335   : > { %v2533_v13 = vpop.permute.xlu0 %2532 }
 0x336   : > { %2618 = vst.msk [vmem:[#allocation5 + $0x58] sm:$0xff] %vm2606_vm0, %v2533_v13  ;;  %v2740_v14 = vpop.permute.xlu1 %2739 }
 0x337   : > { %2826 = vst.msk [vmem:[#allocation5 + $0x50] sm:$0xff] %vm2815_vm1, %v2740_v14  ;;  %3415 = vrot.lane.b32.xlu0 %v2479_v16, %s6139_s24 }
 0x338   : > { %3547 = vrot.lane.b32.xlu1 %v2686_v18, %s6140_s25 }
 0x339   : > { %v3138_v23 = vpop.permute.xlu0 %3137 }
 0x33a   : > { %3225 = vst.msk [vmem:[#allocation5 + $0x48] sm:$0xff] %vm3215_vm6, %v3138_v23  ;;  %v3267_v49 = vpop.permute.xlu1 %3266  ;;  %v5643_v24 = vpop.f32.mrf.mxu0  ;;  %v3655_v9 = vld [vmem:[#allocation5 + $0x38] sm:$0xff] }
 0x33b   : > { %3355 = vst.msk [vmem:[#allocation5 + $0x40] sm:$0xff] %vm3346_vm7, %v3267_v49  ;;  %v2152_v40 = vadd.f32 %v7954_v27, %v5643_v24  ;;  %5678 = vmatmul.mubr.msk.f32.gmra.mxu1 %vm3696_vm10, %v3655_v9  ;;  %2546 = vrot.lane.b32.xlu0 %v2477_v63, %s9220_s26 }
 0x33c   : > { %3019 = vrot.lane.b32.xlu1 %v2479_v16, %s6136_s23  ;;  %v2146_v28 = vpop.f32.mrf.mxu0 }
 0x33d   : > { %v2202_v54 = vmax.f32 %v2152_v40, 0.0  ;;  %v2147_v47 = vadd.f32 %v7954_v27, %v2146_v28  ;;  %v2742_v37 = vpop.permute.xlu0 %2741 }
 0x33e   : > { %2827 = vst.msk [vmem:[#allocation5 + $0x58] sm:$0xff] %vm2815_vm1, %v2742_v37  ;;  %v2871_v19 = vpop.permute.xlu1 %2870 }
 0x33f   : > { %2291 = vst.msk [vmem:[#allocation4 + $0x159] sm:$0xff] %vm2207_vm14, %v2202_v54  ;;  %v2201_v38 = vmax.f32 %v2147_v47, 0.0  ;;  %3151 = vrot.lane.b32.xlu0 %v2686_v18, %s6137_s27  ;;  %v2485_v54 = vrot.slane %v7798_v2, 1  ;;  %v2486_v47 = vrot.slane %v7800_v25, 1 }
 0x340   : > { %2957 = vst.msk [vmem:[#allocation5 + $0x50] sm:$0xff] %vm2946_vm4, %v2871_v19  ;;  %3549 = vrot.lane.b32.xlu1 %v2688_v39, %s6140_s25 }
 0x341   : > { %2290 = vst.msk [vmem:[#allocation4 + $0x151] sm:$0xff] %vm2207_vm14, %v2201_v38  ;;  %v3269_v58 = vpop.permute.xlu0 %3268  ;;  %v2487_v38 = vsel %vm585_vm3, %v2485_v54, %v2486_v47 }
 0x342   : > { %3356 = vst.msk [vmem:[#allocation5 + $0x48] sm:$0xff] %vm3346_vm7, %v3269_v58  ;;  %v3402_v22 = vpop.permute.xlu1 %3401 }
 0x343   : > { %3490 = vst.msk [vmem:[#allocation5 + $0x40] sm:$0xff] %vm3481_vm8, %v3402_v22  ;;  %2548 = vrot.lane.b32.xlu0 %v2479_v16, %s9220_s26 }
 0x344   : > { %2755 = vrot.lane.b32.xlu1 %v2686_v18, %s6132_s29 }
 0x345   : > { %v2873_v42 = vpop.permute.xlu0 %2872 }
 0x346   : > { %2958 = vst.msk [vmem:[#allocation5 + $0x58] sm:$0xff] %vm2946_vm4, %v2873_v42  ;;  %v3006_v4 = vpop.permute.xlu1 %3005 }
 0x347   : > { %3092 = vst.msk [vmem:[#allocation5 + $0x50] sm:$0xff] %vm3081_vm5, %v3006_v4  ;;  %3153 = vrot.lane.b32.xlu0 %v2688_v39, %s6137_s27 }
 0x348   : > { %3282 = vrot.lane.b32.xlu1 %v7740_v35, %s6138_s28  ;;  %v7977_v43 = vld [vmem:[#allocation4 + $0x150] sm:$0xff]  ;;  %v7979_v30 = vld [vmem:[#allocation4 + $0x158] sm:$0xff] }
 0x349   : > { %v3404_v34 = vpop.permute.xlu0 %3403  ;;  %2378 = vst.msk [vmem:[#allocation5 + $0xe0] sm:$0xff] %vm2207_vm14, %v7977_v43  ;;  %2379 = vst.msk [vmem:[#allocation5 + $0xe8] sm:$0xff] %vm2207_vm14, %v7979_v30 }
 0x34a   : > { %3491 = vst.msk [vmem:[#allocation5 + $0x48] sm:$0xff] %vm3481_vm8, %v3404_v34  ;;  %v3536_v44 = vpop.permute.xlu1 %3535  ;;  %v2694_v34 = vrot.slane %v7798_v2, 2 }
 0x34b   : > { %3624 = vst.msk [vmem:[#allocation5 + $0x40] sm:$0xff] %vm3615_vm9, %v3536_v44  ;;  %2757 = vrot.lane.b32.xlu0 %v2688_v39, %s6132_s29  ;;  %v2331_v39 = vld [vmem:[#allocation4 + $0x118] sm:$0x3]  ;;  %v2695_v44 = vrot.slane %v7800_v25, 2 }
 0x34c   : > { %2886 = vrot.lane.b32.xlu1 %v7740_v35, %s9221_s16  ;;  %v2488_v4 = vrot.slane %v2331_v39, 1  ;;  %v2697_v52 = vrot.slane %v2331_v39, 2 }
 0x34d   : > { %v2535_v33 = vpop.permute.xlu0 %2534 }
 0x34e   : > { %2619 = vst.msk [vmem:[#allocation5 + $0x60] sm:$0xff] %vm2606_vm0, %v2535_v33  ;;  %v3008_v50 = vpop.permute.xlu1 %3007  ;;  %v2489_v33 = vsel %vm585_vm3, %v2486_v47, %v2488_v4  ;;  %v2496_v4 = vrot.slane %v7916_v45, 1 }
 0x34f   : > { %3093 = vst.msk [vmem:[#allocation5 + $0x58] sm:$0xff] %vm3081_vm5, %v3008_v50  ;;  %3284 = vrot.lane.b32.xlu0 %v7742_v36, %s6138_s28  ;;  %v2696_v50 = vsel %vm795_vm2, %v2694_v34, %v2695_v44 }
 0x350   : > { %3417 = vrot.lane.b32.xlu1 %v2482_v51, %s6139_s24 }
 0x351   : > { %v3140_v41 = vpop.permute.xlu0 %3139 }
 0x352   : > { %3226 = vst.msk [vmem:[#allocation5 + $0x50] sm:$0xff] %vm3215_vm6, %v3140_v41  ;;  %v3538_v53 = vpop.permute.xlu1 %3537  ;;  %v3656_v55 = vld [vmem:[#allocation5 + $0x40] sm:$0xff] }
 0x353   : > { %3625 = vst.msk [vmem:[#allocation5 + $0x48] sm:$0xff] %vm3615_vm9, %v3538_v53  ;;  %5680 = vmatprep.mubr.msk.f32.mxu1 %vm3696_vm10, %v3656_v55  ;;  %2888 = vrot.lane.b32.xlu0 %v7742_v36, %s9221_s16  ;;  %v2698_v55 = vsel %vm795_vm2, %v2695_v44, %v2697_v52  ;;  %v2705_v52 = vrot.slane %v7916_v45, 2 }
 0x354   : > { %3021 = vrot.lane.b32.xlu1 %v2482_v51, %s6136_s23 }
 0x355   : > { %v2537_v10 = vpop.permute.xlu0 %2536 }
 0x356   : > { %2620 = vst.msk [vmem:[#allocation5 + $0x68] sm:$0xff] %vm2606_vm0, %v2537_v10  ;;  %v2744_v57 = vpop.permute.xlu1 %2743 }
 0x357   : > { %2828 = vst.msk [vmem:[#allocation5 + $0x60] sm:$0xff] %vm2815_vm1, %v2744_v57  ;;  %3419 = vrot.lane.b32.xlu0 %v2484_v26, %s6139_s24 }
 0x358   : > { %3551 = vrot.lane.b32.xlu1 %v2691_v31, %s6140_s25 }
 0x359   : > { %v3142_v1 = vpop.permute.xlu0 %3141 }
 0x35a   : > { %3227 = vst.msk [vmem:[#allocation5 + $0x58] sm:$0xff] %vm3215_vm6, %v3142_v1  ;;  %v3271_v35 = vpop.permute.xlu1 %3270  ;;  %v3657_v60 = vld [vmem:[#allocation5 + $0x48] sm:$0xff]  ;;  %v2491_v1 = vrot.slane %v7858_v29, 1 }
 0x35b   : > { %v5646_v36 = vpop.f32.mrf.mxu0  ;;  %3357 = vst.msk [vmem:[#allocation5 + $0x50] sm:$0xff] %vm3346_vm7, %v3271_v35  ;;  %5681 = vmatmul.mubr.msk.f32.gmra.mxu1 %vm3696_vm10, %v3657_v60  ;;  %2550 = vrot.lane.b32.xlu0 %v2482_v51, %s9220_s26 }
 0x35c   : > { %v2162_v59 = vadd.f32 %v7954_v27, %v5646_v36  ;;  %3023 = vrot.lane.b32.xlu1 %v2484_v26, %s6136_s23 }
 0x35d   : > { %v2156_v32 = vpop.f32.mrf.mxu0  ;;  %v2746_v5 = vpop.permute.xlu0 %2745 }
 0x35e   : > { %v2204_v63 = vmax.f32 %v2162_v59, 0.0  ;;  %v2157_v3 = vadd.f32 %v7954_v27, %v2156_v32  ;;  %2829 = vst.msk [vmem:[#allocation5 + $0x68] sm:$0xff] %vm2815_vm1, %v2746_v5  ;;  %v2875_v6 = vpop.permute.xlu1 %2874  ;;  %v2334_v59 = vld [vmem:[#allocation4 + $0x130] sm:$0x3]  ;;  %v2699_v5 = vrot.slane %v7856_v48, 2 }
 0x35f   : > { %2959 = vst.msk [vmem:[#allocation5 + $0x60] sm:$0xff] %vm2946_vm4, %v2875_v6  ;;  %3155 = vrot.lane.b32.xlu0 %v2691_v31, %s6137_s27  ;;  %v2700_v6 = vrot.slane %v7858_v29, 2 }
 0x360   : > { %2293 = vst.msk [vmem:[#allocation4 + $0x171] sm:$0xff] %vm2207_vm14, %v2204_v63  ;;  %v2203_v7 = vmax.f32 %v2157_v3, 0.0  ;;  %3553 = vrot.lane.b32.xlu1 %v2693_v8, %s6140_s25  ;;  %v2493_v3 = vrot.slane %v2334_v59, 1 }
 0x361   : > { %v3273_v11 = vpop.permute.xlu0 %3272 }
 0x362   : > { %2292 = vst.msk [vmem:[#allocation4 + $0x169] sm:$0xff] %vm2207_vm14, %v2203_v7  ;;  %v3406_v12 = vpop.permute.xlu1 %3405 }
 0x363   : > { %3358 = vst.msk [vmem:[#allocation5 + $0x58] sm:$0xff] %vm3346_vm7, %v3273_v11  ;;  %2552 = vrot.lane.b32.xlu0 %v2484_v26, %s9220_s26  ;;  %v2494_v11 = vsel %vm585_vm3, %v2491_v1, %v2493_v3 }
 0x364   : > { %3492 = vst.msk [vmem:[#allocation5 + $0x50] sm:$0xff] %vm3481_vm8, %v3406_v12  ;;  %2759 = vrot.lane.b32.xlu1 %v2691_v31, %s6132_s29  ;;  %v2490_v31 = vrot.slane %v7856_v48, 1  ;;  %v2701_v12 = vsel %vm795_vm2, %v2699_v5, %v2700_v6 }
 0x365   : > { %v2877_v13 = vpop.permute.xlu0 %2876 }
 0x366   : > { %2960 = vst.msk [vmem:[#allocation5 + $0x68] sm:$0xff] %vm2946_vm4, %v2877_v13  ;;  %v3010_v14 = vpop.permute.xlu1 %3009  ;;  %v2492_v60 = vsel %vm585_vm3, %v2490_v31, %v2491_v1 }
 0x367   : > { %3094 = vst.msk [vmem:[#allocation5 + $0x60] sm:$0xff] %vm3081_vm5, %v3010_v14  ;;  %v5649_v16 = vpop.f32.mrf.mxu0  ;;  %3157 = vrot.lane.b32.xlu0 %v2693_v8, %s6137_s27 }
 0x368   : > { %v2172_v18 = vadd.f32 %v7954_v27, %v5649_v16  ;;  %3286 = vrot.lane.b32.xlu1 %v7798_v2, %s6138_s28 }
 0x369   : > { %v8036_v23 = vld [vmem:[#allocation4 + $0x168] sm:$0xff]  ;;  %v8038_v49 = vld [vmem:[#allocation4 + $0x170] sm:$0xff]  ;;  %v2166_v24 = vpop.f32.mrf.mxu0  ;;  %v3408_v9 = vpop.permute.xlu0 %3407 }
 0x36a   : > { %2380 = vst.msk [vmem:[#allocation5 + $0xf0] sm:$0xff] %vm2207_vm14, %v8036_v23  ;;  %2381 = vst.msk [vmem:[#allocation5 + $0xf8] sm:$0xff] %vm2207_vm14, %v8038_v49  ;;  %v2206_v40 = vmax.f32 %v2172_v18, 0.0  ;;  %v2167_v62 = vadd.f32 %v7954_v27, %v2166_v24  ;;  %v3540_v28 = vpop.permute.xlu1 %3539  ;;  %v2702_v24 = vrot.slane %v2334_v59, 2 }
 0x36b   : > { %3493 = vst.msk [vmem:[#allocation5 + $0x58] sm:$0xff] %vm3481_vm8, %v3408_v9  ;;  %2761 = vrot.lane.b32.xlu0 %v2693_v8, %s6132_s29 }
 0x36c   : > { %3626 = vst.msk [vmem:[#allocation5 + $0x50] sm:$0xff] %vm3615_vm9, %v3540_v28  ;;  %v2205_v37 = vmax.f32 %v2167_v62, 0.0  ;;  %2890 = vrot.lane.b32.xlu1 %v7798_v2, %s9221_s16 }
 0x36d   : > { %2295 = vst.msk [vmem:[#allocation4 + $0x189] sm:$0xff] %vm2207_vm14, %v2206_v40  ;;  %v2539_v19 = vpop.permute.xlu0 %2538 }
 0x36e   : > { %2294 = vst.msk [vmem:[#allocation4 + $0x181] sm:$0xff] %vm2207_vm14, %v2205_v37  ;;  %v3012_v27 = vpop.permute.xlu1 %3011  ;;  %v2703_v37 = vsel %vm795_vm2, %v2700_v6, %v2702_v24  ;;  %vm4191_vm14 = vcmask 1045509  }
 0x36f   : > { %2621 = vst.msk [vmem:[#allocation5 + $0x70] sm:$0xff] %vm2606_vm0, %v2539_v19  ;;  %3288 = vrot.lane.b32.xlu0 %v7800_v25, %s6138_s28 }
 0x370   : > { %3095 = vst.msk [vmem:[#allocation5 + $0x68] sm:$0xff] %vm3081_vm5, %v3012_v27  ;;  %3421 = vrot.lane.b32.xlu1 %v2487_v38, %s6139_s24 }
 0x371   : > { %v3144_v58 = vpop.permute.xlu0 %3143 }
 0x372   : > { %3228 = vst.msk [vmem:[#allocation5 + $0x60] sm:$0xff] %vm3215_vm6, %v3144_v58  ;;  %v3542_v22 = vpop.permute.xlu1 %3541 }
 0x373   : > { %v3658_v42 = vld [vmem:[#allocation5 + $0x50] sm:$0xff]  ;;  %3627 = vst.msk [vmem:[#allocation5 + $0x58] sm:$0xff] %vm3615_vm9, %v3542_v22  ;;  %2892 = vrot.lane.b32.xlu0 %v7800_v25, %s9221_s16 }
 0x374   : > { %5683 = vmatprep.mubr.msk.f32.mxu1 %vm3696_vm10, %v3658_v42  ;;  %3025 = vrot.lane.b32.xlu1 %v2487_v38, %s6136_s23  ;;  %v2495_v42 = vrot.slane %v7914_v17, 1 }
 0x375   : > { %v2541_v46 = vpop.permute.xlu0 %2540 }
 0x376   : > { %2622 = vst.msk [vmem:[#allocation5 + $0x78] sm:$0xff] %vm2606_vm0, %v2541_v46  ;;  %v2748_v21 = vpop.permute.xlu1 %2747  ;;  %v2497_v46 = vsel %vm585_vm3, %v2495_v42, %v2496_v4 }
 0x377   : > { %2830 = vst.msk [vmem:[#allocation5 + $0x70] sm:$0xff] %vm2815_vm1, %v2748_v21  ;;  %3423 = vrot.lane.b32.xlu0 %v2489_v33, %s6139_s24  ;;  %v2337_v21 = vld [vmem:[#allocation4 + $0x148] sm:$0x3] }
 0x378   : > { %3555 = vrot.lane.b32.xlu1 %v2696_v50, %s6140_s25 }
 0x379   : > { %v3146_v51 = vpop.permute.xlu0 %3145 }
 0x37a   : > { %3229 = vst.msk [vmem:[#allocation5 + $0x68] sm:$0xff] %vm3215_vm6, %v3146_v51  ;;  %v3275_v2 = vpop.permute.xlu1 %3274  ;;  %v3659_v25 = vld [vmem:[#allocation5 + $0x58] sm:$0xff] }
 0x37b   : > { %3359 = vst.msk [vmem:[#allocation5 + $0x60] sm:$0xff] %vm3346_vm7, %v3275_v2  ;;  %5684 = vmatmul.mubr.msk.f32.gmra.mxu1 %vm3696_vm10, %v3659_v25  ;;  %2554 = vrot.lane.b32.xlu0 %v2487_v38, %s9220_s26  ;;  %v2498_v2 = vrot.slane %v2337_v21, 1  ;;  %v2704_v25 = vrot.slane %v7914_v17, 2 }
 0x37c   : > { %3027 = vrot.lane.b32.xlu1 %v2489_v33, %s6136_s23 }
 0x37d   : > { %v2750_v41 = vpop.permute.xlu0 %2749 }
 0x37e   : > { %2831 = vst.msk [vmem:[#allocation5 + $0x78] sm:$0xff] %vm2815_vm1, %v2750_v41  ;;  %v2879_v53 = vpop.permute.xlu1 %2878 }
 0x37f   : > { %2961 = vst.msk [vmem:[#allocation5 + $0x70] sm:$0xff] %vm2946_vm4, %v2879_v53  ;;  %3159 = vrot.lane.b32.xlu0 %v2696_v50, %s6137_s27 }
 0x380   : > { %3557 = vrot.lane.b32.xlu1 %v2698_v55, %s6140_s25 }
 0x381   : > { %v3277_v56 = vpop.permute.xlu0 %3276 }
 0x382   : > { %3360 = vst.msk [vmem:[#allocation5 + $0x68] sm:$0xff] %vm3346_vm7, %v3277_v56  ;;  %v3410_v20 = vpop.permute.xlu1 %3409  ;;  %v2706_v56 = vsel %vm795_vm2, %v2704_v25, %v2705_v52  ;;  %v2505_v25 = vrot.slane %v8036_v23, 1 }
 0x383   : > { %3494 = vst.msk [vmem:[#allocation5 + $0x60] sm:$0xff] %vm3481_vm8, %v3410_v20  ;;  %2556 = vrot.lane.b32.xlu0 %v2489_v33, %s9220_s26 }
 0x384   : > { %2763 = vrot.lane.b32.xlu1 %v2696_v50, %s6132_s29 }
 0x385   : > { %v2881_v15 = vpop.permute.xlu0 %2880 }
 0x386   : > { %2962 = vst.msk [vmem:[#allocation5 + $0x78] sm:$0xff] %vm2946_vm4, %v2881_v15  ;;  %v3014_v10 = vpop.permute.xlu1 %3013 }
 0x387   : > { %3096 = vst.msk [vmem:[#allocation5 + $0x70] sm:$0xff] %vm3081_vm5, %v3014_v10  ;;  %3161 = vrot.lane.b32.xlu0 %v2698_v55, %s6137_s27 }
 0x388   : > { %3290 = vrot.lane.b32.xlu1 %v7856_v48, %s6138_s28 }
 0x389   : > { %v3412_v57 = vpop.permute.xlu0 %3411 }
 0x38a   : > { %3495 = vst.msk [vmem:[#allocation5 + $0x68] sm:$0xff] %vm3481_vm8, %v3412_v57  ;;  %v3544_v26 = vpop.permute.xlu1 %3543  ;;  %v2707_v57 = vrot.slane %v2337_v21, 2 }
 0x38b   : > { %3628 = vst.msk [vmem:[#allocation5 + $0x60] sm:$0xff] %vm3615_vm9, %v3544_v26  ;;  %2765 = vrot.lane.b32.xlu0 %v2698_v55, %s6132_s29  ;;  %v2499_v55 = vsel %vm585_vm3, %v2496_v4, %v2498_v2 }
 0x38c   : > { %2894 = vrot.lane.b32.xlu1 %v7856_v48, %s9221_s16  ;;  %v8123_v48 = vld [vmem:[%s9205_s4] ss:$0 sm:$0xff]  ;;  %v2708_v59 = vsel %vm795_vm2, %v2705_v52, %v2707_v57  ;;  %v2506_v52 = vrot.slane %v8038_v49, 1 }
 0x38d   : > { %v2543_v35 = vpop.permute.xlu0 %2542 }
 0x38e   : > { %2623 = vst.msk [vmem:[#allocation5 + $0x80] sm:$0xff] %vm2606_vm0, %v2543_v35  ;;  %v3016_v36 = vpop.permute.xlu1 %3015 }
 0x38f   : > { %3097 = vst.msk [vmem:[#allocation5 + $0x78] sm:$0xff] %vm3081_vm5, %v3016_v36  ;;  %3292 = vrot.lane.b32.xlu0 %v7858_v29, %s6138_s28 }
 0x390   : > { %3425 = vrot.lane.b32.xlu1 %v2492_v60, %s6139_s24 }
 0x391   : > { %v3148_v61 = vpop.permute.xlu0 %3147 }
 0x392   : > { %3230 = vst.msk [vmem:[#allocation5 + $0x70] sm:$0xff] %vm3215_vm6, %v3148_v61  ;;  %v3546_v32 = vpop.permute.xlu1 %3545  ;;  %v3660_v63 = vld [vmem:[#allocation5 + $0x60] sm:$0xff] }
 0x393   : > { %3629 = vst.msk [vmem:[#allocation5 + $0x68] sm:$0xff] %vm3615_vm9, %v3546_v32  ;;  %5686 = vmatprep.mubr.msk.f32.mxu1 %vm3696_vm10, %v3660_v63  ;;  %2896 = vrot.lane.b32.xlu0 %v7858_v29, %s9221_s16 }
 0x394   : > { %3029 = vrot.lane.b32.xlu1 %v2492_v60, %s6136_s23 }
 0x395   : > { %v2545_v7 = vpop.permute.xlu0 %2544 }
 0x396   : > { %2624 = vst.msk [vmem:[#allocation5 + $0x88] sm:$0xff] %vm2606_vm0, %v2545_v7  ;;  %v2752_v8 = vpop.permute.xlu1 %2751  ;;  %v2500_v7 = vrot.slane %v7977_v43, 1 }
 0x397   : > { %2832 = vst.msk [vmem:[#allocation5 + $0x80] sm:$0xff] %vm2815_vm1, %v2752_v8  ;;  %3427 = vrot.lane.b32.xlu0 %v2494_v11, %s6139_s24  ;;  %v2501_v8 = vrot.slane %v7979_v30, 1 }
 0x398   : > { %3559 = vrot.lane.b32.xlu1 %v2701_v12, %s6140_s25 }
 0x399   : > { %v3150_v29 = vpop.permute.xlu0 %3149 }
 0x39a   : > { %3231 = vst.msk [vmem:[#allocation5 + $0x78] sm:$0xff] %vm3215_vm6, %v3150_v29  ;;  %v3279_v13 = vpop.permute.xlu1 %3278  ;;  %v3661_v16 = vld [vmem:[#allocation5 + $0x68] sm:$0xff]  ;;  %v2502_v29 = vsel %vm585_vm3, %v2500_v7, %v2501_v8 }
 0x39b   : > { %v5670_v14 = vpop.f32.mrf.mxu1  ;;  %3361 = vst.msk [vmem:[#allocation5 + $0x70] sm:$0xff] %vm3346_vm7, %v3279_v13  ;;  %5687 = vmatmul.mubr.msk.f32.gmra.mxu1 %vm3696_vm10, %v3661_v16  ;;  %2558 = vrot.lane.b32.xlu0 %v2492_v60, %s9220_s26  ;;  %v2340_v13 = vld [vmem:[#allocation4 + $0x160] sm:$0x3] }
 0x39c   : > { %v3865_v18 = vadd.f32 %v5670_v14, %v8123_v48  ;;  %3031 = vrot.lane.b32.xlu1 %v2494_v11, %s6136_s23  ;;  %v2503_v24 = vrot.slane %v2340_v13, 1 }
 0x39d   : > { %v3859_v9 = vpop.f32.mrf.mxu1  ;;  %v2754_v28 = vpop.permute.xlu0 %2753 }
 0x39e   : > { %v4019_v40 = vmax.f32 %v3865_v18, 0.0  ;;  %v3860_v62 = vadd.f32 %v8123_v48, %v3859_v9  ;;  %2833 = vst.msk [vmem:[#allocation5 + $0x88] sm:$0xff] %vm2815_vm1, %v2754_v28  ;;  %v2883_v54 = vpop.permute.xlu1 %2882  ;;  %v2709_v9 = vrot.slane %v7977_v43, 2 }
 0x39f   : > { %2963 = vst.msk [vmem:[#allocation5 + $0x80] sm:$0xff] %vm2946_vm4, %v2883_v54  ;;  %3163 = vrot.lane.b32.xlu0 %v2701_v12, %s6137_s27  ;;  %v2504_v54 = vsel %vm585_vm3, %v2501_v8, %v2503_v24 }
 0x3a0   : > { %4052 = vst.msk [vmem:[#allocation6 + $0x8] sm:$0xff] %vm4050_vm11, %v4019_v40  ;;  %v4018_v47 = vmax.f32 %v3860_v62, 0.0  ;;  %3561 = vrot.lane.b32.xlu1 %v2703_v37, %s6140_s25  ;;  %v2710_v40 = vrot.slane %v7979_v30, 2 }
 0x3a1   : > { %v3281_v19 = vpop.permute.xlu0 %3280 }
 0x3a2   : > { %4051 = vst.msk [vmem:[#allocation6] sm:$0xff] %vm4050_vm11, %v4018_v47  ;;  %v3414_v27 = vpop.permute.xlu1 %3413  ;;  %v2711_v47 = vsel %vm795_vm2, %v2709_v9, %v2710_v40 }
 0x3a3   : > { %3362 = vst.msk [vmem:[#allocation5 + $0x78] sm:$0xff] %vm3346_vm7, %v3281_v19  ;;  %2560 = vrot.lane.b32.xlu0 %v2494_v11, %s9220_s26 }
 0x3a4   : > { %3496 = vst.msk [vmem:[#allocation5 + $0x70] sm:$0xff] %vm3481_vm8, %v3414_v27  ;;  %2767 = vrot.lane.b32.xlu1 %v2701_v12, %s6132_s29 }
 0x3a5   : > { %v2885_v38 = vpop.permute.xlu0 %2884 }
 0x3a6   : > { %2964 = vst.msk [vmem:[#allocation5 + $0x88] sm:$0xff] %vm2946_vm4, %v2885_v38  ;;  %v3018_v39 = vpop.permute.xlu1 %3017  ;;  %v2712_v38 = vrot.slane %v2340_v13, 2 }
 0x3a7   : > { %3098 = vst.msk [vmem:[#allocation5 + $0x80] sm:$0xff] %vm3081_vm5, %v3018_v39  ;;  %3165 = vrot.lane.b32.xlu0 %v2703_v37, %s6137_s27 }
 0x3a8   : > { %3294 = vrot.lane.b32.xlu1 %v7914_v17, %s6138_s28 }
 0x3a9   : > { %v3416_v58 = vpop.permute.xlu0 %3415 }
 0x3aa   : > { %3497 = vst.msk [vmem:[#allocation5 + $0x78] sm:$0xff] %vm3481_vm8, %v3416_v58  ;;  %v3548_v22 = vpop.permute.xlu1 %3547 }
 0x3ab   : > { %3630 = vst.msk [vmem:[#allocation5 + $0x70] sm:$0xff] %vm3615_vm9, %v3548_v22  ;;  %2769 = vrot.lane.b32.xlu0 %v2703_v37, %s6132_s29 }
 0x3ac   : > { %2898 = vrot.lane.b32.xlu1 %v7914_v17, %s9221_s16 }
 0x3ad   : > { %v2547_v34 = vpop.permute.xlu0 %2546 }
 0x3ae   : > { %2625 = vst.msk [vmem:[#allocation5 + $0x90] sm:$0xff] %vm2606_vm0, %v2547_v34  ;;  %v3020_v44 = vpop.permute.xlu1 %3019 }
 0x3af   : > { %3099 = vst.msk [vmem:[#allocation5 + $0x88] sm:$0xff] %vm3081_vm5, %v3020_v44  ;;  %3296 = vrot.lane.b32.xlu0 %v7916_v45, %s6138_s28  ;;  %v2713_v44 = vsel %vm795_vm2, %v2710_v40, %v2712_v38 }
 0x3b0   : > { %3429 = vrot.lane.b32.xlu1 %v2497_v46, %s6139_s24 }
 0x3b1   : > { %v3152_v33 = vpop.permute.xlu0 %3151 }
 0x3b2   : > { %3232 = vst.msk [vmem:[#allocation5 + $0x80] sm:$0xff] %vm3215_vm6, %v3152_v33  ;;  %v3550_v50 = vpop.permute.xlu1 %3549  ;;  %v3662_v51 = vld [vmem:[#allocation5 + $0x70] sm:$0xff] }
 0x3b3   : > { %3631 = vst.msk [vmem:[#allocation5 + $0x78] sm:$0xff] %vm3615_vm9, %v3550_v50  ;;  %5689 = vmatprep.mubr.msk.f32.mxu1 %vm3696_vm10, %v3662_v51  ;;  %2900 = vrot.lane.b32.xlu0 %v7916_v45, %s9221_s16 }
 0x3b4   : > { %3033 = vrot.lane.b32.xlu1 %v2497_v46, %s6136_s23 }
 0x3b5   : > { %v2549_v41 = vpop.permute.xlu0 %2548 }
 0x3b6   : > { %2626 = vst.msk [vmem:[#allocation5 + $0x98] sm:$0xff] %vm2606_vm0, %v2549_v41  ;;  %v2756_v53 = vpop.permute.xlu1 %2755 }
 0x3b7   : > { %2834 = vst.msk [vmem:[#allocation5 + $0x90] sm:$0xff] %vm2815_vm1, %v2756_v53  ;;  %3431 = vrot.lane.b32.xlu0 %v2499_v55, %s6139_s24 }
 0x3b8   : > { %3563 = vrot.lane.b32.xlu1 %v2706_v56, %s6140_s25 }
 0x3b9   : > { %v3154_v20 = vpop.permute.xlu0 %3153 }
 0x3ba   : > { %3233 = vst.msk [vmem:[#allocation5 + $0x88] sm:$0xff] %vm3215_vm6, %v3154_v20  ;;  %v3283_v17 = vpop.permute.xlu1 %3282  ;;  %v3663_v15 = vld [vmem:[#allocation5 + $0x78] sm:$0xff]  ;;  %v2343_v20 = vld [vmem:[#allocation4 + $0x178] sm:$0x3] }
 0x3bb   : > { %v5673_v45 = vpop.f32.mrf.mxu1  ;;  %3363 = vst.msk [vmem:[#allocation5 + $0x80] sm:$0xff] %vm3346_vm7, %v3283_v17  ;;  %5690 = vmatmul.mubr.msk.f32.gmra.mxu1 %vm3696_vm10, %v3663_v15  ;;  %2562 = vrot.lane.b32.xlu0 %v2497_v46, %s9220_s26  ;;  %v2714_v15 = vrot.slane %v8036_v23, 2  ;;  %v2508_v57 = vrot.slane %v2343_v20, 1 }
 0x3bc   : > { %v3875_v10 = vadd.f32 %v5673_v45, %v8123_v48  ;;  %3035 = vrot.lane.b32.xlu1 %v2499_v55, %s6136_s23 }
 0x3bd   : > { %v3869_v26 = vpop.f32.mrf.mxu1  ;;  %v2758_v35 = vpop.permute.xlu0 %2757 }
 0x3be   : > { %v4021_v31 = vmax.f32 %v3875_v10, 0.0  ;;  %v3870_v1 = vadd.f32 %v8123_v48, %v3869_v26  ;;  %2835 = vst.msk [vmem:[#allocation5 + $0x98] sm:$0xff] %vm2815_vm1, %v2758_v35  ;;  %v2887_v36 = vpop.permute.xlu1 %2886  ;;  %v2715_v10 = vrot.slane %v8038_v49, 2 }
 0x3bf   : > { %2965 = vst.msk [vmem:[#allocation5 + $0x90] sm:$0xff] %vm2946_vm4, %v2887_v36  ;;  %3167 = vrot.lane.b32.xlu0 %v2706_v56, %s6137_s27 }
 0x3c0   : > { %4054 = vst.msk [vmem:[#allocation6 + $0x18] sm:$0xff] %vm4050_vm11, %v4021_v31  ;;  %v4020_v60 = vmax.f32 %v3870_v1, 0.0  ;;  %3565 = vrot.lane.b32.xlu1 %v2708_v59, %s6140_s25  ;;  %v2509_v1 = vsel %vm585_vm3, %v2506_v52, %v2508_v57  ;;  %v2716_v35 = vsel %vm795_vm2, %v2714_v15, %v2715_v10 }
 0x3c1   : > { %v3285_v61 = vpop.permute.xlu0 %3284 }
 0x3c2   : > { %4053 = vst.msk [vmem:[#allocation6 + $0x10] sm:$0xff] %vm4050_vm11, %v4020_v60  ;;  %v3418_v32 = vpop.permute.xlu1 %3417 }
 0x3c3   : > { %3364 = vst.msk [vmem:[#allocation5 + $0x88] sm:$0xff] %vm3346_vm7, %v3285_v61  ;;  %2564 = vrot.lane.b32.xlu0 %v2499_v55, %s9220_s26  ;;  %v2507_v55 = vsel %vm585_vm3, %v2505_v25, %v2506_v52  ;;  %v2348_v25 = vld [vmem:[#allocation4 + $0x1a0] sm:$0xff] }
 0x3c4   : > { %3498 = vst.msk [vmem:[#allocation5 + $0x80] sm:$0xff] %vm3481_vm8, %v3418_v32  ;;  %2771 = vrot.lane.b32.xlu1 %v2706_v56, %s6132_s29 }
 0x3c5   : > { %v2889_v63 = vpop.permute.xlu0 %2888 }
 0x3c6   : > { %2966 = vst.msk [vmem:[#allocation5 + $0x98] sm:$0xff] %vm2946_vm4, %v2889_v63  ;;  %v3022_v3 = vpop.permute.xlu1 %3021  ;;  %v2717_v63 = vrot.slane %v2343_v20, 2 }
 0x3c7   : > { %3100 = vst.msk [vmem:[#allocation5 + $0x90] sm:$0xff] %vm3081_vm5, %v3022_v3  ;;  %3169 = vrot.lane.b32.xlu0 %v2708_v59, %s6137_s27 }
 0x3c8   : > { %3298 = vrot.lane.b32.xlu1 %v7977_v43, %s6138_s28  ;;  %v2718_v7 = vsel %vm795_vm2, %v2715_v10, %v2717_v63 }
 0x3c9   : > { %v3420_v5 = vpop.permute.xlu0 %3419 }
 0x3ca   : > { %3499 = vst.msk [vmem:[#allocation5 + $0x88] sm:$0xff] %vm3481_vm8, %v3420_v5  ;;  %v3552_v6 = vpop.permute.xlu1 %3551 }
 0x3cb   : > { %3632 = vst.msk [vmem:[#allocation5 + $0x80] sm:$0xff] %vm3615_vm9, %v3552_v6  ;;  %2773 = vrot.lane.b32.xlu0 %v2708_v59, %s6132_s29 }
 0x3cc   : > { %2902 = vrot.lane.b32.xlu1 %v7977_v43, %s9221_s16 }
 0x3cd   : > { %v2551_v11 = vpop.permute.xlu0 %2550 }
 0x3ce   : > { %2627 = vst.msk [vmem:[#allocation5 + $0xa0] sm:$0xff] %vm2606_vm0, %v2551_v11  ;;  %v3024_v12 = vpop.permute.xlu1 %3023 }
 0x3cf   : > { %3101 = vst.msk [vmem:[#allocation5 + $0x98] sm:$0xff] %vm3081_vm5, %v3024_v12  ;;  %3300 = vrot.lane.b32.xlu0 %v7979_v30, %s6138_s28 }
 0x3d0   : > { %3433 = vrot.lane.b32.xlu1 %v2502_v29, %s6139_s24 }
 0x3d1   : > { %v3156_v14 = vpop.permute.xlu0 %3155 }
 0x3d2   : > { %3234 = vst.msk [vmem:[#allocation5 + $0x90] sm:$0xff] %vm3215_vm6, %v3156_v14  ;;  %v3554_v16 = vpop.permute.xlu1 %3553  ;;  %v3664_v18 = vld [vmem:[#allocation5 + $0x80] sm:$0xff]  ;;  %v2344_v14 = vld [vmem:[#allocation4 + $0x180] sm:$0xff] }
 0x3d3   : > { %3633 = vst.msk [vmem:[#allocation5 + $0x88] sm:$0xff] %vm3615_vm9, %v3554_v16  ;;  %5692 = vmatprep.mubr.msk.f32.mxu1 %vm3696_vm10, %v3664_v18  ;;  %2904 = vrot.lane.b32.xlu0 %v7979_v30, %s9221_s16  ;;  %v2345_v16 = vld [vmem:[#allocation4 + $0x188] sm:$0xff]  ;;  %v2980_v9 = vrot.slane %v2344_v14, 1 }
 0x3d4   : > { %3037 = vrot.lane.b32.xlu1 %v2502_v29, %s6136_s23  ;;  %v2981_v40 = vrot.slane %v2345_v16, 1 }
 0x3d5   : > { %v2553_v62 = vpop.permute.xlu0 %2552 }
 0x3d6   : > { %2628 = vst.msk [vmem:[#allocation5 + $0xa8] sm:$0xff] %vm2606_vm0, %v2553_v62  ;;  %v2760_v28 = vpop.permute.xlu1 %2759 }
 0x3d7   : > { %2836 = vst.msk [vmem:[#allocation5 + $0xa0] sm:$0xff] %vm2815_vm1, %v2760_v28  ;;  %3435 = vrot.lane.b32.xlu0 %v2504_v54, %s6139_s24 }
 0x3d8   : > { %3567 = vrot.lane.b32.xlu1 %v2711_v47, %s6140_s25 }
 0x3d9   : > { %v3158_v37 = vpop.permute.xlu0 %3157 }
 0x3da   : > { %3235 = vst.msk [vmem:[#allocation5 + $0x98] sm:$0xff] %vm3215_vm6, %v3158_v37  ;;  %v3287_v43 = vpop.permute.xlu1 %3286  ;;  %v3665_v19 = vld [vmem:[#allocation5 + $0x88] sm:$0xff]  ;;  %v2346_v37 = vld [vmem:[#allocation4 + $0x190] sm:$0x3] }
 0x3db   : > { %v5676_v30 = vpop.f32.mrf.mxu1  ;;  %3365 = vst.msk [vmem:[#allocation5 + $0x90] sm:$0xff] %vm3346_vm7, %v3287_v43  ;;  %5693 = vmatmul.mubr.msk.f32.gmra.mxu1 %vm3696_vm10, %v3665_v19  ;;  %2566 = vrot.lane.b32.xlu0 %v2502_v29, %s9220_s26  ;;  %v3114_v19 = vrot.slane %v2344_v14, 2  ;;  %v2983_v38 = vrot.slane %v2346_v37, 1 }
 0x3dc   : > { %v3885_v27 = vadd.f32 %v5676_v30, %v8123_v48  ;;  %3039 = vrot.lane.b32.xlu1 %v2504_v54, %s6136_s23 }
 0x3dd   : > { %v3879_v39 = vpop.f32.mrf.mxu1  ;;  %v2762_v42 = vpop.permute.xlu0 %2761 }
 0x3de   : > { %v4023_v58 = vmax.f32 %v3885_v27, 0.0  ;;  %v3880_v22 = vadd.f32 %v8123_v48, %v3879_v39  ;;  %2837 = vst.msk [vmem:[#allocation5 + $0xa8] sm:$0xff] %vm2815_vm1, %v2762_v42  ;;  %v2891_v4 = vpop.permute.xlu1 %2890  ;;  %v3115_v27 = vrot.slane %v2345_v16, 2 }
 0x3df   : > { %2967 = vst.msk [vmem:[#allocation5 + $0xa0] sm:$0xff] %vm2946_vm4, %v2891_v4  ;;  %3171 = vrot.lane.b32.xlu0 %v2711_v47, %s6137_s27 }
 0x3e0   : > { %4056 = vst.msk [vmem:[#allocation6 + $0x28] sm:$0xff] %vm4050_vm11, %v4023_v58  ;;  %v4022_v34 = vmax.f32 %v3880_v22, 0.0  ;;  %3569 = vrot.lane.b32.xlu1 %v2713_v44, %s6140_s25  ;;  %v2984_v22 = vsel %vm585_vm3, %v2981_v40, %v2983_v38  ;;  %v3116_v42 = vsel %vm795_vm2, %v3114_v19, %v3115_v27 }
 0x3e1   : > { %v3289_v46 = vpop.permute.xlu0 %3288 }
 0x3e2   : > { %4055 = vst.msk [vmem:[#allocation6 + $0x20] sm:$0xff] %vm4050_vm11, %v4022_v34  ;;  %v3422_v21 = vpop.permute.xlu1 %3421 }
 0x3e3   : > { %3366 = vst.msk [vmem:[#allocation5 + $0x98] sm:$0xff] %vm3346_vm7, %v3289_v46  ;;  %2568 = vrot.lane.b32.xlu0 %v2504_v54, %s9220_s26  ;;  %v2982_v54 = vsel %vm585_vm3, %v2980_v9, %v2981_v40 }
 0x3e4   : > { %3500 = vst.msk [vmem:[#allocation5 + $0x90] sm:$0xff] %vm3481_vm8, %v3422_v21  ;;  %2775 = vrot.lane.b32.xlu1 %v2711_v47, %s6132_s29 }
 0x3e5   : > { %v2893_v33 = vpop.permute.xlu0 %2892 }
 0x3e6   : > { %2968 = vst.msk [vmem:[#allocation5 + $0xa8] sm:$0xff] %vm2946_vm4, %v2893_v33  ;;  %v3026_v50 = vpop.permute.xlu1 %3025  ;;  %v3117_v33 = vrot.slane %v2346_v37, 2 }
 0x3e7   : > { %3102 = vst.msk [vmem:[#allocation5 + $0xa0] sm:$0xff] %vm3081_vm5, %v3026_v50  ;;  %3173 = vrot.lane.b32.xlu0 %v2713_v44, %s6137_s27 }
 0x3e8   : > { %3302 = vrot.lane.b32.xlu1 %v8036_v23, %s6138_s28 }
 0x3e9   : > { %v3424_v51 = vpop.permute.xlu0 %3423 }
 0x3ea   : > { %3501 = vst.msk [vmem:[#allocation5 + $0x98] sm:$0xff] %vm3481_vm8, %v3424_v51  ;;  %v3556_v2 = vpop.permute.xlu1 %3555 }
 0x3eb   : > { %3634 = vst.msk [vmem:[#allocation5 + $0x90] sm:$0xff] %vm3615_vm9, %v3556_v2  ;;  %2777 = vrot.lane.b32.xlu0 %v2713_v44, %s6132_s29  ;;  %v2347_v2 = vld [vmem:[#allocation4 + $0x198] sm:$0xff] }
 0x3ec   : > { %2906 = vrot.lane.b32.xlu1 %v8036_v23, %s9221_s16 }
 0x3ed   : > { %v2555_v41 = vpop.permute.xlu0 %2554 }
 0x3ee   : > { %2629 = vst.msk [vmem:[#allocation5 + $0xb0] sm:$0xff] %vm2606_vm0, %v2555_v41  ;;  %v3028_v53 = vpop.permute.xlu1 %3027 }
 0x3ef   : > { %3103 = vst.msk [vmem:[#allocation5 + $0xa8] sm:$0xff] %vm3081_vm5, %v3028_v53  ;;  %3304 = vrot.lane.b32.xlu0 %v8038_v49, %s6138_s28 }
 0x3f0   : > { %3437 = vrot.lane.b32.xlu1 %v2507_v55, %s6139_s24 }
 0x3f1   : > { %v3160_v56 = vpop.permute.xlu0 %3159 }
 0x3f2   : > { %3236 = vst.msk [vmem:[#allocation5 + $0xa0] sm:$0xff] %vm3215_vm6, %v3160_v56  ;;  %v3558_v17 = vpop.permute.xlu1 %3557  ;;  %v3666_v45 = vld [vmem:[#allocation5 + $0x90] sm:$0xff]  ;;  %v2349_v56 = vld [vmem:[#allocation4 + $0x1a8] sm:$0x3] }
 0x3f3   : > { %3635 = vst.msk [vmem:[#allocation5 + $0x98] sm:$0xff] %vm3615_vm9, %v3558_v17  ;;  %5695 = vmatprep.mubr.msk.f32.mxu1 %vm3696_vm10, %v3666_v45  ;;  %2908 = vrot.lane.b32.xlu0 %v8038_v49, %s9221_s16  ;;  %v3380_v17 = vrot.slane %v2347_v2, 1  ;;  %v3381_v45 = vrot.slane %v2348_v25, 1  ;;  %v3383_v10 = vrot.slane %v2349_v56, 1 }
 0x3f4   : > { %3041 = vrot.lane.b32.xlu1 %v2507_v55, %s6136_s23 }
 0x3f5   : > { %v2557_v26 = vpop.permute.xlu0 %2556 }
 0x3f6   : > { %2630 = vst.msk [vmem:[#allocation5 + $0xb8] sm:$0xff] %vm2606_vm0, %v2557_v26  ;;  %v2764_v31 = vpop.permute.xlu1 %2763  ;;  %v3514_v26 = vrot.slane %v2347_v2, 2 }
 0x3f7   : > { %2838 = vst.msk [vmem:[#allocation5 + $0xb0] sm:$0xff] %vm2815_vm1, %v2764_v31  ;;  %3439 = vrot.lane.b32.xlu0 %v2509_v1, %s6139_s24  ;;  %v3515_v31 = vrot.slane %v2348_v25, 2 }
 0x3f8   : > { %3571 = vrot.lane.b32.xlu1 %v2716_v35, %s6140_s25 }
 0x3f9   : > { %v3162_v23 = vpop.permute.xlu0 %3161 }
 0x3fa   : > { %3237 = vst.msk [vmem:[#allocation5 + $0xa8] sm:$0xff] %vm3215_vm6, %v3162_v23  ;;  %v3291_v49 = vpop.permute.xlu1 %3290  ;;  %v3667_v36 = vld [vmem:[#allocation5 + $0x98] sm:$0xff]  ;;  %v3384_v23 = vsel %vm585_vm3, %v3381_v45, %v3383_v10 }
 0x3fb   : > { %3367 = vst.msk [vmem:[#allocation5 + $0xa0] sm:$0xff] %vm3346_vm7, %v3291_v49  ;;  %v5679_v60 = vpop.f32.mrf.mxu1  ;;  %5696 = vmatmul.mubr.msk.f32.gmra.mxu1 %vm3696_vm10, %v3667_v36  ;;  %2570 = vrot.lane.b32.xlu0 %v2507_v55, %s9220_s26  ;;  %v3118_v55 = vsel %vm795_vm2, %v3115_v27, %v3117_v33  ;;  %v3517_v49 = vrot.slane %v2349_v56, 2 }
 0x3fc   : > { %v3895_v59 = vadd.f32 %v5679_v60, %v8123_v48  ;;  %3043 = vrot.lane.b32.xlu1 %v2509_v1, %s6136_s23  ;;  %v3516_v60 = vsel %vm795_vm2, %v3514_v26, %v3515_v31 }
 0x3fd   : > { %v3889_v61 = vpop.f32.mrf.mxu1  ;;  %v2766_v32 = vpop.permute.xlu0 %2765 }
 0x3fe   : > { %v4025_v3 = vmax.f32 %v3895_v59, 0.0  ;;  %v3890_v5 = vadd.f32 %v8123_v48, %v3889_v61  ;;  %2839 = vst.msk [vmem:[#allocation5 + $0xb8] sm:$0xff] %vm2815_vm1, %v2766_v32  ;;  %v2895_v6 = vpop.permute.xlu1 %2894  ;;  %v3518_v61 = vsel %vm795_vm2, %v3515_v31, %v3517_v49  ;;  %vm4179_vm2 = vcmask 1041409  }
 0x3ff   : > { %2969 = vst.msk [vmem:[#allocation5 + $0xb0] sm:$0xff] %vm2946_vm4, %v2895_v6  ;;  %3175 = vrot.lane.b32.xlu0 %v2716_v35, %s6137_s27 }
 0x400   : > { %4058 = vst.msk [vmem:[#allocation6 + $0x38] sm:$0xff] %vm4050_vm11, %v4025_v3  ;;  %v4024_v8 = vmax.f32 %v3890_v5, 0.0  ;;  %3573 = vrot.lane.b32.xlu1 %v2718_v7, %s6140_s25 }
 0x401   : > { %v3293_v11 = vpop.permute.xlu0 %3292 }
 0x402   : > { %4057 = vst.msk [vmem:[#allocation6 + $0x30] sm:$0xff] %vm4050_vm11, %v4024_v8  ;;  %v3426_v12 = vpop.permute.xlu1 %3425 }
 0x403   : > { %3368 = vst.msk [vmem:[#allocation5 + $0xa8] sm:$0xff] %vm3346_vm7, %v3293_v11  ;;  %2572 = vrot.lane.b32.xlu0 %v2509_v1, %s9220_s26  ;;  %v3382_v1 = vsel %vm585_vm3, %v3380_v17, %v3381_v45  ;;  %vm4182_vm3 = vcmask 1042434   ;;  %s9224_s26 = smov 112  }
 0x404   : > { %3502 = vst.msk [vmem:[#allocation5 + $0xa0] sm:$0xff] %vm3481_vm8, %v3426_v12  ;;  %2779 = vrot.lane.b32.xlu1 %v2716_v35, %s6132_s29 }
 0x405   : > { %v2897_v29 = vpop.permute.xlu0 %2896 }
 0x406   : > { %2970 = vst.msk [vmem:[#allocation5 + $0xb8] sm:$0xff] %vm2946_vm4, %v2897_v29  ;;  %v3030_v13 = vpop.permute.xlu1 %3029 }
 0x407   : > { %3104 = vst.msk [vmem:[#allocation5 + $0xb0] sm:$0xff] %vm3081_vm5, %v3030_v13  ;;  %3177 = vrot.lane.b32.xlu0 %v2718_v7, %s6137_s27 }
 0x408   : > { %3306 = vrot.lane.b32.xlu1 %v2344_v14, %s6138_s28 }
 0x409   : > { %v3428_v18 = vpop.permute.xlu0 %3427 }
 0x40a   : > { %3503 = vst.msk [vmem:[#allocation5 + $0xa8] sm:$0xff] %vm3481_vm8, %v3428_v18  ;;  %v3560_v24 = vpop.permute.xlu1 %3559 }
 0x40b   : > { %3636 = vst.msk [vmem:[#allocation5 + $0xa0] sm:$0xff] %vm3615_vm9, %v3560_v24  ;;  %2781 = vrot.lane.b32.xlu0 %v2718_v7, %s6132_s29 }
 0x40c   : > { %2910 = vrot.lane.b32.xlu1 %v2344_v14, %s9221_s16 }
 0x40d   : > { %v2559_v62 = vpop.permute.xlu0 %2558 }
 0x40e   : > { %2631 = vst.msk [vmem:[#allocation5 + $0xc0] sm:$0xff] %vm2606_vm0, %v2559_v62  ;;  %v3032_v28 = vpop.permute.xlu1 %3031 }
 0x40f   : > { %3105 = vst.msk [vmem:[#allocation5 + $0xb8] sm:$0xff] %vm3081_vm5, %v3032_v28  ;;  %3308 = vrot.lane.b32.xlu0 %v2345_v16, %s6138_s28 }
 0x410   : > { %3441 = vrot.lane.b32.xlu1 %v2982_v54, %s6139_s24 }
 0x411   : > { %v3164_v47 = vpop.permute.xlu0 %3163 }
 0x412   : > { %3238 = vst.msk [vmem:[#allocation5 + $0xb0] sm:$0xff] %vm3215_vm6, %v3164_v47  ;;  %v3562_v43 = vpop.permute.xlu1 %3561  ;;  %v3668_v30 = vld [vmem:[#allocation5 + $0xa0] sm:$0xff] }
 0x413   : > { %3637 = vst.msk [vmem:[#allocation5 + $0xa8] sm:$0xff] %vm3615_vm9, %v3562_v43  ;;  %5698 = vmatprep.mubr.msk.f32.mxu1 %vm3696_vm10, %v3668_v30  ;;  %2912 = vrot.lane.b32.xlu0 %v2345_v16, %s9221_s16 }
 0x414   : > { %3045 = vrot.lane.b32.xlu1 %v2982_v54, %s6136_s23 }
 0x415   : > { %v2561_v39 = vpop.permute.xlu0 %2560 }
 0x416   : > { %2632 = vst.msk [vmem:[#allocation5 + $0xc8] sm:$0xff] %vm2606_vm0, %v2561_v39  ;;  %v2768_v58 = vpop.permute.xlu1 %2767 }
 0x417   : > { %2840 = vst.msk [vmem:[#allocation5 + $0xc0] sm:$0xff] %vm2815_vm1, %v2768_v58  ;;  %3443 = vrot.lane.b32.xlu0 %v2984_v22, %s6139_s24 }
 0x418   : > { %3575 = vrot.lane.b32.xlu1 %v3116_v42, %s6140_s25 }
 0x419   : > { %v3166_v4 = vpop.permute.xlu0 %3165 }
 0x41a   : > { %3239 = vst.msk [vmem:[#allocation5 + $0xb8] sm:$0xff] %vm3215_vm6, %v3166_v4  ;;  %v3295_v34 = vpop.permute.xlu1 %3294  ;;  %v3669_v44 = vld [vmem:[#allocation5 + $0xa8] sm:$0xff] }
 0x41b   : > { %3369 = vst.msk [vmem:[#allocation5 + $0xb0] sm:$0xff] %vm3346_vm7, %v3295_v34  ;;  %v5682_v46 = vpop.f32.mrf.mxu1  ;;  %5699 = vmatmul.mubr.msk.f32.gmra.mxu1 %vm3696_vm10, %v3669_v44  ;;  %3047 = vrot.lane.b32.xlu0 %v2984_v22, %s6136_s23 }
 0x41c   : > { %v3905_v21 = vadd.f32 %v5682_v46, %v8123_v48  ;;  %3179 = vrot.lane.b32.xlu1 %v3116_v42, %s6137_s27 }
 0x41d   : > { %v3899_v50 = vpop.f32.mrf.mxu1  ;;  %v2770_v51 = vpop.permute.xlu0 %2769 }
 0x41e   : > { %v4027_v52 = vmax.f32 %v3905_v21, 0.0  ;;  %v3900_v41 = vadd.f32 %v8123_v48, %v3899_v50  ;;  %2841 = vst.msk [vmem:[#allocation5 + $0xc8] sm:$0xff] %vm2815_vm1, %v2770_v51  ;;  %v2899_v53 = vpop.permute.xlu1 %2898 }
 0x41f   : > { %2971 = vst.msk [vmem:[#allocation5 + $0xc0] sm:$0xff] %vm2946_vm4, %v2899_v53  ;;  %3577 = vrot.lane.b32.xlu0 %v3118_v55, %s6140_s25 }
 0x420   : > { %4060 = vst.msk [vmem:[#allocation6 + $0x48] sm:$0xff] %vm4050_vm11, %v4027_v52  ;;  %v4026_v20 = vmax.f32 %v3900_v41, 0.0  ;;  %3181 = vrot.lane.b32.xlu1 %v3118_v55, %s6137_s27 }
 0x421   : > { %v3297_v15 = vpop.permute.xlu0 %3296 }
 0x422   : > { %4059 = vst.msk [vmem:[#allocation6 + $0x40] sm:$0xff] %vm4050_vm11, %v4026_v20  ;;  %v3430_v57 = vpop.permute.xlu1 %3429 }
 0x423   : > { %3370 = vst.msk [vmem:[#allocation5 + $0xb8] sm:$0xff] %vm3346_vm7, %v3297_v15  ;;  %3310 = vrot.lane.b32.xlu0 %v2347_v2, %s6138_s28 }
 0x424   : > { %3504 = vst.msk [vmem:[#allocation5 + $0xb0] sm:$0xff] %vm3481_vm8, %v3430_v57  ;;  %3312 = vrot.lane.b32.xlu1 %v2348_v25, %s6138_s28 }
 0x425   : > { %v2901_v35 = vpop.permute.xlu0 %2900 }
 0x426   : > { %2972 = vst.msk [vmem:[#allocation5 + $0xc8] sm:$0xff] %vm2946_vm4, %v2901_v35  ;;  %v3034_v36 = vpop.permute.xlu1 %3033 }
 0x427   : > { %3106 = vst.msk [vmem:[#allocation5 + $0xc0] sm:$0xff] %vm3081_vm5, %v3034_v36  ;;  %3445 = vrot.lane.b32.xlu0 %v3382_v1, %s6139_s24 }
 0x428   : > { %3447 = vrot.lane.b32.xlu1 %v3384_v23, %s6139_s24  ;;  %s9216_s24 = smov 96  }
 0x429   : > { %v3432_v59 = vpop.permute.xlu0 %3431 }
 0x42a   : > { %3505 = vst.msk [vmem:[#allocation5 + $0xb8] sm:$0xff] %vm3481_vm8, %v3432_v59  ;;  %v3564_v32 = vpop.permute.xlu1 %3563 }
 0x42b   : > { %3638 = vst.msk [vmem:[#allocation5 + $0xb0] sm:$0xff] %vm3615_vm9, %v3564_v32  ;;  %3579 = vrot.lane.b32.xlu0 %v3516_v60, %s6140_s25 }
 0x42c   : > { %3581 = vrot.lane.b32.xlu1 %v3518_v61, %s6140_s25 }
 0x42d   : > { %v2563_v63 = vpop.permute.xlu0 %2562 }
 0x42e   : > { %2633 = vst.msk [vmem:[#allocation5 + $0xd0] sm:$0xff] %vm2606_vm0, %v2563_v63  ;;  %v3036_v3 = vpop.permute.xlu1 %3035 }
 0x42f   : > { %3107 = vst.msk [vmem:[#allocation5 + $0xc8] sm:$0xff] %vm3081_vm5, %v3036_v3 }
 0x431   : > { %v3168_v5 = vpop.permute.xlu0 %3167 }
 0x432   : > { %3240 = vst.msk [vmem:[#allocation5 + $0xc0] sm:$0xff] %vm3215_vm6, %v3168_v5  ;;  %v3566_v6 = vpop.permute.xlu1 %3565  ;;  %v3670_v7 = vld [vmem:[#allocation5 + $0xb0] sm:$0xff] }
 0x433   : > { %3639 = vst.msk [vmem:[#allocation5 + $0xb8] sm:$0xff] %vm3615_vm9, %v3566_v6  ;;  %5701 = vmatprep.mubr.msk.f32.mxu1 %vm3696_vm10, %v3670_v7 }
 0x435   : > { %v2565_v8 = vpop.permute.xlu0 %2564 }
 0x436   : > { %2634 = vst.msk [vmem:[#allocation5 + $0xd8] sm:$0xff] %vm2606_vm0, %v2565_v8  ;;  %v2772_v11 = vpop.permute.xlu1 %2771 }
 0x437   : > { %2842 = vst.msk [vmem:[#allocation5 + $0xd0] sm:$0xff] %vm2815_vm1, %v2772_v11 }
 0x439   : > { %v3170_v12 = vpop.permute.xlu0 %3169 }
 0x43a   : > { %3241 = vst.msk [vmem:[#allocation5 + $0xc8] sm:$0xff] %vm3215_vm6, %v3170_v12  ;;  %v3299_v29 = vpop.permute.xlu1 %3298  ;;  %v3671_v13 = vld [vmem:[#allocation5 + $0xb8] sm:$0xff] }
 0x43b   : > { %3371 = vst.msk [vmem:[#allocation5 + $0xc0] sm:$0xff] %vm3346_vm7, %v3299_v29  ;;  %v5685_v14 = vpop.f32.mrf.mxu1  ;;  %5702 = vmatmul.mubr.msk.f32.gmra.mxu1 %vm3696_vm10, %v3671_v13 }
 0x43c   : > { %v3915_v16 = vadd.f32 %v5685_v14, %v8123_v48 }
 0x43d   : > { %v3909_v18 = vpop.f32.mrf.mxu1  ;;  %v2774_v24 = vpop.permute.xlu0 %2773 }
 0x43e   : > { %v4029_v9 = vmax.f32 %v3915_v16, 0.0  ;;  %v3910_v40 = vadd.f32 %v8123_v48, %v3909_v18  ;;  %2843 = vst.msk [vmem:[#allocation5 + $0xd8] sm:$0xff] %vm2815_vm1, %v2774_v24  ;;  %v2903_v62 = vpop.permute.xlu1 %2902 }
 0x43f   : > { %2973 = vst.msk [vmem:[#allocation5 + $0xd0] sm:$0xff] %vm2946_vm4, %v2903_v62 }
 0x440   : > { %4062 = vst.msk [vmem:[#allocation6 + $0x58] sm:$0xff] %vm4050_vm11, %v4029_v9  ;;  %v4028_v28 = vmax.f32 %v3910_v40, 0.0 }
 0x441   : > { %v3301_v54 = vpop.permute.xlu0 %3300 }
 0x442   : > { %4061 = vst.msk [vmem:[#allocation6 + $0x50] sm:$0xff] %vm4050_vm11, %v4028_v28  ;;  %v3434_v47 = vpop.permute.xlu1 %3433 }
 0x443   : > { %3372 = vst.msk [vmem:[#allocation5 + $0xc8] sm:$0xff] %vm3346_vm7, %v3301_v54 }
 0x444   : > { %3506 = vst.msk [vmem:[#allocation5 + $0xc0] sm:$0xff] %vm3481_vm8, %v3434_v47 }
 0x445   : > { %v2905_v37 = vpop.permute.xlu0 %2904 }
 0x446   : > { %2974 = vst.msk [vmem:[#allocation5 + $0xd8] sm:$0xff] %vm2946_vm4, %v2905_v37  ;;  %v3038_v43 = vpop.permute.xlu1 %3037 }
 0x447   : > { %3108 = vst.msk [vmem:[#allocation5 + $0xd0] sm:$0xff] %vm3081_vm5, %v3038_v43 }
 0x449   : > { %v3436_v30 = vpop.permute.xlu0 %3435 }
 0x44a   : > { %3507 = vst.msk [vmem:[#allocation5 + $0xc8] sm:$0xff] %vm3481_vm8, %v3436_v30  ;;  %v3568_v19 = vpop.permute.xlu1 %3567 }
 0x44b   : > { %3640 = vst.msk [vmem:[#allocation5 + $0xc0] sm:$0xff] %vm3615_vm9, %v3568_v19 }
 0x44d   : > { %v2567_v27 = vpop.permute.xlu0 %2566 }
 0x44e   : > { %2635 = vst.msk [vmem:[#allocation5 + $0xe0] sm:$0xff] %vm2606_vm0, %v2567_v27  ;;  %v3040_v38 = vpop.permute.xlu1 %3039 }
 0x44f   : > { %3109 = vst.msk [vmem:[#allocation5 + $0xd8] sm:$0xff] %vm3081_vm5, %v3040_v38 }
 0x451   : > { %v3172_v39 = vpop.permute.xlu0 %3171 }
 0x452   : > { %3242 = vst.msk [vmem:[#allocation5 + $0xd0] sm:$0xff] %vm3215_vm6, %v3172_v39  ;;  %v3570_v58 = vpop.permute.xlu1 %3569  ;;  %v3672_v22 = vld [vmem:[#allocation5 + $0xc0] sm:$0xff] }
 0x453   : > { %3641 = vst.msk [vmem:[#allocation5 + $0xc8] sm:$0xff] %vm3615_vm9, %v3570_v58  ;;  %5704 = vmatprep.mubr.msk.f32.mxu1 %vm3696_vm10, %v3672_v22 }
 0x455   : > { %v2569_v42 = vpop.permute.xlu0 %2568 }
 0x456   : > { %2636 = vst.msk [vmem:[#allocation5 + $0xe8] sm:$0xff] %vm2606_vm0, %v2569_v42  ;;  %v2776_v4 = vpop.permute.xlu1 %2775 }
 0x457   : > { %2844 = vst.msk [vmem:[#allocation5 + $0xe0] sm:$0xff] %vm2815_vm1, %v2776_v4 }
 0x459   : > { %v3174_v34 = vpop.permute.xlu0 %3173 }
 0x45a   : > { %3243 = vst.msk [vmem:[#allocation5 + $0xd8] sm:$0xff] %vm3215_vm6, %v3174_v34  ;;  %v3303_v44 = vpop.permute.xlu1 %3302  ;;  %v3673_v46 = vld [vmem:[#allocation5 + $0xc8] sm:$0xff] }
 0x45b   : > { %3373 = vst.msk [vmem:[#allocation5 + $0xd0] sm:$0xff] %vm3346_vm7, %v3303_v44  ;;  %v5688_v21 = vpop.f32.mrf.mxu1  ;;  %5705 = vmatmul.mubr.msk.f32.gmra.mxu1 %vm3696_vm10, %v3673_v46 }
 0x45c   : > { %v3925_v33 = vadd.f32 %v5688_v21, %v8123_v48 }
 0x45d   : > { %v3919_v50 = vpop.f32.mrf.mxu1  ;;  %v2778_v51 = vpop.permute.xlu0 %2777 }
 0x45e   : > { %v4031_v2 = vmax.f32 %v3925_v33, 0.0  ;;  %v3920_v25 = vadd.f32 %v8123_v48, %v3919_v50  ;;  %2845 = vst.msk [vmem:[#allocation5 + $0xe8] sm:$0xff] %vm2815_vm1, %v2778_v51  ;;  %v2907_v52 = vpop.permute.xlu1 %2906  ;;  %v4093_v33 = vld [vmem:[#allocation6 + $0x50] ss:$2 sm:$0xff]  ;;  %v4125_v50 = vld [vmem:[#allocation6 + $0x51] ss:$2 sm:$0xff] }
 0x45f   : > { %2975 = vst.msk [vmem:[#allocation5 + $0xe0] sm:$0xff] %vm2946_vm4, %v2907_v52 }
 0x460   : > { %4064 = vst.msk [vmem:[#allocation6 + $0x68] sm:$0xff] %vm4050_vm11, %v4031_v2  ;;  %v4030_v41 = vmax.f32 %v3920_v25, 0.0  ;;  %v4089_v2 = vld [vmem:[#allocation6 + $0x30] ss:$2 sm:$0xff] }
 0x461   : > { %v3305_v53 = vpop.permute.xlu0 %3304 }
 0x462   : > { %4063 = vst.msk [vmem:[#allocation6 + $0x60] sm:$0xff] %vm4050_vm11, %v4030_v41  ;;  %v3438_v55 = vpop.permute.xlu1 %3437  ;;  %v4121_v41 = vld [vmem:[#allocation6 + $0x31] ss:$2 sm:$0xff] }
 0x463   : > { %3374 = vst.msk [vmem:[#allocation5 + $0xd8] sm:$0xff] %vm3346_vm7, %v3305_v53  ;;  %v4091_v53 = vld [vmem:[#allocation6 + $0x40] ss:$2 sm:$0xff] }
 0x464   : > { %3508 = vst.msk [vmem:[#allocation5 + $0xd0] sm:$0xff] %vm3481_vm8, %v3438_v55  ;;  %v4123_v55 = vld [vmem:[#allocation6 + $0x41] ss:$2 sm:$0xff] }
 0x465   : > { %v2909_v56 = vpop.permute.xlu0 %2908 }
 0x466   : > { %2976 = vst.msk [vmem:[#allocation5 + $0xe8] sm:$0xff] %vm2946_vm4, %v2909_v56  ;;  %v3042_v20 = vpop.permute.xlu1 %3041  ;;  %v4151_v56 = vmax.f32 %v4093_v33, %v4125_v50 }
 0x467   : > { %3110 = vst.msk [vmem:[#allocation5 + $0xe0] sm:$0xff] %vm3081_vm5, %v3042_v20 }
 0x469   : > { %v3440_v17 = vpop.permute.xlu0 %3439  ;;  %v4095_v20 = vld [vmem:[#allocation6 + $0x60] ss:$2 sm:$0xff] }
 0x46a   : > { %3509 = vst.msk [vmem:[#allocation5 + $0xd8] sm:$0xff] %vm3481_vm8, %v3440_v17  ;;  %v3572_v45 = vpop.permute.xlu1 %3571  ;;  %v4127_v17 = vld [vmem:[#allocation6 + $0x61] ss:$2 sm:$0xff] }
 0x46b   : > { %3642 = vst.msk [vmem:[#allocation5 + $0xd0] sm:$0xff] %vm3615_vm9, %v3572_v45  ;;  %v4087_v45 = vld [vmem:[#allocation6 + $0x20] ss:$2 sm:$0xff] }
 0x46d   : > { %v2571_v15 = vpop.permute.xlu0 %2570 }
 0x46e   : > { %2637 = vst.msk [vmem:[#allocation5 + $0xf0] sm:$0xff] %vm2606_vm0, %v2571_v15  ;;  %v3044_v10 = vpop.permute.xlu1 %3043  ;;  %v4119_v15 = vld [vmem:[#allocation6 + $0x21] ss:$2 sm:$0xff] }
 0x46f   : > { %3111 = vst.msk [vmem:[#allocation5 + $0xe8] sm:$0xff] %vm3081_vm5, %v3044_v10 }
 0x471   : > { %v3176_v57 = vpop.permute.xlu0 %3175 }
 0x472   : > { %3244 = vst.msk [vmem:[#allocation5 + $0xe0] sm:$0xff] %vm3215_vm6, %v3176_v57  ;;  %v3574_v26 = vpop.permute.xlu1 %3573  ;;  %v3674_v31 = vld [vmem:[#allocation5 + $0xd0] sm:$0xff]  ;;  %v4149_v57 = vmax.f32 %v4089_v2, %v4121_v41 }
 0x473   : > { %3643 = vst.msk [vmem:[#allocation5 + $0xd8] sm:$0xff] %vm3615_vm9, %v3574_v26  ;;  %5707 = vmatprep.mubr.msk.f32.mxu1 %vm3696_vm10, %v3674_v31  ;;  %v4150_v26 = vmax.f32 %v4091_v53, %v4123_v55  ;;  %v4152_v31 = vmax.f32 %v4095_v20, %v4127_v17  ;;  %v4085_v53 = vld [vmem:[#allocation6 + $0x10] ss:$2 sm:$0xff]  ;;  %v4117_v55 = vld [vmem:[#allocation6 + $0x11] ss:$2 sm:$0xff] }
 0x474   : > { %v4115_v20 = vld [vmem:[#allocation6 + $0x1] ss:$2 sm:$0xff]  ;;  %v4147_v17 = vmax.f32 %v4085_v53, %v4117_v55 }
 0x475   : > { %v2573_v1 = vpop.permute.xlu0 %2572  ;;  %v5264_v55 = vld [vmem:[%s9206_s5 + $0xc0] sm:$0xff] }
 0x476   : > { %2638 = vst.msk [vmem:[#allocation5 + $0xf8] sm:$0xff] %vm2606_vm0, %v2573_v1  ;;  %v2780_v35 = vpop.permute.xlu1 %2779  ;;  %v4148_v1 = vmax.f32 %v4087_v45, %v4119_v15  ;;  %vm4197_vm0 = vcmask 1047559  }
 0x477   : > { %2846 = vst.msk [vmem:[#allocation5 + $0xf0] sm:$0xff] %vm2815_vm1, %v2780_v35  ;;  %v4164_v35 = vmax.f32 %v4150_v26, %v4151_v56  ;;  %v4083_v56 = vld [vmem:[#allocation6] ss:$2 sm:$0xff] }
 0x478   : > { %v4146_v45 = vmax.f32 %v4083_v56, %v4115_v20 }
 0x479   : > { %v3178_v23 = vpop.permute.xlu0 %3177 }
 0x47a   : > { %3245 = vst.msk [vmem:[#allocation5 + $0xe8] sm:$0xff] %vm3215_vm6, %v3178_v23  ;;  %v3307_v49 = vpop.permute.xlu1 %3306  ;;  %v3675_v36 = vld [vmem:[#allocation5 + $0xd8] sm:$0xff] }
 0x47b   : > { %3375 = vst.msk [vmem:[#allocation5 + $0xe0] sm:$0xff] %vm3346_vm7, %v3307_v49  ;;  %v5691_v60 = vpop.f32.mrf.mxu1  ;;  %5708 = vmatmul.mubr.msk.f32.gmra.mxu1 %vm3696_vm10, %v3675_v36 }
 0x47c   : > { %v3935_v59 = vadd.f32 %v5691_v60, %v8123_v48  ;;  %v4163_v60 = vmax.f32 %v4148_v1, %v4149_v57  ;;  %v8475_v57 = vmax.f32 %v4146_v45, %v4147_v17 }
 0x47d   : > { %v3929_v61 = vpop.f32.mrf.mxu1  ;;  %v2782_v32 = vpop.permute.xlu0 %2781 }
 0x47e   : > { %v4033_v63 = vmax.f32 %v3935_v59, 0.0  ;;  %v3930_v3 = vadd.f32 %v8123_v48, %v3929_v61  ;;  %2847 = vst.msk [vmem:[#allocation5 + $0xf8] sm:$0xff] %vm2815_vm1, %v2782_v32  ;;  %v2911_v5 = vpop.permute.xlu1 %2910  ;;  %vm6144_vm1 = vmmov 0  }
 0x47f   : > { %2977 = vst.msk [vmem:[#allocation5 + $0xf0] sm:$0xff] %vm2946_vm4, %v2911_v5  ;;  %5748 = vmatprep.mubr.msk.f32.mxu0 %vm6144_vm1, %v6128_v0 }
 0x480   : > { %4066 = vst.msk [vmem:[#allocation6 + $0x78] sm:$0xff] %vm4050_vm11, %v4033_v63  ;;  %v4032_v6 = vmax.f32 %v3930_v3, 0.0  ;;  %v8440_v3 = vrot.slane %v4164_v35, 6 }
 0x481   : > { %v3309_v7 = vpop.permute.xlu0 %3308 }
 0x482   : > { %4065 = vst.msk [vmem:[#allocation6 + $0x70] sm:$0xff] %vm4050_vm11, %v4032_v6  ;;  %v3442_v8 = vpop.permute.xlu1 %3441 }
 0x483   : > { %3376 = vst.msk [vmem:[#allocation5 + $0xe8] sm:$0xff] %vm3346_vm7, %v3309_v7  ;;  %v8444_v7 = vrot.slane %v4163_v60, 7 }
 0x484   : > { %3510 = vst.msk [vmem:[#allocation5 + $0xe0] sm:$0xff] %vm3481_vm8, %v3442_v8 }
 0x485   : > { %v2913_v11 = vpop.permute.xlu0 %2912  ;;  %v4281_v53 = vsel %vm4197_vm0, %v8444_v7, %v8475_v57 }
 0x486   : > { %2978 = vst.msk [vmem:[#allocation5 + $0xf8] sm:$0xff] %vm2946_vm4, %v2913_v11  ;;  %v3046_v12 = vpop.permute.xlu1 %3045  ;;  %v4297_v11 = vsel %vm4179_vm2, %v8440_v3, %v8444_v7  ;;  %vm4213_vm4 = vcmask 261249  }
 0x487   : > { %3112 = vst.msk [vmem:[#allocation5 + $0xf0] sm:$0xff] %vm3081_vm5, %v3046_v12 }
 0x489   : > { %v3444_v29 = vpop.permute.xlu0 %3443  ;;  %v4097_v25 = vld [vmem:[#allocation6 + $0x70] ss:$2 sm:$0xff]  ;;  %v4129_v52 = vld [vmem:[#allocation6 + $0x71] ss:$2 sm:$0xff] }
 0x48a   : > { %3511 = vst.msk [vmem:[#allocation5 + $0xe8] sm:$0xff] %vm3481_vm8, %v3444_v29  ;;  %v3576_v13 = vpop.permute.xlu1 %3575  ;;  %v4153_v10 = vmax.f32 %v4097_v25, %v4129_v52 }
 0x48b   : > { %3644 = vst.msk [vmem:[#allocation5 + $0xe0] sm:$0xff] %vm3615_vm9, %v3576_v13 }
 0x48c   : > { %v4165_v36 = vmax.f32 %v4152_v31, %v4153_v10 }
 0x48d   : > { %v3048_v14 = vpop.permute.xlu0 %3047 }
 0x48e   : > { %3113 = vst.msk [vmem:[#allocation5 + $0xf8] sm:$0xff] %vm3081_vm5, %v3048_v14  ;;  %v3180_v16 = vpop.permute.xlu1 %3179  ;;  %v8442_v5 = vrot.slane %v4165_v36, 5  ;;  %vm4229_vm5 = vcmask 392450  }
 0x48f   : > { %3246 = vst.msk [vmem:[#allocation5 + $0xf0] sm:$0xff] %vm3215_vm6, %v3180_v16 }
 0x490   : > { %v4298_v12 = vsel %vm4182_vm3, %v8442_v5, %v4297_v11  ;;  %v4330_v11 = vld [vmem:[%s9206_s5 + $0x78] sm:$0xff] }
 0x491   : > { %v3578_v18 = vpop.permute.xlu0 %3577  ;;  %5717 = vmatpush3.msra.mxu0 %v4330_v11 }
 0x492   : > { %3645 = vst.msk [vmem:[#allocation5 + $0xe8] sm:$0xff] %vm3615_vm9, %v3578_v18  ;;  %v3182_v24 = vpop.permute.xlu1 %3181  ;;  %v3676_v9 = vld [vmem:[#allocation5 + $0xe0] sm:$0xff]  ;;  %5718 = vmatprep.subr.mxu0 %v6128_v0 }
 0x493   : > { %3247 = vst.msk [vmem:[#allocation5 + $0xf8] sm:$0xff] %vm3215_vm6, %v3182_v24  ;;  %5710 = vmatprep.mubr.msk.f32.mxu1 %vm3696_vm10, %v3676_v9  ;;  %vm4245_vm6 = vcmask 523651  }
 0x495   : > { %v3311_v40 = vpop.permute.xlu0 %3310 }
 0x496   : > { %3377 = vst.msk [vmem:[#allocation5 + $0xf0] sm:$0xff] %vm3346_vm7, %v3311_v40  ;;  %v3313_v62 = vpop.permute.xlu1 %3312 }
 0x497   : > { %3378 = vst.msk [vmem:[#allocation5 + $0xf8] sm:$0xff] %vm3346_vm7, %v3313_v62  ;;  %vm4261_vm7 = vcmask 654852  }
 0x499   : > { %v3446_v28 = vpop.permute.xlu0 %3445  ;;  %v3677_v54 = vld [vmem:[#allocation5 + $0xe8] sm:$0xff] }
 0x49a   : > { %3512 = vst.msk [vmem:[#allocation5 + $0xf0] sm:$0xff] %vm3481_vm8, %v3446_v28  ;;  %v3448_v47 = vpop.permute.xlu1 %3447  ;;  %5711 = vmatmul.mubr.msk.f32.gmra.mxu1 %vm3696_vm10, %v3677_v54 }
 0x49b   : > { %3513 = vst.msk [vmem:[#allocation5 + $0xf8] sm:$0xff] %vm3481_vm8, %v3448_v47  ;;  %v5694_v37 = vpop.f32.mrf.mxu1  ;;  %vm4277_vm8 = vcmask 786053  }
 0x49c   : > { %v3945_v43 = vadd.f32 %v5694_v37, %v8123_v48 }
 0x49d   : > { %v3939_v30 = vpop.f32.mrf.mxu1  ;;  %v3580_v19 = vpop.permute.xlu0 %3579 }
 0x49e   : > { %v4035_v27 = vmax.f32 %v3945_v43, 0.0  ;;  %v3940_v38 = vadd.f32 %v8123_v48, %v3939_v30  ;;  %3646 = vst.msk [vmem:[#allocation5 + $0xf0] sm:$0xff] %vm3615_vm9, %v3580_v19  ;;  %v3582_v39 = vpop.permute.xlu1 %3581  ;;  %v8434_v48 = vld [vmem:[%s9205_s4] ss:$0 sm:$0xff] }
 0x49f   : > { %3647 = vst.msk [vmem:[#allocation5 + $0xf8] sm:$0xff] %vm3615_vm9, %v3582_v39  ;;  %vm4293_vm9 = vcmask 917254  }
 0x4a0   : > { %4068 = vst.msk [vmem:[#allocation6 + $0x88] sm:$0xff] %vm4050_vm11, %v4035_v27  ;;  %v4034_v58 = vmax.f32 %v3940_v38, 0.0 }
 0x4a2   : > { %4067 = vst.msk [vmem:[#allocation6 + $0x80] sm:$0xff] %vm4050_vm11, %v4034_v58 }
 0x4a5   : > { %v3678_v22 = vld [vmem:[#allocation5 + $0xf0] sm:$0xff] }
 0x4a6   : > { %5713 = vmatprep.mubr.msk.f32.mxu1 %vm3696_vm10, %v3678_v22  ;;  %v3679_v42 = vld [vmem:[#allocation5 + $0xf8] sm:$0xff] }
 0x4a7   : > { %5714 = vmatmul.mubr.msk.f32.gmra.mxu1 %vm3696_vm10, %v3679_v42  ;;  %vm4309_vm10 = vcmask 1048455  }
 0x4a8   : > { %5783 = vmatprep.mubr.msk.f32.mxu1 %vm6144_vm1, %v6128_v0 }
 0x4a9   : > { %v4099_v23 = vld [vmem:[#allocation6 + $0x80] ss:$2 sm:$0xff]  ;;  %v4131_v49 = vld [vmem:[#allocation6 + $0x81] ss:$2 sm:$0xff] }
 0x4aa   : > { %v4154_v32 = vmax.f32 %v4099_v23, %v4131_v49  ;;  %v4201_v23 = vsel %vm4182_vm3, %v8444_v7, %v8475_v57 }
 0x4ab   : > { %v4202_v36 = vsel %vm4185_vm12, %v8440_v3, %v4201_v23  ;;  %v5262_v23 = vld [vmem:[%s9206_s5 + $0xb0] sm:$0xff] }
 0x4ac   : > { %v4203_v60 = vsel %vm4188_vm13, %v8442_v5, %v4202_v36 }
 0x4bb   : > { %v5697_v4 = vpop.f32.mrf.mxu1 }
 0x4bc   : > { %v3955_v34 = vadd.f32 %v8434_v48, %v5697_v4 }
 0x4bd   : > { %v3949_v44 = vpop.f32.mrf.mxu1 }
 0x4be   : > { %v4037_v46 = vmax.f32 %v3955_v34, 0.0  ;;  %v3950_v21 = vadd.f32 %v8434_v48, %v3949_v44 }
 0x4c0   : > { %4070 = vst.msk [vmem:[#allocation6 + $0x98] sm:$0xff] %vm4050_vm11, %v4037_v46  ;;  %v4036_v51 = vmax.f32 %v3950_v21, 0.0 }
 0x4c2   : > { %4069 = vst.msk [vmem:[#allocation6 + $0x90] sm:$0xff] %vm4050_vm11, %v4036_v51 }
 0x4c9   : > { %v4101_v59 = vld [vmem:[#allocation6 + $0x90] ss:$2 sm:$0xff]  ;;  %v4133_v61 = vld [vmem:[#allocation6 + $0x91] ss:$2 sm:$0xff] }
 0x4ca   : > { %v4155_v63 = vmax.f32 %v4101_v59, %v4133_v61 }
 0x4cc   : > { %v4166_v6 = vmax.f32 %v4154_v32, %v4155_v63 }
 0x4ce   : > { %v8446_v8 = vrot.slane %v4166_v6, 4  ;;  %v4217_v6 = vsel %vm4185_vm12, %v8444_v7, %v8475_v57 }
 0x4d0   : > { %v4299_v29 = vsel %vm4185_vm12, %v8446_v8, %v4298_v12  ;;  %v4204_v61 = vsel %vm4191_vm14, %v8446_v8, %v4203_v60  ;;  %v5271_v12 = vld [vmem:[%s9206_s5 + $0xf8] sm:$0xff] }
 0x4d1   : > { %5752 = vmatpush3.msra.mxu1 %v5271_v12 }
 0x4d2   : > { %5753 = vmatprep.subr.mxu1 %v6128_v0 }
 0x4db   : > { %v5700_v13 = vpop.f32.mrf.mxu1 }
 0x4dc   : > { %v3965_v14 = vadd.f32 %v8434_v48, %v5700_v13 }
 0x4dd   : > { %v3959_v16 = vpop.f32.mrf.mxu1 }
 0x4de   : > { %v4039_v18 = vmax.f32 %v3965_v14, 0.0  ;;  %v3960_v24 = vadd.f32 %v8434_v48, %v3959_v16 }
 0x4e0   : > { %4072 = vst.msk [vmem:[#allocation6 + $0xa8] sm:$0xff] %vm4050_vm11, %v4039_v18  ;;  %v4038_v9 = vmax.f32 %v3960_v24, 0.0  ;;  %v4329_v24 = vld [vmem:[%s9206_s5 + $0x70] sm:$0xff] }
 0x4e1   : > { %5719 = vmatpush3.msra.mxu0 %v4329_v24 }
 0x4e2   : > { %4071 = vst.msk [vmem:[#allocation6 + $0xa0] sm:$0xff] %vm4050_vm11, %v4038_v9  ;;  %v5270_v9 = vld [vmem:[%s9206_s5 + $0xf0] sm:$0xff]  ;;  %5720 = vmatprep.subr.mxu0 %v6128_v0 }
 0x4e3   : > { %5754 = vmatpush3.msra.mxu1 %v5270_v9 }
 0x4e4   : > { %5755 = vmatprep.subr.mxu1 %v6128_v0 }
 0x4e9   : > { %v4103_v43 = vld [vmem:[#allocation6 + $0xa0] ss:$2 sm:$0xff]  ;;  %v4135_v30 = vld [vmem:[#allocation6 + $0xa1] ss:$2 sm:$0xff] }
 0x4ea   : > { %v4156_v38 = vmax.f32 %v4103_v43, %v4135_v30  ;;  %v4249_v30 = vsel %vm4191_vm14, %v8444_v7, %v8475_v57 }
 0x4fb   : > { %v5703_v40 = vpop.f32.mrf.mxu1 }
 0x4fc   : > { %v3975_v62 = vadd.f32 %v8434_v48, %v5703_v40  ;;  %v4233_v40 = vsel %vm4188_vm13, %v8444_v7, %v8475_v57 }
 0x4fd   : > { %v3969_v28 = vpop.f32.mrf.mxu1 }
 0x4fe   : > { %v4041_v54 = vmax.f32 %v3975_v62, 0.0  ;;  %v3970_v47 = vadd.f32 %v8434_v48, %v3969_v28  ;;  %v4234_v62 = vsel %vm4191_vm14, %v8440_v3, %v4233_v40 }
 0x4ff   : > { %v4235_v28 = vsel %vm4194_vm15, %v8442_v5, %v4234_v62  ;;  %v4318_v62 = vld [vmem:[%s9206_s5 + $0x18] sm:$0xff] }
 0x500   : > { %4074 = vst.msk [vmem:[#allocation6 + $0xb8] sm:$0xff] %vm4050_vm11, %v4041_v54  ;;  %v4040_v37 = vmax.f32 %v3970_v47, 0.0  ;;  %v4236_v54 = vsel %vm4197_vm0, %v8446_v8, %v4235_v28  ;;  %v4328_v47 = vld [vmem:[%s9206_s5 + $0x68] sm:$0xff]  ;;  %v5259_v28 = vld [vmem:[%s9206_s5 + $0x98] sm:$0xff] }
 0x501   : > { %5721 = vmatpush3.msra.mxu0 %v4328_v47 }
 0x502   : > { %4073 = vst.msk [vmem:[#allocation6 + $0xb0] sm:$0xff] %vm4050_vm11, %v4040_v37  ;;  %v5269_v37 = vld [vmem:[%s9206_s5 + $0xe8] sm:$0xff]  ;;  %5722 = vmatprep.subr.mxu0 %v6128_v0 }
 0x503   : > { %5756 = vmatpush3.msra.mxu1 %v5269_v37  ;;  %v4317_v37 = vld [vmem:[%s9206_s5 + $0x10] sm:$0xff] }
 0x504   : > { %5757 = vmatprep.subr.mxu1 %v6128_v0 }
 0x509   : > { %v4105_v19 = vld [vmem:[#allocation6 + $0xb0] ss:$2 sm:$0xff]  ;;  %v4137_v27 = vld [vmem:[#allocation6 + $0xb1] ss:$2 sm:$0xff] }
 0x50a   : > { %v4157_v39 = vmax.f32 %v4105_v19, %v4137_v27  ;;  %v4250_v27 = vsel %vm4194_vm15, %v8440_v3, %v4249_v30 }
 0x50c   : > { %v4167_v58 = vmax.f32 %v4156_v38, %v4157_v39  ;;  %v4251_v39 = vsel %vm4197_vm0, %v8442_v5, %v4250_v27 }
 0x50e   : > { %v8463_v22 = vrot.slane %v4167_v58, 3  ;;  %v4327_v58 = vld [vmem:[%s9206_s5 + $0x60] sm:$0xff] }
 0x50f   : > { %5723 = vmatpush3.msra.mxu0 %v4327_v58  ;;  %v4315_v58 = vld [vmem:[%s9206_s5] sm:$0xff] }
 0x510   : > { %v4300_v42 = vsel %vm4188_vm13, %v8463_v22, %v4299_v29  ;;  %v4205_v32 = vsel %vm4194_vm15, %v8463_v22, %v4204_v61  ;;  %v4218_v29 = vsel %vm4188_vm13, %v8440_v3, %v4217_v6  ;;  %5724 = vmatprep.subr.mxu0 %v6128_v0  ;;  %v5261_v6 = vld [vmem:[%s9206_s5 + $0xa8] sm:$0xff]  ;;  %v4252_v30 = vsel %vm4179_vm2, %v8463_v22, %v8446_v8 }
 0x511   : > { %v4219_v14 = vsel %vm4191_vm14, %v8442_v5, %v4218_v29 }
 0x512   : > { %v4220_v16 = vsel %vm4194_vm15, %v8446_v8, %v4219_v14 }
 0x513   : > { %v4221_v18 = vsel %vm4197_vm0, %v8463_v22, %v4220_v16  ;;  %v4319_v16 = vld [vmem:[%s9206_s5 + $0x20] sm:$0xff] }
 0x51b   : > { %v5706_v4 = vpop.f32.mrf.mxu1 }
 0x51c   : > { %v3985_v34 = vadd.f32 %v8434_v48, %v5706_v4  ;;  %v4326_v4 = vld [vmem:[%s9206_s5 + $0x58] sm:$0xff] }
 0x51d   : > { %v3979_v44 = vpop.f32.mrf.mxu1  ;;  %5725 = vmatpush3.msra.mxu0 %v4326_v4  ;;  %v5256_v4 = vld [vmem:[%s9206_s5 + $0x80] sm:$0xff] }
 0x51e   : > { %v4043_v46 = vmax.f32 %v3985_v34, 0.0  ;;  %v3980_v21 = vadd.f32 %v8434_v48, %v3979_v44  ;;  %5726 = vmatprep.subr.mxu0 %v6128_v0 }
 0x520   : > { %4076 = vst.msk [vmem:[#allocation6 + $0xc8] sm:$0xff] %vm4050_vm11, %v4043_v46  ;;  %v4042_v33 = vmax.f32 %v3980_v21, 0.0  ;;  %v5267_v46 = vld [vmem:[%s9206_s5 + $0xd8] sm:$0xff]  ;;  %v4325_v21 = vld [vmem:[%s9206_s5 + $0x50] sm:$0xff] }
 0x521   : > { %5727 = vmatpush3.msra.mxu0 %v4325_v21  ;;  %v4282_v21 = vsel %vm4179_vm2, %v8442_v5, %v8440_v3 }
 0x522   : > { %4075 = vst.msk [vmem:[#allocation6 + $0xc0] sm:$0xff] %vm4050_vm11, %v4042_v33  ;;  %5728 = vmatprep.subr.mxu0 %v6128_v0 }
 0x529   : > { %v4107_v15 = vld [vmem:[#allocation6 + $0xc0] ss:$2 sm:$0xff]  ;;  %v4139_v10 = vld [vmem:[#allocation6 + $0xc1] ss:$2 sm:$0xff] }
 0x52a   : > { %v4158_v1 = vmax.f32 %v4107_v15, %v4139_v10 }
 0x53b   : > { %v5709_v50 = vpop.f32.mrf.mxu1 }
 0x53c   : > { %v3995_v51 = vadd.f32 %v8434_v48, %v5709_v50  ;;  %v4265_v50 = vsel %vm4194_vm15, %v8444_v7, %v8475_v57 }
 0x53d   : > { %v3989_v2 = vpop.f32.mrf.mxu1 }
 0x53e   : > { %v4045_v25 = vmax.f32 %v3995_v51, 0.0  ;;  %v3990_v52 = vadd.f32 %v8434_v48, %v3989_v2  ;;  %v4266_v51 = vsel %vm4197_vm0, %v8440_v3, %v4265_v50  ;;  %v5266_v2 = vld [vmem:[%s9206_s5 + $0xd0] sm:$0xff] }
 0x540   : > { %4078 = vst.msk [vmem:[#allocation6 + $0xd8] sm:$0xff] %vm4050_vm11, %v4045_v25  ;;  %v4044_v41 = vmax.f32 %v3990_v52, 0.0  ;;  %v4324_v25 = vld [vmem:[%s9206_s5 + $0x48] sm:$0xff] }
 0x541   : > { %v5265_v52 = vld [vmem:[%s9206_s5 + $0xc8] sm:$0xff]  ;;  %5729 = vmatpush3.msra.mxu0 %v4324_v25 }
 0x542   : > { %4077 = vst.msk [vmem:[#allocation6 + $0xd0] sm:$0xff] %vm4050_vm11, %v4044_v41  ;;  %v4323_v41 = vld [vmem:[%s9206_s5 + $0x40] sm:$0xff]  ;;  %5730 = vmatprep.subr.mxu0 %v6128_v0 }
 0x543   : > { %5731 = vmatpush3.msra.mxu0 %v4323_v41 }
 0x544   : > { %5732 = vmatprep.subr.mxu0 %v6128_v0 }
 0x549   : > { %v4109_v26 = vld [vmem:[#allocation6 + $0xd0] ss:$2 sm:$0xff]  ;;  %v4141_v31 = vld [vmem:[#allocation6 + $0xd1] ss:$2 sm:$0xff] }
 0x54a   : > { %v4159_v35 = vmax.f32 %v4109_v26, %v4141_v31  ;;  %v4322_v26 = vld [vmem:[%s9206_s5 + $0x38] sm:$0xff] }
 0x54b   : > { %v5263_v31 = vld [vmem:[%s9206_s5 + $0xb8] sm:$0xff]  ;;  %5733 = vmatpush3.msra.mxu0 %v4322_v26 }
 0x54c   : > { %v4168_v49 = vmax.f32 %v4158_v1, %v4159_v35  ;;  %5734 = vmatprep.subr.mxu0 %v6128_v0  ;;  %v4321_v35 = vld [vmem:[%s9206_s5 + $0x30] sm:$0xff] }
 0x54d   : > { %5735 = vmatpush3.msra.mxu0 %v4321_v35  ;;  %v5302_v35 = vld [vmem:[%s9206_s5 + $0x1f0] sm:$0xff] }
 0x54e   : > { %v8484_v59 = vrot.slane %v4168_v49, 2  ;;  %5736 = vmatprep.subr.mxu0 %v6128_v0 }
 0x550   : > { %v4206_v63 = vsel %vm4197_vm0, %v8484_v59, %v4205_v32  ;;  %v8506_v13 = vsel %vm4191_vm14, %v8484_v59, %v4300_v42  ;;  %v5268_v42 = vld [vmem:[%s9206_s5 + $0xe0] sm:$0xff]  ;;  %v4180_v32 = vsel %vm4179_vm2, %v8444_v7, %v8475_v57 }
 0x551   : > { %4207 = vrot.lane.b32.xlu0 %v4206_v63, %s6132_s29  ;;  %5758 = vmatpush3.msra.mxu1 %v5268_v42  ;;  %v4320_v63 = vld [vmem:[%s9206_s5 + $0x28] sm:$0xff]  ;;  %v4183_v12 = vsel %vm4182_vm3, %v8440_v3, %v4180_v32  ;;  %v4267_v42 = vsel %vm4179_vm2, %v8446_v8, %v8442_v5  ;;  %v5299_v32 = vld [vmem:[%s9206_s5 + $0x1d8] sm:$0xff] }
 0x552   : > { %5759 = vmatprep.subr.mxu1 %v6128_v0  ;;  %5737 = vmatpush3.msra.mxu0 %v4320_v63  ;;  %v4186_v29 = vsel %vm4185_vm12, %v8442_v5, %v4183_v12  ;;  %v5281_v63 = vld [vmem:[%s9206_s5 + $0x148] sm:$0xff] }
 0x553   : > { %5760 = vmatpush3.msra.mxu1 %v5267_v46  ;;  %5738 = vmatprep.subr.mxu0 %v6128_v0  ;;  %v5297_v12 = vld [vmem:[%s9206_s5 + $0x1c8] sm:$0xff] }
 0x554   : > { %5761 = vmatprep.subr.mxu1 %v6128_v0  ;;  %5739 = vmatpush3.msra.mxu0 %v4319_v16  ;;  %v5277_v16 = vld [vmem:[%s9206_s5 + $0x128] sm:$0xff] }
 0x555   : > { %4223 = vrot.lane.b32.xlu0 %v4221_v18, %s6136_s23  ;;  %5762 = vmatpush3.msra.mxu1 %v5266_v2  ;;  %v5260_v18 = vld [vmem:[%s9206_s5 + $0xa0] sm:$0xff] }
 0x556   : > { %5763 = vmatprep.subr.mxu1 %v6128_v0  ;;  %5740 = vmatprep.subr.mxu0 %v6128_v0 }
 0x557   : > { %5764 = vmatpush3.msra.mxu1 %v5265_v52  ;;  %5741 = vmatpush3.msra.mxu0 %v4318_v62  ;;  %v5292_v62 = vld [vmem:[%s9206_s5 + $0x1a0] sm:$0xff] }
 0x558   : > { %5765 = vmatprep.subr.mxu1 %v6128_v0  ;;  %5742 = vmatprep.subr.mxu0 %v6128_v0 }
 0x559   : > { %4239 = vrot.lane.b32.xlu0 %v4236_v54, %s6138_s28  ;;  %5766 = vmatpush3.msra.mxu1 %v5264_v55  ;;  %v4237_v54 = vsel %vm4179_vm2, %v8484_v59, %v8463_v22 }
 0x55a   : > { %v5712_v43 = vpop.f32.mrf.mxu1  ;;  %5767 = vmatprep.subr.mxu1 %v6128_v0  ;;  %5743 = vmatpush3.msra.mxu0 %v4317_v37  ;;  %v5290_v37 = vld [vmem:[%s9206_s5 + $0x190] sm:$0xff] }
 0x55b   : > { %v4005_v19 = vadd.f32 %v8434_v48, %v5712_v43  ;;  %5768 = vmatpush3.msra.mxu1 %v5263_v31  ;;  %v5258_v43 = vld [vmem:[%s9206_s5 + $0x90] sm:$0xff]  ;;  %5744 = vmatprep.subr.mxu0 %v6128_v0 }
 0x55c   : > { %v3999_v38 = vpop.f32.mrf.mxu1  ;;  %5769 = vmatprep.subr.mxu1 %v6128_v0  ;;  %v5286_v31 = vld [vmem:[%s9206_s5 + $0x170] sm:$0xff] }
 0x55d   : > { %v4047_v34 = vmax.f32 %v4005_v19, 0.0  ;;  %v4000_v44 = vadd.f32 %v8434_v48, %v3999_v38  ;;  %4255 = vrot.lane.b32.xlu0 %v4251_v39, %s6140_s25  ;;  %5770 = vmatpush3.msra.mxu1 %v5262_v23  ;;  %v4253_v19 = vsel %vm4182_vm3, %v8484_v59, %v4252_v30  ;;  %v4316_v38 = vld [vmem:[%s9206_s5 + $0x8] sm:$0xff]  ;;  %v5284_v23 = vld [vmem:[%s9206_s5 + $0x160] sm:$0xff] }
 0x55e   : > { %5771 = vmatprep.subr.mxu1 %v6128_v0  ;;  %v5257_v39 = vld [vmem:[%s9206_s5 + $0x88] sm:$0xff]  ;;  %5745 = vmatpush3.msra.mxu0 %v4316_v38  ;;  %v5319_v38 = vld [vmem:[%s9206_s5 + $0x278] sm:$0xff] }
 0x55f   : > { %4080 = vst.msk [vmem:[#allocation6 + $0xe8] sm:$0xff] %vm4050_vm11, %v4047_v34  ;;  %v4046_v33 = vmax.f32 %v4000_v44, 0.0  ;;  %5772 = vmatpush3.msra.mxu1 %v5261_v6  ;;  %v4268_v34 = vsel %vm4182_vm3, %v8463_v22, %v4267_v42  ;;  %5746 = vmatprep.subr.mxu0 %v6128_v0  ;;  %v5298_v6 = vld [vmem:[%s9206_s5 + $0x1d0] sm:$0xff]  ;;  %v5289_v30 = vld [vmem:[%s9206_s5 + $0x188] sm:$0xff]  ;;  %v5335_v42 = vld [vmem:[%s9206_s5 + $0x2f8] sm:$0xff] }
 0x560   : > { %5773 = vmatprep.subr.mxu1 %v6128_v0  ;;  %v4269_v44 = vsel %vm4185_vm12, %v8484_v59, %v4268_v34  ;;  %5747 = vmatpush3.msra.mxu0 %v4315_v58  ;;  %v5318_v58 = vld [vmem:[%s9206_s5 + $0x270] sm:$0xff] }
 0x561   : > { %4079 = vst.msk [vmem:[#allocation6 + $0xe0] sm:$0xff] %vm4050_vm11, %v4046_v33  ;;  %4271 = vrot.lane.b32.xlu0 %v4266_v51, %s9217_s17  ;;  %5774 = vmatpush3.msra.mxu1 %v5260_v18  ;;  %v4283_v33 = vsel %vm4182_vm3, %v8446_v8, %v4282_v21  ;;  %v5294_v18 = vld [vmem:[%s9206_s5 + $0x1b0] sm:$0xff]  ;;  %v5315_v21 = vld [vmem:[%s9206_s5 + $0x258] sm:$0xff] }
 0x562   : > { %5775 = vmatprep.subr.mxu1 %v6128_v0  ;;  %5786 = vmatprep.subr.mxu0 %v6128_v0  ;;  %v4284_v50 = vsel %vm4185_vm12, %v8463_v22, %v4283_v33  ;;  %v5334_v34 = vld [vmem:[%s9206_s5 + $0x2f0] sm:$0xff]  ;;  %v5332_v33 = vld [vmem:[%s9206_s5 + $0x2e0] sm:$0xff] }
 0x563   : > { %5776 = vmatpush3.msra.mxu1 %v5259_v28  ;;  %v4285_v3 = vsel %vm4188_vm13, %v8484_v59, %v4284_v50  ;;  %v5274_v28 = vld [vmem:[%s9206_s5 + $0x110] sm:$0xff] }
 0x564   : > { %5777 = vmatprep.subr.mxu1 %v6128_v0  ;;  %v5314_v50 = vld [vmem:[%s9206_s5 + $0x250] sm:$0xff] }
 0x565   : > { %4287 = vrot.lane.b32.xlu0 %v4281_v53, %s9216_s24  ;;  %5778 = vmatpush3.msra.mxu1 %v5258_v43  ;;  %v5272_v43 = vld [vmem:[%s9206_s5 + $0x100] sm:$0xff] }
 0x566   : > { %5779 = vmatprep.subr.mxu1 %v6128_v0 }
 0x567   : > { %v5715_v56 = vpop.f32.mrf.mxu1  ;;  %5780 = vmatpush3.msra.mxu1 %v5257_v39 }
 0x568   : > { %v4015_v20 = vadd.f32 %v8434_v48, %v5715_v56  ;;  %v4143_v1 = vld [vmem:[#allocation6 + $0xe1] ss:$2 sm:$0xff]  ;;  %5781 = vmatprep.subr.mxu1 %v6128_v0 }
 0x569   : > { %4303 = vrot.lane.b32.xlu0 %v8475_v57, %s9215_s21  ;;  %v4009_v17 = vpop.f32.mrf.mxu1  ;;  %v4189_v57 = vsel %vm4188_vm13, %v8446_v8, %v4186_v29  ;;  %5782 = vmatpush3.msra.mxu1 %v5256_v4  ;;  %v5279_v29 = vld [vmem:[%s9206_s5 + $0x138] sm:$0xff]  ;;  %v5317_v4 = vld [vmem:[%s9206_s5 + $0x268] sm:$0xff] }
 0x56a   : > { %v4049_v45 = vmax.f32 %v4015_v20, 0.0  ;;  %v4010_v15 = vadd.f32 %v8434_v48, %v4009_v17  ;;  %v4111_v48 = vld [vmem:[#allocation6 + $0xe0] ss:$2 sm:$0xff]  ;;  %v4192_v14 = vsel %vm4191_vm14, %v8463_v22, %v4189_v57  ;;  %5821 = vmatprep.subr.mxu1 %v6128_v0  ;;  %v5278_v57 = vld [vmem:[%s9206_s5 + $0x130] sm:$0xff] }
 0x56b   : > { %v4160_v60 = vmax.f32 %v4111_v48, %v4143_v1  ;;  %v4195_v24 = vsel %vm4194_vm15, %v8484_v59, %v4192_v14  ;;  %v5303_v48 = vld [vmem:[%s9206_s5 + $0x1f8] sm:$0xff]  ;;  %v5285_v1 = vld [vmem:[%s9206_s5 + $0x168] sm:$0xff] }
 0x56c   : > { %4082 = vst.msk [vmem:[#allocation6 + $0xf8] sm:$0xff] %vm4050_vm11, %v4049_v45  ;;  %v4048_v10 = vmax.f32 %v4010_v15, 0.0  ;;  %v5287_v15 = vld [vmem:[%s9206_s5 + $0x178] sm:$0xff] }
 0x56d   : > { %v5295_v14 = vld [vmem:[%s9206_s5 + $0x1b8] sm:$0xff] }
 0x56e   : > { %4081 = vst.msk [vmem:[#allocation6 + $0xf0] sm:$0xff] %vm4050_vm11, %v4048_v10 }
 0x575   : > { %v4113_v49 = vld [vmem:[#allocation6 + $0xf0] ss:$2 sm:$0xff]  ;;  %v4145_v36 = vld [vmem:[#allocation6 + $0xf1] ss:$2 sm:$0xff] }
 0x576   : > { %v4161_v61 = vmax.f32 %v4113_v49, %v4145_v36  ;;  %v5301_v49 = vld [vmem:[%s9206_s5 + $0x1e8] sm:$0xff]  ;;  %v5283_v36 = vld [vmem:[%s9206_s5 + $0x158] sm:$0xff] }
 0x578   : > { %v4169_v11 = vmax.f32 %v4160_v60, %v4161_v61  ;;  %v5300_v60 = vld [vmem:[%s9206_s5 + $0x1e0] sm:$0xff]  ;;  %v5282_v61 = vld [vmem:[%s9206_s5 + $0x150] sm:$0xff] }
 0x57a   : > { %v4196_v7 = vrot.slane %v4169_v11, 1  ;;  %v5280_v11 = vld [vmem:[%s9206_s5 + $0x140] sm:$0xff] }
 0x57c   : > { %4209 = vrot.lane.b32.xlu1 %v4196_v7, %s6132_s29  ;;  %v4198_v9 = vsel %vm4197_vm0, %v4196_v7, %v4195_v24  ;;  %v4222_v40 = vsel %vm4179_vm2, %v4196_v7, %v8484_v59  ;;  %v4238_v47 = vsel %vm4182_vm3, %v4196_v7, %v4237_v54  ;;  %v4254_v27 = vsel %vm4185_vm12, %v4196_v7, %v4253_v19  ;;  %v5276_v24 = vld [vmem:[%s9206_s5 + $0x120] sm:$0xff]  ;;  %v5291_v54 = vld [vmem:[%s9206_s5 + $0x198] sm:$0xff] }
 0x57d   : > { %4200 = vst.msk [vmem:[#allocation7] sm:$0xff] %vm4050_vm11, %v4198_v9  ;;  %v4270_v46 = vsel %vm4188_vm13, %v4196_v7, %v4269_v44  ;;  %v4286_v5 = vsel %vm4191_vm14, %v4196_v7, %v4285_v3  ;;  %v4302_v8 = vsel %vm4194_vm15, %v4196_v7, %v8506_v13  ;;  %vm4215_vm11 = vcmask 254080   ;;  %v5296_v7 = vld [vmem:[%s9206_s5 + $0x1c0] sm:$0xff]  ;;  %v5293_v9 = vld [vmem:[%s9206_s5 + $0x1a8] sm:$0xff]  ;;  %v5331_v3 = vld [vmem:[%s9206_s5 + $0x2d8] sm:$0xff] }
 0x57e   : > { %vm4231_vm2 = vcmask 386304   ;;  %vm4247_vm3 = vcmask 518528   ;;  %vm4263_vm12 = vcmask 650752   ;;  %vm4279_vm13 = vcmask 782976   ;;  %v5316_v44 = vld [vmem:[%s9206_s5 + $0x260] sm:$0xff] }
 0x57f   : > { %vm4295_vm14 = vcmask 915200   ;;  %vm4311_vm15 = vcmask 1047424   ;;  %vm5039_vm0 = vcmask 261120  }
 0x580   : > { %4225 = vrot.lane.b32.xlu1 %v4222_v40, %s6136_s23  ;;  %v5275_v40 = vld [vmem:[%s9206_s5 + $0x118] sm:$0xff]  ;;  %s5369_s23 = sshll.u32 %s6217_s13, 4  ;;  %s6145_s13 = smov [#allocation8]  }
 0x581   : > { %s9166_s29 = scalar_lea.hbm %s9210_s9, %s5369_s23 }
 0x584   : > { %4241 = vrot.lane.b32.xlu1 %v4238_v47, %s6138_s28  ;;  %v5273_v47 = vld [vmem:[%s9206_s5 + $0x108] sm:$0xff] }
 0x588   : > { %4257 = vrot.lane.b32.xlu1 %v4254_v27, %s6140_s25  ;;  %s9222_s25 = smov 80   ;;  %v5288_v27 = vld [vmem:[%s9206_s5 + $0x180] sm:$0xff] }
 0x58c   : > { %4273 = vrot.lane.b32.xlu1 %v4270_v46, %s9222_s25  ;;  %v5333_v46 = vld [vmem:[%s9206_s5 + $0x2e8] sm:$0xff]  ;;  %s6070_s25 = sshll.u32 %s6145_s13, 4  ;;  %s6071_s25 = int_to_ptr.vmem [resolvable:$false] %s6070_s25 }
 0x590   : > { %4289 = vrot.lane.b32.xlu1 %v4286_v5, %s9223_s14  ;;  %v5313_v5 = vld [vmem:[%s9206_s5 + $0x248] sm:$0xff]  ;;  %s323_s14 = sand.u32 1, %s6118_s10  }
 0x591   : > { %s324_s27 = scalar_lea.vmem [#allocation8], %s323_s14  ;;  %s5116_s17 = scalar_lea.sflag [#allocation9], %s323_s14 }
 0x592   : > { %s5128_s28 = sshll.u32 %s324_s27, 4  ;;  %s5129_s28 = int_to_ptr.vmem [resolvable:$true] %s5128_s28 }
 0x593   : > { %s6066_s24 = scalar_lea.vmem %s5129_s28, 16  ;;  %p6073_p0 = scmp.lt.s32.totalorder %s5129_s28, %s6071_s25 }
 0x594   : > { %4305 = vrot.lane.b32.xlu1 %v4302_v8, %s9224_s26  ;;  %v5330_v8 = vld [vmem:[%s9206_s5 + $0x2d0] sm:$0xff]  ;;  %p6067_p11 = scmp.ne.s32.totalorder %s5129_s28, %s6066_s24  ;;  %s6072_s26 = scalar_lea.vmem %s6071_s25, 32 }
 0x595   : > { %p6074_p1 = scmp.lt.s32.totalorder %s6072_s26, %s6066_s24 }
 0x596   : > { %p6068_p12 = pnand %p6067_p11, %p6234_p5 }
 0x597   : > { %p6075_p2 = por %p6074_p1, %p6073_p0 }
 0x598   : > { %p6069_p13 = pneg %p6068_p12 }
 0x59a   : > { %p6076_p3 = pnand %p6075_p2, %p6069_p13 }
 0x5c3   : > { %v4208_v51 = vpop.permute.xlu0 %4207 }
 0x5c4   : > { %4214 = vst.msk [vmem:[#allocation7 - $0x1] sm:$0xfe] %vm4213_vm4, %v4208_v51  ;;  %v5312_v51 = vld [vmem:[%s9206_s5 + $0x240] sm:$0xff] }
 0x5c7   : > { %v4224_v22 = vpop.permute.xlu0 %4223 }
 0x5c8   : > { %4230 = vst.msk [vmem:[#allocation7 - $0x2] sm:$0xfc] %vm4229_vm5, %v4224_v22  ;;  %v5329_v22 = vld [vmem:[%s9206_s5 + $0x2c8] sm:$0xff] }
 0x5cb   : > { %v4240_v2 = vpop.permute.xlu0 %4239 }
 0x5cc   : > { %4246 = vst.msk [vmem:[#allocation7 - $0x3] sm:$0xf8] %vm4245_vm6, %v4240_v2  ;;  %v5311_v2 = vld [vmem:[%s9206_s5 + $0x238] sm:$0xff] }
 0x5cf   : > { %v4256_v59 = vpop.permute.xlu0 %4255 }
 0x5d0   : > { %4262 = vst.msk [vmem:[#allocation7 - $0x4] sm:$0xf0] %vm4261_vm7, %v4256_v59  ;;  %v5328_v59 = vld [vmem:[%s9206_s5 + $0x2c0] sm:$0xff] }
 0x5d3   : > { %v4272_v25 = vpop.permute.xlu0 %4271 }
 0x5d4   : > { %4278 = vst.msk [vmem:[#allocation7 - $0x5] sm:$0xe0] %vm4277_vm8, %v4272_v25  ;;  %v5310_v25 = vld [vmem:[%s9206_s5 + $0x230] sm:$0xff] }
 0x5d7   : > { %v4288_v52 = vpop.permute.xlu0 %4287 }
 0x5d8   : > { %4294 = vst.msk [vmem:[#allocation7 - $0x6] sm:$0xc0] %vm4293_vm9, %v4288_v52  ;;  %v5327_v52 = vld [vmem:[%s9206_s5 + $0x2b8] sm:$0xff] }
 0x5db   : > { %v4304_v13 = vpop.permute.xlu0 %4303 }
 0x5dc   : > { %4310 = vst.msk [vmem:[#allocation7 - $0x7] sm:$0x80] %vm4309_vm10, %v4304_v13  ;;  %v5309_v13 = vld [vmem:[%s9206_s5 + $0x228] sm:$0xff] }
 0x5ee   : > { %v4210_v41 = vpop.permute.xlu1 %4209 }
 0x5ef   : > { %4216 = vst.msk [vmem:[#allocation7 + $0x7] sm:$0x1] %vm4215_vm11, %v4210_v41  ;;  %v5326_v41 = vld [vmem:[%s9206_s5 + $0x2b0] sm:$0xff] }
 0x5f2   : > { %v4226_v53 = vpop.permute.xlu1 %4225 }
 0x5f3   : > { %4232 = vst.msk [vmem:[#allocation7 + $0x6] sm:$0x3] %vm4231_vm2, %v4226_v53  ;;  %v5308_v53 = vld [vmem:[%s9206_s5 + $0x220] sm:$0xff] }
 0x5f6   : > { %v4242_v55 = vpop.permute.xlu1 %4241 }
 0x5f7   : > { %4248 = vst.msk [vmem:[#allocation7 + $0x5] sm:$0x7] %vm4247_vm3, %v4242_v55  ;;  %v5325_v55 = vld [vmem:[%s9206_s5 + $0x2a8] sm:$0xff] }
 0x5fa   : > { %v4258_v56 = vpop.permute.xlu1 %4257 }
 0x5fb   : > { %4264 = vst.msk [vmem:[#allocation7 + $0x4] sm:$0xf] %vm4263_vm12, %v4258_v56  ;;  %v5307_v56 = vld [vmem:[%s9206_s5 + $0x218] sm:$0xff] }
 0x5fe   : > { %v4274_v20 = vpop.permute.xlu1 %4273 }
 0x5ff   : > { %4280 = vst.msk [vmem:[#allocation7 + $0x3] sm:$0x1f] %vm4279_vm13, %v4274_v20  ;;  %v5324_v20 = vld [vmem:[%s9206_s5 + $0x2a0] sm:$0xff] }
 0x602   : > { %v4290_v17 = vpop.permute.xlu1 %4289 }
 0x603   : > { %4296 = vst.msk [vmem:[#allocation7 + $0x2] sm:$0x3f] %vm4295_vm14, %v4290_v17  ;;  %v5306_v17 = vld [vmem:[%s9206_s5 + $0x210] sm:$0xff] }
 0x606   : > { %v4306_v45 = vpop.permute.xlu1 %4305 }
 0x607   : > { %4312 = vst.msk [vmem:[#allocation7 + $0x1] sm:$0x7f] %vm4311_vm15, %v4306_v45  ;;  %v5323_v45 = vld [vmem:[%s9206_s5 + $0x298] sm:$0xff] }
 0x60e   : > { %v8736_v10 = vld [vmem:[#allocation7] sm:$0xff] }
 0x60f   : > { %5749 = vmatmul.mubr.f32.vlgmr.msra.gmra.mxu0 %v8736_v10  ;;  %v4420_v26 = vrot.slane %v8736_v10, 1  ;;  %v4510_v19 = vrot.slane %v8736_v10, 2  ;;  %v4600_v39 = vrot.slane %v8736_v10, 3 }
 0x610   : > { %5787 = vmatpush3.msra.mxu0 %v5287_v15  ;;  %5818 = vmatprep.mubr.msk.f32.mxu0 %vm6144_vm1, %v6128_v0  ;;  %v5305_v15 = vld [vmem:[%s9206_s5 + $0x208] sm:$0xff] }
 0x611   : > { %5788 = vmatprep.subr.mxu0 %v6128_v0  ;;  %5784 = vmatmul.mubr.f32.vlgmr.msra.gmra.mxu1 %v4420_v26  ;;  %v5322_v26 = vld [vmem:[%s9206_s5 + $0x290] sm:$0xff] }
 0x612   : > { %5789 = vmatpush3.msra.mxu0 %v5286_v31  ;;  %5822 = vmatpush3.msra.mxu1 %v5303_v48  ;;  %v5304_v31 = vld [vmem:[%s9206_s5 + $0x200] sm:$0xff]  ;;  %v5321_v48 = vld [vmem:[%s9206_s5 + $0x288] sm:$0xff] }
 0x613   : > { %5790 = vmatprep.subr.mxu0 %v6128_v0  ;;  %5823 = vmatprep.subr.mxu1 %v6128_v0 }
 0x614   : > { %5791 = vmatpush3.msra.mxu0 %v5285_v1  ;;  %5824 = vmatpush3.msra.mxu1 %v5302_v35  ;;  %v4690_v1 = vrot.slane %v8736_v10, 4  ;;  %v5320_v35 = vld [vmem:[%s9206_s5 + $0x280] sm:$0xff] }
 0x615   : > { %5792 = vmatprep.subr.mxu0 %v6128_v0  ;;  %5825 = vmatprep.subr.mxu1 %v6128_v0 }
 0x616   : > { %5793 = vmatpush3.msra.mxu0 %v5284_v23  ;;  %5826 = vmatpush3.msra.mxu1 %v5301_v49  ;;  %v5351_v23 = vld [vmem:[%s9206_s5 + $0x378] sm:$0xff]  ;;  %v4780_v49 = vrot.slane %v8736_v10, 5 }
 0x617   : > { %5794 = vmatprep.subr.mxu0 %v6128_v0  ;;  %5827 = vmatprep.subr.mxu1 %v6128_v0 }
 0x618   : > { %5795 = vmatpush3.msra.mxu0 %v5283_v36  ;;  %5828 = vmatpush3.msra.mxu1 %v5300_v60  ;;  %v5350_v36 = vld [vmem:[%s9206_s5 + $0x370] sm:$0xff]  ;;  %v5367_v60 = vld [vmem:[%s9206_s5 + $0x3f8] sm:$0xff] }
 0x619   : > { %5796 = vmatprep.subr.mxu0 %v6128_v0  ;;  %5829 = vmatprep.subr.mxu1 %v6128_v0 }
 0x61a   : > { %5797 = vmatpush3.msra.mxu0 %v5282_v61  ;;  %5830 = vmatpush3.msra.mxu1 %v5299_v32  ;;  %v5349_v61 = vld [vmem:[%s9206_s5 + $0x368] sm:$0xff]  ;;  %v5366_v32 = vld [vmem:[%s9206_s5 + $0x3f0] sm:$0xff] }
 0x61b   : > { %5798 = vmatprep.subr.mxu0 %v6128_v0  ;;  %5831 = vmatprep.subr.mxu1 %v6128_v0 }
 0x61c   : > { %5799 = vmatpush3.msra.mxu0 %v5281_v63  ;;  %5832 = vmatpush3.msra.mxu1 %v5298_v6  ;;  %v5348_v63 = vld [vmem:[%s9206_s5 + $0x360] sm:$0xff]  ;;  %v5365_v6 = vld [vmem:[%s9206_s5 + $0x3e8] sm:$0xff] }
 0x61d   : > { %5800 = vmatprep.subr.mxu0 %v6128_v0  ;;  %5833 = vmatprep.subr.mxu1 %v6128_v0 }
 0x61e   : > { %5801 = vmatpush3.msra.mxu0 %v5280_v11  ;;  %5834 = vmatpush3.msra.mxu1 %v5297_v12  ;;  %v5347_v11 = vld [vmem:[%s9206_s5 + $0x358] sm:$0xff]  ;;  %v5364_v12 = vld [vmem:[%s9206_s5 + $0x3e0] sm:$0xff] }
 0x61f   : > { %5802 = vmatprep.subr.mxu0 %v6128_v0  ;;  %5835 = vmatprep.subr.mxu1 %v6128_v0 }
 0x620   : > { %5803 = vmatpush3.msra.mxu0 %v5279_v29  ;;  %5836 = vmatpush3.msra.mxu1 %v5296_v7  ;;  %v5346_v29 = vld [vmem:[%s9206_s5 + $0x350] sm:$0xff]  ;;  %v5363_v7 = vld [vmem:[%s9206_s5 + $0x3d8] sm:$0xff] }
 0x621   : > { %5804 = vmatprep.subr.mxu0 %v6128_v0  ;;  %5837 = vmatprep.subr.mxu1 %v6128_v0 }
 0x622   : > { %5805 = vmatpush3.msra.mxu0 %v5278_v57  ;;  %5838 = vmatpush3.msra.mxu1 %v5295_v14  ;;  %v5345_v57 = vld [vmem:[%s9206_s5 + $0x348] sm:$0xff]  ;;  %v5362_v14 = vld [vmem:[%s9206_s5 + $0x3d0] sm:$0xff] }
 0x623   : > { %5806 = vmatprep.subr.mxu0 %v6128_v0  ;;  %5839 = vmatprep.subr.mxu1 %v6128_v0 }
 0x624   : > { %5807 = vmatpush3.msra.mxu0 %v5277_v16  ;;  %5840 = vmatpush3.msra.mxu1 %v5294_v18  ;;  %v5344_v16 = vld [vmem:[%s9206_s5 + $0x340] sm:$0xff]  ;;  %v5361_v18 = vld [vmem:[%s9206_s5 + $0x3c8] sm:$0xff] }
 0x625   : > { %5808 = vmatprep.subr.mxu0 %v6128_v0  ;;  %5841 = vmatprep.subr.mxu1 %v6128_v0 }
 0x626   : > { %5809 = vmatpush3.msra.mxu0 %v5276_v24  ;;  %5842 = vmatpush3.msra.mxu1 %v5293_v9  ;;  %v5343_v24 = vld [vmem:[%s9206_s5 + $0x338] sm:$0xff]  ;;  %v5360_v9 = vld [vmem:[%s9206_s5 + $0x3c0] sm:$0xff] }
 0x627   : > { %5810 = vmatprep.subr.mxu0 %v6128_v0  ;;  %5843 = vmatprep.subr.mxu1 %v6128_v0 }
 0x628   : > { %5811 = vmatpush3.msra.mxu0 %v5275_v40  ;;  %5844 = vmatpush3.msra.mxu1 %v5292_v62  ;;  %v5342_v40 = vld [vmem:[%s9206_s5 + $0x330] sm:$0xff]  ;;  %v5359_v62 = vld [vmem:[%s9206_s5 + $0x3b8] sm:$0xff] }
 0x629   : > { %5812 = vmatprep.subr.mxu0 %v6128_v0  ;;  %5845 = vmatprep.subr.mxu1 %v6128_v0 }
 0x62a   : > { %5813 = vmatpush3.msra.mxu0 %v5274_v28  ;;  %5846 = vmatpush3.msra.mxu1 %v5291_v54  ;;  %v5341_v28 = vld [vmem:[%s9206_s5 + $0x328] sm:$0xff]  ;;  %v5358_v54 = vld [vmem:[%s9206_s5 + $0x3b0] sm:$0xff] }
 0x62b   : > { %5814 = vmatprep.subr.mxu0 %v6128_v0  ;;  %5847 = vmatprep.subr.mxu1 %v6128_v0 }
 0x62c   : > { %5815 = vmatpush3.msra.mxu0 %v5273_v47  ;;  %5848 = vmatpush3.msra.mxu1 %v5290_v37  ;;  %v5340_v47 = vld [vmem:[%s9206_s5 + $0x320] sm:$0xff]  ;;  %v5357_v37 = vld [vmem:[%s9206_s5 + $0x3a8] sm:$0xff] }
 0x62d   : > { %5816 = vmatprep.subr.mxu0 %v6128_v0  ;;  %5849 = vmatprep.subr.mxu1 %v6128_v0 }
 0x62e   : > { %5817 = vmatpush3.msra.mxu0 %v5272_v43  ;;  %5850 = vmatpush3.msra.mxu1 %v5289_v30  ;;  %v5339_v43 = vld [vmem:[%s9206_s5 + $0x318] sm:$0xff]  ;;  %v5356_v30 = vld [vmem:[%s9206_s5 + $0x3a0] sm:$0xff] }
 0x62f   : > { %5819 = vmatmul.mubr.f32.vlgmr.msra.gmra.mxu0 %v4510_v19  ;;  %5851 = vmatprep.subr.mxu1 %v6128_v0  ;;  %v5338_v19 = vld [vmem:[%s9206_s5 + $0x310] sm:$0xff] }
 0x630   : > { %5856 = vmatprep.subr.mxu0 %v6128_v0  ;;  %5852 = vmatpush3.msra.mxu1 %v5288_v27  ;;  %v5355_v27 = vld [vmem:[%s9206_s5 + $0x398] sm:$0xff] }
 0x631   : > { %5853 = vmatprep.mubr.msk.f32.mxu1 %vm6144_vm1, %v6128_v0  ;;  %5857 = vmatpush3.msra.mxu0 %v5319_v38  ;;  %v5337_v38 = vld [vmem:[%s9206_s5 + $0x308] sm:$0xff] }
 0x632   : > { %5854 = vmatmul.mubr.f32.vlgmr.msra.gmra.mxu1 %v4600_v39  ;;  %5858 = vmatprep.subr.mxu0 %v6128_v0  ;;  %v5354_v39 = vld [vmem:[%s9206_s5 + $0x390] sm:$0xff] }
 0x633   : > { %5891 = vmatprep.subr.mxu1 %v6128_v0  ;;  %5859 = vmatpush3.msra.mxu0 %v5318_v58  ;;  %v5336_v58 = vld [vmem:[%s9206_s5 + $0x300] sm:$0xff] }
 0x634   : > { %5892 = vmatpush3.msra.mxu1 %v5335_v42  ;;  %5860 = vmatprep.subr.mxu0 %v6128_v0  ;;  %v5353_v42 = vld [vmem:[%s9206_s5 + $0x388] sm:$0xff] }
 0x635   : > { %5893 = vmatprep.subr.mxu1 %v6128_v0  ;;  %5861 = vmatpush3.msra.mxu0 %v5317_v4  ;;  %v4870_v4 = vrot.slane %v8736_v10, 6 }
 0x636   : > { %5894 = vmatpush3.msra.mxu1 %v5334_v34  ;;  %5862 = vmatprep.subr.mxu0 %v6128_v0  ;;  %v5352_v34 = vld [vmem:[%s9206_s5 + $0x380] sm:$0xff] }
 0x637   : > { %5895 = vmatprep.subr.mxu1 %v6128_v0  ;;  %5863 = vmatpush3.msra.mxu0 %v5316_v44  ;;  %v4960_v44 = vrot.slane %v8736_v10, 7  ;;  %v5036_v10 = vld [vmem:[%s9208_s7 + $0x10] sm:$0xff] }
 0x638   : > { %5896 = vmatpush3.msra.mxu1 %v5333_v46  ;;  %5864 = vmatprep.subr.mxu0 %v6128_v0  ;;  %v5037_v46 = vld [vmem:[%s9208_s7 + $0x18] sm:$0xff] }
 0x639   : > { %5897 = vmatprep.subr.mxu1 %v6128_v0  ;;  %5865 = vmatpush3.msra.mxu0 %v5315_v21  ;;  %v5035_v21 = vld [vmem:[%s9208_s7 + $0x8] sm:$0xff] }
 0x63a   : > { %5898 = vmatpush3.msra.mxu1 %v5332_v33  ;;  %5866 = vmatprep.subr.mxu0 %v6128_v0  ;;  %v5034_v33 = vld [vmem:[%s9208_s7] sm:$0xff] }
 0x63b   : > { %5899 = vmatprep.subr.mxu1 %v6128_v0  ;;  %5867 = vmatpush3.msra.mxu0 %v5314_v50  ;;  %v4314_v50 = vld [vmem:[%s9207_s6] sm:$0x1] }
 0x63c   : > { %5900 = vmatpush3.msra.mxu1 %v5331_v3  ;;  %5868 = vmatprep.subr.mxu0 %v6128_v0 }
 0x63d   : > { %5901 = vmatprep.subr.mxu1 %v6128_v0  ;;  %5869 = vmatpush3.msra.mxu0 %v5313_v5 }
 0x63e   : > { %5902 = vmatpush3.msra.mxu1 %v5330_v8  ;;  %5870 = vmatprep.subr.mxu0 %v6128_v0 }
 0x63f   : > { %5903 = vmatprep.subr.mxu1 %v6128_v0  ;;  %5871 = vmatpush3.msra.mxu0 %v5312_v51 }
 0x640   : > { %5904 = vmatpush3.msra.mxu1 %v5329_v22  ;;  %5872 = vmatprep.subr.mxu0 %v6128_v0 }
 0x641   : > { %5905 = vmatprep.subr.mxu1 %v6128_v0  ;;  %5873 = vmatpush3.msra.mxu0 %v5311_v2 }
 0x642   : > { %5906 = vmatpush3.msra.mxu1 %v5328_v59  ;;  %5874 = vmatprep.subr.mxu0 %v6128_v0 }
 0x643   : > { %5907 = vmatprep.subr.mxu1 %v6128_v0  ;;  %5875 = vmatpush3.msra.mxu0 %v5310_v25 }
 0x644   : > { %5908 = vmatpush3.msra.mxu1 %v5327_v52  ;;  %5876 = vmatprep.subr.mxu0 %v6128_v0 }
 0x645   : > { %5909 = vmatprep.subr.mxu1 %v6128_v0  ;;  %5877 = vmatpush3.msra.mxu0 %v5309_v13 }
 0x646   : > { %5910 = vmatpush3.msra.mxu1 %v5326_v41  ;;  %5878 = vmatprep.subr.mxu0 %v6128_v0 }
 0x647   : > { %5911 = vmatprep.subr.mxu1 %v6128_v0  ;;  %5879 = vmatpush3.msra.mxu0 %v5308_v53 }
 0x648   : > { %5912 = vmatpush3.msra.mxu1 %v5325_v55  ;;  %5880 = vmatprep.subr.mxu0 %v6128_v0 }
 0x649   : > { %5913 = vmatprep.subr.mxu1 %v6128_v0  ;;  %5881 = vmatpush3.msra.mxu0 %v5307_v56 }
 0x64a   : > { %5914 = vmatpush3.msra.mxu1 %v5324_v20  ;;  %5882 = vmatprep.subr.mxu0 %v6128_v0 }
 0x64b   : > { %5915 = vmatprep.subr.mxu1 %v6128_v0  ;;  %5883 = vmatpush3.msra.mxu0 %v5306_v17 }
 0x64c   : > { %5916 = vmatpush3.msra.mxu1 %v5323_v45  ;;  %5884 = vmatprep.subr.mxu0 %v6128_v0 }
 0x64d   : > { %5917 = vmatprep.subr.mxu1 %v6128_v0  ;;  %5885 = vmatpush3.msra.mxu0 %v5305_v15 }
 0x64e   : > { %5918 = vmatpush3.msra.mxu1 %v5322_v26  ;;  %5886 = vmatprep.subr.mxu0 %v6128_v0 }
 0x64f   : > { %5919 = vmatprep.subr.mxu1 %v6128_v0  ;;  %5887 = vmatpush3.msra.mxu0 %v5304_v31 }
 0x650   : > { %5888 = vmatprep.mubr.msk.f32.mxu0 %vm6144_vm1, %v6128_v0  ;;  %5920 = vmatpush3.msra.mxu1 %v5321_v48 }
 0x651   : > { %5889 = vmatmul.mubr.f32.vlgmr.msra.gmra.mxu0 %v4690_v1  ;;  %5921 = vmatprep.subr.mxu1 %v6128_v0 }
 0x652   : > { %5926 = vmatprep.subr.mxu0 %v6128_v0  ;;  %5922 = vmatpush3.msra.mxu1 %v5320_v35 }
 0x653   : > { %5923 = vmatprep.mubr.msk.f32.mxu1 %vm6144_vm1, %v6128_v0  ;;  %5927 = vmatpush3.msra.mxu0 %v5351_v23 }
 0x654   : > { %5924 = vmatmul.mubr.f32.vlgmr.msra.gmra.mxu1 %v4780_v49  ;;  %5928 = vmatprep.subr.mxu0 %v6128_v0  ;;  %v5038_v49 = vld [vmem:[%s9209_s8] sm:$0x1] }
 0x655   : > { %5961 = vmatprep.subr.mxu1 %v6128_v0  ;;  %5929 = vmatpush3.msra.mxu0 %v5350_v36 }
 0x656   : > { %5962 = vmatpush3.msra.mxu1 %v5367_v60  ;;  %5930 = vmatprep.subr.mxu0 %v6128_v0 }
 0x657   : > { %5963 = vmatprep.subr.mxu1 %v6128_v0  ;;  %5931 = vmatpush3.msra.mxu0 %v5349_v61 }
 0x658   : > { %5964 = vmatpush3.msra.mxu1 %v5366_v32  ;;  %5932 = vmatprep.subr.mxu0 %v6128_v0 }
 0x659   : > { %5965 = vmatprep.subr.mxu1 %v6128_v0  ;;  %5933 = vmatpush3.msra.mxu0 %v5348_v63 }
 0x65a   : > { %5966 = vmatpush3.msra.mxu1 %v5365_v6  ;;  %5934 = vmatprep.subr.mxu0 %v6128_v0 }
 0x65b   : > { %5967 = vmatprep.subr.mxu1 %v6128_v0  ;;  %5935 = vmatpush3.msra.mxu0 %v5347_v11 }
 0x65c   : > { %5968 = vmatpush3.msra.mxu1 %v5364_v12  ;;  %5936 = vmatprep.subr.mxu0 %v6128_v0 }
 0x65d   : > { %5969 = vmatprep.subr.mxu1 %v6128_v0  ;;  %5937 = vmatpush3.msra.mxu0 %v5346_v29 }
 0x65e   : > { %5970 = vmatpush3.msra.mxu1 %v5363_v7  ;;  %5938 = vmatprep.subr.mxu0 %v6128_v0 }
 0x65f   : > { %5971 = vmatprep.subr.mxu1 %v6128_v0  ;;  %5939 = vmatpush3.msra.mxu0 %v5345_v57 }
 0x660   : > { %5972 = vmatpush3.msra.mxu1 %v5362_v14  ;;  %5940 = vmatprep.subr.mxu0 %v6128_v0 }
 0x661   : > { %5973 = vmatprep.subr.mxu1 %v6128_v0  ;;  %5941 = vmatpush3.msra.mxu0 %v5344_v16 }
 0x662   : > { %5974 = vmatpush3.msra.mxu1 %v5361_v18  ;;  %5942 = vmatprep.subr.mxu0 %v6128_v0 }
 0x663   : > { %5975 = vmatprep.subr.mxu1 %v6128_v0  ;;  %5943 = vmatpush3.msra.mxu0 %v5343_v24 }
 0x664   : > { %5976 = vmatpush3.msra.mxu1 %v5360_v9  ;;  %5944 = vmatprep.subr.mxu0 %v6128_v0 }
 0x665   : > { %5977 = vmatprep.subr.mxu1 %v6128_v0  ;;  %5945 = vmatpush3.msra.mxu0 %v5342_v40 }
 0x666   : > { %5978 = vmatpush3.msra.mxu1 %v5359_v62  ;;  %5946 = vmatprep.subr.mxu0 %v6128_v0 }
 0x667   : > { %5979 = vmatprep.subr.mxu1 %v6128_v0  ;;  %5947 = vmatpush3.msra.mxu0 %v5341_v28 }
 0x668   : > { %5980 = vmatpush3.msra.mxu1 %v5358_v54  ;;  %5948 = vmatprep.subr.mxu0 %v6128_v0 }
 0x669   : > { %5981 = vmatprep.subr.mxu1 %v6128_v0  ;;  %5949 = vmatpush3.msra.mxu0 %v5340_v47 }
 0x66a   : > { %5982 = vmatpush3.msra.mxu1 %v5357_v37  ;;  %5950 = vmatprep.subr.mxu0 %v6128_v0 }
 0x66b   : > { %5983 = vmatprep.subr.mxu1 %v6128_v0  ;;  %5951 = vmatpush3.msra.mxu0 %v5339_v43 }
 0x66c   : > { %5984 = vmatpush3.msra.mxu1 %v5356_v30  ;;  %5952 = vmatprep.subr.mxu0 %v6128_v0 }
 0x66d   : > { %5985 = vmatprep.subr.mxu1 %v6128_v0  ;;  %5953 = vmatpush3.msra.mxu0 %v5338_v19 }
 0x66e   : > { %5986 = vmatpush3.msra.mxu1 %v5355_v27  ;;  %5954 = vmatprep.subr.mxu0 %v6128_v0 }
 0x66f   : > { %5987 = vmatprep.subr.mxu1 %v6128_v0  ;;  %5955 = vmatpush3.msra.mxu0 %v5337_v38 }
 0x670   : > { %5988 = vmatpush3.msra.mxu1 %v5354_v39  ;;  %5956 = vmatprep.subr.mxu0 %v6128_v0 }
 0x671   : > { %5989 = vmatprep.subr.mxu1 %v6128_v0  ;;  %5957 = vmatpush3.msra.mxu0 %v5336_v58 }
 0x672   : > { %5958 = vmatprep.mubr.msk.f32.mxu0 %vm6144_vm1, %v6128_v0  ;;  %5990 = vmatpush3.msra.mxu1 %v5353_v42 }
 0x673   : > { %5959 = vmatmul.mubr.f32.vlgmr.msra.gmra.mxu0 %v4870_v4  ;;  %5991 = vmatprep.subr.mxu1 %v6128_v0 }
 0x674   : > { %5992 = vmatpush3.msra.mxu1 %v5352_v34  ;;  %5993 = vmatprep.mubr.msk.f32.mxu1 %vm6144_vm1, %v6128_v0 }
 0x675   : > { %5994 = vmatmul.mubr.f32.vlgmr.msra.gmra.mxu1 %v4960_v44  ;;  %5996 = vmatprep.subr.mxu0 %v6128_v0 }
 0x676   : > { %6004 = vmatprep.mubr.msk.f32.mxu0 %vm6144_vm1, %v6128_v0  ;;  %5997 = vmatpush3.msra.mxu0 %v5037_v46  ;;  %vm5113_vm1 = vcmask 73728  }
 0x677   : > { %5998 = vmatprep.subr.mxu0 %v6128_v0 }
 0x678   : > { %5999 = vmatpush3.msra.mxu0 %v5036_v10 }
 0x679   : > { %6000 = vmatprep.subr.mxu0 %v6128_v0 }
 0x67a   : > { %6001 = vmatpush3.msra.mxu0 %v5035_v21 }
 0x67b   : > { %6002 = vmatprep.subr.mxu0 %v6128_v0 }
 0x67c   : > { %6003 = vmatpush3.msra.mxu0 %v5034_v33 }
 0x6cf   : > { %v4397_v3 = vpop.f32.mrf.mxu0 }
 0x6d0   : > { %v4401_v5 = vadd.f32 %v4397_v3, %v4314_v50 }
 0x6d1   : > { %v5750_v8 = vpop.f32.mrf.mxu0  ;;  %v4488_v51 = vpop.f32.mrf.mxu1 }
 0x6d2   : > { %v4492_v22 = vadd.f32 %v4488_v51, %v4401_v5 }
 0x6d3   : > { %v5785_v2 = vpop.f32.mrf.mxu1 }
 0x6ef   : > { %v4578_v59 = vpop.f32.mrf.mxu0 }
 0x6f0   : > { %v4582_v56 = vadd.f32 %v4578_v59, %v4492_v22 }
 0x6f1   : > { %v5820_v25 = vpop.f32.mrf.mxu0 }
 0x6f2   : > { %v4668_v52 = vpop.f32.mrf.mxu1 }
 0x6f3   : > { %v4672_v20 = vadd.f32 %v4668_v52, %v4582_v56 }
 0x6f4   : > { %v5855_v13 = vpop.f32.mrf.mxu1 }
 0x711   : > { %v4758_v0 = vpop.f32.mrf.mxu0 }
 0x712   : > { %v4762_v17 = vadd.f32 %v4758_v0, %v4672_v20 }
 0x713   : > { %v5890_v41 = vpop.f32.mrf.mxu0 }
 0x714   : > { %v4848_v53 = vpop.f32.mrf.mxu1 }
 0x715   : > { %v4852_v45 = vadd.f32 %v4848_v53, %v4762_v17 }
 0x716   : > { %v5925_v55 = vpop.f32.mrf.mxu1 }
 0x733   : > { %v4938_v15 = vpop.f32.mrf.mxu0 }
 0x734   : > { %v4942_v26 = vadd.f32 %v4938_v15, %v4852_v45 }
 0x735   : > { %v5960_v31 = vpop.f32.mrf.mxu0  ;;  %v5028_v48 = vpop.f32.mrf.mxu1 }
 0x736   : > { %v5032_v1 = vadd.f32 %v5028_v48, %v4942_v26 }
 0x737   : > { %v5995_v35 = vpop.f32.mrf.mxu1 }
 0x738   : > { %v5033_v23 = vmax.f32 %v5032_v1, 0.0 }
 0x73a   : > { %6005 = vmatmul.mubr.msk.f32.vlgmr.msra.gmra.mxu0 %vm5039_vm0, %v5033_v23 }
 0x7fa   : > { %v5109_v36 = vpop.f32.mrf.mxu0 }
 0x7fb   : > { %v5110_v60 = vadd.f32 %v5109_v36, %v5038_v49 }
 0x7fc   : > { %v6006_v61 = vpop.f32.mrf.mxu0 }
 0x7fd   : > { %5114 = vst.msk [vmem:[%s324_s27] sm:$0x1] %vm5113_vm1, %v5110_v60 }
 0x7fe   : > { %6079 = shalt.err (!%p6076_p3)
}
 0x7ff   : > { %s6080_s16 = scalar_lea.hbm %s9166_s29, 16  ;;  %s6084_s27 = scalar_lea.hbm %s9210_s9, 32 }
 0x800   : > { %p6081_p4 = scmp.ne.s32.totalorder %s9166_s29, %s6080_s16  ;;  %p6085_p9 = scmp.lt.s32.totalorder %s9166_s29, %s9210_s9 }
 0x801   : > { %p6086_p10 = scmp.lt.s32.totalorder %s6084_s27, %s6080_s16 }
 0x802   : > { %p6082_p7 = pnand %p6081_p4, %p6234_p5 }
 0x803   : > { %p6087_p11 = por %p6086_p10, %p6085_p9 }
 0x804   : > { %p6083_p8 = pneg %p6082_p7 }
 0x806   : > { %p6088_p12 = pnand %p6087_p11, %p6083_p8 }
 0x808   : > { %6091 = shalt.err (!%p6088_p12)
}
 0x809   : > { %6007 = dma.vmem_to_hbm [thread:$0]  (%p6234_p5), %s5129_s28, 16, %s9166_s29, %s5116_s17  }
 0x80a PF: > { %p6013_p13 = scmp.ge.s32.totalorder %s6126_s12, 2  ;;  %s5140_s24 = sand.u32 1, %s6114_s30  }
 0x80b   : > { %s5141_s13 = scalar_lea.sflag [#allocation9], %s5140_s24 }
 0x80c   : > { %p6010_p0 = pnand %p6013_p13, %p6238_p6 }
 0x80e   : > { %p6011_p1 = pneg %p6010_p0 }
 0x810   : > { %6109 = dma.done.wait (%p6011_p1), %s5141_s13, 16  }
 0x811   : > { %6111 = vsyncadd (%p6011_p1), %s5141_s13, 4294967280  ;;  %p19_p2 = scmp.ge.s32.totalorder %s6221_s15, 4   ;;  %s9225_s30 = smov %s6118_s10 }
 0x812   : > { %s9226_s10 = smov %s6122_s11  ;;  %s9227_s11 = smov %s6232_s18 }
 0x813   : > { %s9228_s12 = smov %s6221_s15  ;;  %21 = sbr.rel (!%p19_p2) target bundleno = 3 (0x3), region = 131 }
 0x818   :  { %5145 = vsyncpa [#allocation9], 1 }
 0x819   :  { %5147 = vsyncpa [#allocation9 + $0x1], 1 }

</bundles_post_ra>
